<compile_context>
chip_gen: v7x
topology: tpu7x:2x2x1
jax: 0.10.0
libtpu: 0.0.40
codegen_flags: <defaults>
</compile_context>

<pallas_src>
import functools

import jax
import jax.numpy as jnp
from jax.experimental import pallas as pl
from jax.experimental.pallas import tpu as pltpu


def _round_up(x, m):
    return (x + m - 1) // m * m


def _pick_bt(batch):
    """Images per grid step: amortize step overhead, keep grid >= 2 (megacore)."""
    bt = min(8, batch)
    while bt > 1 and -(-batch // bt) < 2:
        bt //= 2
    return max(bt, 1)


# ----------------------------------------------------------------------------
# Fused conv + bias + ReLU + maxpool(2,2) kernel.
#
# Two modes, selected by the weight's leading (tap) dimension:
#   n_taps == 9 : 3x3 'same' conv.  xe/xo hold the spatially padded activation
#                 split into even/odd columns, flattened to (Hp*Wph, CinP);
#                 every tap is a contiguous row slice of the flat image.
#   n_taps == 1 : conv1 K-fold.  xe/xo are tap-major im2col images per output
#                 column parity, flattened to (H*Wph, Kp); one dot per parity.
# ----------------------------------------------------------------------------
def _conv_relu_pool_kernel(xe_ref, xo_ref, w_ref, b_ref, o_ref, acc_ref, *,
                           H, Wo, Wph, tch, bt, n_taps):
    srcs = (xe_ref, xo_ref)
    bias = b_ref[...]                                    # (1, CoutP) f32
    cout = o_ref.shape[-1]
    rows = bt * tch * Wph
    for ci in range(H // tch):                           # unrolled row chunks
        r0 = ci * tch
        hmax = None
        for p in (0, 1):                                 # output-column parity
            acc = None
            for t in range(n_taps):
                if n_taps == 1:
                    parity, kh, shift = p, 0, 0
                else:
                    kh, kw = divmod(t, 3)
                    shift, parity = divmod(p + kw, 2)
                start = (r0 + kh) * Wph + shift          # python int -> static slice
                lhs = srcs[parity][:, pl.ds(start, tch * Wph), :]
                lhs = lhs.reshape(rows, lhs.shape[-1])   # batch folds into M
                d = jnp.dot(lhs, w_ref[t], preferred_element_type=jnp.float32)
                acc = d if acc is None else acc + d
            if p == 0:
                acc_ref[...] = acc                       # stash parity-0 accumulator
            else:
                hmax = jnp.maximum(acc_ref[...], acc)    # horizontal 2-max
        # vertical 2-max over adjacent conv rows, bias + ReLU, one store per chunk.
        hm = hmax.reshape(bt * (tch // 2), 2 * Wph, cout)
        pooled = jnp.maximum(hm[:, :Wph, :], hm[:, Wph:, :])
        pooled = jnp.maximum(pooled[:, :Wo, :] + bias, 0.0)
        o_ref[:, pl.ds(r0 // 2, tch // 2), :, :] = (
            pooled.reshape(bt, tch // 2, Wo, cout).astype(o_ref.dtype))


def _conv_call(xe, xo, w, b, *, B, H, Wo, Wph, src_rows, cinp, coutp, tch, bt):
    Ho = H // 2
    kernel = functools.partial(_conv_relu_pool_kernel,
                               H=H, Wo=Wo, Wph=Wph, tch=tch, bt=bt,
                               n_taps=w.shape[0])
    return pl.pallas_call(
        kernel,
        out_shape=jax.ShapeDtypeStruct((B, Ho, Wo, coutp), jnp.bfloat16),
        grid_spec=pltpu.PrefetchScalarGridSpec(
            num_scalar_prefetch=0,
            grid=(B // bt,),
            in_specs=[
                pl.BlockSpec((bt, src_rows, cinp), lambda i: (i, 0, 0)),
                pl.BlockSpec((bt, src_rows, cinp), lambda i: (i, 0, 0)),
                pl.BlockSpec(w.shape, lambda i: (0, 0, 0)),
                pl.BlockSpec((1, coutp), lambda i: (0, 0)),
            ],
            out_specs=pl.BlockSpec((bt, Ho, Wo, coutp), lambda i: (i, 0, 0, 0)),
            scratch_shapes=[pltpu.VMEM((bt * tch * Wph, coutp), jnp.float32)],
        ),
        compiler_params=pltpu.CompilerParams(
            dimension_semantics=("parallel",)),
    )(xe, xo, w, b)


def conv1_im2col_relu_pool(x, wcol, b, *, tch, bt):
    """conv1: 3x3 'same' conv with the 9 taps x Cin folded into the reduction.

    x: (B,H,W,Cin) bf16, wcol: (1, Kp, CoutP) bf16, b: (1, CoutP) f32.
    Returns relu(conv + bias) max-pooled 2x2: (B, H//2, W//2, CoutP) bf16.
    """
    B, H, W, Cin = x.shape
    _, Kp, CoutP = wcol.shape
    Wo = W // 2
    Wph = _round_up(Wo, 8)
    assert H % tch == 0 and tch % 2 == 0 and B % bt == 0

    xp = jnp.pad(x, ((0, 0), (1, 1), (1, 1), (0, 0)))            # 'same' spatial pad
    taps = [xp[:, kh:kh + H, kw:kw + W, :]                        # tap-major im2col
            for kh in range(3) for kw in range(3)]
    cols = jnp.concatenate(taps, axis=-1)                         # (B, H, W, 9*Cin)
    cols = jnp.pad(cols, ((0, 0), (0, 0), (0, 0), (0, Kp - 9 * Cin)))
    xe = cols[:, :, 0::2, :]                                      # even output cols
    xo = cols[:, :, 1::2, :]                                      # odd  output cols
    if Wph > Wo:
        xe = jnp.pad(xe, ((0, 0), (0, 0), (0, Wph - Wo), (0, 0)))
        xo = jnp.pad(xo, ((0, 0), (0, 0), (0, Wph - Wo), (0, 0)))
    xe = xe.reshape(B, H * Wph, Kp)
    xo = xo.reshape(B, H * Wph, Kp)
    return _conv_call(xe, xo, wcol, b, B=B, H=H, Wo=Wo, Wph=Wph,
                      src_rows=H * Wph, cinp=Kp, coutp=CoutP, tch=tch, bt=bt)


def conv3x3_relu_pool(x, w9, b, *, tch, bt):
    """x: (B,H,W,Cin) bf16 NHWC -> relu(conv3x3 'same' + bias) -> maxpool 2x2.

    w9: (9, CinP, CoutP) bf16 tap-major, b: (1, CoutP) f32.
    Returns (B, H//2, W//2, CoutP) bf16.
    """
    B, H, W, Cin = x.shape
    _, CinP, CoutP = w9.shape
    Wo = W // 2
    Wph = _round_up(Wo + 1, 8)      # padded half-width (sublane aligned)
    Hp = H + 3                      # 1 top + 2 bottom zero rows keep slices in-bounds
    assert H % tch == 0 and tch % 2 == 0 and B % bt == 0

    xp = jnp.pad(x, ((0, 0), (1, 2), (1, 1), (0, CinP - Cin)))
    pad_u = Wph - (Wo + 1)
    xe = jnp.pad(xp[:, :, 0::2, :], ((0, 0), (0, 0), (0, pad_u), (0, 0)))
    xo = jnp.pad(xp[:, :, 1::2, :], ((0, 0), (0, 0), (0, pad_u), (0, 0)))
    xe = xe.reshape(B, Hp * Wph, CinP)
    xo = xo.reshape(B, Hp * Wph, CinP)
    return _conv_call(xe, xo, w9, b, B=B, H=H, Wo=Wo, Wph=Wph,
                      src_rows=Hp * Wph, cinp=CinP, coutp=CoutP, tch=tch, bt=bt)


# ----------------------------------------------------------------------------
# Fused fc1 (+ReLU) -> fc2 kernel; fc2 output lane-padded to 128.
# ----------------------------------------------------------------------------
def _fc_fused_kernel(a_ref, w1_ref, b1_ref, w2_ref, b2_ref, o_ref):
    h = jnp.dot(a_ref[...], w1_ref[...], preferred_element_type=jnp.float32)
    h = jnp.maximum(h + b1_ref[...], 0.0).astype(jnp.bfloat16)
    out = jnp.dot(h, w2_ref[...], preferred_element_type=jnp.float32)
    o_ref[...] = out + b2_ref[...]


def fc_fused(a, w1, b1, w2, b2):
    """relu(a @ w1 + b1) @ w2 + b2 with both GEMMs in one kernel.

    a: (M,K) bf16, w1: (K,N1) bf16, b1: (1,N1) f32,
    w2: (N1,N2) bf16 (N2 lane-padded), b2: (1,N2) f32 -> (M,N2) f32.
    """
    M, K = a.shape
    N1 = w1.shape[1]
    N2 = w2.shape[1]
    tm = M if M <= 512 else 512
    Mp = _round_up(M, tm)
    a_p = a if Mp == M else jnp.pad(a, ((0, Mp - M), (0, 0)))
    out = pl.pallas_call(
        _fc_fused_kernel,
        out_shape=jax.ShapeDtypeStruct((Mp, N2), jnp.float32),
        grid_spec=pltpu.PrefetchScalarGridSpec(
            num_scalar_prefetch=0,
            grid=(Mp // tm,),
            in_specs=[
                pl.BlockSpec((tm, K), lambda i: (i, 0)),
                pl.BlockSpec((K, N1), lambda i: (0, 0)),
                pl.BlockSpec((1, N1), lambda i: (0, 0)),
                pl.BlockSpec((N1, N2), lambda i: (0, 0)),
                pl.BlockSpec((1, N2), lambda i: (0, 0)),
            ],
            out_specs=pl.BlockSpec((tm, N2), lambda i: (i, 0)),
        ),
        compiler_params=pltpu.CompilerParams(
            dimension_semantics=("parallel",)),
    )(a_p, w1, b1, w2, b2)
    return out if Mp == M else out[:M]


# ----------------------------------------------------------------------------
# Parameters (PyTorch-like init) + one-time kernel-layout repack
# ----------------------------------------------------------------------------
def init_params(key):
    ks = jax.random.split(key, 10)

    def conv_w(k, cout, cin):
        bound = 1.0 / (cin * 9.0) ** 0.5
        return jax.random.uniform(k, (cout, cin, 3, 3), jnp.float32, -bound, bound)

    def lin_w(k, cout, cin):
        bound = 1.0 / float(cin) ** 0.5
        return jax.random.uniform(k, (cout, cin), jnp.float32, -bound, bound)

    return {
        "conv1_w": conv_w(ks[0], 32, 3),
        "conv1_b": jax.random.uniform(ks[1], (32,), jnp.float32, -0.1, 0.1),
        "conv2_w": conv_w(ks[2], 64, 32),
        "conv2_b": jax.random.uniform(ks[3], (64,), jnp.float32, -0.1, 0.1),
        "conv3_w": conv_w(ks[4], 128, 64),
        "conv3_b": jax.random.uniform(ks[5], (128,), jnp.float32, -0.1, 0.1),
        "fc1_w": lin_w(ks[6], 256, 128 * 4 * 4),
        "fc1_b": jax.random.uniform(ks[7], (256,), jnp.float32, -0.1, 0.1),
        "fc2_w": lin_w(ks[8], 10, 256),
        "fc2_b": jax.random.uniform(ks[9], (10,), jnp.float32, -0.1, 0.1),
    }


_C1_OUT = 64     # conv1 output channel pad (32 real) == conv2's reduction dim
_C_PAD = 128     # conv2/conv3 output channel pad (lane-dense)
_FC2_PAD = 128   # fc2 output lane pad (10 real)


def prepare_kernel_params(p):
    """One-time (outside jit) repack of PyTorch-layout params into kernel layout."""
    # conv1: fold (kh, kw, cin) into one reduction dim (27 -> 32), pad Cout to 64.
    w = p["conv1_w"]                                       # (32, 3, 3, 3) OIHW
    cout1, cin1 = w.shape[0], w.shape[1]
    k1 = _round_up(9 * cin1, 8)
    w1col = jnp.transpose(w, (2, 3, 1, 0)).reshape(9 * cin1, cout1)  # row=(kh*3+kw)*cin+c
    w1col = jnp.pad(w1col, ((0, k1 - 9 * cin1), (0, _C1_OUT - cout1)))
    c1w = w1col.reshape(1, k1, _C1_OUT).astype(jnp.bfloat16)
    c1b = jnp.pad(p["conv1_b"], (0, _C1_OUT - cout1)).reshape(1, _C1_OUT)

    def conv_pack(w, b, cin_p, cout_p):
        cout, cin = w.shape[0], w.shape[1]
        # (Cout,Cin,kh,kw) -> (kh,kw,Cin,Cout) -> (9,Cin,Cout), zero-pad, bf16
        w9 = jnp.transpose(w, (2, 3, 1, 0)).reshape(9, cin, cout)
        w9 = jnp.pad(w9, ((0, 0), (0, cin_p - cin), (0, cout_p - cout)))
        b_p = jnp.pad(b, (0, cout_p - cout)).reshape(1, cout_p)
        return w9.astype(jnp.bfloat16), b_p.astype(jnp.float32)

    c2w, c2b = conv_pack(p["conv2_w"], p["conv2_b"], _C1_OUT, _C_PAD)
    c3w, c3b = conv_pack(p["conv3_w"], p["conv3_b"], _C_PAD, _C_PAD)

    # fc1 consumes the flattened conv3 output; torch flattens NCHW (C,H,W) while
    # the kernels produce NHWC -> permute fc1's input columns once here.
    w1 = jnp.transpose(p["fc1_w"].reshape(256, 128, 4, 4),
                       (2, 3, 1, 0)).reshape(2048, 256)
    w2 = jnp.pad(p["fc2_w"].T, ((0, 0), (0, _FC2_PAD - 10)))
    b2 = jnp.pad(p["fc2_b"], (0, _FC2_PAD - 10)).reshape(1, _FC2_PAD)
    return {
        "c1w": c1w, "c1b": c1b.astype(jnp.float32),
        "c2w": c2w, "c2b": c2b,
        "c3w": c3w, "c3b": c3b,
        "w1": w1.astype(jnp.bfloat16),
        "b1": p["fc1_b"].reshape(1, 256).astype(jnp.float32),
        "w2": w2.astype(jnp.bfloat16),
        "b2": b2.astype(jnp.float32),
    }


# ----------------------------------------------------------------------------
# Forward pass (matches CNN.forward)
# ----------------------------------------------------------------------------
def cnn_forward(kp, x_nchw):
    B = x_nchw.shape[0]
    bt = _pick_bt(B)
    Bp = _round_up(B, bt)
    x = jnp.transpose(x_nchw, (0, 2, 3, 1)).astype(jnp.bfloat16)      # NHWC, bf16
    if Bp != B:
        x = jnp.pad(x, ((0, Bp - B), (0, 0), (0, 0), (0, 0)))
    x = conv1_im2col_relu_pool(x, kp["c1w"], kp["c1b"], tch=4, bt=bt)  # (Bp,16,16, 64)
    x = conv3x3_relu_pool(x, kp["c2w"], kp["c2b"], tch=4, bt=bt)       # (Bp, 8, 8,128)
    x = conv3x3_relu_pool(x, kp["c3w"], kp["c3b"], tch=8, bt=bt)       # (Bp, 4, 4,128)
    x = x.reshape(Bp, 4 * 4 * 128)          # fc1 columns pre-permuted to NHWC order
    logits = fc_fused(x, kp["w1"], kp["b1"], kp["w2"], kp["b2"])       # (Bp, 128) f32
    return logits[:B, :10]


# Pure-JAX f32 reference (PyTorch semantics) for a tolerance check.
def cnn_reference(p, x):
    def conv(x, w, b):
        y = jax.lax.conv_general_dilated(
            x, w, window_strides=(1, 1), padding="SAME",
            dimension_numbers=("NCHW", "OIHW", "NCHW"))
        return jax.nn.relu(y + b[None, :, None, None])

    def pool(x):
        return jax.lax.reduce_window(x, -jnp.inf, jax.lax.max,
                                     (1, 1, 2, 2), (1, 1, 2, 2), "VALID")

    x = pool(conv(x, p["conv1_w"], p["conv1_b"]))
    x = pool(conv(x, p["conv2_w"], p["conv2_b"]))
    x = pool(conv(x, p["conv3_w"], p["conv3_b"]))
    x = x.reshape(x.shape[0], -1)                    # NCHW flatten (torch order)
    x = jax.nn.relu(x @ p["fc1_w"].T + p["fc1_b"])
    return x @ p["fc2_w"].T + p["fc2_b"]


if __name__ == "__main__":
    key = jax.random.PRNGKey(0)
    pkey, xkey = jax.random.split(key)
    params = init_params(pkey)
    kparams = prepare_kernel_params(params)
    # Input shape implied by fc1 = Linear(128*4*4, 256): (B, 3, 32, 32)
    x = jax.random.normal(xkey, (2, 3, 32, 32), jnp.float32)

    fwd = jax.jit(cnn_forward)
    out = jax.block_until_ready(fwd(kparams, x))
    assert out.shape == (2, 10) and out.dtype == jnp.float32

    # bf16 operands with f32 accumulation -> small quantization vs f32 reference.
    ref = cnn_reference(params, x)
    err = float(jnp.max(jnp.abs(out - ref)))
    assert err < 5e-2, f"max abs err vs f32 reference too large: {err}"
    print("KERNEL_OK")
</pallas_src>

<mosaic_0001>
module attributes {stable_mosaic.version = 11 : i64} {
  func.func @_conv_relu_pool_kernel(%arg0: i32, %arg1: memref<1x512x32xbf16, #tpu.memory_space<vmem>>, %arg2: memref<1x512x32xbf16, #tpu.memory_space<vmem>>, %arg3: memref<1x32x64xbf16, #tpu.memory_space<vmem>>, %arg4: memref<1x64xf32, #tpu.memory_space<vmem>>, %arg5: memref<1x16x16x64xbf16, #tpu.memory_space<vmem>>, %arg6: memref<64x64xf32, #tpu.memory_space<vmem>>) attributes {dimension_semantics = [#tpu.dimension_semantics<parallel>], iteration_bounds = array<i64: 2>, scalar_prefetch = 0 : i64, scratch_operands = 1 : i64, tpu.core_type = #tpu.core_type<tc>, window_params = [{transform_indices = @transform_0, window_bounds = array<i64: 1, 512, 32>}, {transform_indices = @transform_1, window_bounds = array<i64: 1, 512, 32>}, {pipeline_mode = #tpu.pipeline_mode<synchronous>, transform_indices = @transform_2, window_bounds = array<i64: 1, 32, 64>}, {pipeline_mode = #tpu.pipeline_mode<synchronous>, transform_indices = @transform_3, window_bounds = array<i64: 1, 64>}, {transform_indices = @transform_4, window_bounds = array<i64: 1, 16, 16, 64>}]} {
    %c0 = arith.constant 0 : index
    %c0_0 = arith.constant 0 : index
    %0 = vector.load %arg4[%c0, %c0_0] : memref<1x64xf32, #tpu.memory_space<vmem>>, vector<1x64xf32>
    %c0_1 = arith.constant 0 : index
    %c0_2 = arith.constant 0 : index
    %c0_3 = arith.constant 0 : index
    %1 = vector.load %arg1[%c0_1, %c0_2, %c0_3] : memref<1x512x32xbf16, #tpu.memory_space<vmem>>, vector<1x64x32xbf16>
    %2 = vector.shape_cast %1 : vector<1x64x32xbf16> to vector<64x32xbf16>
    %c0_4 = arith.constant 0 : index
    %c0_5 = arith.constant 0 : index
    %c0_6 = arith.constant 0 : index
    %3 = vector.load %arg3[%c0_4, %c0_5, %c0_6] : memref<1x32x64xbf16, #tpu.memory_space<vmem>>, vector<1x32x64xbf16>
    %4 = vector.shape_cast %3 : vector<1x32x64xbf16> to vector<32x64xbf16>
    %cst = arith.constant dense<0.000000e+00> : vector<64x64xf32>
    %5 = tpu.matmul %2, %4, %cst {dimension_numbers = #tpu.dot_dimension_numbers<[1], [0], [0], [1], [0, 0, 1, 1], [], []>} : vector<64x32xbf16>, vector<32x64xbf16>, vector<64x64xf32> -> vector<64x64xf32>
    %c0_7 = arith.constant 0 : index
    %c0_8 = arith.constant 0 : index
    %6 = vector.load %arg6[%c0_7, %c0_8] : memref<64x64xf32, #tpu.memory_space<vmem>>, vector<64x64xf32>
    tpu.vector_store %arg6[%c0_7, %c0_8], %5 {strides = array<i32>} : memref<64x64xf32, #tpu.memory_space<vmem>>, vector<64x64xf32>,
    %c0_9 = arith.constant 0 : index
    %c0_10 = arith.constant 0 : index
    %c0_11 = arith.constant 0 : index
    %7 = vector.load %arg2[%c0_9, %c0_10, %c0_11] : memref<1x512x32xbf16, #tpu.memory_space<vmem>>, vector<1x64x32xbf16>
    %8 = vector.shape_cast %7 : vector<1x64x32xbf16> to vector<64x32xbf16>
    %c0_12 = arith.constant 0 : index
    %c0_13 = arith.constant 0 : index
    %c0_14 = arith.constant 0 : index
    %9 = vector.load %arg3[%c0_12, %c0_13, %c0_14] : memref<1x32x64xbf16, #tpu.memory_space<vmem>>, vector<1x32x64xbf16>
    %10 = vector.shape_cast %9 : vector<1x32x64xbf16> to vector<32x64xbf16>
    %cst_15 = arith.constant dense<0.000000e+00> : vector<64x64xf32>
    %11 = tpu.matmul %8, %10, %cst_15 {dimension_numbers = #tpu.dot_dimension_numbers<[1], [0], [0], [1], [0, 0, 1, 1], [], []>} : vector<64x32xbf16>, vector<32x64xbf16>, vector<64x64xf32> -> vector<64x64xf32>
    %c0_16 = arith.constant 0 : index
    %c0_17 = arith.constant 0 : index
    %12 = vector.load %arg6[%c0_16, %c0_17] : memref<64x64xf32, #tpu.memory_space<vmem>>, vector<64x64xf32>
    %13 = arith.maximumf %12, %11 : vector<64x64xf32>
    %14 = vector.shape_cast %13 : vector<64x64xf32> to vector<2x32x64xf32>
    %15 = vector.extract_strided_slice %14 {offsets = [0, 0, 0], sizes = [2, 16, 64], strides = [1, 1, 1]} : vector<2x32x64xf32> to vector<2x16x64xf32>
    %16 = vector.extract_strided_slice %14 {offsets = [0, 16, 0], sizes = [2, 16, 64], strides = [1, 1, 1]} : vector<2x32x64xf32> to vector<2x16x64xf32>
    %17 = arith.maximumf %15, %16 : vector<2x16x64xf32>
    %18 = vector.shape_cast %0 : vector<1x64xf32> to vector<1x1x64xf32>
    %19 = vector.broadcast %18 : vector<1x1x64xf32> to vector<2x16x64xf32>
    %20 = arith.addf %17, %19 : vector<2x16x64xf32>
    %cst_18 = arith.constant 0.000000e+00 : f32
    %21 = vector.broadcast %cst_18 : f32 to vector<2x16x64xf32>
    %22 = arith.maximumf %20, %21 : vector<2x16x64xf32>
    %23 = vector.shape_cast %22 : vector<2x16x64xf32> to vector<1x2x16x64xf32>
    %24 = arith.truncf %23 : vector<1x2x16x64xf32> to vector<1x2x16x64xbf16>
    %c0_19 = arith.constant 0 : index
    %c0_20 = arith.constant 0 : index
    %c0_21 = arith.constant 0 : index
    %c0_22 = arith.constant 0 : index
    %25 = vector.load %arg5[%c0_19, %c0_20, %c0_21, %c0_22] : memref<1x16x16x64xbf16, #tpu.memory_space<vmem>>, vector<1x2x16x64xbf16>
    tpu.vector_store %arg5[%c0_19, %c0_20, %c0_21, %c0_22], %24 {strides = array<i32>} : memref<1x16x16x64xbf16, #tpu.memory_space<vmem>>, vector<1x2x16x64xbf16>,
    %c0_23 = arith.constant 0 : index
    %c64 = arith.constant 64 : index
    %c0_24 = arith.constant 0 : index
    %26 = vector.load %arg1[%c0_23, %c64, %c0_24] : memref<1x512x32xbf16, #tpu.memory_space<vmem>>, vector<1x64x32xbf16>
    %27 = vector.shape_cast %26 : vector<1x64x32xbf16> to vector<64x32xbf16>
    %c0_25 = arith.constant 0 : index
    %c0_26 = arith.constant 0 : index
    %c0_27 = arith.constant 0 : index
    %28 = vector.load %arg3[%c0_25, %c0_26, %c0_27] : memref<1x32x64xbf16, #tpu.memory_space<vmem>>, vector<1x32x64xbf16>
    %29 = vector.shape_cast %28 : vector<1x32x64xbf16> to vector<32x64xbf16>
    %cst_28 = arith.constant dense<0.000000e+00> : vector<64x64xf32>
    %30 = tpu.matmul %27, %29, %cst_28 {dimension_numbers = #tpu.dot_dimension_numbers<[1], [0], [0], [1], [0, 0, 1, 1], [], []>} : vector<64x32xbf16>, vector<32x64xbf16>, vector<64x64xf32> -> vector<64x64xf32>
    %c0_29 = arith.constant 0 : index
    %c0_30 = arith.constant 0 : index
    %31 = vector.load %arg6[%c0_29, %c0_30] : memref<64x64xf32, #tpu.memory_space<vmem>>, vector<64x64xf32>
    tpu.vector_store %arg6[%c0_29, %c0_30], %30 {strides = array<i32>} : memref<64x64xf32, #tpu.memory_space<vmem>>, vector<64x64xf32>,
    %c0_31 = arith.constant 0 : index
    %c64_32 = arith.constant 64 : index
    %c0_33 = arith.constant 0 : index
    %32 = vector.load %arg2[%c0_31, %c64_32, %c0_33] : memref<1x512x32xbf16, #tpu.memory_space<vmem>>, vector<1x64x32xbf16>
    %33 = vector.shape_cast %32 : vector<1x64x32xbf16> to vector<64x32xbf16>
    %c0_34 = arith.constant 0 : index
    %c0_35 = arith.constant 0 : index
    %c0_36 = arith.constant 0 : index
    %34 = vector.load %arg3[%c0_34, %c0_35, %c0_36] : memref<1x32x64xbf16, #tpu.memory_space<vmem>>, vector<1x32x64xbf16>
    %35 = vector.shape_cast %34 : vector<1x32x64xbf16> to vector<32x64xbf16>
    %cst_37 = arith.constant dense<0.000000e+00> : vector<64x64xf32>
    %36 = tpu.matmul %33, %35, %cst_37 {dimension_numbers = #tpu.dot_dimension_numbers<[1], [0], [0], [1], [0, 0, 1, 1], [], []>} : vector<64x32xbf16>, vector<32x64xbf16>, vector<64x64xf32> -> vector<64x64xf32>
    %c0_38 = arith.constant 0 : index
    %c0_39 = arith.constant 0 : index
    %37 = vector.load %arg6[%c0_38, %c0_39] : memref<64x64xf32, #tpu.memory_space<vmem>>, vector<64x64xf32>
    %38 = arith.maximumf %37, %36 : vector<64x64xf32>
    %39 = vector.shape_cast %38 : vector<64x64xf32> to vector<2x32x64xf32>
    %40 = vector.extract_strided_slice %39 {offsets = [0, 0, 0], sizes = [2, 16, 64], strides = [1, 1, 1]} : vector<2x32x64xf32> to vector<2x16x64xf32>
    %41 = vector.extract_strided_slice %39 {offsets = [0, 16, 0], sizes = [2, 16, 64], strides = [1, 1, 1]} : vector<2x32x64xf32> to vector<2x16x64xf32>
    %42 = arith.maximumf %40, %41 : vector<2x16x64xf32>
    %43 = vector.shape_cast %0 : vector<1x64xf32> to vector<1x1x64xf32>
    %44 = vector.broadcast %43 : vector<1x1x64xf32> to vector<2x16x64xf32>
    %45 = arith.addf %42, %44 : vector<2x16x64xf32>
    %cst_40 = arith.constant 0.000000e+00 : f32
    %46 = vector.broadcast %cst_40 : f32 to vector<2x16x64xf32>
    %47 = arith.maximumf %45, %46 : vector<2x16x64xf32>
    %48 = vector.shape_cast %47 : vector<2x16x64xf32> to vector<1x2x16x64xf32>
    %49 = arith.truncf %48 : vector<1x2x16x64xf32> to vector<1x2x16x64xbf16>
    %c0_41 = arith.constant 0 : index
    %c2 = arith.constant 2 : index
    %c0_42 = arith.constant 0 : index
    %c0_43 = arith.constant 0 : index
    %50 = vector.load %arg5[%c0_41, %c2, %c0_42, %c0_43] : memref<1x16x16x64xbf16, #tpu.memory_space<vmem>>, vector<1x2x16x64xbf16>
    tpu.vector_store %arg5[%c0_41, %c2, %c0_42, %c0_43], %49 {strides = array<i32>} : memref<1x16x16x64xbf16, #tpu.memory_space<vmem>>, vector<1x2x16x64xbf16>,
    %c0_44 = arith.constant 0 : index
    %c128 = arith.constant 128 : index
    %c0_45 = arith.constant 0 : index
    %51 = vector.load %arg1[%c0_44, %c128, %c0_45] : memref<1x512x32xbf16, #tpu.memory_space<vmem>>, vector<1x64x32xbf16>
    %52 = vector.shape_cast %51 : vector<1x64x32xbf16> to vector<64x32xbf16>
    %c0_46 = arith.constant 0 : index
    %c0_47 = arith.constant 0 : index
    %c0_48 = arith.constant 0 : index
    %53 = vector.load %arg3[%c0_46, %c0_47, %c0_48] : memref<1x32x64xbf16, #tpu.memory_space<vmem>>, vector<1x32x64xbf16>
    %54 = vector.shape_cast %53 : vector<1x32x64xbf16> to vector<32x64xbf16>
    %cst_49 = arith.constant dense<0.000000e+00> : vector<64x64xf32>
    %55 = tpu.matmul %52, %54, %cst_49 {dimension_numbers = #tpu.dot_dimension_numbers<[1], [0], [0], [1], [0, 0, 1, 1], [], []>} : vector<64x32xbf16>, vector<32x64xbf16>, vector<64x64xf32> -> vector<64x64xf32>
    %c0_50 = arith.constant 0 : index
    %c0_51 = arith.constant 0 : index
    %56 = vector.load %arg6[%c0_50, %c0_51] : memref<64x64xf32, #tpu.memory_space<vmem>>, vector<64x64xf32>
    tpu.vector_store %arg6[%c0_50, %c0_51], %55 {strides = array<i32>} : memref<64x64xf32, #tpu.memory_space<vmem>>, vector<64x64xf32>,
    %c0_52 = arith.constant 0 : index
    %c128_53 = arith.constant 128 : index
    %c0_54 = arith.constant 0 : index
    %57 = vector.load %arg2[%c0_52, %c128_53, %c0_54] : memref<1x512x32xbf16, #tpu.memory_space<vmem>>, vector<1x64x32xbf16>
    %58 = vector.shape_cast %57 : vector<1x64x32xbf16> to vector<64x32xbf16>
    %c0_55 = arith.constant 0 : index
    %c0_56 = arith.constant 0 : index
    %c0_57 = arith.constant 0 : index
    %59 = vector.load %arg3[%c0_55, %c0_56, %c0_57] : memref<1x32x64xbf16, #tpu.memory_space<vmem>>, vector<1x32x64xbf16>
    %60 = vector.shape_cast %59 : vector<1x32x64xbf16> to vector<32x64xbf16>
    %cst_58 = arith.constant dense<0.000000e+00> : vector<64x64xf32>
    %61 = tpu.matmul %58, %60, %cst_58 {dimension_numbers = #tpu.dot_dimension_numbers<[1], [0], [0], [1], [0, 0, 1, 1], [], []>} : vector<64x32xbf16>, vector<32x64xbf16>, vector<64x64xf32> -> vector<64x64xf32>
    %c0_59 = arith.constant 0 : index
    %c0_60 = arith.constant 0 : index
    %62 = vector.load %arg6[%c0_59, %c0_60] : memref<64x64xf32, #tpu.memory_space<vmem>>, vector<64x64xf32>
    %63 = arith.maximumf %62, %61 : vector<64x64xf32>
    %64 = vector.shape_cast %63 : vector<64x64xf32> to vector<2x32x64xf32>
    %65 = vector.extract_strided_slice %64 {offsets = [0, 0, 0], sizes = [2, 16, 64], strides = [1, 1, 1]} : vector<2x32x64xf32> to vector<2x16x64xf32>
    %66 = vector.extract_strided_slice %64 {offsets = [0, 16, 0], sizes = [2, 16, 64], strides = [1, 1, 1]} : vector<2x32x64xf32> to vector<2x16x64xf32>
    %67 = arith.maximumf %65, %66 : vector<2x16x64xf32>
    %68 = vector.shape_cast %0 : vector<1x64xf32> to vector<1x1x64xf32>
    %69 = vector.broadcast %68 : vector<1x1x64xf32> to vector<2x16x64xf32>
    %70 = arith.addf %67, %69 : vector<2x16x64xf32>
    %cst_61 = arith.constant 0.000000e+00 : f32
    %71 = vector.broadcast %cst_61 : f32 to vector<2x16x64xf32>
    %72 = arith.maximumf %70, %71 : vector<2x16x64xf32>
    %73 = vector.shape_cast %72 : vector<2x16x64xf32> to vector<1x2x16x64xf32>
    %74 = arith.truncf %73 : vector<1x2x16x64xf32> to vector<1x2x16x64xbf16>
    %c0_62 = arith.constant 0 : index
    %c4 = arith.constant 4 : index
    %c0_63 = arith.constant 0 : index
    %c0_64 = arith.constant 0 : index
    %75 = vector.load %arg5[%c0_62, %c4, %c0_63, %c0_64] : memref<1x16x16x64xbf16, #tpu.memory_space<vmem>>, vector<1x2x16x64xbf16>
    tpu.vector_store %arg5[%c0_62, %c4, %c0_63, %c0_64], %74 {strides = array<i32>} : memref<1x16x16x64xbf16, #tpu.memory_space<vmem>>, vector<1x2x16x64xbf16>,
    %c0_65 = arith.constant 0 : index
    %c192 = arith.constant 192 : index
    %c0_66 = arith.constant 0 : index
    %76 = vector.load %arg1[%c0_65, %c192, %c0_66] : memref<1x512x32xbf16, #tpu.memory_space<vmem>>, vector<1x64x32xbf16>
    %77 = vector.shape_cast %76 : vector<1x64x32xbf16> to vector<64x32xbf16>
    %c0_67 = arith.constant 0 : index
    %c0_68 = arith.constant 0 : index
    %c0_69 = arith.constant 0 : index
    %78 = vector.load %arg3[%c0_67, %c0_68, %c0_69] : memref<1x32x64xbf16, #tpu.memory_space<vmem>>, vector<1x32x64xbf16>
    %79 = vector.shape_cast %78 : vector<1x32x64xbf16> to vector<32x64xbf16>
    %cst_70 = arith.constant dense<0.000000e+00> : vector<64x64xf32>
    %80 = tpu.matmul %77, %79, %cst_70 {dimension_numbers = #tpu.dot_dimension_numbers<[1], [0], [0], [1], [0, 0, 1, 1], [], []>} : vector<64x32xbf16>, vector<32x64xbf16>, vector<64x64xf32> -> vector<64x64xf32>
    %c0_71 = arith.constant 0 : index
    %c0_72 = arith.constant 0 : index
    %81 = vector.load %arg6[%c0_71, %c0_72] : memref<64x64xf32, #tpu.memory_space<vmem>>, vector<64x64xf32>
    tpu.vector_store %arg6[%c0_71, %c0_72], %80 {strides = array<i32>} : memref<64x64xf32, #tpu.memory_space<vmem>>, vector<64x64xf32>,
    %c0_73 = arith.constant 0 : index
    %c192_74 = arith.constant 192 : index
    %c0_75 = arith.constant 0 : index
    %82 = vector.load %arg2[%c0_73, %c192_74, %c0_75] : memref<1x512x32xbf16, #tpu.memory_space<vmem>>, vector<1x64x32xbf16>
    %83 = vector.shape_cast %82 : vector<1x64x32xbf16> to vector<64x32xbf16>
    %c0_76 = arith.constant 0 : index
    %c0_77 = arith.constant 0 : index
    %c0_78 = arith.constant 0 : index
    %84 = vector.load %arg3[%c0_76, %c0_77, %c0_78] : memref<1x32x64xbf16, #tpu.memory_space<vmem>>, vector<1x32x64xbf16>
    %85 = vector.shape_cast %84 : vector<1x32x64xbf16> to vector<32x64xbf16>
    %cst_79 = arith.constant dense<0.000000e+00> : vector<64x64xf32>
    %86 = tpu.matmul %83, %85, %cst_79 {dimension_numbers = #tpu.dot_dimension_numbers<[1], [0], [0], [1], [0, 0, 1, 1], [], []>} : vector<64x32xbf16>, vector<32x64xbf16>, vector<64x64xf32> -> vector<64x64xf32>
    %c0_80 = arith.constant 0 : index
    %c0_81 = arith.constant 0 : index
    %87 = vector.load %arg6[%c0_80, %c0_81] : memref<64x64xf32, #tpu.memory_space<vmem>>, vector<64x64xf32>
    %88 = arith.maximumf %87, %86 : vector<64x64xf32>
    %89 = vector.shape_cast %88 : vector<64x64xf32> to vector<2x32x64xf32>
    %90 = vector.extract_strided_slice %89 {offsets = [0, 0, 0], sizes = [2, 16, 64], strides = [1, 1, 1]} : vector<2x32x64xf32> to vector<2x16x64xf32>
    %91 = vector.extract_strided_slice %89 {offsets = [0, 16, 0], sizes = [2, 16, 64], strides = [1, 1, 1]} : vector<2x32x64xf32> to vector<2x16x64xf32>
    %92 = arith.maximumf %90, %91 : vector<2x16x64xf32>
    %93 = vector.shape_cast %0 : vector<1x64xf32> to vector<1x1x64xf32>
    %94 = vector.broadcast %93 : vector<1x1x64xf32> to vector<2x16x64xf32>
    %95 = arith.addf %92, %94 : vector<2x16x64xf32>
    %cst_82 = arith.constant 0.000000e+00 : f32
    %96 = vector.broadcast %cst_82 : f32 to vector<2x16x64xf32>
    %97 = arith.maximumf %95, %96 : vector<2x16x64xf32>
    %98 = vector.shape_cast %97 : vector<2x16x64xf32> to vector<1x2x16x64xf32>
    %99 = arith.truncf %98 : vector<1x2x16x64xf32> to vector<1x2x16x64xbf16>
    %c0_83 = arith.constant 0 : index
    %c6 = arith.constant 6 : index
    %c0_84 = arith.constant 0 : index
    %c0_85 = arith.constant 0 : index
    %100 = vector.load %arg5[%c0_83, %c6, %c0_84, %c0_85] : memref<1x16x16x64xbf16, #tpu.memory_space<vmem>>, vector<1x2x16x64xbf16>
    tpu.vector_store %arg5[%c0_83, %c6, %c0_84, %c0_85], %99 {strides = array<i32>} : memref<1x16x16x64xbf16, #tpu.memory_space<vmem>>, vector<1x2x16x64xbf16>,
    %c0_86 = arith.constant 0 : index
    %c256 = arith.constant 256 : index
    %c0_87 = arith.constant 0 : index
    %101 = vector.load %arg1[%c0_86, %c256, %c0_87] : memref<1x512x32xbf16, #tpu.memory_space<vmem>>, vector<1x64x32xbf16>
    %102 = vector.shape_cast %101 : vector<1x64x32xbf16> to vector<64x32xbf16>
    %c0_88 = arith.constant 0 : index
    %c0_89 = arith.constant 0 : index
    %c0_90 = arith.constant 0 : index
    %103 = vector.load %arg3[%c0_88, %c0_89, %c0_90] : memref<1x32x64xbf16, #tpu.memory_space<vmem>>, vector<1x32x64xbf16>
    %104 = vector.shape_cast %103 : vector<1x32x64xbf16> to vector<32x64xbf16>
    %cst_91 = arith.constant dense<0.000000e+00> : vector<64x64xf32>
    %105 = tpu.matmul %102, %104, %cst_91 {dimension_numbers = #tpu.dot_dimension_numbers<[1], [0], [0], [1], [0, 0, 1, 1], [], []>} : vector<64x32xbf16>, vector<32x64xbf16>, vector<64x64xf32> -> vector<64x64xf32>
    %c0_92 = arith.constant 0 : index
    %c0_93 = arith.constant 0 : index
    %106 = vector.load %arg6[%c0_92, %c0_93] : memref<64x64xf32, #tpu.memory_space<vmem>>, vector<64x64xf32>
    tpu.vector_store %arg6[%c0_92, %c0_93], %105 {strides = array<i32>} : memref<64x64xf32, #tpu.memory_space<vmem>>, vector<64x64xf32>,
    %c0_94 = arith.constant 0 : index
    %c256_95 = arith.constant 256 : index
    %c0_96 = arith.constant 0 : index
    %107 = vector.load %arg2[%c0_94, %c256_95, %c0_96] : memref<1x512x32xbf16, #tpu.memory_space<vmem>>, vector<1x64x32xbf16>
    %108 = vector.shape_cast %107 : vector<1x64x32xbf16> to vector<64x32xbf16>
    %c0_97 = arith.constant 0 : index
    %c0_98 = arith.constant 0 : index
    %c0_99 = arith.constant 0 : index
    %109 = vector.load %arg3[%c0_97, %c0_98, %c0_99] : memref<1x32x64xbf16, #tpu.memory_space<vmem>>, vector<1x32x64xbf16>
    %110 = vector.shape_cast %109 : vector<1x32x64xbf16> to vector<32x64xbf16>
    %cst_100 = arith.constant dense<0.000000e+00> : vector<64x64xf32>
    %111 = tpu.matmul %108, %110, %cst_100 {dimension_numbers = #tpu.dot_dimension_numbers<[1], [0], [0], [1], [0, 0, 1, 1], [], []>} : vector<64x32xbf16>, vector<32x64xbf16>, vector<64x64xf32> -> vector<64x64xf32>
    %c0_101 = arith.constant 0 : index
    %c0_102 = arith.constant 0 : index
    %112 = vector.load %arg6[%c0_101, %c0_102] : memref<64x64xf32, #tpu.memory_space<vmem>>, vector<64x64xf32>
    %113 = arith.maximumf %112, %111 : vector<64x64xf32>
    %114 = vector.shape_cast %113 : vector<64x64xf32> to vector<2x32x64xf32>
    %115 = vector.extract_strided_slice %114 {offsets = [0, 0, 0], sizes = [2, 16, 64], strides = [1, 1, 1]} : vector<2x32x64xf32> to vector<2x16x64xf32>
    %116 = vector.extract_strided_slice %114 {offsets = [0, 16, 0], sizes = [2, 16, 64], strides = [1, 1, 1]} : vector<2x32x64xf32> to vector<2x16x64xf32>
    %117 = arith.maximumf %115, %116 : vector<2x16x64xf32>
    %118 = vector.shape_cast %0 : vector<1x64xf32> to vector<1x1x64xf32>
    %119 = vector.broadcast %118 : vector<1x1x64xf32> to vector<2x16x64xf32>
    %120 = arith.addf %117, %119 : vector<2x16x64xf32>
    %cst_103 = arith.constant 0.000000e+00 : f32
    %121 = vector.broadcast %cst_103 : f32 to vector<2x16x64xf32>
    %122 = arith.maximumf %120, %121 : vector<2x16x64xf32>
    %123 = vector.shape_cast %122 : vector<2x16x64xf32> to vector<1x2x16x64xf32>
    %124 = arith.truncf %123 : vector<1x2x16x64xf32> to vector<1x2x16x64xbf16>
    %c0_104 = arith.constant 0 : index
    %c8 = arith.constant 8 : index
    %c0_105 = arith.constant 0 : index
    %c0_106 = arith.constant 0 : index
    %125 = vector.load %arg5[%c0_104, %c8, %c0_105, %c0_106] : memref<1x16x16x64xbf16, #tpu.memory_space<vmem>>, vector<1x2x16x64xbf16>
    tpu.vector_store %arg5[%c0_104, %c8, %c0_105, %c0_106], %124 {strides = array<i32>} : memref<1x16x16x64xbf16, #tpu.memory_space<vmem>>, vector<1x2x16x64xbf16>,
    %c0_107 = arith.constant 0 : index
    %c320 = arith.constant 320 : index
    %c0_108 = arith.constant 0 : index
    %126 = vector.load %arg1[%c0_107, %c320, %c0_108] : memref<1x512x32xbf16, #tpu.memory_space<vmem>>, vector<1x64x32xbf16>
    %127 = vector.shape_cast %126 : vector<1x64x32xbf16> to vector<64x32xbf16>
    %c0_109 = arith.constant 0 : index
    %c0_110 = arith.constant 0 : index
    %c0_111 = arith.constant 0 : index
    %128 = vector.load %arg3[%c0_109, %c0_110, %c0_111] : memref<1x32x64xbf16, #tpu.memory_space<vmem>>, vector<1x32x64xbf16>
    %129 = vector.shape_cast %128 : vector<1x32x64xbf16> to vector<32x64xbf16>
    %cst_112 = arith.constant dense<0.000000e+00> : vector<64x64xf32>
    %130 = tpu.matmul %127, %129, %cst_112 {dimension_numbers = #tpu.dot_dimension_numbers<[1], [0], [0], [1], [0, 0, 1, 1], [], []>} : vector<64x32xbf16>, vector<32x64xbf16>, vector<64x64xf32> -> vector<64x64xf32>
    %c0_113 = arith.constant 0 : index
    %c0_114 = arith.constant 0 : index
    %131 = vector.load %arg6[%c0_113, %c0_114] : memref<64x64xf32, #tpu.memory_space<vmem>>, vector<64x64xf32>
    tpu.vector_store %arg6[%c0_113, %c0_114], %130 {strides = array<i32>} : memref<64x64xf32, #tpu.memory_space<vmem>>, vector<64x64xf32>,
    %c0_115 = arith.constant 0 : index
    %c320_116 = arith.constant 320 : index
    %c0_117 = arith.constant 0 : index
    %132 = vector.load %arg2[%c0_115, %c320_116, %c0_117] : memref<1x512x32xbf16, #tpu.memory_space<vmem>>, vector<1x64x32xbf16>
    %133 = vector.shape_cast %132 : vector<1x64x32xbf16> to vector<64x32xbf16>
    %c0_118 = arith.constant 0 : index
    %c0_119 = arith.constant 0 : index
    %c0_120 = arith.constant 0 : index
    %134 = vector.load %arg3[%c0_118, %c0_119, %c0_120] : memref<1x32x64xbf16, #tpu.memory_space<vmem>>, vector<1x32x64xbf16>
    %135 = vector.shape_cast %134 : vector<1x32x64xbf16> to vector<32x64xbf16>
    %cst_121 = arith.constant dense<0.000000e+00> : vector<64x64xf32>
    %136 = tpu.matmul %133, %135, %cst_121 {dimension_numbers = #tpu.dot_dimension_numbers<[1], [0], [0], [1], [0, 0, 1, 1], [], []>} : vector<64x32xbf16>, vector<32x64xbf16>, vector<64x64xf32> -> vector<64x64xf32>
    %c0_122 = arith.constant 0 : index
    %c0_123 = arith.constant 0 : index
    %137 = vector.load %arg6[%c0_122, %c0_123] : memref<64x64xf32, #tpu.memory_space<vmem>>, vector<64x64xf32>
    %138 = arith.maximumf %137, %136 : vector<64x64xf32>
    %139 = vector.shape_cast %138 : vector<64x64xf32> to vector<2x32x64xf32>
    %140 = vector.extract_strided_slice %139 {offsets = [0, 0, 0], sizes = [2, 16, 64], strides = [1, 1, 1]} : vector<2x32x64xf32> to vector<2x16x64xf32>
    %141 = vector.extract_strided_slice %139 {offsets = [0, 16, 0], sizes = [2, 16, 64], strides = [1, 1, 1]} : vector<2x32x64xf32> to vector<2x16x64xf32>
    %142 = arith.maximumf %140, %141 : vector<2x16x64xf32>
    %143 = vector.shape_cast %0 : vector<1x64xf32> to vector<1x1x64xf32>
    %144 = vector.broadcast %143 : vector<1x1x64xf32> to vector<2x16x64xf32>
    %145 = arith.addf %142, %144 : vector<2x16x64xf32>
    %cst_124 = arith.constant 0.000000e+00 : f32
    %146 = vector.broadcast %cst_124 : f32 to vector<2x16x64xf32>
    %147 = arith.maximumf %145, %146 : vector<2x16x64xf32>
    %148 = vector.shape_cast %147 : vector<2x16x64xf32> to vector<1x2x16x64xf32>
    %149 = arith.truncf %148 : vector<1x2x16x64xf32> to vector<1x2x16x64xbf16>
    %c0_125 = arith.constant 0 : index
    %c10 = arith.constant 10 : index
    %c0_126 = arith.constant 0 : index
    %c0_127 = arith.constant 0 : index
    %150 = vector.load %arg5[%c0_125, %c10, %c0_126, %c0_127] : memref<1x16x16x64xbf16, #tpu.memory_space<vmem>>, vector<1x2x16x64xbf16>
    tpu.vector_store %arg5[%c0_125, %c10, %c0_126, %c0_127], %149 {strides = array<i32>} : memref<1x16x16x64xbf16, #tpu.memory_space<vmem>>, vector<1x2x16x64xbf16>,
    %c0_128 = arith.constant 0 : index
    %c384 = arith.constant 384 : index
    %c0_129 = arith.constant 0 : index
    %151 = vector.load %arg1[%c0_128, %c384, %c0_129] : memref<1x512x32xbf16, #tpu.memory_space<vmem>>, vector<1x64x32xbf16>
    %152 = vector.shape_cast %151 : vector<1x64x32xbf16> to vector<64x32xbf16>
    %c0_130 = arith.constant 0 : index
    %c0_131 = arith.constant 0 : index
    %c0_132 = arith.constant 0 : index
    %153 = vector.load %arg3[%c0_130, %c0_131, %c0_132] : memref<1x32x64xbf16, #tpu.memory_space<vmem>>, vector<1x32x64xbf16>
    %154 = vector.shape_cast %153 : vector<1x32x64xbf16> to vector<32x64xbf16>
    %cst_133 = arith.constant dense<0.000000e+00> : vector<64x64xf32>
    %155 = tpu.matmul %152, %154, %cst_133 {dimension_numbers = #tpu.dot_dimension_numbers<[1], [0], [0], [1], [0, 0, 1, 1], [], []>} : vector<64x32xbf16>, vector<32x64xbf16>, vector<64x64xf32> -> vector<64x64xf32>
    %c0_134 = arith.constant 0 : index
    %c0_135 = arith.constant 0 : index
    %156 = vector.load %arg6[%c0_134, %c0_135] : memref<64x64xf32, #tpu.memory_space<vmem>>, vector<64x64xf32>
    tpu.vector_store %arg6[%c0_134, %c0_135], %155 {strides = array<i32>} : memref<64x64xf32, #tpu.memory_space<vmem>>, vector<64x64xf32>,
    %c0_136 = arith.constant 0 : index
    %c384_137 = arith.constant 384 : index
    %c0_138 = arith.constant 0 : index
    %157 = vector.load %arg2[%c0_136, %c384_137, %c0_138] : memref<1x512x32xbf16, #tpu.memory_space<vmem>>, vector<1x64x32xbf16>
    %158 = vector.shape_cast %157 : vector<1x64x32xbf16> to vector<64x32xbf16>
    %c0_139 = arith.constant 0 : index
    %c0_140 = arith.constant 0 : index
    %c0_141 = arith.constant 0 : index
    %159 = vector.load %arg3[%c0_139, %c0_140, %c0_141] : memref<1x32x64xbf16, #tpu.memory_space<vmem>>, vector<1x32x64xbf16>
    %160 = vector.shape_cast %159 : vector<1x32x64xbf16> to vector<32x64xbf16>
    %cst_142 = arith.constant dense<0.000000e+00> : vector<64x64xf32>
    %161 = tpu.matmul %158, %160, %cst_142 {dimension_numbers = #tpu.dot_dimension_numbers<[1], [0], [0], [1], [0, 0, 1, 1], [], []>} : vector<64x32xbf16>, vector<32x64xbf16>, vector<64x64xf32> -> vector<64x64xf32>
    %c0_143 = arith.constant 0 : index
    %c0_144 = arith.constant 0 : index
    %162 = vector.load %arg6[%c0_143, %c0_144] : memref<64x64xf32, #tpu.memory_space<vmem>>, vector<64x64xf32>
    %163 = arith.maximumf %162, %161 : vector<64x64xf32>
    %164 = vector.shape_cast %163 : vector<64x64xf32> to vector<2x32x64xf32>
    %165 = vector.extract_strided_slice %164 {offsets = [0, 0, 0], sizes = [2, 16, 64], strides = [1, 1, 1]} : vector<2x32x64xf32> to vector<2x16x64xf32>
    %166 = vector.extract_strided_slice %164 {offsets = [0, 16, 0], sizes = [2, 16, 64], strides = [1, 1, 1]} : vector<2x32x64xf32> to vector<2x16x64xf32>
    %167 = arith.maximumf %165, %166 : vector<2x16x64xf32>
    %168 = vector.shape_cast %0 : vector<1x64xf32> to vector<1x1x64xf32>
    %169 = vector.broadcast %168 : vector<1x1x64xf32> to vector<2x16x64xf32>
    %170 = arith.addf %167, %169 : vector<2x16x64xf32>
    %cst_145 = arith.constant 0.000000e+00 : f32
    %171 = vector.broadcast %cst_145 : f32 to vector<2x16x64xf32>
    %172 = arith.maximumf %170, %171 : vector<2x16x64xf32>
    %173 = vector.shape_cast %172 : vector<2x16x64xf32> to vector<1x2x16x64xf32>
    %174 = arith.truncf %173 : vector<1x2x16x64xf32> to vector<1x2x16x64xbf16>
    %c0_146 = arith.constant 0 : index
    %c12 = arith.constant 12 : index
    %c0_147 = arith.constant 0 : index
    %c0_148 = arith.constant 0 : index
    %175 = vector.load %arg5[%c0_146, %c12, %c0_147, %c0_148] : memref<1x16x16x64xbf16, #tpu.memory_space<vmem>>, vector<1x2x16x64xbf16>
    tpu.vector_store %arg5[%c0_146, %c12, %c0_147, %c0_148], %174 {strides = array<i32>} : memref<1x16x16x64xbf16, #tpu.memory_space<vmem>>, vector<1x2x16x64xbf16>,
    %c0_149 = arith.constant 0 : index
    %c448 = arith.constant 448 : index
    %c0_150 = arith.constant 0 : index
    %176 = vector.load %arg1[%c0_149, %c448, %c0_150] : memref<1x512x32xbf16, #tpu.memory_space<vmem>>, vector<1x64x32xbf16>
    %177 = vector.shape_cast %176 : vector<1x64x32xbf16> to vector<64x32xbf16>
    %c0_151 = arith.constant 0 : index
    %c0_152 = arith.constant 0 : index
    %c0_153 = arith.constant 0 : index
    %178 = vector.load %arg3[%c0_151, %c0_152, %c0_153] : memref<1x32x64xbf16, #tpu.memory_space<vmem>>, vector<1x32x64xbf16>
    %179 = vector.shape_cast %178 : vector<1x32x64xbf16> to vector<32x64xbf16>
    %cst_154 = arith.constant dense<0.000000e+00> : vector<64x64xf32>
    %180 = tpu.matmul %177, %179, %cst_154 {dimension_numbers = #tpu.dot_dimension_numbers<[1], [0], [0], [1], [0, 0, 1, 1], [], []>} : vector<64x32xbf16>, vector<32x64xbf16>, vector<64x64xf32> -> vector<64x64xf32>
    %c0_155 = arith.constant 0 : index
    %c0_156 = arith.constant 0 : index
    %181 = vector.load %arg6[%c0_155, %c0_156] : memref<64x64xf32, #tpu.memory_space<vmem>>, vector<64x64xf32>
    tpu.vector_store %arg6[%c0_155, %c0_156], %180 {strides = array<i32>} : memref<64x64xf32, #tpu.memory_space<vmem>>, vector<64x64xf32>,
    %c0_157 = arith.constant 0 : index
    %c448_158 = arith.constant 448 : index
    %c0_159 = arith.constant 0 : index
    %182 = vector.load %arg2[%c0_157, %c448_158, %c0_159] : memref<1x512x32xbf16, #tpu.memory_space<vmem>>, vector<1x64x32xbf16>
    %183 = vector.shape_cast %182 : vector<1x64x32xbf16> to vector<64x32xbf16>
    %c0_160 = arith.constant 0 : index
    %c0_161 = arith.constant 0 : index
    %c0_162 = arith.constant 0 : index
    %184 = vector.load %arg3[%c0_160, %c0_161, %c0_162] : memref<1x32x64xbf16, #tpu.memory_space<vmem>>, vector<1x32x64xbf16>
    %185 = vector.shape_cast %184 : vector<1x32x64xbf16> to vector<32x64xbf16>
    %cst_163 = arith.constant dense<0.000000e+00> : vector<64x64xf32>
    %186 = tpu.matmul %183, %185, %cst_163 {dimension_numbers = #tpu.dot_dimension_numbers<[1], [0], [0], [1], [0, 0, 1, 1], [], []>} : vector<64x32xbf16>, vector<32x64xbf16>, vector<64x64xf32> -> vector<64x64xf32>
    %c0_164 = arith.constant 0 : index
    %c0_165 = arith.constant 0 : index
    %187 = vector.load %arg6[%c0_164, %c0_165] : memref<64x64xf32, #tpu.memory_space<vmem>>, vector<64x64xf32>
    %188 = arith.maximumf %187, %186 : vector<64x64xf32>
    %189 = vector.shape_cast %188 : vector<64x64xf32> to vector<2x32x64xf32>
    %190 = vector.extract_strided_slice %189 {offsets = [0, 0, 0], sizes = [2, 16, 64], strides = [1, 1, 1]} : vector<2x32x64xf32> to vector<2x16x64xf32>
    %191 = vector.extract_strided_slice %189 {offsets = [0, 16, 0], sizes = [2, 16, 64], strides = [1, 1, 1]} : vector<2x32x64xf32> to vector<2x16x64xf32>
    %192 = arith.maximumf %190, %191 : vector<2x16x64xf32>
    %193 = vector.shape_cast %0 : vector<1x64xf32> to vector<1x1x64xf32>
    %194 = vector.broadcast %193 : vector<1x1x64xf32> to vector<2x16x64xf32>
    %195 = arith.addf %192, %194 : vector<2x16x64xf32>
    %cst_166 = arith.constant 0.000000e+00 : f32
    %196 = vector.broadcast %cst_166 : f32 to vector<2x16x64xf32>
    %197 = arith.maximumf %195, %196 : vector<2x16x64xf32>
    %198 = vector.shape_cast %197 : vector<2x16x64xf32> to vector<1x2x16x64xf32>
    %199 = arith.truncf %198 : vector<1x2x16x64xf32> to vector<1x2x16x64xbf16>
    %c0_167 = arith.constant 0 : index
    %c14 = arith.constant 14 : index
    %c0_168 = arith.constant 0 : index
    %c0_169 = arith.constant 0 : index
    %200 = vector.load %arg5[%c0_167, %c14, %c0_168, %c0_169] : memref<1x16x16x64xbf16, #tpu.memory_space<vmem>>, vector<1x2x16x64xbf16>
    tpu.vector_store %arg5[%c0_167, %c14, %c0_168, %c0_169], %199 {strides = array<i32>} : memref<1x16x16x64xbf16, #tpu.memory_space<vmem>>, vector<1x2x16x64xbf16>,
    return
  }
  func.func @transform_0(%arg0: i32) -> (i32, i32, i32) {
    %c0_i32 = arith.constant 0 : i32
    %c0_i32_0 = arith.constant 0 : i32
    %c0_i32_1 = arith.constant 0 : i32
    return %arg0, %c0_i32, %c0_i32_0 : i32, i32, i32
  }
  func.func @transform_1(%arg0: i32) -> (i32, i32, i32) {
    %c0_i32 = arith.constant 0 : i32
    %c0_i32_0 = arith.constant 0 : i32
    %c0_i32_1 = arith.constant 0 : i32
    return %arg0, %c0_i32, %c0_i32_0 : i32, i32, i32
  }
  func.func @transform_2(%arg0: i32) -> (i32, i32, i32) {
    %c0_i32 = arith.constant 0 : i32
    %c0_i32_0 = arith.constant 0 : i32
    %c0_i32_1 = arith.constant 0 : i32
    %c0_i32_2 = arith.constant 0 : i32
    return %c0_i32, %c0_i32_0, %c0_i32_1 : i32, i32, i32
  }
  func.func @transform_3(%arg0: i32) -> (i32, i32) {
    %c0_i32 = arith.constant 0 : i32
    %c0_i32_0 = arith.constant 0 : i32
    %c0_i32_1 = arith.constant 0 : i32
    return %c0_i32, %c0_i32_0 : i32, i32
  }
  func.func @transform_4(%arg0: i32) -> (i32, i32, i32, i32) {
    %c0_i32 = arith.constant 0 : i32
    %c0_i32_0 = arith.constant 0 : i32
    %c0_i32_1 = arith.constant 0 : i32
    %c0_i32_2 = arith.constant 0 : i32
    return %arg0, %c0_i32, %c0_i32_0, %c0_i32_1 : i32, i32, i32, i32
  }
}

module attributes {stable_mosaic.version = 11 : i64} {
  func.func @_conv_relu_pool_kernel(%arg0: i32, %arg1: memref<1x304x64xbf16, #tpu.memory_space<vmem>>, %arg2: memref<1x304x64xbf16, #tpu.memory_space<vmem>>, %arg3: memref<9x64x128xbf16, #tpu.memory_space<vmem>>, %arg4: memref<1x128xf32, #tpu.memory_space<vmem>>, %arg5: memref<1x8x8x128xbf16, #tpu.memory_space<vmem>>, %arg6: memref<64x128xf32, #tpu.memory_space<vmem>>) attributes {dimension_semantics = [#tpu.dimension_semantics<parallel>], iteration_bounds = array<i64: 2>, scalar_prefetch = 0 : i64, scratch_operands = 1 : i64, tpu.core_type = #tpu.core_type<tc>, window_params = [{transform_indices = @transform_0, window_bounds = array<i64: 1, 304, 64>}, {transform_indices = @transform_1, window_bounds = array<i64: 1, 304, 64>}, {pipeline_mode = #tpu.pipeline_mode<synchronous>, transform_indices = @transform_2, window_bounds = array<i64: 9, 64, 128>}, {pipeline_mode = #tpu.pipeline_mode<synchronous>, transform_indices = @transform_3, window_bounds = array<i64: 1, 128>}, {transform_indices = @transform_4, window_bounds = array<i64: 1, 8, 8, 128>}]} {
    %c0 = arith.constant 0 : index
    %c0_0 = arith.constant 0 : index
    %0 = vector.load %arg4[%c0, %c0_0] : memref<1x128xf32, #tpu.memory_space<vmem>>, vector<1x128xf32>
    %c0_1 = arith.constant 0 : index
    %c0_2 = arith.constant 0 : index
    %c0_3 = arith.constant 0 : index
    %1 = vector.load %arg1[%c0_1, %c0_2, %c0_3] : memref<1x304x64xbf16, #tpu.memory_space<vmem>>, vector<1x64x64xbf16>
    %2 = vector.shape_cast %1 : vector<1x64x64xbf16> to vector<64x64xbf16>
    %c0_4 = arith.constant 0 : index
    %c0_5 = arith.constant 0 : index
    %c0_6 = arith.constant 0 : index
    %3 = vector.load %arg3[%c0_4, %c0_5, %c0_6] : memref<9x64x128xbf16, #tpu.memory_space<vmem>>, vector<1x64x128xbf16>
    %4 = vector.shape_cast %3 : vector<1x64x128xbf16> to vector<64x128xbf16>
    %cst = arith.constant dense<0.000000e+00> : vector<64x128xf32>
    %5 = tpu.matmul %2, %4, %cst {dimension_numbers = #tpu.dot_dimension_numbers<[1], [0], [0], [1], [0, 0, 1, 1], [], []>} : vector<64x64xbf16>, vector<64x128xbf16>, vector<64x128xf32> -> vector<64x128xf32>
    %c0_7 = arith.constant 0 : index
    %c0_8 = arith.constant 0 : index
    %c0_9 = arith.constant 0 : index
    %6 = vector.load %arg2[%c0_7, %c0_8, %c0_9] : memref<1x304x64xbf16, #tpu.memory_space<vmem>>, vector<1x64x64xbf16>
    %7 = vector.shape_cast %6 : vector<1x64x64xbf16> to vector<64x64xbf16>
    %c1 = arith.constant 1 : index
    %c0_10 = arith.constant 0 : index
    %c0_11 = arith.constant 0 : index
    %8 = vector.load %arg3[%c1, %c0_10, %c0_11] : memref<9x64x128xbf16, #tpu.memory_space<vmem>>, vector<1x64x128xbf16>
    %9 = vector.shape_cast %8 : vector<1x64x128xbf16> to vector<64x128xbf16>
    %cst_12 = arith.constant dense<0.000000e+00> : vector<64x128xf32>
    %10 = tpu.matmul %7, %9, %cst_12 {dimension_numbers = #tpu.dot_dimension_numbers<[1], [0], [0], [1], [0, 0, 1, 1], [], []>} : vector<64x64xbf16>, vector<64x128xbf16>, vector<64x128xf32> -> vector<64x128xf32>
    %11 = arith.addf %5, %10 : vector<64x128xf32>
    %c0_13 = arith.constant 0 : index
    %c1_14 = arith.constant 1 : index
    %c0_15 = arith.constant 0 : index
    %12 = vector.load %arg1[%c0_13, %c1_14, %c0_15] : memref<1x304x64xbf16, #tpu.memory_space<vmem>>, vector<1x64x64xbf16>
    %13 = vector.shape_cast %12 : vector<1x64x64xbf16> to vector<64x64xbf16>
    %c2 = arith.constant 2 : index
    %c0_16 = arith.constant 0 : index
    %c0_17 = arith.constant 0 : index
    %14 = vector.load %arg3[%c2, %c0_16, %c0_17] : memref<9x64x128xbf16, #tpu.memory_space<vmem>>, vector<1x64x128xbf16>
    %15 = vector.shape_cast %14 : vector<1x64x128xbf16> to vector<64x128xbf16>
    %cst_18 = arith.constant dense<0.000000e+00> : vector<64x128xf32>
    %16 = tpu.matmul %13, %15, %cst_18 {dimension_numbers = #tpu.dot_dimension_numbers<[1], [0], [0], [1], [0, 0, 1, 1], [], []>} : vector<64x64xbf16>, vector<64x128xbf16>, vector<64x128xf32> -> vector<64x128xf32>
    %17 = arith.addf %11, %16 : vector<64x128xf32>
    %c0_19 = arith.constant 0 : index
    %c16 = arith.constant 16 : index
    %c0_20 = arith.constant 0 : index
    %18 = vector.load %arg1[%c0_19, %c16, %c0_20] : memref<1x304x64xbf16, #tpu.memory_space<vmem>>, vector<1x64x64xbf16>
    %19 = vector.shape_cast %18 : vector<1x64x64xbf16> to vector<64x64xbf16>
    %c3 = arith.constant 3 : index
    %c0_21 = arith.constant 0 : index
    %c0_22 = arith.constant 0 : index
    %20 = vector.load %arg3[%c3, %c0_21, %c0_22] : memref<9x64x128xbf16, #tpu.memory_space<vmem>>, vector<1x64x128xbf16>
    %21 = vector.shape_cast %20 : vector<1x64x128xbf16> to vector<64x128xbf16>
    %cst_23 = arith.constant dense<0.000000e+00> : vector<64x128xf32>
    %22 = tpu.matmul %19, %21, %cst_23 {dimension_numbers = #tpu.dot_dimension_numbers<[1], [0], [0], [1], [0, 0, 1, 1], [], []>} : vector<64x64xbf16>, vector<64x128xbf16>, vector<64x128xf32> -> vector<64x128xf32>
    %23 = arith.addf %17, %22 : vector<64x128xf32>
    %c0_24 = arith.constant 0 : index
    %c16_25 = arith.constant 16 : index
    %c0_26 = arith.constant 0 : index
    %24 = vector.load %arg2[%c0_24, %c16_25, %c0_26] : memref<1x304x64xbf16, #tpu.memory_space<vmem>>, vector<1x64x64xbf16>
    %25 = vector.shape_cast %24 : vector<1x64x64xbf16> to vector<64x64xbf16>
    %c4 = arith.constant 4 : index
    %c0_27 = arith.constant 0 : index
    %c0_28 = arith.constant 0 : index
    %26 = vector.load %arg3[%c4, %c0_27, %c0_28] : memref<9x64x128xbf16, #tpu.memory_space<vmem>>, vector<1x64x128xbf16>
    %27 = vector.shape_cast %26 : vector<1x64x128xbf16> to vector<64x128xbf16>
    %cst_29 = arith.constant dense<0.000000e+00> : vector<64x128xf32>
    %28 = tpu.matmul %25, %27, %cst_29 {dimension_numbers = #tpu.dot_dimension_numbers<[1], [0], [0], [1], [0, 0, 1, 1], [], []>} : vector<64x64xbf16>, vector<64x128xbf16>, vector<64x128xf32> -> vector<64x128xf32>
    %29 = arith.addf %23, %28 : vector<64x128xf32>
    %c0_30 = arith.constant 0 : index
    %c17 = arith.constant 17 : index
    %c0_31 = arith.constant 0 : index
    %30 = vector.load %arg1[%c0_30, %c17, %c0_31] : memref<1x304x64xbf16, #tpu.memory_space<vmem>>, vector<1x64x64xbf16>
    %31 = vector.shape_cast %30 : vector<1x64x64xbf16> to vector<64x64xbf16>
    %c5 = arith.constant 5 : index
    %c0_32 = arith.constant 0 : index
    %c0_33 = arith.constant 0 : index
    %32 = vector.load %arg3[%c5, %c0_32, %c0_33] : memref<9x64x128xbf16, #tpu.memory_space<vmem>>, vector<1x64x128xbf16>
    %33 = vector.shape_cast %32 : vector<1x64x128xbf16> to vector<64x128xbf16>
    %cst_34 = arith.constant dense<0.000000e+00> : vector<64x128xf32>
    %34 = tpu.matmul %31, %33, %cst_34 {dimension_numbers = #tpu.dot_dimension_numbers<[1], [0], [0], [1], [0, 0, 1, 1], [], []>} : vector<64x64xbf16>, vector<64x128xbf16>, vector<64x128xf32> -> vector<64x128xf32>
    %35 = arith.addf %29, %34 : vector<64x128xf32>
    %c0_35 = arith.constant 0 : index
    %c32 = arith.constant 32 : index
    %c0_36 = arith.constant 0 : index
    %36 = vector.load %arg1[%c0_35, %c32, %c0_36] : memref<1x304x64xbf16, #tpu.memory_space<vmem>>, vector<1x64x64xbf16>
    %37 = vector.shape_cast %36 : vector<1x64x64xbf16> to vector<64x64xbf16>
    %c6 = arith.constant 6 : index
    %c0_37 = arith.constant 0 : index
    %c0_38 = arith.constant 0 : index
    %38 = vector.load %arg3[%c6, %c0_37, %c0_38] : memref<9x64x128xbf16, #tpu.memory_space<vmem>>, vector<1x64x128xbf16>
    %39 = vector.shape_cast %38 : vector<1x64x128xbf16> to vector<64x128xbf16>
    %cst_39 = arith.constant dense<0.000000e+00> : vector<64x128xf32>
    %40 = tpu.matmul %37, %39, %cst_39 {dimension_numbers = #tpu.dot_dimension_numbers<[1], [0], [0], [1], [0, 0, 1, 1], [], []>} : vector<64x64xbf16>, vector<64x128xbf16>, vector<64x128xf32> -> vector<64x128xf32>
    %41 = arith.addf %35, %40 : vector<64x128xf32>
    %c0_40 = arith.constant 0 : index
    %c32_41 = arith.constant 32 : index
    %c0_42 = arith.constant 0 : index
    %42 = vector.load %arg2[%c0_40, %c32_41, %c0_42] : memref<1x304x64xbf16, #tpu.memory_space<vmem>>, vector<1x64x64xbf16>
    %43 = vector.shape_cast %42 : vector<1x64x64xbf16> to vector<64x64xbf16>
    %c7 = arith.constant 7 : index
    %c0_43 = arith.constant 0 : index
    %c0_44 = arith.constant 0 : index
    %44 = vector.load %arg3[%c7, %c0_43, %c0_44] : memref<9x64x128xbf16, #tpu.memory_space<vmem>>, vector<1x64x128xbf16>
    %45 = vector.shape_cast %44 : vector<1x64x128xbf16> to vector<64x128xbf16>
    %cst_45 = arith.constant dense<0.000000e+00> : vector<64x128xf32>
    %46 = tpu.matmul %43, %45, %cst_45 {dimension_numbers = #tpu.dot_dimension_numbers<[1], [0], [0], [1], [0, 0, 1, 1], [], []>} : vector<64x64xbf16>, vector<64x128xbf16>, vector<64x128xf32> -> vector<64x128xf32>
    %47 = arith.addf %41, %46 : vector<64x128xf32>
    %c0_46 = arith.constant 0 : index
    %c33 = arith.constant 33 : index
    %c0_47 = arith.constant 0 : index
    %48 = vector.load %arg1[%c0_46, %c33, %c0_47] : memref<1x304x64xbf16, #tpu.memory_space<vmem>>, vector<1x64x64xbf16>
    %49 = vector.shape_cast %48 : vector<1x64x64xbf16> to vector<64x64xbf16>
    %c8 = arith.constant 8 : index
    %c0_48 = arith.constant 0 : index
    %c0_49 = arith.constant 0 : index
    %50 = vector.load %arg3[%c8, %c0_48, %c0_49] : memref<9x64x128xbf16, #tpu.memory_space<vmem>>, vector<1x64x128xbf16>
    %51 = vector.shape_cast %50 : vector<1x64x128xbf16> to vector<64x128xbf16>
    %cst_50 = arith.constant dense<0.000000e+00> : vector<64x128xf32>
    %52 = tpu.matmul %49, %51, %cst_50 {dimension_numbers = #tpu.dot_dimension_numbers<[1], [0], [0], [1], [0, 0, 1, 1], [], []>} : vector<64x64xbf16>, vector<64x128xbf16>, vector<64x128xf32> -> vector<64x128xf32>
    %53 = arith.addf %47, %52 : vector<64x128xf32>
    %c0_51 = arith.constant 0 : index
    %c0_52 = arith.constant 0 : index
    %54 = vector.load %arg6[%c0_51, %c0_52] : memref<64x128xf32, #tpu.memory_space<vmem>>, vector<64x128xf32>
    tpu.vector_store %arg6[%c0_51, %c0_52], %53 {strides = array<i32>} : memref<64x128xf32, #tpu.memory_space<vmem>>, vector<64x128xf32>,
    %c0_53 = arith.constant 0 : index
    %c0_54 = arith.constant 0 : index
    %c0_55 = arith.constant 0 : index
    %55 = vector.load %arg2[%c0_53, %c0_54, %c0_55] : memref<1x304x64xbf16, #tpu.memory_space<vmem>>, vector<1x64x64xbf16>
    %56 = vector.shape_cast %55 : vector<1x64x64xbf16> to vector<64x64xbf16>
    %c0_56 = arith.constant 0 : index
    %c0_57 = arith.constant 0 : index
    %c0_58 = arith.constant 0 : index
    %57 = vector.load %arg3[%c0_56, %c0_57, %c0_58] : memref<9x64x128xbf16, #tpu.memory_space<vmem>>, vector<1x64x128xbf16>
    %58 = vector.shape_cast %57 : vector<1x64x128xbf16> to vector<64x128xbf16>
    %cst_59 = arith.constant dense<0.000000e+00> : vector<64x128xf32>
    %59 = tpu.matmul %56, %58, %cst_59 {dimension_numbers = #tpu.dot_dimension_numbers<[1], [0], [0], [1], [0, 0, 1, 1], [], []>} : vector<64x64xbf16>, vector<64x128xbf16>, vector<64x128xf32> -> vector<64x128xf32>
    %c0_60 = arith.constant 0 : index
    %c1_61 = arith.constant 1 : index
    %c0_62 = arith.constant 0 : index
    %60 = vector.load %arg1[%c0_60, %c1_61, %c0_62] : memref<1x304x64xbf16, #tpu.memory_space<vmem>>, vector<1x64x64xbf16>
    %61 = vector.shape_cast %60 : vector<1x64x64xbf16> to vector<64x64xbf16>
    %c1_63 = arith.constant 1 : index
    %c0_64 = arith.constant 0 : index
    %c0_65 = arith.constant 0 : index
    %62 = vector.load %arg3[%c1_63, %c0_64, %c0_65] : memref<9x64x128xbf16, #tpu.memory_space<vmem>>, vector<1x64x128xbf16>
    %63 = vector.shape_cast %62 : vector<1x64x128xbf16> to vector<64x128xbf16>
    %cst_66 = arith.constant dense<0.000000e+00> : vector<64x128xf32>
    %64 = tpu.matmul %61, %63, %cst_66 {dimension_numbers = #tpu.dot_dimension_numbers<[1], [0], [0], [1], [0, 0, 1, 1], [], []>} : vector<64x64xbf16>, vector<64x128xbf16>, vector<64x128xf32> -> vector<64x128xf32>
    %65 = arith.addf %59, %64 : vector<64x128xf32>
    %c0_67 = arith.constant 0 : index
    %c1_68 = arith.constant 1 : index
    %c0_69 = arith.constant 0 : index
    %66 = vector.load %arg2[%c0_67, %c1_68, %c0_69] : memref<1x304x64xbf16, #tpu.memory_space<vmem>>, vector<1x64x64xbf16>
    %67 = vector.shape_cast %66 : vector<1x64x64xbf16> to vector<64x64xbf16>
    %c2_70 = arith.constant 2 : index
    %c0_71 = arith.constant 0 : index
    %c0_72 = arith.constant 0 : index
    %68 = vector.load %arg3[%c2_70, %c0_71, %c0_72] : memref<9x64x128xbf16, #tpu.memory_space<vmem>>, vector<1x64x128xbf16>
    %69 = vector.shape_cast %68 : vector<1x64x128xbf16> to vector<64x128xbf16>
    %cst_73 = arith.constant dense<0.000000e+00> : vector<64x128xf32>
    %70 = tpu.matmul %67, %69, %cst_73 {dimension_numbers = #tpu.dot_dimension_numbers<[1], [0], [0], [1], [0, 0, 1, 1], [], []>} : vector<64x64xbf16>, vector<64x128xbf16>, vector<64x128xf32> -> vector<64x128xf32>
    %71 = arith.addf %65, %70 : vector<64x128xf32>
    %c0_74 = arith.constant 0 : index
    %c16_75 = arith.constant 16 : index
    %c0_76 = arith.constant 0 : index
    %72 = vector.load %arg2[%c0_74, %c16_75, %c0_76] : memref<1x304x64xbf16, #tpu.memory_space<vmem>>, vector<1x64x64xbf16>
    %73 = vector.shape_cast %72 : vector<1x64x64xbf16> to vector<64x64xbf16>
    %c3_77 = arith.constant 3 : index
    %c0_78 = arith.constant 0 : index
    %c0_79 = arith.constant 0 : index
    %74 = vector.load %arg3[%c3_77, %c0_78, %c0_79] : memref<9x64x128xbf16, #tpu.memory_space<vmem>>, vector<1x64x128xbf16>
    %75 = vector.shape_cast %74 : vector<1x64x128xbf16> to vector<64x128xbf16>
    %cst_80 = arith.constant dense<0.000000e+00> : vector<64x128xf32>
    %76 = tpu.matmul %73, %75, %cst_80 {dimension_numbers = #tpu.dot_dimension_numbers<[1], [0], [0], [1], [0, 0, 1, 1], [], []>} : vector<64x64xbf16>, vector<64x128xbf16>, vector<64x128xf32> -> vector<64x128xf32>
    %77 = arith.addf %71, %76 : vector<64x128xf32>
    %c0_81 = arith.constant 0 : index
    %c17_82 = arith.constant 17 : index
    %c0_83 = arith.constant 0 : index
    %78 = vector.load %arg1[%c0_81, %c17_82, %c0_83] : memref<1x304x64xbf16, #tpu.memory_space<vmem>>, vector<1x64x64xbf16>
    %79 = vector.shape_cast %78 : vector<1x64x64xbf16> to vector<64x64xbf16>
    %c4_84 = arith.constant 4 : index
    %c0_85 = arith.constant 0 : index
    %c0_86 = arith.constant 0 : index
    %80 = vector.load %arg3[%c4_84, %c0_85, %c0_86] : memref<9x64x128xbf16, #tpu.memory_space<vmem>>, vector<1x64x128xbf16>
    %81 = vector.shape_cast %80 : vector<1x64x128xbf16> to vector<64x128xbf16>
    %cst_87 = arith.constant dense<0.000000e+00> : vector<64x128xf32>
    %82 = tpu.matmul %79, %81, %cst_87 {dimension_numbers = #tpu.dot_dimension_numbers<[1], [0], [0], [1], [0, 0, 1, 1], [], []>} : vector<64x64xbf16>, vector<64x128xbf16>, vector<64x128xf32> -> vector<64x128xf32>
    %83 = arith.addf %77, %82 : vector<64x128xf32>
    %c0_88 = arith.constant 0 : index
    %c17_89 = arith.constant 17 : index
    %c0_90 = arith.constant 0 : index
    %84 = vector.load %arg2[%c0_88, %c17_89, %c0_90] : memref<1x304x64xbf16, #tpu.memory_space<vmem>>, vector<1x64x64xbf16>
    %85 = vector.shape_cast %84 : vector<1x64x64xbf16> to vector<64x64xbf16>
    %c5_91 = arith.constant 5 : index
    %c0_92 = arith.constant 0 : index
    %c0_93 = arith.constant 0 : index
    %86 = vector.load %arg3[%c5_91, %c0_92, %c0_93] : memref<9x64x128xbf16, #tpu.memory_space<vmem>>, vector<1x64x128xbf16>
    %87 = vector.shape_cast %86 : vector<1x64x128xbf16> to vector<64x128xbf16>
    %cst_94 = arith.constant dense<0.000000e+00> : vector<64x128xf32>
    %88 = tpu.matmul %85, %87, %cst_94 {dimension_numbers = #tpu.dot_dimension_numbers<[1], [0], [0], [1], [0, 0, 1, 1], [], []>} : vector<64x64xbf16>, vector<64x128xbf16>, vector<64x128xf32> -> vector<64x128xf32>
    %89 = arith.addf %83, %88 : vector<64x128xf32>
    %c0_95 = arith.constant 0 : index
    %c32_96 = arith.constant 32 : index
    %c0_97 = arith.constant 0 : index
    %90 = vector.load %arg2[%c0_95, %c32_96, %c0_97] : memref<1x304x64xbf16, #tpu.memory_space<vmem>>, vector<1x64x64xbf16>
    %91 = vector.shape_cast %90 : vector<1x64x64xbf16> to vector<64x64xbf16>
    %c6_98 = arith.constant 6 : index
    %c0_99 = arith.constant 0 : index
    %c0_100 = arith.constant 0 : index
    %92 = vector.load %arg3[%c6_98, %c0_99, %c0_100] : memref<9x64x128xbf16, #tpu.memory_space<vmem>>, vector<1x64x128xbf16>
    %93 = vector.shape_cast %92 : vector<1x64x128xbf16> to vector<64x128xbf16>
    %cst_101 = arith.constant dense<0.000000e+00> : vector<64x128xf32>
    %94 = tpu.matmul %91, %93, %cst_101 {dimension_numbers = #tpu.dot_dimension_numbers<[1], [0], [0], [1], [0, 0, 1, 1], [], []>} : vector<64x64xbf16>, vector<64x128xbf16>, vector<64x128xf32> -> vector<64x128xf32>
    %95 = arith.addf %89, %94 : vector<64x128xf32>
    %c0_102 = arith.constant 0 : index
    %c33_103 = arith.constant 33 : index
    %c0_104 = arith.constant 0 : index
    %96 = vector.load %arg1[%c0_102, %c33_103, %c0_104] : memref<1x304x64xbf16, #tpu.memory_space<vmem>>, vector<1x64x64xbf16>
    %97 = vector.shape_cast %96 : vector<1x64x64xbf16> to vector<64x64xbf16>
    %c7_105 = arith.constant 7 : index
    %c0_106 = arith.constant 0 : index
    %c0_107 = arith.constant 0 : index
    %98 = vector.load %arg3[%c7_105, %c0_106, %c0_107] : memref<9x64x128xbf16, #tpu.memory_space<vmem>>, vector<1x64x128xbf16>
    %99 = vector.shape_cast %98 : vector<1x64x128xbf16> to vector<64x128xbf16>
    %cst_108 = arith.constant dense<0.000000e+00> : vector<64x128xf32>
    %100 = tpu.matmul %97, %99, %cst_108 {dimension_numbers = #tpu.dot_dimension_numbers<[1], [0], [0], [1], [0, 0, 1, 1], [], []>} : vector<64x64xbf16>, vector<64x128xbf16>, vector<64x128xf32> -> vector<64x128xf32>
    %101 = arith.addf %95, %100 : vector<64x128xf32>
    %c0_109 = arith.constant 0 : index
    %c33_110 = arith.constant 33 : index
    %c0_111 = arith.constant 0 : index
    %102 = vector.load %arg2[%c0_109, %c33_110, %c0_111] : memref<1x304x64xbf16, #tpu.memory_space<vmem>>, vector<1x64x64xbf16>
    %103 = vector.shape_cast %102 : vector<1x64x64xbf16> to vector<64x64xbf16>
    %c8_112 = arith.constant 8 : index
    %c0_113 = arith.constant 0 : index
    %c0_114 = arith.constant 0 : index
    %104 = vector.load %arg3[%c8_112, %c0_113, %c0_114] : memref<9x64x128xbf16, #tpu.memory_space<vmem>>, vector<1x64x128xbf16>
    %105 = vector.shape_cast %104 : vector<1x64x128xbf16> to vector<64x128xbf16>
    %cst_115 = arith.constant dense<0.000000e+00> : vector<64x128xf32>
    %106 = tpu.matmul %103, %105, %cst_115 {dimension_numbers = #tpu.dot_dimension_numbers<[1], [0], [0], [1], [0, 0, 1, 1], [], []>} : vector<64x64xbf16>, vector<64x128xbf16>, vector<64x128xf32> -> vector<64x128xf32>
    %107 = arith.addf %101, %106 : vector<64x128xf32>
    %c0_116 = arith.constant 0 : index
    %c0_117 = arith.constant 0 : index
    %108 = vector.load %arg6[%c0_116, %c0_117] : memref<64x128xf32, #tpu.memory_space<vmem>>, vector<64x128xf32>
    %109 = arith.maximumf %108, %107 : vector<64x128xf32>
    %110 = vector.shape_cast %109 : vector<64x128xf32> to vector<2x32x128xf32>
    %111 = vector.extract_strided_slice %110 {offsets = [0, 0, 0], sizes = [2, 16, 128], strides = [1, 1, 1]} : vector<2x32x128xf32> to vector<2x16x128xf32>
    %112 = vector.extract_strided_slice %110 {offsets = [0, 16, 0], sizes = [2, 16, 128], strides = [1, 1, 1]} : vector<2x32x128xf32> to vector<2x16x128xf32>
    %113 = arith.maximumf %111, %112 : vector<2x16x128xf32>
    %114 = vector.extract_strided_slice %113 {offsets = [0, 0, 0], sizes = [2, 8, 128], strides = [1, 1, 1]} : vector<2x16x128xf32> to vector<2x8x128xf32>
    %115 = vector.shape_cast %0 : vector<1x128xf32> to vector<1x1x128xf32>
    %116 = vector.broadcast %115 : vector<1x1x128xf32> to vector<2x8x128xf32>
    %117 = arith.addf %114, %116 : vector<2x8x128xf32>
    %cst_118 = arith.constant 0.000000e+00 : f32
    %118 = vector.broadcast %cst_118 : f32 to vector<2x8x128xf32>
    %119 = arith.maximumf %117, %118 : vector<2x8x128xf32>
    %120 = vector.shape_cast %119 : vector<2x8x128xf32> to vector<1x2x8x128xf32>
    %121 = arith.truncf %120 : vector<1x2x8x128xf32> to vector<1x2x8x128xbf16>
    %c0_119 = arith.constant 0 : index
    %c0_120 = arith.constant 0 : index
    %c0_121 = arith.constant 0 : index
    %c0_122 = arith.constant 0 : index
    %122 = vector.load %arg5[%c0_119, %c0_120, %c0_121, %c0_122] : memref<1x8x8x128xbf16, #tpu.memory_space<vmem>>, vector<1x2x8x128xbf16>
    tpu.vector_store %arg5[%c0_119, %c0_120, %c0_121, %c0_122], %121 {strides = array<i32>} : memref<1x8x8x128xbf16, #tpu.memory_space<vmem>>, vector<1x2x8x128xbf16>,
    %c0_123 = arith.constant 0 : index
    %c64 = arith.constant 64 : index
    %c0_124 = arith.constant 0 : index
    %123 = vector.load %arg1[%c0_123, %c64, %c0_124] : memref<1x304x64xbf16, #tpu.memory_space<vmem>>, vector<1x64x64xbf16>
    %124 = vector.shape_cast %123 : vector<1x64x64xbf16> to vector<64x64xbf16>
    %c0_125 = arith.constant 0 : index
    %c0_126 = arith.constant 0 : index
    %c0_127 = arith.constant 0 : index
    %125 = vector.load %arg3[%c0_125, %c0_126, %c0_127] : memref<9x64x128xbf16, #tpu.memory_space<vmem>>, vector<1x64x128xbf16>
    %126 = vector.shape_cast %125 : vector<1x64x128xbf16> to vector<64x128xbf16>
    %cst_128 = arith.constant dense<0.000000e+00> : vector<64x128xf32>
    %127 = tpu.matmul %124, %126, %cst_128 {dimension_numbers = #tpu.dot_dimension_numbers<[1], [0], [0], [1], [0, 0, 1, 1], [], []>} : vector<64x64xbf16>, vector<64x128xbf16>, vector<64x128xf32> -> vector<64x128xf32>
    %c0_129 = arith.constant 0 : index
    %c64_130 = arith.constant 64 : index
    %c0_131 = arith.constant 0 : index
    %128 = vector.load %arg2[%c0_129, %c64_130, %c0_131] : memref<1x304x64xbf16, #tpu.memory_space<vmem>>, vector<1x64x64xbf16>
    %129 = vector.shape_cast %128 : vector<1x64x64xbf16> to vector<64x64xbf16>
    %c1_132 = arith.constant 1 : index
    %c0_133 = arith.constant 0 : index
    %c0_134 = arith.constant 0 : index
    %130 = vector.load %arg3[%c1_132, %c0_133, %c0_134] : memref<9x64x128xbf16, #tpu.memory_space<vmem>>, vector<1x64x128xbf16>
    %131 = vector.shape_cast %130 : vector<1x64x128xbf16> to vector<64x128xbf16>
    %cst_135 = arith.constant dense<0.000000e+00> : vector<64x128xf32>
    %132 = tpu.matmul %129, %131, %cst_135 {dimension_numbers = #tpu.dot_dimension_numbers<[1], [0], [0], [1], [0, 0, 1, 1], [], []>} : vector<64x64xbf16>, vector<64x128xbf16>, vector<64x128xf32> -> vector<64x128xf32>
    %133 = arith.addf %127, %132 : vector<64x128xf32>
    %c0_136 = arith.constant 0 : index
    %c65 = arith.constant 65 : index
    %c0_137 = arith.constant 0 : index
    %134 = vector.load %arg1[%c0_136, %c65, %c0_137] : memref<1x304x64xbf16, #tpu.memory_space<vmem>>, vector<1x64x64xbf16>
    %135 = vector.shape_cast %134 : vector<1x64x64xbf16> to vector<64x64xbf16>
    %c2_138 = arith.constant 2 : index
    %c0_139 = arith.constant 0 : index
    %c0_140 = arith.constant 0 : index
    %136 = vector.load %arg3[%c2_138, %c0_139, %c0_140] : memref<9x64x128xbf16, #tpu.memory_space<vmem>>, vector<1x64x128xbf16>
    %137 = vector.shape_cast %136 : vector<1x64x128xbf16> to vector<64x128xbf16>
    %cst_141 = arith.constant dense<0.000000e+00> : vector<64x128xf32>
    %138 = tpu.matmul %135, %137, %cst_141 {dimension_numbers = #tpu.dot_dimension_numbers<[1], [0], [0], [1], [0, 0, 1, 1], [], []>} : vector<64x64xbf16>, vector<64x128xbf16>, vector<64x128xf32> -> vector<64x128xf32>
    %139 = arith.addf %133, %138 : vector<64x128xf32>
    %c0_142 = arith.constant 0 : index
    %c80 = arith.constant 80 : index
    %c0_143 = arith.constant 0 : index
    %140 = vector.load %arg1[%c0_142, %c80, %c0_143] : memref<1x304x64xbf16, #tpu.memory_space<vmem>>, vector<1x64x64xbf16>
    %141 = vector.shape_cast %140 : vector<1x64x64xbf16> to vector<64x64xbf16>
    %c3_144 = arith.constant 3 : index
    %c0_145 = arith.constant 0 : index
    %c0_146 = arith.constant 0 : index
    %142 = vector.load %arg3[%c3_144, %c0_145, %c0_146] : memref<9x64x128xbf16, #tpu.memory_space<vmem>>, vector<1x64x128xbf16>
    %143 = vector.shape_cast %142 : vector<1x64x128xbf16> to vector<64x128xbf16>
    %cst_147 = arith.constant dense<0.000000e+00> : vector<64x128xf32>
    %144 = tpu.matmul %141, %143, %cst_147 {dimension_numbers = #tpu.dot_dimension_numbers<[1], [0], [0], [1], [0, 0, 1, 1], [], []>} : vector<64x64xbf16>, vector<64x128xbf16>, vector<64x128xf32> -> vector<64x128xf32>
    %145 = arith.addf %139, %144 : vector<64x128xf32>
    %c0_148 = arith.constant 0 : index
    %c80_149 = arith.constant 80 : index
    %c0_150 = arith.constant 0 : index
    %146 = vector.load %arg2[%c0_148, %c80_149, %c0_150] : memref<1x304x64xbf16, #tpu.memory_space<vmem>>, vector<1x64x64xbf16>
    %147 = vector.shape_cast %146 : vector<1x64x64xbf16> to vector<64x64xbf16>
    %c4_151 = arith.constant 4 : index
    %c0_152 = arith.constant 0 : index
    %c0_153 = arith.constant 0 : index
    %148 = vector.load %arg3[%c4_151, %c0_152, %c0_153] : memref<9x64x128xbf16, #tpu.memory_space<vmem>>, vector<1x64x128xbf16>
    %149 = vector.shape_cast %148 : vector<1x64x128xbf16> to vector<64x128xbf16>
    %cst_154 = arith.constant dense<0.000000e+00> : vector<64x128xf32>
    %150 = tpu.matmul %147, %149, %cst_154 {dimension_numbers = #tpu.dot_dimension_numbers<[1], [0], [0], [1], [0, 0, 1, 1], [], []>} : vector<64x64xbf16>, vector<64x128xbf16>, vector<64x128xf32> -> vector<64x128xf32>
    %151 = arith.addf %145, %150 : vector<64x128xf32>
    %c0_155 = arith.constant 0 : index
    %c81 = arith.constant 81 : index
    %c0_156 = arith.constant 0 : index
    %152 = vector.load %arg1[%c0_155, %c81, %c0_156] : memref<1x304x64xbf16, #tpu.memory_space<vmem>>, vector<1x64x64xbf16>
    %153 = vector.shape_cast %152 : vector<1x64x64xbf16> to vector<64x64xbf16>
    %c5_157 = arith.constant 5 : index
    %c0_158 = arith.constant 0 : index
    %c0_159 = arith.constant 0 : index
    %154 = vector.load %arg3[%c5_157, %c0_158, %c0_159] : memref<9x64x128xbf16, #tpu.memory_space<vmem>>, vector<1x64x128xbf16>
    %155 = vector.shape_cast %154 : vector<1x64x128xbf16> to vector<64x128xbf16>
    %cst_160 = arith.constant dense<0.000000e+00> : vector<64x128xf32>
    %156 = tpu.matmul %153, %155, %cst_160 {dimension_numbers = #tpu.dot_dimension_numbers<[1], [0], [0], [1], [0, 0, 1, 1], [], []>} : vector<64x64xbf16>, vector<64x128xbf16>, vector<64x128xf32> -> vector<64x128xf32>
    %157 = arith.addf %151, %156 : vector<64x128xf32>
    %c0_161 = arith.constant 0 : index
    %c96 = arith.constant 96 : index
    %c0_162 = arith.constant 0 : index
    %158 = vector.load %arg1[%c0_161, %c96, %c0_162] : memref<1x304x64xbf16, #tpu.memory_space<vmem>>, vector<1x64x64xbf16>
    %159 = vector.shape_cast %158 : vector<1x64x64xbf16> to vector<64x64xbf16>
    %c6_163 = arith.constant 6 : index
    %c0_164 = arith.constant 0 : index
    %c0_165 = arith.constant 0 : index
    %160 = vector.load %arg3[%c6_163, %c0_164, %c0_165] : memref<9x64x128xbf16, #tpu.memory_space<vmem>>, vector<1x64x128xbf16>
    %161 = vector.shape_cast %160 : vector<1x64x128xbf16> to vector<64x128xbf16>
    %cst_166 = arith.constant dense<0.000000e+00> : vector<64x128xf32>
    %162 = tpu.matmul %159, %161, %cst_166 {dimension_numbers = #tpu.dot_dimension_numbers<[1], [0], [0], [1], [0, 0, 1, 1], [], []>} : vector<64x64xbf16>, vector<64x128xbf16>, vector<64x128xf32> -> vector<64x128xf32>
    %163 = arith.addf %157, %162 : vector<64x128xf32>
    %c0_167 = arith.constant 0 : index
    %c96_168 = arith.constant 96 : index
    %c0_169 = arith.constant 0 : index
    %164 = vector.load %arg2[%c0_167, %c96_168, %c0_169] : memref<1x304x64xbf16, #tpu.memory_space<vmem>>, vector<1x64x64xbf16>
    %165 = vector.shape_cast %164 : vector<1x64x64xbf16> to vector<64x64xbf16>
    %c7_170 = arith.constant 7 : index
    %c0_171 = arith.constant 0 : index
    %c0_172 = arith.constant 0 : index
    %166 = vector.load %arg3[%c7_170, %c0_171, %c0_172] : memref<9x64x128xbf16, #tpu.memory_space<vmem>>, vector<1x64x128xbf16>
    %167 = vector.shape_cast %166 : vector<1x64x128xbf16> to vector<64x128xbf16>
    %cst_173 = arith.constant dense<0.000000e+00> : vector<64x128xf32>
    %168 = tpu.matmul %165, %167, %cst_173 {dimension_numbers = #tpu.dot_dimension_numbers<[1], [0], [0], [1], [0, 0, 1, 1], [], []>} : vector<64x64xbf16>, vector<64x128xbf16>, vector<64x128xf32> -> vector<64x128xf32>
    %169 = arith.addf %163, %168 : vector<64x128xf32>
    %c0_174 = arith.constant 0 : index
    %c97 = arith.constant 97 : index
    %c0_175 = arith.constant 0 : index
    %170 = vector.load %arg1[%c0_174, %c97, %c0_175] : memref<1x304x64xbf16, #tpu.memory_space<vmem>>, vector<1x64x64xbf16>
    %171 = vector.shape_cast %170 : vector<1x64x64xbf16> to vector<64x64xbf16>
    %c8_176 = arith.constant 8 : index
    %c0_177 = arith.constant 0 : index
    %c0_178 = arith.constant 0 : index
    %172 = vector.load %arg3[%c8_176, %c0_177, %c0_178] : memref<9x64x128xbf16, #tpu.memory_space<vmem>>, vector<1x64x128xbf16>
    %173 = vector.shape_cast %172 : vector<1x64x128xbf16> to vector<64x128xbf16>
    %cst_179 = arith.constant dense<0.000000e+00> : vector<64x128xf32>
    %174 = tpu.matmul %171, %173, %cst_179 {dimension_numbers = #tpu.dot_dimension_numbers<[1], [0], [0], [1], [0, 0, 1, 1], [], []>} : vector<64x64xbf16>, vector<64x128xbf16>, vector<64x128xf32> -> vector<64x128xf32>
    %175 = arith.addf %169, %174 : vector<64x128xf32>
    %c0_180 = arith.constant 0 : index
    %c0_181 = arith.constant 0 : index
    %176 = vector.load %arg6[%c0_180, %c0_181] : memref<64x128xf32, #tpu.memory_space<vmem>>, vector<64x128xf32>
    tpu.vector_store %arg6[%c0_180, %c0_181], %175 {strides = array<i32>} : memref<64x128xf32, #tpu.memory_space<vmem>>, vector<64x128xf32>,
    %c0_182 = arith.constant 0 : index
    %c64_183 = arith.constant 64 : index
    %c0_184 = arith.constant 0 : index
    %177 = vector.load %arg2[%c0_182, %c64_183, %c0_184] : memref<1x304x64xbf16, #tpu.memory_space<vmem>>, vector<1x64x64xbf16>
    %178 = vector.shape_cast %177 : vector<1x64x64xbf16> to vector<64x64xbf16>
    %c0_185 = arith.constant 0 : index
    %c0_186 = arith.constant 0 : index
    %c0_187 = arith.constant 0 : index
    %179 = vector.load %arg3[%c0_185, %c0_186, %c0_187] : memref<9x64x128xbf16, #tpu.memory_space<vmem>>, vector<1x64x128xbf16>
    %180 = vector.shape_cast %179 : vector<1x64x128xbf16> to vector<64x128xbf16>
    %cst_188 = arith.constant dense<0.000000e+00> : vector<64x128xf32>
    %181 = tpu.matmul %178, %180, %cst_188 {dimension_numbers = #tpu.dot_dimension_numbers<[1], [0], [0], [1], [0, 0, 1, 1], [], []>} : vector<64x64xbf16>, vector<64x128xbf16>, vector<64x128xf32> -> vector<64x128xf32>
    %c0_189 = arith.constant 0 : index
    %c65_190 = arith.constant 65 : index
    %c0_191 = arith.constant 0 : index
    %182 = vector.load %arg1[%c0_189, %c65_190, %c0_191] : memref<1x304x64xbf16, #tpu.memory_space<vmem>>, vector<1x64x64xbf16>
    %183 = vector.shape_cast %182 : vector<1x64x64xbf16> to vector<64x64xbf16>
    %c1_192 = arith.constant 1 : index
    %c0_193 = arith.constant 0 : index
    %c0_194 = arith.constant 0 : index
    %184 = vector.load %arg3[%c1_192, %c0_193, %c0_194] : memref<9x64x128xbf16, #tpu.memory_space<vmem>>, vector<1x64x128xbf16>
    %185 = vector.shape_cast %184 : vector<1x64x128xbf16> to vector<64x128xbf16>
    %cst_195 = arith.constant dense<0.000000e+00> : vector<64x128xf32>
    %186 = tpu.matmul %183, %185, %cst_195 {dimension_numbers = #tpu.dot_dimension_numbers<[1], [0], [0], [1], [0, 0, 1, 1], [], []>} : vector<64x64xbf16>, vector<64x128xbf16>, vector<64x128xf32> -> vector<64x128xf32>
    %187 = arith.addf %181, %186 : vector<64x128xf32>
    %c0_196 = arith.constant 0 : index
    %c65_197 = arith.constant 65 : index
    %c0_198 = arith.constant 0 : index
    %188 = vector.load %arg2[%c0_196, %c65_197, %c0_198] : memref<1x304x64xbf16, #tpu.memory_space<vmem>>, vector<1x64x64xbf16>
    %189 = vector.shape_cast %188 : vector<1x64x64xbf16> to vector<64x64xbf16>
    %c2_199 = arith.constant 2 : index
    %c0_200 = arith.constant 0 : index
    %c0_201 = arith.constant 0 : index
    %190 = vector.load %arg3[%c2_199, %c0_200, %c0_201] : memref<9x64x128xbf16, #tpu.memory_space<vmem>>, vector<1x64x128xbf16>
    %191 = vector.shape_cast %190 : vector<1x64x128xbf16> to vector<64x128xbf16>
    %cst_202 = arith.constant dense<0.000000e+00> : vector<64x128xf32>
    %192 = tpu.matmul %189, %191, %cst_202 {dimension_numbers = #tpu.dot_dimension_numbers<[1], [0], [0], [1], [0, 0, 1, 1], [], []>} : vector<64x64xbf16>, vector<64x128xbf16>, vector<64x128xf32> -> vector<64x128xf32>
    %193 = arith.addf %187, %192 : vector<64x128xf32>
    %c0_203 = arith.constant 0 : index
    %c80_204 = arith.constant 80 : index
    %c0_205 = arith.constant 0 : index
    %194 = vector.load %arg2[%c0_203, %c80_204, %c0_205] : memref<1x304x64xbf16, #tpu.memory_space<vmem>>, vector<1x64x64xbf16>
    %195 = vector.shape_cast %194 : vector<1x64x64xbf16> to vector<64x64xbf16>
    %c3_206 = arith.constant 3 : index
    %c0_207 = arith.constant 0 : index
    %c0_208 = arith.constant 0 : index
    %196 = vector.load %arg3[%c3_206, %c0_207, %c0_208] : memref<9x64x128xbf16, #tpu.memory_space<vmem>>, vector<1x64x128xbf16>
    %197 = vector.shape_cast %196 : vector<1x64x128xbf16> to vector<64x128xbf16>
    %cst_209 = arith.constant dense<0.000000e+00> : vector<64x128xf32>
    %198 = tpu.matmul %195, %197, %cst_209 {dimension_numbers = #tpu.dot_dimension_numbers<[1], [0], [0], [1], [0, 0, 1, 1], [], []>} : vector<64x64xbf16>, vector<64x128xbf16>, vector<64x128xf32> -> vector<64x128xf32>
    %199 = arith.addf %193, %198 : vector<64x128xf32>
    %c0_210 = arith.constant 0 : index
    %c81_211 = arith.constant 81 : index
    %c0_212 = arith.constant 0 : index
    %200 = vector.load %arg1[%c0_210, %c81_211, %c0_212] : memref<1x304x64xbf16, #tpu.memory_space<vmem>>, vector<1x64x64xbf16>
    %201 = vector.shape_cast %200 : vector<1x64x64xbf16> to vector<64x64xbf16>
    %c4_213 = arith.constant 4 : index
    %c0_214 = arith.constant 0 : index
    %c0_215 = arith.constant 0 : index
    %202 = vector.load %arg3[%c4_213, %c0_214, %c0_215] : memref<9x64x128xbf16, #tpu.memory_space<vmem>>, vector<1x64x128xbf16>
    %203 = vector.shape_cast %202 : vector<1x64x128xbf16> to vector<64x128xbf16>
    %cst_216 = arith.constant dense<0.000000e+00> : vector<64x128xf32>
    %204 = tpu.matmul %201, %203, %cst_216 {dimension_numbers = #tpu.dot_dimension_numbers<[1], [0], [0], [1], [0, 0, 1, 1], [], []>} : vector<64x64xbf16>, vector<64x128xbf16>, vector<64x128xf32> -> vector<64x128xf32>
    %205 = arith.addf %199, %204 : vector<64x128xf32>
    %c0_217 = arith.constant 0 : index
    %c81_218 = arith.constant 81 : index
    %c0_219 = arith.constant 0 : index
    %206 = vector.load %arg2[%c0_217, %c81_218, %c0_219] : memref<1x304x64xbf16, #tpu.memory_space<vmem>>, vector<1x64x64xbf16>
    %207 = vector.shape_cast %206 : vector<1x64x64xbf16> to vector<64x64xbf16>
    %c5_220 = arith.constant 5 : index
    %c0_221 = arith.constant 0 : index
    %c0_222 = arith.constant 0 : index
    %208 = vector.load %arg3[%c5_220, %c0_221, %c0_222] : memref<9x64x128xbf16, #tpu.memory_space<vmem>>, vector<1x64x128xbf16>
    %209 = vector.shape_cast %208 : vector<1x64x128xbf16> to vector<64x128xbf16>
    %cst_223 = arith.constant dense<0.000000e+00> : vector<64x128xf32>
    %210 = tpu.matmul %207, %209, %cst_223 {dimension_numbers = #tpu.dot_dimension_numbers<[1], [0], [0], [1], [0, 0, 1, 1], [], []>} : vector<64x64xbf16>, vector<64x128xbf16>, vector<64x128xf32> -> vector<64x128xf32>
    %211 = arith.addf %205, %210 : vector<64x128xf32>
    %c0_224 = arith.constant 0 : index
    %c96_225 = arith.constant 96 : index
    %c0_226 = arith.constant 0 : index
    %212 = vector.load %arg2[%c0_224, %c96_225, %c0_226] : memref<1x304x64xbf16, #tpu.memory_space<vmem>>, vector<1x64x64xbf16>
    %213 = vector.shape_cast %212 : vector<1x64x64xbf16> to vector<64x64xbf16>
    %c6_227 = arith.constant 6 : index
    %c0_228 = arith.constant 0 : index
    %c0_229 = arith.constant 0 : index
    %214 = vector.load %arg3[%c6_227, %c0_228, %c0_229] : memref<9x64x128xbf16, #tpu.memory_space<vmem>>, vector<1x64x128xbf16>
    %215 = vector.shape_cast %214 : vector<1x64x128xbf16> to vector<64x128xbf16>
    %cst_230 = arith.constant dense<0.000000e+00> : vector<64x128xf32>
    %216 = tpu.matmul %213, %215, %cst_230 {dimension_numbers = #tpu.dot_dimension_numbers<[1], [0], [0], [1], [0, 0, 1, 1], [], []>} : vector<64x64xbf16>, vector<64x128xbf16>, vector<64x128xf32> -> vector<64x128xf32>
    %217 = arith.addf %211, %216 : vector<64x128xf32>
    %c0_231 = arith.constant 0 : index
    %c97_232 = arith.constant 97 : index
    %c0_233 = arith.constant 0 : index
    %218 = vector.load %arg1[%c0_231, %c97_232, %c0_233] : memref<1x304x64xbf16, #tpu.memory_space<vmem>>, vector<1x64x64xbf16>
    %219 = vector.shape_cast %218 : vector<1x64x64xbf16> to vector<64x64xbf16>
    %c7_234 = arith.constant 7 : index
    %c0_235 = arith.constant 0 : index
    %c0_236 = arith.constant 0 : index
    %220 = vector.load %arg3[%c7_234, %c0_235, %c0_236] : memref<9x64x128xbf16, #tpu.memory_space<vmem>>, vector<1x64x128xbf16>
    %221 = vector.shape_cast %220 : vector<1x64x128xbf16> to vector<64x128xbf16>
    %cst_237 = arith.constant dense<0.000000e+00> : vector<64x128xf32>
    %222 = tpu.matmul %219, %221, %cst_237 {dimension_numbers = #tpu.dot_dimension_numbers<[1], [0], [0], [1], [0, 0, 1, 1], [], []>} : vector<64x64xbf16>, vector<64x128xbf16>, vector<64x128xf32> -> vector<64x128xf32>
    %223 = arith.addf %217, %222 : vector<64x128xf32>
    %c0_238 = arith.constant 0 : index
    %c97_239 = arith.constant 97 : index
    %c0_240 = arith.constant 0 : index
    %224 = vector.load %arg2[%c0_238, %c97_239, %c0_240] : memref<1x304x64xbf16, #tpu.memory_space<vmem>>, vector<1x64x64xbf16>
    %225 = vector.shape_cast %224 : vector<1x64x64xbf16> to vector<64x64xbf16>
    %c8_241 = arith.constant 8 : index
    %c0_242 = arith.constant 0 : index
    %c0_243 = arith.constant 0 : index
    %226 = vector.load %arg3[%c8_241, %c0_242, %c0_243] : memref<9x64x128xbf16, #tpu.memory_space<vmem>>, vector<1x64x128xbf16>
    %227 = vector.shape_cast %226 : vector<1x64x128xbf16> to vector<64x128xbf16>
    %cst_244 = arith.constant dense<0.000000e+00> : vector<64x128xf32>
    %228 = tpu.matmul %225, %227, %cst_244 {dimension_numbers = #tpu.dot_dimension_numbers<[1], [0], [0], [1], [0, 0, 1, 1], [], []>} : vector<64x64xbf16>, vector<64x128xbf16>, vector<64x128xf32> -> vector<64x128xf32>
    %229 = arith.addf %223, %228 : vector<64x128xf32>
    %c0_245 = arith.constant 0 : index
    %c0_246 = arith.constant 0 : index
    %230 = vector.load %arg6[%c0_245, %c0_246] : memref<64x128xf32, #tpu.memory_space<vmem>>, vector<64x128xf32>
    %231 = arith.maximumf %230, %229 : vector<64x128xf32>
    %232 = vector.shape_cast %231 : vector<64x128xf32> to vector<2x32x128xf32>
    %233 = vector.extract_strided_slice %232 {offsets = [0, 0, 0], sizes = [2, 16, 128], strides = [1, 1, 1]} : vector<2x32x128xf32> to vector<2x16x128xf32>
    %234 = vector.extract_strided_slice %232 {offsets = [0, 16, 0], sizes = [2, 16, 128], strides = [1, 1, 1]} : vector<2x32x128xf32> to vector<2x16x128xf32>
    %235 = arith.maximumf %233, %234 : vector<2x16x128xf32>
    %236 = vector.extract_strided_slice %235 {offsets = [0, 0, 0], sizes = [2, 8, 128], strides = [1, 1, 1]} : vector<2x16x128xf32> to vector<2x8x128xf32>
    %237 = vector.shape_cast %0 : vector<1x128xf32> to vector<1x1x128xf32>
    %238 = vector.broadcast %237 : vector<1x1x128xf32> to vector<2x8x128xf32>
    %239 = arith.addf %236, %238 : vector<2x8x128xf32>
    %cst_247 = arith.constant 0.000000e+00 : f32
    %240 = vector.broadcast %cst_247 : f32 to vector<2x8x128xf32>
    %241 = arith.maximumf %239, %240 : vector<2x8x128xf32>
    %242 = vector.shape_cast %241 : vector<2x8x128xf32> to vector<1x2x8x128xf32>
    %243 = arith.truncf %242 : vector<1x2x8x128xf32> to vector<1x2x8x128xbf16>
    %c0_248 = arith.constant 0 : index
    %c2_249 = arith.constant 2 : index
    %c0_250 = arith.constant 0 : index
    %c0_251 = arith.constant 0 : index
    %244 = vector.load %arg5[%c0_248, %c2_249, %c0_250, %c0_251] : memref<1x8x8x128xbf16, #tpu.memory_space<vmem>>, vector<1x2x8x128xbf16>
    tpu.vector_store %arg5[%c0_248, %c2_249, %c0_250, %c0_251], %243 {strides = array<i32>} : memref<1x8x8x128xbf16, #tpu.memory_space<vmem>>, vector<1x2x8x128xbf16>,
    %c0_252 = arith.constant 0 : index
    %c128 = arith.constant 128 : index
    %c0_253 = arith.constant 0 : index
    %245 = vector.load %arg1[%c0_252, %c128, %c0_253] : memref<1x304x64xbf16, #tpu.memory_space<vmem>>, vector<1x64x64xbf16>
    %246 = vector.shape_cast %245 : vector<1x64x64xbf16> to vector<64x64xbf16>
    %c0_254 = arith.constant 0 : index
    %c0_255 = arith.constant 0 : index
    %c0_256 = arith.constant 0 : index
    %247 = vector.load %arg3[%c0_254, %c0_255, %c0_256] : memref<9x64x128xbf16, #tpu.memory_space<vmem>>, vector<1x64x128xbf16>
    %248 = vector.shape_cast %247 : vector<1x64x128xbf16> to vector<64x128xbf16>
    %cst_257 = arith.constant dense<0.000000e+00> : vector<64x128xf32>
    %249 = tpu.matmul %246, %248, %cst_257 {dimension_numbers = #tpu.dot_dimension_numbers<[1], [0], [0], [1], [0, 0, 1, 1], [], []>} : vector<64x64xbf16>, vector<64x128xbf16>, vector<64x128xf32> -> vector<64x128xf32>
    %c0_258 = arith.constant 0 : index
    %c128_259 = arith.constant 128 : index
    %c0_260 = arith.constant 0 : index
    %250 = vector.load %arg2[%c0_258, %c128_259, %c0_260] : memref<1x304x64xbf16, #tpu.memory_space<vmem>>, vector<1x64x64xbf16>
    %251 = vector.shape_cast %250 : vector<1x64x64xbf16> to vector<64x64xbf16>
    %c1_261 = arith.constant 1 : index
    %c0_262 = arith.constant 0 : index
    %c0_263 = arith.constant 0 : index
    %252 = vector.load %arg3[%c1_261, %c0_262, %c0_263] : memref<9x64x128xbf16, #tpu.memory_space<vmem>>, vector<1x64x128xbf16>
    %253 = vector.shape_cast %252 : vector<1x64x128xbf16> to vector<64x128xbf16>
    %cst_264 = arith.constant dense<0.000000e+00> : vector<64x128xf32>
    %254 = tpu.matmul %251, %253, %cst_264 {dimension_numbers = #tpu.dot_dimension_numbers<[1], [0], [0], [1], [0, 0, 1, 1], [], []>} : vector<64x64xbf16>, vector<64x128xbf16>, vector<64x128xf32> -> vector<64x128xf32>
    %255 = arith.addf %249, %254 : vector<64x128xf32>
    %c0_265 = arith.constant 0 : index
    %c129 = arith.constant 129 : index
    %c0_266 = arith.constant 0 : index
    %256 = vector.load %arg1[%c0_265, %c129, %c0_266] : memref<1x304x64xbf16, #tpu.memory_space<vmem>>, vector<1x64x64xbf16>
    %257 = vector.shape_cast %256 : vector<1x64x64xbf16> to vector<64x64xbf16>
    %c2_267 = arith.constant 2 : index
    %c0_268 = arith.constant 0 : index
    %c0_269 = arith.constant 0 : index
    %258 = vector.load %arg3[%c2_267, %c0_268, %c0_269] : memref<9x64x128xbf16, #tpu.memory_space<vmem>>, vector<1x64x128xbf16>
    %259 = vector.shape_cast %258 : vector<1x64x128xbf16> to vector<64x128xbf16>
    %cst_270 = arith.constant dense<0.000000e+00> : vector<64x128xf32>
    %260 = tpu.matmul %257, %259, %cst_270 {dimension_numbers = #tpu.dot_dimension_numbers<[1], [0], [0], [1], [0, 0, 1, 1], [], []>} : vector<64x64xbf16>, vector<64x128xbf16>, vector<64x128xf32> -> vector<64x128xf32>
    %261 = arith.addf %255, %260 : vector<64x128xf32>
    %c0_271 = arith.constant 0 : index
    %c144 = arith.constant 144 : index
    %c0_272 = arith.constant 0 : index
    %262 = vector.load %arg1[%c0_271, %c144, %c0_272] : memref<1x304x64xbf16, #tpu.memory_space<vmem>>, vector<1x64x64xbf16>
    %263 = vector.shape_cast %262 : vector<1x64x64xbf16> to vector<64x64xbf16>
    %c3_273 = arith.constant 3 : index
    %c0_274 = arith.constant 0 : index
    %c0_275 = arith.constant 0 : index
    %264 = vector.load %arg3[%c3_273, %c0_274, %c0_275] : memref<9x64x128xbf16, #tpu.memory_space<vmem>>, vector<1x64x128xbf16>
    %265 = vector.shape_cast %264 : vector<1x64x128xbf16> to vector<64x128xbf16>
    %cst_276 = arith.constant dense<0.000000e+00> : vector<64x128xf32>
    %266 = tpu.matmul %263, %265, %cst_276 {dimension_numbers = #tpu.dot_dimension_numbers<[1], [0], [0], [1], [0, 0, 1, 1], [], []>} : vector<64x64xbf16>, vector<64x128xbf16>, vector<64x128xf32> -> vector<64x128xf32>
    %267 = arith.addf %261, %266 : vector<64x128xf32>
    %c0_277 = arith.constant 0 : index
    %c144_278 = arith.constant 144 : index
    %c0_279 = arith.constant 0 : index
    %268 = vector.load %arg2[%c0_277, %c144_278, %c0_279] : memref<1x304x64xbf16, #tpu.memory_space<vmem>>, vector<1x64x64xbf16>
    %269 = vector.shape_cast %268 : vector<1x64x64xbf16> to vector<64x64xbf16>
    %c4_280 = arith.constant 4 : index
    %c0_281 = arith.constant 0 : index
    %c0_282 = arith.constant 0 : index
    %270 = vector.load %arg3[%c4_280, %c0_281, %c0_282] : memref<9x64x128xbf16, #tpu.memory_space<vmem>>, vector<1x64x128xbf16>
    %271 = vector.shape_cast %270 : vector<1x64x128xbf16> to vector<64x128xbf16>
    %cst_283 = arith.constant dense<0.000000e+00> : vector<64x128xf32>
    %272 = tpu.matmul %269, %271, %cst_283 {dimension_numbers = #tpu.dot_dimension_numbers<[1], [0], [0], [1], [0, 0, 1, 1], [], []>} : vector<64x64xbf16>, vector<64x128xbf16>, vector<64x128xf32> -> vector<64x128xf32>
    %273 = arith.addf %267, %272 : vector<64x128xf32>
    %c0_284 = arith.constant 0 : index
    %c145 = arith.constant 145 : index
    %c0_285 = arith.constant 0 : index
    %274 = vector.load %arg1[%c0_284, %c145, %c0_285] : memref<1x304x64xbf16, #tpu.memory_space<vmem>>, vector<1x64x64xbf16>
    %275 = vector.shape_cast %274 : vector<1x64x64xbf16> to vector<64x64xbf16>
    %c5_286 = arith.constant 5 : index
    %c0_287 = arith.constant 0 : index
    %c0_288 = arith.constant 0 : index
    %276 = vector.load %arg3[%c5_286, %c0_287, %c0_288] : memref<9x64x128xbf16, #tpu.memory_space<vmem>>, vector<1x64x128xbf16>
    %277 = vector.shape_cast %276 : vector<1x64x128xbf16> to vector<64x128xbf16>
    %cst_289 = arith.constant dense<0.000000e+00> : vector<64x128xf32>
    %278 = tpu.matmul %275, %277, %cst_289 {dimension_numbers = #tpu.dot_dimension_numbers<[1], [0], [0], [1], [0, 0, 1, 1], [], []>} : vector<64x64xbf16>, vector<64x128xbf16>, vector<64x128xf32> -> vector<64x128xf32>
    %279 = arith.addf %273, %278 : vector<64x128xf32>
    %c0_290 = arith.constant 0 : index
    %c160 = arith.constant 160 : index
    %c0_291 = arith.constant 0 : index
    %280 = vector.load %arg1[%c0_290, %c160, %c0_291] : memref<1x304x64xbf16, #tpu.memory_space<vmem>>, vector<1x64x64xbf16>
    %281 = vector.shape_cast %280 : vector<1x64x64xbf16> to vector<64x64xbf16>
    %c6_292 = arith.constant 6 : index
    %c0_293 = arith.constant 0 : index
    %c0_294 = arith.constant 0 : index
    %282 = vector.load %arg3[%c6_292, %c0_293, %c0_294] : memref<9x64x128xbf16, #tpu.memory_space<vmem>>, vector<1x64x128xbf16>
    %283 = vector.shape_cast %282 : vector<1x64x128xbf16> to vector<64x128xbf16>
    %cst_295 = arith.constant dense<0.000000e+00> : vector<64x128xf32>
    %284 = tpu.matmul %281, %283, %cst_295 {dimension_numbers = #tpu.dot_dimension_numbers<[1], [0], [0], [1], [0, 0, 1, 1], [], []>} : vector<64x64xbf16>, vector<64x128xbf16>, vector<64x128xf32> -> vector<64x128xf32>
    %285 = arith.addf %279, %284 : vector<64x128xf32>
    %c0_296 = arith.constant 0 : index
    %c160_297 = arith.constant 160 : index
    %c0_298 = arith.constant 0 : index
    %286 = vector.load %arg2[%c0_296, %c160_297, %c0_298] : memref<1x304x64xbf16, #tpu.memory_space<vmem>>, vector<1x64x64xbf16>
    %287 = vector.shape_cast %286 : vector<1x64x64xbf16> to vector<64x64xbf16>
    %c7_299 = arith.constant 7 : index
    %c0_300 = arith.constant 0 : index
    %c0_301 = arith.constant 0 : index
    %288 = vector.load %arg3[%c7_299, %c0_300, %c0_301] : memref<9x64x128xbf16, #tpu.memory_space<vmem>>, vector<1x64x128xbf16>
    %289 = vector.shape_cast %288 : vector<1x64x128xbf16> to vector<64x128xbf16>
    %cst_302 = arith.constant dense<0.000000e+00> : vector<64x128xf32>
    %290 = tpu.matmul %287, %289, %cst_302 {dimension_numbers = #tpu.dot_dimension_numbers<[1], [0], [0], [1], [0, 0, 1, 1], [], []>} : vector<64x64xbf16>, vector<64x128xbf16>, vector<64x128xf32> -> vector<64x128xf32>
    %291 = arith.addf %285, %290 : vector<64x128xf32>
    %c0_303 = arith.constant 0 : index
    %c161 = arith.constant 161 : index
    %c0_304 = arith.constant 0 : index
    %292 = vector.load %arg1[%c0_303, %c161, %c0_304] : memref<1x304x64xbf16, #tpu.memory_space<vmem>>, vector<1x64x64xbf16>
    %293 = vector.shape_cast %292 : vector<1x64x64xbf16> to vector<64x64xbf16>
    %c8_305 = arith.constant 8 : index
    %c0_306 = arith.constant 0 : index
    %c0_307 = arith.constant 0 : index
    %294 = vector.load %arg3[%c8_305, %c0_306, %c0_307] : memref<9x64x128xbf16, #tpu.memory_space<vmem>>, vector<1x64x128xbf16>
    %295 = vector.shape_cast %294 : vector<1x64x128xbf16> to vector<64x128xbf16>
    %cst_308 = arith.constant dense<0.000000e+00> : vector<64x128xf32>
    %296 = tpu.matmul %293, %295, %cst_308 {dimension_numbers = #tpu.dot_dimension_numbers<[1], [0], [0], [1], [0, 0, 1, 1], [], []>} : vector<64x64xbf16>, vector<64x128xbf16>, vector<64x128xf32> -> vector<64x128xf32>
    %297 = arith.addf %291, %296 : vector<64x128xf32>
    %c0_309 = arith.constant 0 : index
    %c0_310 = arith.constant 0 : index
    %298 = vector.load %arg6[%c0_309, %c0_310] : memref<64x128xf32, #tpu.memory_space<vmem>>, vector<64x128xf32>
    tpu.vector_store %arg6[%c0_309, %c0_310], %297 {strides = array<i32>} : memref<64x128xf32, #tpu.memory_space<vmem>>, vector<64x128xf32>,
    %c0_311 = arith.constant 0 : index
    %c128_312 = arith.constant 128 : index
    %c0_313 = arith.constant 0 : index
    %299 = vector.load %arg2[%c0_311, %c128_312, %c0_313] : memref<1x304x64xbf16, #tpu.memory_space<vmem>>, vector<1x64x64xbf16>
    %300 = vector.shape_cast %299 : vector<1x64x64xbf16> to vector<64x64xbf16>
    %c0_314 = arith.constant 0 : index
    %c0_315 = arith.constant 0 : index
    %c0_316 = arith.constant 0 : index
    %301 = vector.load %arg3[%c0_314, %c0_315, %c0_316] : memref<9x64x128xbf16, #tpu.memory_space<vmem>>, vector<1x64x128xbf16>
    %302 = vector.shape_cast %301 : vector<1x64x128xbf16> to vector<64x128xbf16>
    %cst_317 = arith.constant dense<0.000000e+00> : vector<64x128xf32>
    %303 = tpu.matmul %300, %302, %cst_317 {dimension_numbers = #tpu.dot_dimension_numbers<[1], [0], [0], [1], [0, 0, 1, 1], [], []>} : vector<64x64xbf16>, vector<64x128xbf16>, vector<64x128xf32> -> vector<64x128xf32>
    %c0_318 = arith.constant 0 : index
    %c129_319 = arith.constant 129 : index
    %c0_320 = arith.constant 0 : index
    %304 = vector.load %arg1[%c0_318, %c129_319, %c0_320] : memref<1x304x64xbf16, #tpu.memory_space<vmem>>, vector<1x64x64xbf16>
    %305 = vector.shape_cast %304 : vector<1x64x64xbf16> to vector<64x64xbf16>
    %c1_321 = arith.constant 1 : index
    %c0_322 = arith.constant 0 : index
    %c0_323 = arith.constant 0 : index
    %306 = vector.load %arg3[%c1_321, %c0_322, %c0_323] : memref<9x64x128xbf16, #tpu.memory_space<vmem>>, vector<1x64x128xbf16>
    %307 = vector.shape_cast %306 : vector<1x64x128xbf16> to vector<64x128xbf16>
    %cst_324 = arith.constant dense<0.000000e+00> : vector<64x128xf32>
    %308 = tpu.matmul %305, %307, %cst_324 {dimension_numbers = #tpu.dot_dimension_numbers<[1], [0], [0], [1], [0, 0, 1, 1], [], []>} : vector<64x64xbf16>, vector<64x128xbf16>, vector<64x128xf32> -> vector<64x128xf32>
    %309 = arith.addf %303, %308 : vector<64x128xf32>
    %c0_325 = arith.constant 0 : index
    %c129_326 = arith.constant 129 : index
    %c0_327 = arith.constant 0 : index
    %310 = vector.load %arg2[%c0_325, %c129_326, %c0_327] : memref<1x304x64xbf16, #tpu.memory_space<vmem>>, vector<1x64x64xbf16>
    %311 = vector.shape_cast %310 : vector<1x64x64xbf16> to vector<64x64xbf16>
    %c2_328 = arith.constant 2 : index
    %c0_329 = arith.constant 0 : index
    %c0_330 = arith.constant 0 : index
    %312 = vector.load %arg3[%c2_328, %c0_329, %c0_330] : memref<9x64x128xbf16, #tpu.memory_space<vmem>>, vector<1x64x128xbf16>
    %313 = vector.shape_cast %312 : vector<1x64x128xbf16> to vector<64x128xbf16>
    %cst_331 = arith.constant dense<0.000000e+00> : vector<64x128xf32>
    %314 = tpu.matmul %311, %313, %cst_331 {dimension_numbers = #tpu.dot_dimension_numbers<[1], [0], [0], [1], [0, 0, 1, 1], [], []>} : vector<64x64xbf16>, vector<64x128xbf16>, vector<64x128xf32> -> vector<64x128xf32>
    %315 = arith.addf %309, %314 : vector<64x128xf32>
    %c0_332 = arith.constant 0 : index
    %c144_333 = arith.constant 144 : index
    %c0_334 = arith.constant 0 : index
    %316 = vector.load %arg2[%c0_332, %c144_333, %c0_334] : memref<1x304x64xbf16, #tpu.memory_space<vmem>>, vector<1x64x64xbf16>
    %317 = vector.shape_cast %316 : vector<1x64x64xbf16> to vector<64x64xbf16>
    %c3_335 = arith.constant 3 : index
    %c0_336 = arith.constant 0 : index
    %c0_337 = arith.constant 0 : index
    %318 = vector.load %arg3[%c3_335, %c0_336, %c0_337] : memref<9x64x128xbf16, #tpu.memory_space<vmem>>, vector<1x64x128xbf16>
    %319 = vector.shape_cast %318 : vector<1x64x128xbf16> to vector<64x128xbf16>
    %cst_338 = arith.constant dense<0.000000e+00> : vector<64x128xf32>
    %320 = tpu.matmul %317, %319, %cst_338 {dimension_numbers = #tpu.dot_dimension_numbers<[1], [0], [0], [1], [0, 0, 1, 1], [], []>} : vector<64x64xbf16>, vector<64x128xbf16>, vector<64x128xf32> -> vector<64x128xf32>
    %321 = arith.addf %315, %320 : vector<64x128xf32>
    %c0_339 = arith.constant 0 : index
    %c145_340 = arith.constant 145 : index
    %c0_341 = arith.constant 0 : index
    %322 = vector.load %arg1[%c0_339, %c145_340, %c0_341] : memref<1x304x64xbf16, #tpu.memory_space<vmem>>, vector<1x64x64xbf16>
    %323 = vector.shape_cast %322 : vector<1x64x64xbf16> to vector<64x64xbf16>
    %c4_342 = arith.constant 4 : index
    %c0_343 = arith.constant 0 : index
    %c0_344 = arith.constant 0 : index
    %324 = vector.load %arg3[%c4_342, %c0_343, %c0_344] : memref<9x64x128xbf16, #tpu.memory_space<vmem>>, vector<1x64x128xbf16>
    %325 = vector.shape_cast %324 : vector<1x64x128xbf16> to vector<64x128xbf16>
    %cst_345 = arith.constant dense<0.000000e+00> : vector<64x128xf32>
    %326 = tpu.matmul %323, %325, %cst_345 {dimension_numbers = #tpu.dot_dimension_numbers<[1], [0], [0], [1], [0, 0, 1, 1], [], []>} : vector<64x64xbf16>, vector<64x128xbf16>, vector<64x128xf32> -> vector<64x128xf32>
    %327 = arith.addf %321, %326 : vector<64x128xf32>
    %c0_346 = arith.constant 0 : index
    %c145_347 = arith.constant 145 : index
    %c0_348 = arith.constant 0 : index
    %328 = vector.load %arg2[%c0_346, %c145_347, %c0_348] : memref<1x304x64xbf16, #tpu.memory_space<vmem>>, vector<1x64x64xbf16>
    %329 = vector.shape_cast %328 : vector<1x64x64xbf16> to vector<64x64xbf16>
    %c5_349 = arith.constant 5 : index
    %c0_350 = arith.constant 0 : index
    %c0_351 = arith.constant 0 : index
    %330 = vector.load %arg3[%c5_349, %c0_350, %c0_351] : memref<9x64x128xbf16, #tpu.memory_space<vmem>>, vector<1x64x128xbf16>
    %331 = vector.shape_cast %330 : vector<1x64x128xbf16> to vector<64x128xbf16>
    %cst_352 = arith.constant dense<0.000000e+00> : vector<64x128xf32>
    %332 = tpu.matmul %329, %331, %cst_352 {dimension_numbers = #tpu.dot_dimension_numbers<[1], [0], [0], [1], [0, 0, 1, 1], [], []>} : vector<64x64xbf16>, vector<64x128xbf16>, vector<64x128xf32> -> vector<64x128xf32>
    %333 = arith.addf %327, %332 : vector<64x128xf32>
    %c0_353 = arith.constant 0 : index
    %c160_354 = arith.constant 160 : index
    %c0_355 = arith.constant 0 : index
    %334 = vector.load %arg2[%c0_353, %c160_354, %c0_355] : memref<1x304x64xbf16, #tpu.memory_space<vmem>>, vector<1x64x64xbf16>
    %335 = vector.shape_cast %334 : vector<1x64x64xbf16> to vector<64x64xbf16>
    %c6_356 = arith.constant 6 : index
    %c0_357 = arith.constant 0 : index
    %c0_358 = arith.constant 0 : index
    %336 = vector.load %arg3[%c6_356, %c0_357, %c0_358] : memref<9x64x128xbf16, #tpu.memory_space<vmem>>, vector<1x64x128xbf16>
    %337 = vector.shape_cast %336 : vector<1x64x128xbf16> to vector<64x128xbf16>
    %cst_359 = arith.constant dense<0.000000e+00> : vector<64x128xf32>
    %338 = tpu.matmul %335, %337, %cst_359 {dimension_numbers = #tpu.dot_dimension_numbers<[1], [0], [0], [1], [0, 0, 1, 1], [], []>} : vector<64x64xbf16>, vector<64x128xbf16>, vector<64x128xf32> -> vector<64x128xf32>
    %339 = arith.addf %333, %338 : vector<64x128xf32>
    %c0_360 = arith.constant 0 : index
    %c161_361 = arith.constant 161 : index
    %c0_362 = arith.constant 0 : index
    %340 = vector.load %arg1[%c0_360, %c161_361, %c0_362] : memref<1x304x64xbf16, #tpu.memory_space<vmem>>, vector<1x64x64xbf16>
    %341 = vector.shape_cast %340 : vector<1x64x64xbf16> to vector<64x64xbf16>
    %c7_363 = arith.constant 7 : index
    %c0_364 = arith.constant 0 : index
    %c0_365 = arith.constant 0 : index
    %342 = vector.load %arg3[%c7_363, %c0_364, %c0_365] : memref<9x64x128xbf16, #tpu.memory_space<vmem>>, vector<1x64x128xbf16>
    %343 = vector.shape_cast %342 : vector<1x64x128xbf16> to vector<64x128xbf16>
    %cst_366 = arith.constant dense<0.000000e+00> : vector<64x128xf32>
    %344 = tpu.matmul %341, %343, %cst_366 {dimension_numbers = #tpu.dot_dimension_numbers<[1], [0], [0], [1], [0, 0, 1, 1], [], []>} : vector<64x64xbf16>, vector<64x128xbf16>, vector<64x128xf32> -> vector<64x128xf32>
    %345 = arith.addf %339, %344 : vector<64x128xf32>
    %c0_367 = arith.constant 0 : index
    %c161_368 = arith.constant 161 : index
    %c0_369 = arith.constant 0 : index
    %346 = vector.load %arg2[%c0_367, %c161_368, %c0_369] : memref<1x304x64xbf16, #tpu.memory_space<vmem>>, vector<1x64x64xbf16>
    %347 = vector.shape_cast %346 : vector<1x64x64xbf16> to vector<64x64xbf16>
    %c8_370 = arith.constant 8 : index
    %c0_371 = arith.constant 0 : index
    %c0_372 = arith.constant 0 : index
    %348 = vector.load %arg3[%c8_370, %c0_371, %c0_372] : memref<9x64x128xbf16, #tpu.memory_space<vmem>>, vector<1x64x128xbf16>
    %349 = vector.shape_cast %348 : vector<1x64x128xbf16> to vector<64x128xbf16>
    %cst_373 = arith.constant dense<0.000000e+00> : vector<64x128xf32>
    %350 = tpu.matmul %347, %349, %cst_373 {dimension_numbers = #tpu.dot_dimension_numbers<[1], [0], [0], [1], [0, 0, 1, 1], [], []>} : vector<64x64xbf16>, vector<64x128xbf16>, vector<64x128xf32> -> vector<64x128xf32>
    %351 = arith.addf %345, %350 : vector<64x128xf32>
    %c0_374 = arith.constant 0 : index
    %c0_375 = arith.constant 0 : index
    %352 = vector.load %arg6[%c0_374, %c0_375] : memref<64x128xf32, #tpu.memory_space<vmem>>, vector<64x128xf32>
    %353 = arith.maximumf %352, %351 : vector<64x128xf32>
    %354 = vector.shape_cast %353 : vector<64x128xf32> to vector<2x32x128xf32>
    %355 = vector.extract_strided_slice %354 {offsets = [0, 0, 0], sizes = [2, 16, 128], strides = [1, 1, 1]} : vector<2x32x128xf32> to vector<2x16x128xf32>
    %356 = vector.extract_strided_slice %354 {offsets = [0, 16, 0], sizes = [2, 16, 128], strides = [1, 1, 1]} : vector<2x32x128xf32> to vector<2x16x128xf32>
    %357 = arith.maximumf %355, %356 : vector<2x16x128xf32>
    %358 = vector.extract_strided_slice %357 {offsets = [0, 0, 0], sizes = [2, 8, 128], strides = [1, 1, 1]} : vector<2x16x128xf32> to vector<2x8x128xf32>
    %359 = vector.shape_cast %0 : vector<1x128xf32> to vector<1x1x128xf32>
    %360 = vector.broadcast %359 : vector<1x1x128xf32> to vector<2x8x128xf32>
    %361 = arith.addf %358, %360 : vector<2x8x128xf32>
    %cst_376 = arith.constant 0.000000e+00 : f32
    %362 = vector.broadcast %cst_376 : f32 to vector<2x8x128xf32>
    %363 = arith.maximumf %361, %362 : vector<2x8x128xf32>
    %364 = vector.shape_cast %363 : vector<2x8x128xf32> to vector<1x2x8x128xf32>
    %365 = arith.truncf %364 : vector<1x2x8x128xf32> to vector<1x2x8x128xbf16>
    %c0_377 = arith.constant 0 : index
    %c4_378 = arith.constant 4 : index
    %c0_379 = arith.constant 0 : index
    %c0_380 = arith.constant 0 : index
    %366 = vector.load %arg5[%c0_377, %c4_378, %c0_379, %c0_380] : memref<1x8x8x128xbf16, #tpu.memory_space<vmem>>, vector<1x2x8x128xbf16>
    tpu.vector_store %arg5[%c0_377, %c4_378, %c0_379, %c0_380], %365 {strides = array<i32>} : memref<1x8x8x128xbf16, #tpu.memory_space<vmem>>, vector<1x2x8x128xbf16>,
    %c0_381 = arith.constant 0 : index
    %c192 = arith.constant 192 : index
    %c0_382 = arith.constant 0 : index
    %367 = vector.load %arg1[%c0_381, %c192, %c0_382] : memref<1x304x64xbf16, #tpu.memory_space<vmem>>, vector<1x64x64xbf16>
    %368 = vector.shape_cast %367 : vector<1x64x64xbf16> to vector<64x64xbf16>
    %c0_383 = arith.constant 0 : index
    %c0_384 = arith.constant 0 : index
    %c0_385 = arith.constant 0 : index
    %369 = vector.load %arg3[%c0_383, %c0_384, %c0_385] : memref<9x64x128xbf16, #tpu.memory_space<vmem>>, vector<1x64x128xbf16>
    %370 = vector.shape_cast %369 : vector<1x64x128xbf16> to vector<64x128xbf16>
    %cst_386 = arith.constant dense<0.000000e+00> : vector<64x128xf32>
    %371 = tpu.matmul %368, %370, %cst_386 {dimension_numbers = #tpu.dot_dimension_numbers<[1], [0], [0], [1], [0, 0, 1, 1], [], []>} : vector<64x64xbf16>, vector<64x128xbf16>, vector<64x128xf32> -> vector<64x128xf32>
    %c0_387 = arith.constant 0 : index
    %c192_388 = arith.constant 192 : index
    %c0_389 = arith.constant 0 : index
    %372 = vector.load %arg2[%c0_387, %c192_388, %c0_389] : memref<1x304x64xbf16, #tpu.memory_space<vmem>>, vector<1x64x64xbf16>
    %373 = vector.shape_cast %372 : vector<1x64x64xbf16> to vector<64x64xbf16>
    %c1_390 = arith.constant 1 : index
    %c0_391 = arith.constant 0 : index
    %c0_392 = arith.constant 0 : index
    %374 = vector.load %arg3[%c1_390, %c0_391, %c0_392] : memref<9x64x128xbf16, #tpu.memory_space<vmem>>, vector<1x64x128xbf16>
    %375 = vector.shape_cast %374 : vector<1x64x128xbf16> to vector<64x128xbf16>
    %cst_393 = arith.constant dense<0.000000e+00> : vector<64x128xf32>
    %376 = tpu.matmul %373, %375, %cst_393 {dimension_numbers = #tpu.dot_dimension_numbers<[1], [0], [0], [1], [0, 0, 1, 1], [], []>} : vector<64x64xbf16>, vector<64x128xbf16>, vector<64x128xf32> -> vector<64x128xf32>
    %377 = arith.addf %371, %376 : vector<64x128xf32>
    %c0_394 = arith.constant 0 : index
    %c193 = arith.constant 193 : index
    %c0_395 = arith.constant 0 : index
    %378 = vector.load %arg1[%c0_394, %c193, %c0_395] : memref<1x304x64xbf16, #tpu.memory_space<vmem>>, vector<1x64x64xbf16>
    %379 = vector.shape_cast %378 : vector<1x64x64xbf16> to vector<64x64xbf16>
    %c2_396 = arith.constant 2 : index
    %c0_397 = arith.constant 0 : index
    %c0_398 = arith.constant 0 : index
    %380 = vector.load %arg3[%c2_396, %c0_397, %c0_398] : memref<9x64x128xbf16, #tpu.memory_space<vmem>>, vector<1x64x128xbf16>
    %381 = vector.shape_cast %380 : vector<1x64x128xbf16> to vector<64x128xbf16>
    %cst_399 = arith.constant dense<0.000000e+00> : vector<64x128xf32>
    %382 = tpu.matmul %379, %381, %cst_399 {dimension_numbers = #tpu.dot_dimension_numbers<[1], [0], [0], [1], [0, 0, 1, 1], [], []>} : vector<64x64xbf16>, vector<64x128xbf16>, vector<64x128xf32> -> vector<64x128xf32>
    %383 = arith.addf %377, %382 : vector<64x128xf32>
    %c0_400 = arith.constant 0 : index
    %c208 = arith.constant 208 : index
    %c0_401 = arith.constant 0 : index
    %384 = vector.load %arg1[%c0_400, %c208, %c0_401] : memref<1x304x64xbf16, #tpu.memory_space<vmem>>, vector<1x64x64xbf16>
    %385 = vector.shape_cast %384 : vector<1x64x64xbf16> to vector<64x64xbf16>
    %c3_402 = arith.constant 3 : index
    %c0_403 = arith.constant 0 : index
    %c0_404 = arith.constant 0 : index
    %386 = vector.load %arg3[%c3_402, %c0_403, %c0_404] : memref<9x64x128xbf16, #tpu.memory_space<vmem>>, vector<1x64x128xbf16>
    %387 = vector.shape_cast %386 : vector<1x64x128xbf16> to vector<64x128xbf16>
    %cst_405 = arith.constant dense<0.000000e+00> : vector<64x128xf32>
    %388 = tpu.matmul %385, %387, %cst_405 {dimension_numbers = #tpu.dot_dimension_numbers<[1], [0], [0], [1], [0, 0, 1, 1], [], []>} : vector<64x64xbf16>, vector<64x128xbf16>, vector<64x128xf32> -> vector<64x128xf32>
    %389 = arith.addf %383, %388 : vector<64x128xf32>
    %c0_406 = arith.constant 0 : index
    %c208_407 = arith.constant 208 : index
    %c0_408 = arith.constant 0 : index
    %390 = vector.load %arg2[%c0_406, %c208_407, %c0_408] : memref<1x304x64xbf16, #tpu.memory_space<vmem>>, vector<1x64x64xbf16>
    %391 = vector.shape_cast %390 : vector<1x64x64xbf16> to vector<64x64xbf16>
    %c4_409 = arith.constant 4 : index
    %c0_410 = arith.constant 0 : index
    %c0_411 = arith.constant 0 : index
    %392 = vector.load %arg3[%c4_409, %c0_410, %c0_411] : memref<9x64x128xbf16, #tpu.memory_space<vmem>>, vector<1x64x128xbf16>
    %393 = vector.shape_cast %392 : vector<1x64x128xbf16> to vector<64x128xbf16>
    %cst_412 = arith.constant dense<0.000000e+00> : vector<64x128xf32>
    %394 = tpu.matmul %391, %393, %cst_412 {dimension_numbers = #tpu.dot_dimension_numbers<[1], [0], [0], [1], [0, 0, 1, 1], [], []>} : vector<64x64xbf16>, vector<64x128xbf16>, vector<64x128xf32> -> vector<64x128xf32>
    %395 = arith.addf %389, %394 : vector<64x128xf32>
    %c0_413 = arith.constant 0 : index
    %c209 = arith.constant 209 : index
    %c0_414 = arith.constant 0 : index
    %396 = vector.load %arg1[%c0_413, %c209, %c0_414] : memref<1x304x64xbf16, #tpu.memory_space<vmem>>, vector<1x64x64xbf16>
    %397 = vector.shape_cast %396 : vector<1x64x64xbf16> to vector<64x64xbf16>
    %c5_415 = arith.constant 5 : index
    %c0_416 = arith.constant 0 : index
    %c0_417 = arith.constant 0 : index
    %398 = vector.load %arg3[%c5_415, %c0_416, %c0_417] : memref<9x64x128xbf16, #tpu.memory_space<vmem>>, vector<1x64x128xbf16>
    %399 = vector.shape_cast %398 : vector<1x64x128xbf16> to vector<64x128xbf16>
    %cst_418 = arith.constant dense<0.000000e+00> : vector<64x128xf32>
    %400 = tpu.matmul %397, %399, %cst_418 {dimension_numbers = #tpu.dot_dimension_numbers<[1], [0], [0], [1], [0, 0, 1, 1], [], []>} : vector<64x64xbf16>, vector<64x128xbf16>, vector<64x128xf32> -> vector<64x128xf32>
    %401 = arith.addf %395, %400 : vector<64x128xf32>
    %c0_419 = arith.constant 0 : index
    %c224 = arith.constant 224 : index
    %c0_420 = arith.constant 0 : index
    %402 = vector.load %arg1[%c0_419, %c224, %c0_420] : memref<1x304x64xbf16, #tpu.memory_space<vmem>>, vector<1x64x64xbf16>
    %403 = vector.shape_cast %402 : vector<1x64x64xbf16> to vector<64x64xbf16>
    %c6_421 = arith.constant 6 : index
    %c0_422 = arith.constant 0 : index
    %c0_423 = arith.constant 0 : index
    %404 = vector.load %arg3[%c6_421, %c0_422, %c0_423] : memref<9x64x128xbf16, #tpu.memory_space<vmem>>, vector<1x64x128xbf16>
    %405 = vector.shape_cast %404 : vector<1x64x128xbf16> to vector<64x128xbf16>
    %cst_424 = arith.constant dense<0.000000e+00> : vector<64x128xf32>
    %406 = tpu.matmul %403, %405, %cst_424 {dimension_numbers = #tpu.dot_dimension_numbers<[1], [0], [0], [1], [0, 0, 1, 1], [], []>} : vector<64x64xbf16>, vector<64x128xbf16>, vector<64x128xf32> -> vector<64x128xf32>
    %407 = arith.addf %401, %406 : vector<64x128xf32>
    %c0_425 = arith.constant 0 : index
    %c224_426 = arith.constant 224 : index
    %c0_427 = arith.constant 0 : index
    %408 = vector.load %arg2[%c0_425, %c224_426, %c0_427] : memref<1x304x64xbf16, #tpu.memory_space<vmem>>, vector<1x64x64xbf16>
    %409 = vector.shape_cast %408 : vector<1x64x64xbf16> to vector<64x64xbf16>
    %c7_428 = arith.constant 7 : index
    %c0_429 = arith.constant 0 : index
    %c0_430 = arith.constant 0 : index
    %410 = vector.load %arg3[%c7_428, %c0_429, %c0_430] : memref<9x64x128xbf16, #tpu.memory_space<vmem>>, vector<1x64x128xbf16>
    %411 = vector.shape_cast %410 : vector<1x64x128xbf16> to vector<64x128xbf16>
    %cst_431 = arith.constant dense<0.000000e+00> : vector<64x128xf32>
    %412 = tpu.matmul %409, %411, %cst_431 {dimension_numbers = #tpu.dot_dimension_numbers<[1], [0], [0], [1], [0, 0, 1, 1], [], []>} : vector<64x64xbf16>, vector<64x128xbf16>, vector<64x128xf32> -> vector<64x128xf32>
    %413 = arith.addf %407, %412 : vector<64x128xf32>
    %c0_432 = arith.constant 0 : index
    %c225 = arith.constant 225 : index
    %c0_433 = arith.constant 0 : index
    %414 = vector.load %arg1[%c0_432, %c225, %c0_433] : memref<1x304x64xbf16, #tpu.memory_space<vmem>>, vector<1x64x64xbf16>
    %415 = vector.shape_cast %414 : vector<1x64x64xbf16> to vector<64x64xbf16>
    %c8_434 = arith.constant 8 : index
    %c0_435 = arith.constant 0 : index
    %c0_436 = arith.constant 0 : index
    %416 = vector.load %arg3[%c8_434, %c0_435, %c0_436] : memref<9x64x128xbf16, #tpu.memory_space<vmem>>, vector<1x64x128xbf16>
    %417 = vector.shape_cast %416 : vector<1x64x128xbf16> to vector<64x128xbf16>
    %cst_437 = arith.constant dense<0.000000e+00> : vector<64x128xf32>
    %418 = tpu.matmul %415, %417, %cst_437 {dimension_numbers = #tpu.dot_dimension_numbers<[1], [0], [0], [1], [0, 0, 1, 1], [], []>} : vector<64x64xbf16>, vector<64x128xbf16>, vector<64x128xf32> -> vector<64x128xf32>
    %419 = arith.addf %413, %418 : vector<64x128xf32>
    %c0_438 = arith.constant 0 : index
    %c0_439 = arith.constant 0 : index
    %420 = vector.load %arg6[%c0_438, %c0_439] : memref<64x128xf32, #tpu.memory_space<vmem>>, vector<64x128xf32>
    tpu.vector_store %arg6[%c0_438, %c0_439], %419 {strides = array<i32>} : memref<64x128xf32, #tpu.memory_space<vmem>>, vector<64x128xf32>,
    %c0_440 = arith.constant 0 : index
    %c192_441 = arith.constant 192 : index
    %c0_442 = arith.constant 0 : index
    %421 = vector.load %arg2[%c0_440, %c192_441, %c0_442] : memref<1x304x64xbf16, #tpu.memory_space<vmem>>, vector<1x64x64xbf16>
    %422 = vector.shape_cast %421 : vector<1x64x64xbf16> to vector<64x64xbf16>
    %c0_443 = arith.constant 0 : index
    %c0_444 = arith.constant 0 : index
    %c0_445 = arith.constant 0 : index
    %423 = vector.load %arg3[%c0_443, %c0_444, %c0_445] : memref<9x64x128xbf16, #tpu.memory_space<vmem>>, vector<1x64x128xbf16>
    %424 = vector.shape_cast %423 : vector<1x64x128xbf16> to vector<64x128xbf16>
    %cst_446 = arith.constant dense<0.000000e+00> : vector<64x128xf32>
    %425 = tpu.matmul %422, %424, %cst_446 {dimension_numbers = #tpu.dot_dimension_numbers<[1], [0], [0], [1], [0, 0, 1, 1], [], []>} : vector<64x64xbf16>, vector<64x128xbf16>, vector<64x128xf32> -> vector<64x128xf32>
    %c0_447 = arith.constant 0 : index
    %c193_448 = arith.constant 193 : index
    %c0_449 = arith.constant 0 : index
    %426 = vector.load %arg1[%c0_447, %c193_448, %c0_449] : memref<1x304x64xbf16, #tpu.memory_space<vmem>>, vector<1x64x64xbf16>
    %427 = vector.shape_cast %426 : vector<1x64x64xbf16> to vector<64x64xbf16>
    %c1_450 = arith.constant 1 : index
    %c0_451 = arith.constant 0 : index
    %c0_452 = arith.constant 0 : index
    %428 = vector.load %arg3[%c1_450, %c0_451, %c0_452] : memref<9x64x128xbf16, #tpu.memory_space<vmem>>, vector<1x64x128xbf16>
    %429 = vector.shape_cast %428 : vector<1x64x128xbf16> to vector<64x128xbf16>
    %cst_453 = arith.constant dense<0.000000e+00> : vector<64x128xf32>
    %430 = tpu.matmul %427, %429, %cst_453 {dimension_numbers = #tpu.dot_dimension_numbers<[1], [0], [0], [1], [0, 0, 1, 1], [], []>} : vector<64x64xbf16>, vector<64x128xbf16>, vector<64x128xf32> -> vector<64x128xf32>
    %431 = arith.addf %425, %430 : vector<64x128xf32>
    %c0_454 = arith.constant 0 : index
    %c193_455 = arith.constant 193 : index
    %c0_456 = arith.constant 0 : index
    %432 = vector.load %arg2[%c0_454, %c193_455, %c0_456] : memref<1x304x64xbf16, #tpu.memory_space<vmem>>, vector<1x64x64xbf16>
    %433 = vector.shape_cast %432 : vector<1x64x64xbf16> to vector<64x64xbf16>
    %c2_457 = arith.constant 2 : index
    %c0_458 = arith.constant 0 : index
    %c0_459 = arith.constant 0 : index
    %434 = vector.load %arg3[%c2_457, %c0_458, %c0_459] : memref<9x64x128xbf16, #tpu.memory_space<vmem>>, vector<1x64x128xbf16>
    %435 = vector.shape_cast %434 : vector<1x64x128xbf16> to vector<64x128xbf16>
    %cst_460 = arith.constant dense<0.000000e+00> : vector<64x128xf32>
    %436 = tpu.matmul %433, %435, %cst_460 {dimension_numbers = #tpu.dot_dimension_numbers<[1], [0], [0], [1], [0, 0, 1, 1], [], []>} : vector<64x64xbf16>, vector<64x128xbf16>, vector<64x128xf32> -> vector<64x128xf32>
    %437 = arith.addf %431, %436 : vector<64x128xf32>
    %c0_461 = arith.constant 0 : index
    %c208_462 = arith.constant 208 : index
    %c0_463 = arith.constant 0 : index
    %438 = vector.load %arg2[%c0_461, %c208_462, %c0_463] : memref<1x304x64xbf16, #tpu.memory_space<vmem>>, vector<1x64x64xbf16>
    %439 = vector.shape_cast %438 : vector<1x64x64xbf16> to vector<64x64xbf16>
    %c3_464 = arith.constant 3 : index
    %c0_465 = arith.constant 0 : index
    %c0_466 = arith.constant 0 : index
    %440 = vector.load %arg3[%c3_464, %c0_465, %c0_466] : memref<9x64x128xbf16, #tpu.memory_space<vmem>>, vector<1x64x128xbf16>
    %441 = vector.shape_cast %440 : vector<1x64x128xbf16> to vector<64x128xbf16>
    %cst_467 = arith.constant dense<0.000000e+00> : vector<64x128xf32>
    %442 = tpu.matmul %439, %441, %cst_467 {dimension_numbers = #tpu.dot_dimension_numbers<[1], [0], [0], [1], [0, 0, 1, 1], [], []>} : vector<64x64xbf16>, vector<64x128xbf16>, vector<64x128xf32> -> vector<64x128xf32>
    %443 = arith.addf %437, %442 : vector<64x128xf32>
    %c0_468 = arith.constant 0 : index
    %c209_469 = arith.constant 209 : index
    %c0_470 = arith.constant 0 : index
    %444 = vector.load %arg1[%c0_468, %c209_469, %c0_470] : memref<1x304x64xbf16, #tpu.memory_space<vmem>>, vector<1x64x64xbf16>
    %445 = vector.shape_cast %444 : vector<1x64x64xbf16> to vector<64x64xbf16>
    %c4_471 = arith.constant 4 : index
    %c0_472 = arith.constant 0 : index
    %c0_473 = arith.constant 0 : index
    %446 = vector.load %arg3[%c4_471, %c0_472, %c0_473] : memref<9x64x128xbf16, #tpu.memory_space<vmem>>, vector<1x64x128xbf16>
    %447 = vector.shape_cast %446 : vector<1x64x128xbf16> to vector<64x128xbf16>
    %cst_474 = arith.constant dense<0.000000e+00> : vector<64x128xf32>
    %448 = tpu.matmul %445, %447, %cst_474 {dimension_numbers = #tpu.dot_dimension_numbers<[1], [0], [0], [1], [0, 0, 1, 1], [], []>} : vector<64x64xbf16>, vector<64x128xbf16>, vector<64x128xf32> -> vector<64x128xf32>
    %449 = arith.addf %443, %448 : vector<64x128xf32>
    %c0_475 = arith.constant 0 : index
    %c209_476 = arith.constant 209 : index
    %c0_477 = arith.constant 0 : index
    %450 = vector.load %arg2[%c0_475, %c209_476, %c0_477] : memref<1x304x64xbf16, #tpu.memory_space<vmem>>, vector<1x64x64xbf16>
    %451 = vector.shape_cast %450 : vector<1x64x64xbf16> to vector<64x64xbf16>
    %c5_478 = arith.constant 5 : index
    %c0_479 = arith.constant 0 : index
    %c0_480 = arith.constant 0 : index
    %452 = vector.load %arg3[%c5_478, %c0_479, %c0_480] : memref<9x64x128xbf16, #tpu.memory_space<vmem>>, vector<1x64x128xbf16>
    %453 = vector.shape_cast %452 : vector<1x64x128xbf16> to vector<64x128xbf16>
    %cst_481 = arith.constant dense<0.000000e+00> : vector<64x128xf32>
    %454 = tpu.matmul %451, %453, %cst_481 {dimension_numbers = #tpu.dot_dimension_numbers<[1], [0], [0], [1], [0, 0, 1, 1], [], []>} : vector<64x64xbf16>, vector<64x128xbf16>, vector<64x128xf32> -> vector<64x128xf32>
    %455 = arith.addf %449, %454 : vector<64x128xf32>
    %c0_482 = arith.constant 0 : index
    %c224_483 = arith.constant 224 : index
    %c0_484 = arith.constant 0 : index
    %456 = vector.load %arg2[%c0_482, %c224_483, %c0_484] : memref<1x304x64xbf16, #tpu.memory_space<vmem>>, vector<1x64x64xbf16>
    %457 = vector.shape_cast %456 : vector<1x64x64xbf16> to vector<64x64xbf16>
    %c6_485 = arith.constant 6 : index
    %c0_486 = arith.constant 0 : index
    %c0_487 = arith.constant 0 : index
    %458 = vector.load %arg3[%c6_485, %c0_486, %c0_487] : memref<9x64x128xbf16, #tpu.memory_space<vmem>>, vector<1x64x128xbf16>
    %459 = vector.shape_cast %458 : vector<1x64x128xbf16> to vector<64x128xbf16>
    %cst_488 = arith.constant dense<0.000000e+00> : vector<64x128xf32>
    %460 = tpu.matmul %457, %459, %cst_488 {dimension_numbers = #tpu.dot_dimension_numbers<[1], [0], [0], [1], [0, 0, 1, 1], [], []>} : vector<64x64xbf16>, vector<64x128xbf16>, vector<64x128xf32> -> vector<64x128xf32>
    %461 = arith.addf %455, %460 : vector<64x128xf32>
    %c0_489 = arith.constant 0 : index
    %c225_490 = arith.constant 225 : index
    %c0_491 = arith.constant 0 : index
    %462 = vector.load %arg1[%c0_489, %c225_490, %c0_491] : memref<1x304x64xbf16, #tpu.memory_space<vmem>>, vector<1x64x64xbf16>
    %463 = vector.shape_cast %462 : vector<1x64x64xbf16> to vector<64x64xbf16>
    %c7_492 = arith.constant 7 : index
    %c0_493 = arith.constant 0 : index
    %c0_494 = arith.constant 0 : index
    %464 = vector.load %arg3[%c7_492, %c0_493, %c0_494] : memref<9x64x128xbf16, #tpu.memory_space<vmem>>, vector<1x64x128xbf16>
    %465 = vector.shape_cast %464 : vector<1x64x128xbf16> to vector<64x128xbf16>
    %cst_495 = arith.constant dense<0.000000e+00> : vector<64x128xf32>
    %466 = tpu.matmul %463, %465, %cst_495 {dimension_numbers = #tpu.dot_dimension_numbers<[1], [0], [0], [1], [0, 0, 1, 1], [], []>} : vector<64x64xbf16>, vector<64x128xbf16>, vector<64x128xf32> -> vector<64x128xf32>
    %467 = arith.addf %461, %466 : vector<64x128xf32>
    %c0_496 = arith.constant 0 : index
    %c225_497 = arith.constant 225 : index
    %c0_498 = arith.constant 0 : index
    %468 = vector.load %arg2[%c0_496, %c225_497, %c0_498] : memref<1x304x64xbf16, #tpu.memory_space<vmem>>, vector<1x64x64xbf16>
    %469 = vector.shape_cast %468 : vector<1x64x64xbf16> to vector<64x64xbf16>
    %c8_499 = arith.constant 8 : index
    %c0_500 = arith.constant 0 : index
    %c0_501 = arith.constant 0 : index
    %470 = vector.load %arg3[%c8_499, %c0_500, %c0_501] : memref<9x64x128xbf16, #tpu.memory_space<vmem>>, vector<1x64x128xbf16>
    %471 = vector.shape_cast %470 : vector<1x64x128xbf16> to vector<64x128xbf16>
    %cst_502 = arith.constant dense<0.000000e+00> : vector<64x128xf32>
    %472 = tpu.matmul %469, %471, %cst_502 {dimension_numbers = #tpu.dot_dimension_numbers<[1], [0], [0], [1], [0, 0, 1, 1], [], []>} : vector<64x64xbf16>, vector<64x128xbf16>, vector<64x128xf32> -> vector<64x128xf32>
    %473 = arith.addf %467, %472 : vector<64x128xf32>
    %c0_503 = arith.constant 0 : index
    %c0_504 = arith.constant 0 : index
    %474 = vector.load %arg6[%c0_503, %c0_504] : memref<64x128xf32, #tpu.memory_space<vmem>>, vector<64x128xf32>
    %475 = arith.maximumf %474, %473 : vector<64x128xf32>
    %476 = vector.shape_cast %475 : vector<64x128xf32> to vector<2x32x128xf32>
    %477 = vector.extract_strided_slice %476 {offsets = [0, 0, 0], sizes = [2, 16, 128], strides = [1, 1, 1]} : vector<2x32x128xf32> to vector<2x16x128xf32>
    %478 = vector.extract_strided_slice %476 {offsets = [0, 16, 0], sizes = [2, 16, 128], strides = [1, 1, 1]} : vector<2x32x128xf32> to vector<2x16x128xf32>
    %479 = arith.maximumf %477, %478 : vector<2x16x128xf32>
    %480 = vector.extract_strided_slice %479 {offsets = [0, 0, 0], sizes = [2, 8, 128], strides = [1, 1, 1]} : vector<2x16x128xf32> to vector<2x8x128xf32>
    %481 = vector.shape_cast %0 : vector<1x128xf32> to vector<1x1x128xf32>
    %482 = vector.broadcast %481 : vector<1x1x128xf32> to vector<2x8x128xf32>
    %483 = arith.addf %480, %482 : vector<2x8x128xf32>
    %cst_505 = arith.constant 0.000000e+00 : f32
    %484 = vector.broadcast %cst_505 : f32 to vector<2x8x128xf32>
    %485 = arith.maximumf %483, %484 : vector<2x8x128xf32>
    %486 = vector.shape_cast %485 : vector<2x8x128xf32> to vector<1x2x8x128xf32>
    %487 = arith.truncf %486 : vector<1x2x8x128xf32> to vector<1x2x8x128xbf16>
    %c0_506 = arith.constant 0 : index
    %c6_507 = arith.constant 6 : index
    %c0_508 = arith.constant 0 : index
    %c0_509 = arith.constant 0 : index
    %488 = vector.load %arg5[%c0_506, %c6_507, %c0_508, %c0_509] : memref<1x8x8x128xbf16, #tpu.memory_space<vmem>>, vector<1x2x8x128xbf16>
    tpu.vector_store %arg5[%c0_506, %c6_507, %c0_508, %c0_509], %487 {strides = array<i32>} : memref<1x8x8x128xbf16, #tpu.memory_space<vmem>>, vector<1x2x8x128xbf16>,
    return
  }
  func.func @transform_0(%arg0: i32) -> (i32, i32, i32) {
    %c0_i32 = arith.constant 0 : i32
    %c0_i32_0 = arith.constant 0 : i32
    %c0_i32_1 = arith.constant 0 : i32
    return %arg0, %c0_i32, %c0_i32_0 : i32, i32, i32
  }
  func.func @transform_1(%arg0: i32) -> (i32, i32, i32) {
    %c0_i32 = arith.constant 0 : i32
    %c0_i32_0 = arith.constant 0 : i32
    %c0_i32_1 = arith.constant 0 : i32
    return %arg0, %c0_i32, %c0_i32_0 : i32, i32, i32
  }
  func.func @transform_2(%arg0: i32) -> (i32, i32, i32) {
    %c0_i32 = arith.constant 0 : i32
    %c0_i32_0 = arith.constant 0 : i32
    %c0_i32_1 = arith.constant 0 : i32
    %c0_i32_2 = arith.constant 0 : i32
    return %c0_i32, %c0_i32_0, %c0_i32_1 : i32, i32, i32
  }
  func.func @transform_3(%arg0: i32) -> (i32, i32) {
    %c0_i32 = arith.constant 0 : i32
    %c0_i32_0 = arith.constant 0 : i32
    %c0_i32_1 = arith.constant 0 : i32
    return %c0_i32, %c0_i32_0 : i32, i32
  }
  func.func @transform_4(%arg0: i32) -> (i32, i32, i32, i32) {
    %c0_i32 = arith.constant 0 : i32
    %c0_i32_0 = arith.constant 0 : i32
    %c0_i32_1 = arith.constant 0 : i32
    %c0_i32_2 = arith.constant 0 : i32
    return %arg0, %c0_i32, %c0_i32_0, %c0_i32_1 : i32, i32, i32, i32
  }
}

module attributes {stable_mosaic.version = 11 : i64} {
  func.func @_conv_relu_pool_kernel(%arg0: i32, %arg1: memref<1x88x128xbf16, #tpu.memory_space<vmem>>, %arg2: memref<1x88x128xbf16, #tpu.memory_space<vmem>>, %arg3: memref<9x128x128xbf16, #tpu.memory_space<vmem>>, %arg4: memref<1x128xf32, #tpu.memory_space<vmem>>, %arg5: memref<1x4x4x128xbf16, #tpu.memory_space<vmem>>, %arg6: memref<64x128xf32, #tpu.memory_space<vmem>>) attributes {dimension_semantics = [#tpu.dimension_semantics<parallel>], iteration_bounds = array<i64: 2>, scalar_prefetch = 0 : i64, scratch_operands = 1 : i64, tpu.core_type = #tpu.core_type<tc>, window_params = [{transform_indices = @transform_0, window_bounds = array<i64: 1, 88, 128>}, {transform_indices = @transform_1, window_bounds = array<i64: 1, 88, 128>}, {pipeline_mode = #tpu.pipeline_mode<synchronous>, transform_indices = @transform_2, window_bounds = array<i64: 9, 128, 128>}, {pipeline_mode = #tpu.pipeline_mode<synchronous>, transform_indices = @transform_3, window_bounds = array<i64: 1, 128>}, {transform_indices = @transform_4, window_bounds = array<i64: 1, 4, 4, 128>}]} {
    %c0 = arith.constant 0 : index
    %c0_0 = arith.constant 0 : index
    %0 = vector.load %arg4[%c0, %c0_0] : memref<1x128xf32, #tpu.memory_space<vmem>>, vector<1x128xf32>
    %c0_1 = arith.constant 0 : index
    %c0_2 = arith.constant 0 : index
    %c0_3 = arith.constant 0 : index
    %1 = vector.load %arg1[%c0_1, %c0_2, %c0_3] : memref<1x88x128xbf16, #tpu.memory_space<vmem>>, vector<1x64x128xbf16>
    %2 = vector.shape_cast %1 : vector<1x64x128xbf16> to vector<64x128xbf16>
    %c0_4 = arith.constant 0 : index
    %c0_5 = arith.constant 0 : index
    %c0_6 = arith.constant 0 : index
    %3 = vector.load %arg3[%c0_4, %c0_5, %c0_6] : memref<9x128x128xbf16, #tpu.memory_space<vmem>>, vector<1x128x128xbf16>
    %4 = vector.shape_cast %3 : vector<1x128x128xbf16> to vector<128x128xbf16>
    %cst = arith.constant dense<0.000000e+00> : vector<64x128xf32>
    %5 = tpu.matmul %2, %4, %cst {dimension_numbers = #tpu.dot_dimension_numbers<[1], [0], [0], [1], [0, 0, 1, 1], [], []>} : vector<64x128xbf16>, vector<128x128xbf16>, vector<64x128xf32> -> vector<64x128xf32>
    %c0_7 = arith.constant 0 : index
    %c0_8 = arith.constant 0 : index
    %c0_9 = arith.constant 0 : index
    %6 = vector.load %arg2[%c0_7, %c0_8, %c0_9] : memref<1x88x128xbf16, #tpu.memory_space<vmem>>, vector<1x64x128xbf16>
    %7 = vector.shape_cast %6 : vector<1x64x128xbf16> to vector<64x128xbf16>
    %c1 = arith.constant 1 : index
    %c0_10 = arith.constant 0 : index
    %c0_11 = arith.constant 0 : index
    %8 = vector.load %arg3[%c1, %c0_10, %c0_11] : memref<9x128x128xbf16, #tpu.memory_space<vmem>>, vector<1x128x128xbf16>
    %9 = vector.shape_cast %8 : vector<1x128x128xbf16> to vector<128x128xbf16>
    %cst_12 = arith.constant dense<0.000000e+00> : vector<64x128xf32>
    %10 = tpu.matmul %7, %9, %cst_12 {dimension_numbers = #tpu.dot_dimension_numbers<[1], [0], [0], [1], [0, 0, 1, 1], [], []>} : vector<64x128xbf16>, vector<128x128xbf16>, vector<64x128xf32> -> vector<64x128xf32>
    %11 = arith.addf %5, %10 : vector<64x128xf32>
    %c0_13 = arith.constant 0 : index
    %c1_14 = arith.constant 1 : index
    %c0_15 = arith.constant 0 : index
    %12 = vector.load %arg1[%c0_13, %c1_14, %c0_15] : memref<1x88x128xbf16, #tpu.memory_space<vmem>>, vector<1x64x128xbf16>
    %13 = vector.shape_cast %12 : vector<1x64x128xbf16> to vector<64x128xbf16>
    %c2 = arith.constant 2 : index
    %c0_16 = arith.constant 0 : index
    %c0_17 = arith.constant 0 : index
    %14 = vector.load %arg3[%c2, %c0_16, %c0_17] : memref<9x128x128xbf16, #tpu.memory_space<vmem>>, vector<1x128x128xbf16>
    %15 = vector.shape_cast %14 : vector<1x128x128xbf16> to vector<128x128xbf16>
    %cst_18 = arith.constant dense<0.000000e+00> : vector<64x128xf32>
    %16 = tpu.matmul %13, %15, %cst_18 {dimension_numbers = #tpu.dot_dimension_numbers<[1], [0], [0], [1], [0, 0, 1, 1], [], []>} : vector<64x128xbf16>, vector<128x128xbf16>, vector<64x128xf32> -> vector<64x128xf32>
    %17 = arith.addf %11, %16 : vector<64x128xf32>
    %c0_19 = arith.constant 0 : index
    %c8 = arith.constant 8 : index
    %c0_20 = arith.constant 0 : index
    %18 = vector.load %arg1[%c0_19, %c8, %c0_20] : memref<1x88x128xbf16, #tpu.memory_space<vmem>>, vector<1x64x128xbf16>
    %19 = vector.shape_cast %18 : vector<1x64x128xbf16> to vector<64x128xbf16>
    %c3 = arith.constant 3 : index
    %c0_21 = arith.constant 0 : index
    %c0_22 = arith.constant 0 : index
    %20 = vector.load %arg3[%c3, %c0_21, %c0_22] : memref<9x128x128xbf16, #tpu.memory_space<vmem>>, vector<1x128x128xbf16>
    %21 = vector.shape_cast %20 : vector<1x128x128xbf16> to vector<128x128xbf16>
    %cst_23 = arith.constant dense<0.000000e+00> : vector<64x128xf32>
    %22 = tpu.matmul %19, %21, %cst_23 {dimension_numbers = #tpu.dot_dimension_numbers<[1], [0], [0], [1], [0, 0, 1, 1], [], []>} : vector<64x128xbf16>, vector<128x128xbf16>, vector<64x128xf32> -> vector<64x128xf32>
    %23 = arith.addf %17, %22 : vector<64x128xf32>
    %c0_24 = arith.constant 0 : index
    %c8_25 = arith.constant 8 : index
    %c0_26 = arith.constant 0 : index
    %24 = vector.load %arg2[%c0_24, %c8_25, %c0_26] : memref<1x88x128xbf16, #tpu.memory_space<vmem>>, vector<1x64x128xbf16>
    %25 = vector.shape_cast %24 : vector<1x64x128xbf16> to vector<64x128xbf16>
    %c4 = arith.constant 4 : index
    %c0_27 = arith.constant 0 : index
    %c0_28 = arith.constant 0 : index
    %26 = vector.load %arg3[%c4, %c0_27, %c0_28] : memref<9x128x128xbf16, #tpu.memory_space<vmem>>, vector<1x128x128xbf16>
    %27 = vector.shape_cast %26 : vector<1x128x128xbf16> to vector<128x128xbf16>
    %cst_29 = arith.constant dense<0.000000e+00> : vector<64x128xf32>
    %28 = tpu.matmul %25, %27, %cst_29 {dimension_numbers = #tpu.dot_dimension_numbers<[1], [0], [0], [1], [0, 0, 1, 1], [], []>} : vector<64x128xbf16>, vector<128x128xbf16>, vector<64x128xf32> -> vector<64x128xf32>
    %29 = arith.addf %23, %28 : vector<64x128xf32>
    %c0_30 = arith.constant 0 : index
    %c9 = arith.constant 9 : index
    %c0_31 = arith.constant 0 : index
    %30 = vector.load %arg1[%c0_30, %c9, %c0_31] : memref<1x88x128xbf16, #tpu.memory_space<vmem>>, vector<1x64x128xbf16>
    %31 = vector.shape_cast %30 : vector<1x64x128xbf16> to vector<64x128xbf16>
    %c5 = arith.constant 5 : index
    %c0_32 = arith.constant 0 : index
    %c0_33 = arith.constant 0 : index
    %32 = vector.load %arg3[%c5, %c0_32, %c0_33] : memref<9x128x128xbf16, #tpu.memory_space<vmem>>, vector<1x128x128xbf16>
    %33 = vector.shape_cast %32 : vector<1x128x128xbf16> to vector<128x128xbf16>
    %cst_34 = arith.constant dense<0.000000e+00> : vector<64x128xf32>
    %34 = tpu.matmul %31, %33, %cst_34 {dimension_numbers = #tpu.dot_dimension_numbers<[1], [0], [0], [1], [0, 0, 1, 1], [], []>} : vector<64x128xbf16>, vector<128x128xbf16>, vector<64x128xf32> -> vector<64x128xf32>
    %35 = arith.addf %29, %34 : vector<64x128xf32>
    %c0_35 = arith.constant 0 : index
    %c16 = arith.constant 16 : index
    %c0_36 = arith.constant 0 : index
    %36 = vector.load %arg1[%c0_35, %c16, %c0_36] : memref<1x88x128xbf16, #tpu.memory_space<vmem>>, vector<1x64x128xbf16>
    %37 = vector.shape_cast %36 : vector<1x64x128xbf16> to vector<64x128xbf16>
    %c6 = arith.constant 6 : index
    %c0_37 = arith.constant 0 : index
    %c0_38 = arith.constant 0 : index
    %38 = vector.load %arg3[%c6, %c0_37, %c0_38] : memref<9x128x128xbf16, #tpu.memory_space<vmem>>, vector<1x128x128xbf16>
    %39 = vector.shape_cast %38 : vector<1x128x128xbf16> to vector<128x128xbf16>
    %cst_39 = arith.constant dense<0.000000e+00> : vector<64x128xf32>
    %40 = tpu.matmul %37, %39, %cst_39 {dimension_numbers = #tpu.dot_dimension_numbers<[1], [0], [0], [1], [0, 0, 1, 1], [], []>} : vector<64x128xbf16>, vector<128x128xbf16>, vector<64x128xf32> -> vector<64x128xf32>
    %41 = arith.addf %35, %40 : vector<64x128xf32>
    %c0_40 = arith.constant 0 : index
    %c16_41 = arith.constant 16 : index
    %c0_42 = arith.constant 0 : index
    %42 = vector.load %arg2[%c0_40, %c16_41, %c0_42] : memref<1x88x128xbf16, #tpu.memory_space<vmem>>, vector<1x64x128xbf16>
    %43 = vector.shape_cast %42 : vector<1x64x128xbf16> to vector<64x128xbf16>
    %c7 = arith.constant 7 : index
    %c0_43 = arith.constant 0 : index
    %c0_44 = arith.constant 0 : index
    %44 = vector.load %arg3[%c7, %c0_43, %c0_44] : memref<9x128x128xbf16, #tpu.memory_space<vmem>>, vector<1x128x128xbf16>
    %45 = vector.shape_cast %44 : vector<1x128x128xbf16> to vector<128x128xbf16>
    %cst_45 = arith.constant dense<0.000000e+00> : vector<64x128xf32>
    %46 = tpu.matmul %43, %45, %cst_45 {dimension_numbers = #tpu.dot_dimension_numbers<[1], [0], [0], [1], [0, 0, 1, 1], [], []>} : vector<64x128xbf16>, vector<128x128xbf16>, vector<64x128xf32> -> vector<64x128xf32>
    %47 = arith.addf %41, %46 : vector<64x128xf32>
    %c0_46 = arith.constant 0 : index
    %c17 = arith.constant 17 : index
    %c0_47 = arith.constant 0 : index
    %48 = vector.load %arg1[%c0_46, %c17, %c0_47] : memref<1x88x128xbf16, #tpu.memory_space<vmem>>, vector<1x64x128xbf16>
    %49 = vector.shape_cast %48 : vector<1x64x128xbf16> to vector<64x128xbf16>
    %c8_48 = arith.constant 8 : index
    %c0_49 = arith.constant 0 : index
    %c0_50 = arith.constant 0 : index
    %50 = vector.load %arg3[%c8_48, %c0_49, %c0_50] : memref<9x128x128xbf16, #tpu.memory_space<vmem>>, vector<1x128x128xbf16>
    %51 = vector.shape_cast %50 : vector<1x128x128xbf16> to vector<128x128xbf16>
    %cst_51 = arith.constant dense<0.000000e+00> : vector<64x128xf32>
    %52 = tpu.matmul %49, %51, %cst_51 {dimension_numbers = #tpu.dot_dimension_numbers<[1], [0], [0], [1], [0, 0, 1, 1], [], []>} : vector<64x128xbf16>, vector<128x128xbf16>, vector<64x128xf32> -> vector<64x128xf32>
    %53 = arith.addf %47, %52 : vector<64x128xf32>
    %c0_52 = arith.constant 0 : index
    %c0_53 = arith.constant 0 : index
    %54 = vector.load %arg6[%c0_52, %c0_53] : memref<64x128xf32, #tpu.memory_space<vmem>>, vector<64x128xf32>
    tpu.vector_store %arg6[%c0_52, %c0_53], %53 {strides = array<i32>} : memref<64x128xf32, #tpu.memory_space<vmem>>, vector<64x128xf32>,
    %c0_54 = arith.constant 0 : index
    %c0_55 = arith.constant 0 : index
    %c0_56 = arith.constant 0 : index
    %55 = vector.load %arg2[%c0_54, %c0_55, %c0_56] : memref<1x88x128xbf16, #tpu.memory_space<vmem>>, vector<1x64x128xbf16>
    %56 = vector.shape_cast %55 : vector<1x64x128xbf16> to vector<64x128xbf16>
    %c0_57 = arith.constant 0 : index
    %c0_58 = arith.constant 0 : index
    %c0_59 = arith.constant 0 : index
    %57 = vector.load %arg3[%c0_57, %c0_58, %c0_59] : memref<9x128x128xbf16, #tpu.memory_space<vmem>>, vector<1x128x128xbf16>
    %58 = vector.shape_cast %57 : vector<1x128x128xbf16> to vector<128x128xbf16>
    %cst_60 = arith.constant dense<0.000000e+00> : vector<64x128xf32>
    %59 = tpu.matmul %56, %58, %cst_60 {dimension_numbers = #tpu.dot_dimension_numbers<[1], [0], [0], [1], [0, 0, 1, 1], [], []>} : vector<64x128xbf16>, vector<128x128xbf16>, vector<64x128xf32> -> vector<64x128xf32>
    %c0_61 = arith.constant 0 : index
    %c1_62 = arith.constant 1 : index
    %c0_63 = arith.constant 0 : index
    %60 = vector.load %arg1[%c0_61, %c1_62, %c0_63] : memref<1x88x128xbf16, #tpu.memory_space<vmem>>, vector<1x64x128xbf16>
    %61 = vector.shape_cast %60 : vector<1x64x128xbf16> to vector<64x128xbf16>
    %c1_64 = arith.constant 1 : index
    %c0_65 = arith.constant 0 : index
    %c0_66 = arith.constant 0 : index
    %62 = vector.load %arg3[%c1_64, %c0_65, %c0_66] : memref<9x128x128xbf16, #tpu.memory_space<vmem>>, vector<1x128x128xbf16>
    %63 = vector.shape_cast %62 : vector<1x128x128xbf16> to vector<128x128xbf16>
    %cst_67 = arith.constant dense<0.000000e+00> : vector<64x128xf32>
    %64 = tpu.matmul %61, %63, %cst_67 {dimension_numbers = #tpu.dot_dimension_numbers<[1], [0], [0], [1], [0, 0, 1, 1], [], []>} : vector<64x128xbf16>, vector<128x128xbf16>, vector<64x128xf32> -> vector<64x128xf32>
    %65 = arith.addf %59, %64 : vector<64x128xf32>
    %c0_68 = arith.constant 0 : index
    %c1_69 = arith.constant 1 : index
    %c0_70 = arith.constant 0 : index
    %66 = vector.load %arg2[%c0_68, %c1_69, %c0_70] : memref<1x88x128xbf16, #tpu.memory_space<vmem>>, vector<1x64x128xbf16>
    %67 = vector.shape_cast %66 : vector<1x64x128xbf16> to vector<64x128xbf16>
    %c2_71 = arith.constant 2 : index
    %c0_72 = arith.constant 0 : index
    %c0_73 = arith.constant 0 : index
    %68 = vector.load %arg3[%c2_71, %c0_72, %c0_73] : memref<9x128x128xbf16, #tpu.memory_space<vmem>>, vector<1x128x128xbf16>
    %69 = vector.shape_cast %68 : vector<1x128x128xbf16> to vector<128x128xbf16>
    %cst_74 = arith.constant dense<0.000000e+00> : vector<64x128xf32>
    %70 = tpu.matmul %67, %69, %cst_74 {dimension_numbers = #tpu.dot_dimension_numbers<[1], [0], [0], [1], [0, 0, 1, 1], [], []>} : vector<64x128xbf16>, vector<128x128xbf16>, vector<64x128xf32> -> vector<64x128xf32>
    %71 = arith.addf %65, %70 : vector<64x128xf32>
    %c0_75 = arith.constant 0 : index
    %c8_76 = arith.constant 8 : index
    %c0_77 = arith.constant 0 : index
    %72 = vector.load %arg2[%c0_75, %c8_76, %c0_77] : memref<1x88x128xbf16, #tpu.memory_space<vmem>>, vector<1x64x128xbf16>
    %73 = vector.shape_cast %72 : vector<1x64x128xbf16> to vector<64x128xbf16>
    %c3_78 = arith.constant 3 : index
    %c0_79 = arith.constant 0 : index
    %c0_80 = arith.constant 0 : index
    %74 = vector.load %arg3[%c3_78, %c0_79, %c0_80] : memref<9x128x128xbf16, #tpu.memory_space<vmem>>, vector<1x128x128xbf16>
    %75 = vector.shape_cast %74 : vector<1x128x128xbf16> to vector<128x128xbf16>
    %cst_81 = arith.constant dense<0.000000e+00> : vector<64x128xf32>
    %76 = tpu.matmul %73, %75, %cst_81 {dimension_numbers = #tpu.dot_dimension_numbers<[1], [0], [0], [1], [0, 0, 1, 1], [], []>} : vector<64x128xbf16>, vector<128x128xbf16>, vector<64x128xf32> -> vector<64x128xf32>
    %77 = arith.addf %71, %76 : vector<64x128xf32>
    %c0_82 = arith.constant 0 : index
    %c9_83 = arith.constant 9 : index
    %c0_84 = arith.constant 0 : index
    %78 = vector.load %arg1[%c0_82, %c9_83, %c0_84] : memref<1x88x128xbf16, #tpu.memory_space<vmem>>, vector<1x64x128xbf16>
    %79 = vector.shape_cast %78 : vector<1x64x128xbf16> to vector<64x128xbf16>
    %c4_85 = arith.constant 4 : index
    %c0_86 = arith.constant 0 : index
    %c0_87 = arith.constant 0 : index
    %80 = vector.load %arg3[%c4_85, %c0_86, %c0_87] : memref<9x128x128xbf16, #tpu.memory_space<vmem>>, vector<1x128x128xbf16>
    %81 = vector.shape_cast %80 : vector<1x128x128xbf16> to vector<128x128xbf16>
    %cst_88 = arith.constant dense<0.000000e+00> : vector<64x128xf32>
    %82 = tpu.matmul %79, %81, %cst_88 {dimension_numbers = #tpu.dot_dimension_numbers<[1], [0], [0], [1], [0, 0, 1, 1], [], []>} : vector<64x128xbf16>, vector<128x128xbf16>, vector<64x128xf32> -> vector<64x128xf32>
    %83 = arith.addf %77, %82 : vector<64x128xf32>
    %c0_89 = arith.constant 0 : index
    %c9_90 = arith.constant 9 : index
    %c0_91 = arith.constant 0 : index
    %84 = vector.load %arg2[%c0_89, %c9_90, %c0_91] : memref<1x88x128xbf16, #tpu.memory_space<vmem>>, vector<1x64x128xbf16>
    %85 = vector.shape_cast %84 : vector<1x64x128xbf16> to vector<64x128xbf16>
    %c5_92 = arith.constant 5 : index
    %c0_93 = arith.constant 0 : index
    %c0_94 = arith.constant 0 : index
    %86 = vector.load %arg3[%c5_92, %c0_93, %c0_94] : memref<9x128x128xbf16, #tpu.memory_space<vmem>>, vector<1x128x128xbf16>
    %87 = vector.shape_cast %86 : vector<1x128x128xbf16> to vector<128x128xbf16>
    %cst_95 = arith.constant dense<0.000000e+00> : vector<64x128xf32>
    %88 = tpu.matmul %85, %87, %cst_95 {dimension_numbers = #tpu.dot_dimension_numbers<[1], [0], [0], [1], [0, 0, 1, 1], [], []>} : vector<64x128xbf16>, vector<128x128xbf16>, vector<64x128xf32> -> vector<64x128xf32>
    %89 = arith.addf %83, %88 : vector<64x128xf32>
    %c0_96 = arith.constant 0 : index
    %c16_97 = arith.constant 16 : index
    %c0_98 = arith.constant 0 : index
    %90 = vector.load %arg2[%c0_96, %c16_97, %c0_98] : memref<1x88x128xbf16, #tpu.memory_space<vmem>>, vector<1x64x128xbf16>
    %91 = vector.shape_cast %90 : vector<1x64x128xbf16> to vector<64x128xbf16>
    %c6_99 = arith.constant 6 : index
    %c0_100 = arith.constant 0 : index
    %c0_101 = arith.constant 0 : index
    %92 = vector.load %arg3[%c6_99, %c0_100, %c0_101] : memref<9x128x128xbf16, #tpu.memory_space<vmem>>, vector<1x128x128xbf16>
    %93 = vector.shape_cast %92 : vector<1x128x128xbf16> to vector<128x128xbf16>
    %cst_102 = arith.constant dense<0.000000e+00> : vector<64x128xf32>
    %94 = tpu.matmul %91, %93, %cst_102 {dimension_numbers = #tpu.dot_dimension_numbers<[1], [0], [0], [1], [0, 0, 1, 1], [], []>} : vector<64x128xbf16>, vector<128x128xbf16>, vector<64x128xf32> -> vector<64x128xf32>
    %95 = arith.addf %89, %94 : vector<64x128xf32>
    %c0_103 = arith.constant 0 : index
    %c17_104 = arith.constant 17 : index
    %c0_105 = arith.constant 0 : index
    %96 = vector.load %arg1[%c0_103, %c17_104, %c0_105] : memref<1x88x128xbf16, #tpu.memory_space<vmem>>, vector<1x64x128xbf16>
    %97 = vector.shape_cast %96 : vector<1x64x128xbf16> to vector<64x128xbf16>
    %c7_106 = arith.constant 7 : index
    %c0_107 = arith.constant 0 : index
    %c0_108 = arith.constant 0 : index
    %98 = vector.load %arg3[%c7_106, %c0_107, %c0_108] : memref<9x128x128xbf16, #tpu.memory_space<vmem>>, vector<1x128x128xbf16>
    %99 = vector.shape_cast %98 : vector<1x128x128xbf16> to vector<128x128xbf16>
    %cst_109 = arith.constant dense<0.000000e+00> : vector<64x128xf32>
    %100 = tpu.matmul %97, %99, %cst_109 {dimension_numbers = #tpu.dot_dimension_numbers<[1], [0], [0], [1], [0, 0, 1, 1], [], []>} : vector<64x128xbf16>, vector<128x128xbf16>, vector<64x128xf32> -> vector<64x128xf32>
    %101 = arith.addf %95, %100 : vector<64x128xf32>
    %c0_110 = arith.constant 0 : index
    %c17_111 = arith.constant 17 : index
    %c0_112 = arith.constant 0 : index
    %102 = vector.load %arg2[%c0_110, %c17_111, %c0_112] : memref<1x88x128xbf16, #tpu.memory_space<vmem>>, vector<1x64x128xbf16>
    %103 = vector.shape_cast %102 : vector<1x64x128xbf16> to vector<64x128xbf16>
    %c8_113 = arith.constant 8 : index
    %c0_114 = arith.constant 0 : index
    %c0_115 = arith.constant 0 : index
    %104 = vector.load %arg3[%c8_113, %c0_114, %c0_115] : memref<9x128x128xbf16, #tpu.memory_space<vmem>>, vector<1x128x128xbf16>
    %105 = vector.shape_cast %104 : vector<1x128x128xbf16> to vector<128x128xbf16>
    %cst_116 = arith.constant dense<0.000000e+00> : vector<64x128xf32>
    %106 = tpu.matmul %103, %105, %cst_116 {dimension_numbers = #tpu.dot_dimension_numbers<[1], [0], [0], [1], [0, 0, 1, 1], [], []>} : vector<64x128xbf16>, vector<128x128xbf16>, vector<64x128xf32> -> vector<64x128xf32>
    %107 = arith.addf %101, %106 : vector<64x128xf32>
    %c0_117 = arith.constant 0 : index
    %c0_118 = arith.constant 0 : index
    %108 = vector.load %arg6[%c0_117, %c0_118] : memref<64x128xf32, #tpu.memory_space<vmem>>, vector<64x128xf32>
    %109 = arith.maximumf %108, %107 : vector<64x128xf32>
    %110 = vector.shape_cast %109 : vector<64x128xf32> to vector<4x16x128xf32>
    %111 = vector.extract_strided_slice %110 {offsets = [0, 0, 0], sizes = [4, 8, 128], strides = [1, 1, 1]} : vector<4x16x128xf32> to vector<4x8x128xf32>
    %112 = vector.extract_strided_slice %110 {offsets = [0, 8, 0], sizes = [4, 8, 128], strides = [1, 1, 1]} : vector<4x16x128xf32> to vector<4x8x128xf32>
    %113 = arith.maximumf %111, %112 : vector<4x8x128xf32>
    %114 = vector.extract_strided_slice %113 {offsets = [0, 0, 0], sizes = [4, 4, 128], strides = [1, 1, 1]} : vector<4x8x128xf32> to vector<4x4x128xf32>
    %115 = vector.shape_cast %0 : vector<1x128xf32> to vector<1x1x128xf32>
    %116 = vector.broadcast %115 : vector<1x1x128xf32> to vector<4x4x128xf32>
    %117 = arith.addf %114, %116 : vector<4x4x128xf32>
    %cst_119 = arith.constant 0.000000e+00 : f32
    %118 = vector.broadcast %cst_119 : f32 to vector<4x4x128xf32>
    %119 = arith.maximumf %117, %118 : vector<4x4x128xf32>
    %120 = vector.shape_cast %119 : vector<4x4x128xf32> to vector<1x4x4x128xf32>
    %121 = arith.truncf %120 : vector<1x4x4x128xf32> to vector<1x4x4x128xbf16>
    %c0_120 = arith.constant 0 : index
    %c0_121 = arith.constant 0 : index
    %c0_122 = arith.constant 0 : index
    %c0_123 = arith.constant 0 : index
    %122 = vector.load %arg5[%c0_120, %c0_121, %c0_122, %c0_123] : memref<1x4x4x128xbf16, #tpu.memory_space<vmem>>, vector<1x4x4x128xbf16>
    tpu.vector_store %arg5[%c0_120, %c0_121, %c0_122, %c0_123], %121 {strides = array<i32>} : memref<1x4x4x128xbf16, #tpu.memory_space<vmem>>, vector<1x4x4x128xbf16>,
    return
  }
  func.func @transform_0(%arg0: i32) -> (i32, i32, i32) {
    %c0_i32 = arith.constant 0 : i32
    %c0_i32_0 = arith.constant 0 : i32
    %c0_i32_1 = arith.constant 0 : i32
    return %arg0, %c0_i32, %c0_i32_0 : i32, i32, i32
  }
  func.func @transform_1(%arg0: i32) -> (i32, i32, i32) {
    %c0_i32 = arith.constant 0 : i32
    %c0_i32_0 = arith.constant 0 : i32
    %c0_i32_1 = arith.constant 0 : i32
    return %arg0, %c0_i32, %c0_i32_0 : i32, i32, i32
  }
  func.func @transform_2(%arg0: i32) -> (i32, i32, i32) {
    %c0_i32 = arith.constant 0 : i32
    %c0_i32_0 = arith.constant 0 : i32
    %c0_i32_1 = arith.constant 0 : i32
    %c0_i32_2 = arith.constant 0 : i32
    return %c0_i32, %c0_i32_0, %c0_i32_1 : i32, i32, i32
  }
  func.func @transform_3(%arg0: i32) -> (i32, i32) {
    %c0_i32 = arith.constant 0 : i32
    %c0_i32_0 = arith.constant 0 : i32
    %c0_i32_1 = arith.constant 0 : i32
    return %c0_i32, %c0_i32_0 : i32, i32
  }
  func.func @transform_4(%arg0: i32) -> (i32, i32, i32, i32) {
    %c0_i32 = arith.constant 0 : i32
    %c0_i32_0 = arith.constant 0 : i32
    %c0_i32_1 = arith.constant 0 : i32
    %c0_i32_2 = arith.constant 0 : i32
    return %arg0, %c0_i32, %c0_i32_0, %c0_i32_1 : i32, i32, i32, i32
  }
}

module attributes {stable_mosaic.version = 11 : i64} {
  func.func @_fc_fused_kernel(%arg0: i32, %arg1: memref<2x2048xbf16, #tpu.memory_space<vmem>>, %arg2: memref<2048x256xbf16, #tpu.memory_space<vmem>>, %arg3: memref<1x256xf32, #tpu.memory_space<vmem>>, %arg4: memref<256x128xbf16, #tpu.memory_space<vmem>>, %arg5: memref<1x128xf32, #tpu.memory_space<vmem>>, %arg6: memref<2x128xf32, #tpu.memory_space<vmem>>) attributes {dimension_semantics = [#tpu.dimension_semantics<parallel>], iteration_bounds = array<i64: 1>, scalar_prefetch = 0 : i64, scratch_operands = 0 : i64, tpu.core_type = #tpu.core_type<tc>, window_params = [{transform_indices = @transform_0, window_bounds = array<i64: 2, 2048>}, {pipeline_mode = #tpu.pipeline_mode<synchronous>, transform_indices = @transform_1, window_bounds = array<i64: 2048, 256>}, {pipeline_mode = #tpu.pipeline_mode<synchronous>, transform_indices = @transform_2, window_bounds = array<i64: 1, 256>}, {pipeline_mode = #tpu.pipeline_mode<synchronous>, transform_indices = @transform_3, window_bounds = array<i64: 256, 128>}, {pipeline_mode = #tpu.pipeline_mode<synchronous>, transform_indices = @transform_4, window_bounds = array<i64: 1, 128>}, {transform_indices = @transform_5, window_bounds = array<i64: 2, 128>}]} {
    %c0 = arith.constant 0 : index
    %c0_0 = arith.constant 0 : index
    %0 = vector.load %arg1[%c0, %c0_0] : memref<2x2048xbf16, #tpu.memory_space<vmem>>, vector<2x2048xbf16>
    %c0_1 = arith.constant 0 : index
    %c0_2 = arith.constant 0 : index
    %1 = vector.load %arg2[%c0_1, %c0_2] : memref<2048x256xbf16, #tpu.memory_space<vmem>>, vector<2048x256xbf16>
    %cst = arith.constant dense<0.000000e+00> : vector<2x256xf32>
    %2 = tpu.matmul %0, %1, %cst {dimension_numbers = #tpu.dot_dimension_numbers<[1], [0], [0], [1], [0, 0, 1, 1], [], []>} : vector<2x2048xbf16>, vector<2048x256xbf16>, vector<2x256xf32> -> vector<2x256xf32>
    %c0_3 = arith.constant 0 : index
    %c0_4 = arith.constant 0 : index
    %3 = vector.load %arg3[%c0_3, %c0_4] : memref<1x256xf32, #tpu.memory_space<vmem>>, vector<1x256xf32>
    %4 = vector.broadcast %3 : vector<1x256xf32> to vector<2x256xf32>
    %5 = arith.addf %2, %4 : vector<2x256xf32>
    %cst_5 = arith.constant 0.000000e+00 : f32
    %6 = vector.broadcast %cst_5 : f32 to vector<2x256xf32>
    %7 = arith.maximumf %5, %6 : vector<2x256xf32>
    %8 = arith.truncf %7 : vector<2x256xf32> to vector<2x256xbf16>
    %c0_6 = arith.constant 0 : index
    %c0_7 = arith.constant 0 : index
    %9 = vector.load %arg4[%c0_6, %c0_7] : memref<256x128xbf16, #tpu.memory_space<vmem>>, vector<256x128xbf16>
    %cst_8 = arith.constant dense<0.000000e+00> : vector<2x128xf32>
    %10 = tpu.matmul %8, %9, %cst_8 {dimension_numbers = #tpu.dot_dimension_numbers<[1], [0], [0], [1], [0, 0, 1, 1], [], []>} : vector<2x256xbf16>, vector<256x128xbf16>, vector<2x128xf32> -> vector<2x128xf32>
    %c0_9 = arith.constant 0 : index
    %c0_10 = arith.constant 0 : index
    %11 = vector.load %arg5[%c0_9, %c0_10] : memref<1x128xf32, #tpu.memory_space<vmem>>, vector<1x128xf32>
    %12 = vector.broadcast %11 : vector<1x128xf32> to vector<2x128xf32>
    %13 = arith.addf %10, %12 : vector<2x128xf32>
    %c0_11 = arith.constant 0 : index
    %c0_12 = arith.constant 0 : index
    %14 = vector.load %arg6[%c0_11, %c0_12] : memref<2x128xf32, #tpu.memory_space<vmem>>, vector<2x128xf32>
    tpu.vector_store %arg6[%c0_11, %c0_12], %13 {strides = array<i32>} : memref<2x128xf32, #tpu.memory_space<vmem>>, vector<2x128xf32>,
    return
  }
  func.func @transform_0(%arg0: i32) -> (i32, i32) {
    %c0_i32 = arith.constant 0 : i32
    %c0_i32_0 = arith.constant 0 : i32
    return %arg0, %c0_i32 : i32, i32
  }
  func.func @transform_1(%arg0: i32) -> (i32, i32) {
    %c0_i32 = arith.constant 0 : i32
    %c0_i32_0 = arith.constant 0 : i32
    %c0_i32_1 = arith.constant 0 : i32
    return %c0_i32, %c0_i32_0 : i32, i32
  }
  func.func @transform_2(%arg0: i32) -> (i32, i32) {
    %c0_i32 = arith.constant 0 : i32
    %c0_i32_0 = arith.constant 0 : i32
    %c0_i32_1 = arith.constant 0 : i32
    return %c0_i32, %c0_i32_0 : i32, i32
  }
  func.func @transform_3(%arg0: i32) -> (i32, i32) {
    %c0_i32 = arith.constant 0 : i32
    %c0_i32_0 = arith.constant 0 : i32
    %c0_i32_1 = arith.constant 0 : i32
    return %c0_i32, %c0_i32_0 : i32, i32
  }
  func.func @transform_4(%arg0: i32) -> (i32, i32) {
    %c0_i32 = arith.constant 0 : i32
    %c0_i32_0 = arith.constant 0 : i32
    %c0_i32_1 = arith.constant 0 : i32
    return %c0_i32, %c0_i32_0 : i32, i32
  }
  func.func @transform_5(%arg0: i32) -> (i32, i32) {
    %c0_i32 = arith.constant 0 : i32
    %c0_i32_0 = arith.constant 0 : i32
    return %arg0, %c0_i32 : i32, i32
  }
}

</mosaic_0001>

<bundles_post_ra>
// kernel: cnn_forward.4
= control target key start
LH: loop header
LB: loop body
LE: loop exit
PB: predicated region body
PF: predicated region fallthrough
CT: control target
= control target key end

     0   :  { %s3381_s15 = smov 0   ;;  %s3800_s0 = inlined_call_operand.vmem [shape: bf16[2,512,32], index: 0, kind: input, shape index: {}]   ;;  %s3801_s1 = inlined_call_operand.vmem [shape: bf16[2,512,32], index: 1, kind: input, shape index: {}]   ;;  %s3802_s2 = inlined_call_operand.vmem [shape: bf16[1,32,64], index: 2, kind: input, shape index: {}]   ;;  %s3803_s3 = inlined_call_operand.vmem [shape: f32[1,64], index: 3, kind: input, shape index: {}]   ;;  %s3804_s4 = inlined_call_operand.vmem [shape: bf16[2,16,16,64], index: 4, kind: output, shape index: {}]  }
   0x1 LB: > { %s2687_s16 = sadd.s32 4294967295, %s3354_s15   ;;  %p2691_p0 = scmp.ge.s32.totalorder %s3354_s15, 1  ;;  %s3354_s15 = sphi %s3381_s15, %s14_s15  }
   0x2   : > { %p172_p1 = scmp.lt.s32.totalorder %s3354_s15, 3 }
   0x4   : > { %p173_p2 = pnand %p2691_p0, %p172_p1 }
   0x5   : > { %v3252_v0 = vld [vmem:[%s3802_s2] sm:$0xff] (!%p173_p2)   ;;  %p203_p3 = scmp.lt.s32.totalorder (!%p173_p2), %s2687_s16, 1  ;;  %v3253_v1 = vld [vmem:[%s3802_s2 + $0x8] sm:$0xff] (!%p173_p2)   ;;  %vm264_vm0 = vcmask (!%p173_p2), 261120   ;;  %vm342_vm1 = vcmask (!%p173_p2), 523264   ;;  %vm522_vm2 = vcmask (!%p173_p2), 519168  }
   0x6   : > { %176 = sbr.rel (%p173_p2) target bundleno = 373 (0x175), region = 36  ;;  %3052 = vmatprep.subr.bf16.mxu0 (!%p173_p2), %v3252_v0  ;;  %v3254_v2 = vld [vmem:[%s3802_s2] sm:$0xff] (!%p173_p2)   ;;  %v3258_v4 = vld [vmem:[%s3802_s2 + $0x8] sm:$0xff] (!%p173_p2)  }
   0x7   : > { %3053 = vmatpush3.bf16.msra.mxu0 (!%p173_p2), %v3252_v0  ;;  %v3257_v3 = vld [vmem:[%s3802_s2] sm:$0xff] (!%p173_p2)   ;;  %3064 = vmatprep.subr.bf16.mxu1 (!%p173_p2), %v3254_v2  ;;  %v3263_v7 = vld [vmem:[%s3802_s2 + $0x8] sm:$0xff] (!%p173_p2)  }
   0x8   : > { %3054 = vmatprep.subr.bf16.mxu0 (!%p173_p2), %v3253_v1  ;;  %3065 = vmatpush3.bf16.msra.mxu1 (!%p173_p2), %v3254_v2  ;;  %v3264_v11 = vld [vmem:[%s3802_s2] sm:$0xff] (!%p173_p2)   ;;  %v3269_v16 = vld [vmem:[%s3802_s2 + $0x8] sm:$0xff] (!%p173_p2)  }
   0x9   : > { %3066 = vmatprep.subr.bf16.mxu1 (!%p173_p2), %v3258_v4  ;;  %v3270_v17 = vld [vmem:[%s3802_s2] sm:$0xff] (!%p173_p2)   ;;  %v3275_v22 = vld [vmem:[%s3802_s2 + $0x8] sm:$0xff] (!%p173_p2)  }
   0xa   : > { %v3276_v23 = vld [vmem:[%s3802_s2] sm:$0xff] (!%p173_p2)   ;;  %v3281_v26 = vld [vmem:[%s3802_s2 + $0x8] sm:$0xff] (!%p173_p2)  }
   0xb   : > { %3055 = vmatpush3.bf16.msra.mxu0 (!%p173_p2), %v3253_v1  ;;  %v3282_v27 = vld [vmem:[%s3802_s2] sm:$0xff] (!%p173_p2)   ;;  %v3287_v35 = vld [vmem:[%s3802_s2 + $0x8] sm:$0xff] (!%p173_p2)  }
   0xc   : > { %3076 = vmatprep.subr.bf16.mxu0 (!%p173_p2), %v3257_v3  ;;  %3067 = vmatpush3.bf16.msra.mxu1 (!%p173_p2), %v3258_v4  ;;  %v3288_v31 = vld [vmem:[%s3802_s2] sm:$0xff] (!%p173_p2)   ;;  %v3293_v37 = vld [vmem:[%s3802_s2 + $0x8] sm:$0xff] (!%p173_p2)  }
   0xd   : > { %s3806_s16 = smov (!%p203_p3, %s2687_s16), 1  ;;  %3088 = vmatprep.subr.bf16.mxu1 %v3264_v11  ;;  %v3294_v38 = vld [vmem:[%s3802_s2] sm:$0xff]   ;;  %v3299_v47 = vld [vmem:[%s3802_s2 + $0x8] sm:$0xff]  }
   0xe   : > { %s2921_s25 = sshll.u32 %s3806_s16, 8  ;;  %v3300_v42 = vld [vmem:[%s3802_s2] sm:$0xff]   ;;  %v3305_v49 = vld [vmem:[%s3802_s2 + $0x8] sm:$0xff]   ;;  %s2923_s20 = sshll.u32 %s3806_s16, 7 }
   0xf   : > { %s3410_s30 = scalar_lea.vmem %s3800_s0, %s2921_s25  ;;  %s3415_s7 = scalar_lea.vmem %s3801_s1, %s2921_s25  ;;  %v3306_v50 = vld [vmem:[%s3802_s2] sm:$0xff]   ;;  %v3311_v59 = vld [vmem:[%s3802_s2 + $0x8] sm:$0xff]  }
  0x10   : > { %v3255_v5 = vld [vmem:[%s3410_s30] sm:$0xff]   ;;  %v3256_v6 = vld [vmem:[%s3410_s30 + $0x8] sm:$0xff]   ;;  %v3261_v10 = vld [vmem:[%s3410_s30 + $0x10] sm:$0xff]   ;;  %s3645_s23 = scalar_lea.vmem %s3804_s4, %s2923_s20 }
  0x11   : > { %3056 = vmatprep.mubr.msk.bf16.mxu0 %vm264_vm0, %v3255_v5  ;;  %v3259_v8 = vld [vmem:[%s3415_s7] sm:$0xff]   ;;  %v3260_v9 = vld [vmem:[%s3415_s7 + $0x8] sm:$0xff]   ;;  %v3265_v12 = vld [vmem:[%s3415_s7 + $0x10] sm:$0xff]  }
  0x12   : > { %3057 = vmatmul.mubr.msk.bf16.vlgmr.msra.gmra.mrb[0].mxu0 %vm264_vm0, %v3256_v6  ;;  %3068 = vmatprep.mubr.msk.bf16.mxu1 %vm264_vm0, %v3259_v8  ;;  %v3262_v13 = vld [vmem:[%s3410_s30 + $0x18] sm:$0xff]   ;;  %v3267_v14 = vld [vmem:[%s3410_s30 + $0x20] sm:$0xff]   ;;  %v3268_v19 = vld [vmem:[%s3410_s30 + $0x28] sm:$0xff]  }
  0x13   : > { %3077 = vmatpush3.bf16.msra.mxu0 %v3257_v3  ;;  %3069 = vmatmul.mubr.msk.bf16.vlgmr.msra.gmra.mrb[0].mxu1 %vm264_vm0, %v3260_v9  ;;  %v3266_v15 = vld [vmem:[%s3415_s7 + $0x18] sm:$0xff]   ;;  %v3271_v18 = vld [vmem:[%s3415_s7 + $0x20] sm:$0xff]   ;;  %v3272_v20 = vld [vmem:[%s3415_s7 + $0x28] sm:$0xff]  }
  0x14   : > { %3060 = vmatprep.mubr.msk.bf16.mxu0 %vm264_vm0, %v3261_v10  ;;  %3078 = vmatprep.subr.bf16.mxu0 %v3263_v7  ;;  %v3273_v21 = vld [vmem:[%s3410_s30 + $0x30] sm:$0xff]   ;;  %v3274_v25 = vld [vmem:[%s3410_s30 + $0x38] sm:$0xff]   ;;  %v3279_v28 = vld [vmem:[%s3410_s30 + $0x40] sm:$0xff]  }
  0x15   : > { %3089 = vmatpush3.bf16.msra.mxu1 %v3264_v11  ;;  %3072 = vmatprep.mubr.msk.bf16.mxu1 %vm264_vm0, %v3265_v12  ;;  %v3277_v24 = vld [vmem:[%s3415_s7 + $0x30] sm:$0xff]   ;;  %v3278_v29 = vld [vmem:[%s3415_s7 + $0x38] sm:$0xff]   ;;  %v3283_v30 = vld [vmem:[%s3415_s7 + $0x40] sm:$0xff]  }
  0x16   : > { %3090 = vmatprep.subr.bf16.mxu1 %v3269_v16  ;;  %v3280_v32 = vld [vmem:[%s3410_s30 + $0x48] sm:$0xff]   ;;  %v3285_v34 = vld [vmem:[%s3410_s30 + $0x50] sm:$0xff]   ;;  %v3286_v39 = vld [vmem:[%s3410_s30 + $0x58] sm:$0xff]  }
  0x17   : > { %3079 = vmatpush3.bf16.msra.mxu0 %v3263_v7  ;;  %v3284_v33 = vld [vmem:[%s3415_s7 + $0x48] sm:$0xff]   ;;  %v3289_v36 = vld [vmem:[%s3415_s7 + $0x50] sm:$0xff]   ;;  %v3290_v40 = vld [vmem:[%s3415_s7 + $0x58] sm:$0xff]  }
  0x18   : > { %3100 = vmatprep.subr.bf16.mxu0 %v3270_v17  ;;  %v3291_v41 = vld [vmem:[%s3410_s30 + $0x60] sm:$0xff]   ;;  %v3292_v44 = vld [vmem:[%s3410_s30 + $0x68] sm:$0xff]   ;;  %v3297_v46 = vld [vmem:[%s3410_s30 + $0x70] sm:$0xff]  }
  0x19   : > { %3091 = vmatpush3.bf16.msra.mxu1 %v3269_v16  ;;  %v3295_v43 = vld [vmem:[%s3415_s7 + $0x60] sm:$0xff]   ;;  %v3296_v45 = vld [vmem:[%s3415_s7 + $0x68] sm:$0xff]   ;;  %v3301_v48 = vld [vmem:[%s3415_s7 + $0x70] sm:$0xff]  }
  0x1a   : > { %3061 = vmatmul.mubr.msk.bf16.gmra.mrb[4].mxu0 %vm264_vm0, %v3262_v13  ;;  %3112 = vmatprep.subr.bf16.mxu1 %v3276_v23  ;;  %v3298_v51 = vld [vmem:[%s3410_s30 + $0x78] sm:$0xff]   ;;  %v3312_v52 = vld [vmem:[%s3802_s2] sm:$0xff]   ;;  %v3304_v56 = vld [vmem:[%s3410_s30 + $0x88] sm:$0xff]  }
  0x1b   : > { %3080 = vmatprep.mubr.msk.bf16.mxu0 %vm264_vm0, %v3267_v14  ;;  %3073 = vmatmul.mubr.msk.bf16.gmra.mrb[4].mxu1 %vm264_vm0, %v3266_v15  ;;  %v3303_v53 = vld [vmem:[%s3410_s30 + $0x80] sm:$0xff]   ;;  %v3302_v54 = vld [vmem:[%s3415_s7 + $0x78] sm:$0xff]   ;;  %v3308_v57 = vld [vmem:[%s3415_s7 + $0x88] sm:$0xff]  }
  0x1c   : > { %3092 = vmatprep.mubr.msk.bf16.mxu1 %vm264_vm0, %v3271_v18  ;;  %v3307_v55 = vld [vmem:[%s3415_s7 + $0x80] sm:$0xff]   ;;  %v3309_v58 = vld [vmem:[%s3410_s30 + $0x90] sm:$0xff]   ;;  %v3317_v61 = vld [vmem:[%s3802_s2 + $0x8] sm:$0xff]  }
  0x1d   : > { %v3313_v60 = vld [vmem:[%s3415_s7 + $0x90] sm:$0xff]   ;;  %v3318_v62 = vld [vmem:[%s3802_s2] sm:$0xff]   ;;  %v3310_v63 = vld [vmem:[%s3410_s30 + $0x98] sm:$0xff]  }
  0x1e   : > { %v3324_v0 = vld [vmem:[%s3802_s2] sm:$0xff]   ;;  %v3314_v2 = vld [vmem:[%s3415_s7 + $0x98] sm:$0xff]   ;;  %v3316_v4 = vld [vmem:[%s3410_s30 + $0xa8] sm:$0xff]  }
  0x1f   : > { %v3315_v1 = vld [vmem:[%s3410_s30 + $0xa0] sm:$0xff]   ;;  %v3320_v5 = vld [vmem:[%s3415_s7 + $0xa8] sm:$0xff]   ;;  %v3321_v6 = vld [vmem:[%s3410_s30 + $0xb0] sm:$0xff]  }
  0x20   : > { %v3319_v3 = vld [vmem:[%s3415_s7 + $0xa0] sm:$0xff]   ;;  %v3323_v7 = vld [vmem:[%s3802_s2 + $0x8] sm:$0xff]   ;;  %v3325_v8 = vld [vmem:[%s3415_s7 + $0xb0] sm:$0xff]  }
  0x21   : > { %v3329_v9 = vld [vmem:[%s3802_s2 + $0x8] sm:$0xff]   ;;  %v3330_v10 = vld [vmem:[%s3802_s2] sm:$0xff]   ;;  %v3322_v11 = vld [vmem:[%s3410_s30 + $0xb8] sm:$0xff]  }
  0x22   : > { %3081 = vmatmul.mubr.msk.bf16.vlgmr.msra.gmra.mrb[8].mxu0 %vm264_vm0, %v3268_v19  ;;  %v3336_v12 = vld [vmem:[%s3802_s2] sm:$0xff]   ;;  %v3326_v14 = vld [vmem:[%s3415_s7 + $0xb8] sm:$0xff]   ;;  %v3328_v16 = vld [vmem:[%s3410_s30 + $0xc8] sm:$0xff]  }
  0x23   : > { %3101 = vmatpush3.bf16.msra.mxu0 %v3270_v17  ;;  %3084 = vmatprep.mubr.msk.bf16.mxu0 %vm264_vm0, %v3273_v21  ;;  %v3327_v13 = vld [vmem:[%s3410_s30 + $0xc0] sm:$0xff]   ;;  %v3333_v17 = vld [vmem:[%s3410_s30 + $0xd0] sm:$0xff]   ;;  %v3332_v18 = vld [vmem:[%s3415_s7 + $0xc8] sm:$0xff]  }
  0x24   : > { %3093 = vmatmul.mubr.msk.bf16.vlgmr.msra.gmra.mrb[8].mxu1 %vm264_vm0, %v3272_v20  ;;  %3102 = vmatprep.subr.bf16.mxu0 %v3275_v22  ;;  %v3331_v15 = vld [vmem:[%s3415_s7 + $0xc0] sm:$0xff]   ;;  %v3335_v19 = vld [vmem:[%s3802_s2 + $0x8] sm:$0xff]   ;;  %v3337_v20 = vld [vmem:[%s3415_s7 + $0xd0] sm:$0xff]  }
  0x25   : > { %3113 = vmatpush3.bf16.msra.mxu1 %v3276_v23  ;;  %3096 = vmatprep.mubr.msk.bf16.mxu1 %vm264_vm0, %v3277_v24  ;;  %v3341_v21 = vld [vmem:[%s3802_s2 + $0x8] sm:$0xff]   ;;  %v3339_v23 = vld [vmem:[%s3410_s30 + $0xe0] sm:$0xff]   ;;  %v3338_v24 = vld [vmem:[%s3415_s7 + $0xd8] sm:$0xff]  }
  0x26   : > { %3114 = vmatprep.subr.bf16.mxu1 %v3281_v26 }
  0x27   : > { %3103 = vmatpush3.bf16.msra.mxu0 %v3275_v22  ;;  %v3334_v22 = vld [vmem:[%s3410_s30 + $0xd8] sm:$0xff]  }
  0x28   : > { %3124 = vmatprep.subr.bf16.mxu0 %v3282_v27 }
  0x29   : > { %3115 = vmatpush3.bf16.msra.mxu1 %v3281_v26  ;;  %v3340_v26 = vld [vmem:[%s3410_s30 + $0xe8] sm:$0xff]  }
  0x2a   : > { %3085 = vmatmul.mubr.msk.bf16.gmra.mrb[12].mxu0 %vm264_vm0, %v3274_v25  ;;  %3136 = vmatprep.subr.bf16.mxu1 %v3288_v31  ;;  %v3342_v25 = vld [vmem:[%s3415_s7 + $0xe0] sm:$0xff]  }
  0x2b   : > { %3104 = vmatprep.mubr.msk.bf16.mxu0 %vm264_vm0, %v3279_v28  ;;  %v3343_v28 = vld [vmem:[%s3415_s7 + $0xe8] sm:$0xff]  }
  0x2c   : > { %3097 = vmatmul.mubr.msk.bf16.gmra.mrb[12].mxu1 %vm264_vm0, %v3278_v29  ;;  %v3346_v29 = vld [vmem:[%s3415_s7 + $0xf0] sm:$0xff]  }
  0x2d   : > { %3116 = vmatprep.mubr.msk.bf16.mxu1 %vm264_vm0, %v3283_v30  ;;  %v3345_v30 = vld [vmem:[%s3410_s30 + $0xf8] sm:$0xff]  }
  0x32   : > { %3105 = vmatmul.mubr.msk.bf16.vlgmr.msra.gmra.mrb[16].mxu0 %vm264_vm0, %v3280_v32 }
  0x33   : > { %3125 = vmatpush3.bf16.msra.mxu0 %v3282_v27  ;;  %3108 = vmatprep.mubr.msk.bf16.mxu0 %vm264_vm0, %v3285_v34  ;;  %v3344_v27 = vld [vmem:[%s3410_s30 + $0xf0] sm:$0xff]  }
  0x34   : > { %3117 = vmatmul.mubr.msk.bf16.vlgmr.msra.gmra.mrb[16].mxu1 %vm264_vm0, %v3284_v33  ;;  %3126 = vmatprep.subr.bf16.mxu0 %v3287_v35 }
  0x35   : > { %3137 = vmatpush3.bf16.msra.mxu1 %v3288_v31  ;;  %3120 = vmatprep.mubr.msk.bf16.mxu1 %vm264_vm0, %v3289_v36  ;;  %v3347_v31 = vld [vmem:[%s3415_s7 + $0xf8] sm:$0xff]  }
  0x36   : > { %3138 = vmatprep.subr.bf16.mxu1 %v3293_v37 }
  0x37   : > { %3127 = vmatpush3.bf16.msra.mxu0 %v3287_v35 }
  0x38   : > { %3148 = vmatprep.subr.bf16.mxu0 %v3294_v38 }
  0x39   : > { %3139 = vmatpush3.bf16.msra.mxu1 %v3293_v37 }
  0x3a   : > { %3109 = vmatmul.mubr.msk.bf16.gmra.mrb[20].mxu0 %vm264_vm0, %v3286_v39  ;;  %3160 = vmatprep.subr.bf16.mxu1 %v3300_v42 }
  0x3b   : > { %3128 = vmatprep.mubr.msk.bf16.mxu0 %vm264_vm0, %v3291_v41 }
  0x3c   : > { %3121 = vmatmul.mubr.msk.bf16.gmra.mrb[20].mxu1 %vm264_vm0, %v3290_v40 }
  0x3d   : > { %3140 = vmatprep.mubr.msk.bf16.mxu1 %vm264_vm0, %v3295_v43 }
  0x42   : > { %3129 = vmatmul.mubr.msk.bf16.vlgmr.msra.gmra.mrb[24].mxu0 %vm264_vm0, %v3292_v44 }
  0x43   : > { %3149 = vmatpush3.bf16.msra.mxu0 %v3294_v38  ;;  %3132 = vmatprep.mubr.msk.bf16.mxu0 %vm264_vm0, %v3297_v46 }
  0x44   : > { %3141 = vmatmul.mubr.msk.bf16.vlgmr.msra.gmra.mrb[24].mxu1 %vm264_vm0, %v3296_v45  ;;  %3150 = vmatprep.subr.bf16.mxu0 %v3299_v47 }
  0x45   : > { %3161 = vmatpush3.bf16.msra.mxu1 %v3300_v42  ;;  %3144 = vmatprep.mubr.msk.bf16.mxu1 %vm264_vm0, %v3301_v48 }
  0x46   : > { %3162 = vmatprep.subr.bf16.mxu1 %v3305_v49 }
  0x47   : > { %3151 = vmatpush3.bf16.msra.mxu0 %v3299_v47 }
  0x48   : > { %3172 = vmatprep.subr.bf16.mxu0 %v3306_v50 }
  0x49   : > { %3163 = vmatpush3.bf16.msra.mxu1 %v3305_v49  ;;  %v3635_v49 = vld [vmem:[%s3803_s3] ss:$0 sm:$0xff] }
  0x4a   : > { %3133 = vmatmul.mubr.msk.bf16.gmra.mrb[28].mxu0 %vm264_vm0, %v3298_v51  ;;  %3184 = vmatprep.subr.bf16.mxu1 %v3312_v52 }
  0x4b   : > { %3152 = vmatprep.mubr.msk.bf16.mxu0 %vm264_vm0, %v3303_v53 }
  0x4c   : > { %3145 = vmatmul.mubr.msk.bf16.gmra.mrb[28].mxu1 %vm264_vm0, %v3302_v54 }
  0x4d   : > { %3164 = vmatprep.mubr.msk.bf16.mxu1 %vm264_vm0, %v3307_v55 }
  0x52   : > { %3153 = vmatmul.mubr.msk.bf16.vlgmr.msra.gmra.mrb[32].mxu0 %vm264_vm0, %v3304_v56 }
  0x53   : > { %3173 = vmatpush3.bf16.msra.mxu0 %v3306_v50  ;;  %3156 = vmatprep.mubr.msk.bf16.mxu0 %vm264_vm0, %v3309_v58 }
  0x54   : > { %3165 = vmatmul.mubr.msk.bf16.vlgmr.msra.gmra.mrb[32].mxu1 %vm264_vm0, %v3308_v57  ;;  %3174 = vmatprep.subr.bf16.mxu0 %v3311_v59 }
  0x55   : > { %3185 = vmatpush3.bf16.msra.mxu1 %v3312_v52  ;;  %3168 = vmatprep.mubr.msk.bf16.mxu1 %vm264_vm0, %v3313_v60 }
  0x56   : > { %3186 = vmatprep.subr.bf16.mxu1 %v3317_v61 }
  0x57   : > { %3175 = vmatpush3.bf16.msra.mxu0 %v3311_v59 }
  0x58   : > { %3196 = vmatprep.subr.bf16.mxu0 %v3318_v62 }
  0x59   : > { %3187 = vmatpush3.bf16.msra.mxu1 %v3317_v61 }
  0x5a   : > { %3157 = vmatmul.mubr.msk.bf16.gmra.mrb[36].mxu0 %vm264_vm0, %v3310_v63  ;;  %3208 = vmatprep.subr.bf16.mxu1 %v3324_v0 }
  0x5b   : > { %3176 = vmatprep.mubr.msk.bf16.mxu0 %vm264_vm0, %v3315_v1 }
  0x5c   : > { %3169 = vmatmul.mubr.msk.bf16.gmra.mrb[36].mxu1 %vm264_vm0, %v3314_v2 }
  0x5d   : > { %3188 = vmatprep.mubr.msk.bf16.mxu1 %vm264_vm0, %v3319_v3 }
  0x62   : > { %3177 = vmatmul.mubr.msk.bf16.vlgmr.msra.gmra.mrb[40].mxu0 %vm264_vm0, %v3316_v4 }
  0x63   : > { %3197 = vmatpush3.bf16.msra.mxu0 %v3318_v62  ;;  %3180 = vmatprep.mubr.msk.bf16.mxu0 %vm264_vm0, %v3321_v6 }
  0x64   : > { %3189 = vmatmul.mubr.msk.bf16.vlgmr.msra.gmra.mrb[40].mxu1 %vm264_vm0, %v3320_v5  ;;  %3198 = vmatprep.subr.bf16.mxu0 %v3323_v7 }
  0x65   : > { %3209 = vmatpush3.bf16.msra.mxu1 %v3324_v0  ;;  %3192 = vmatprep.mubr.msk.bf16.mxu1 %vm264_vm0, %v3325_v8 }
  0x66   : > { %3210 = vmatprep.subr.bf16.mxu1 %v3329_v9 }
  0x67   : > { %3199 = vmatpush3.bf16.msra.mxu0 %v3323_v7 }
  0x68   : > { %3220 = vmatprep.subr.bf16.mxu0 %v3330_v10 }
  0x69   : > { %3211 = vmatpush3.bf16.msra.mxu1 %v3329_v9 }
  0x6a   : > { %3181 = vmatmul.mubr.msk.bf16.gmra.mrb[44].mxu0 %vm264_vm0, %v3322_v11  ;;  %3232 = vmatprep.subr.bf16.mxu1 %v3336_v12 }
  0x6b   : > { %3200 = vmatprep.mubr.msk.bf16.mxu0 %vm264_vm0, %v3327_v13 }
  0x6c   : > { %3193 = vmatmul.mubr.msk.bf16.gmra.mrb[44].mxu1 %vm264_vm0, %v3326_v14 }
  0x6d   : > { %3212 = vmatprep.mubr.msk.bf16.mxu1 %vm264_vm0, %v3331_v15 }
  0x72   : > { %3201 = vmatmul.mubr.msk.bf16.vlgmr.msra.gmra.mrb[48].mxu0 %vm264_vm0, %v3328_v16 }
  0x73   : > { %3221 = vmatpush3.bf16.msra.mxu0 %v3330_v10  ;;  %3204 = vmatprep.mubr.msk.bf16.mxu0 %vm264_vm0, %v3333_v17 }
  0x74   : > { %3213 = vmatmul.mubr.msk.bf16.vlgmr.msra.gmra.mrb[48].mxu1 %vm264_vm0, %v3332_v18  ;;  %3222 = vmatprep.subr.bf16.mxu0 %v3335_v19 }
  0x75   : > { %3233 = vmatpush3.bf16.msra.mxu1 %v3336_v12  ;;  %3216 = vmatprep.mubr.msk.bf16.mxu1 %vm264_vm0, %v3337_v20 }
  0x76   : > { %3234 = vmatprep.subr.bf16.mxu1 %v3341_v21 }
  0x77   : > { %3223 = vmatpush3.bf16.msra.mxu0 %v3335_v19 }
  0x79   : > { %3235 = vmatpush3.bf16.msra.mxu1 %v3341_v21 }
  0x7a   : > { %3205 = vmatmul.mubr.msk.bf16.gmra.mrb[52].mxu0 %vm264_vm0, %v3334_v22 }
  0x7b   : > { %3224 = vmatprep.mubr.msk.bf16.mxu0 %vm264_vm0, %v3339_v23 }
  0x7c   : > { %3217 = vmatmul.mubr.msk.bf16.gmra.mrb[52].mxu1 %vm264_vm0, %v3338_v24 }
  0x7d   : > { %3236 = vmatprep.mubr.msk.bf16.mxu1 %vm264_vm0, %v3342_v25 }
  0x82   : > { %3225 = vmatmul.mubr.msk.bf16.vlgmr.msra.gmra.mrb[56].mxu0 %vm264_vm0, %v3340_v26 }
  0x83   : > { %3228 = vmatprep.mubr.msk.bf16.mxu0 %vm264_vm0, %v3344_v27 }
  0x84   : > { %3237 = vmatmul.mubr.msk.bf16.vlgmr.msra.gmra.mrb[56].mxu1 %vm264_vm0, %v3343_v28 }
  0x85   : > { %3240 = vmatprep.mubr.msk.bf16.mxu1 %vm264_vm0, %v3346_v29 }
  0x8a   : > { %3229 = vmatmul.mubr.msk.bf16.gmra.mrb[60].mxu0 %vm264_vm0, %v3345_v30 }
  0x8c   : > { %3241 = vmatmul.mubr.msk.bf16.gmra.mrb[60].mxu1 %vm264_vm0, %v3347_v31 }
  0xe5   : > { %v3058_v32 = vpop.f32.mrb[0].mxu0 }
  0xe6   : > { %345 = vst.msk [vmem:[#allocation2 + $0x10] sm:$0xff] %vm342_vm1, %v3058_v32  ;;  %v311_v33 = vpop.f32.mrb[1].mxu0  ;;  %v3070_v35 = vpop.f32.mrb[0].mxu1 }
  0xe7   : > { %343 = vst.msk [vmem:[#allocation2] sm:$0xff] %vm342_vm1, %v311_v33  ;;  %v3059_v34 = vpop.f32.mrb[2].mxu0  ;;  %v441_v37 = vpop.f32.mrb[1].mxu1 }
  0xe8   : > { %346 = vst.msk [vmem:[#allocation2 + $0x18] sm:$0xff] %vm342_vm1, %v3059_v34  ;;  %v314_v36 = vpop.f32.mrb[3].mxu0  ;;  %v3071_v38 = vpop.f32.mrb[2].mxu1 }
  0xe9   : > { %344 = vst.msk [vmem:[#allocation2 + $0x8] sm:$0xff] %vm342_vm1, %v314_v36  ;;  %v444_v39 = vpop.f32.mrb[3].mxu1 }
  0xed   : > { %v474_v40 = vld [vmem:[#allocation2 + $0x10] sm:$0xff]  ;;  %v3062_v41 = vpop.f32.mrb[4].mxu0 }
  0xee   : > { %v482_v42 = vmax.f32 %v474_v40, %v3070_v35  ;;  %v472_v43 = vld [vmem:[#allocation2] sm:$0xff]  ;;  %349 = vst.msk [vmem:[#allocation2 + $0x30] sm:$0xff] %vm342_vm1, %v3062_v41  ;;  %v327_v44 = vpop.f32.mrb[5].mxu0  ;;  %v3074_v48 = vpop.f32.mrb[4].mxu1 }
  0xef   : > { %v480_v45 = vmax.f32 %v472_v43, %v441_v37  ;;  %v475_v46 = vld [vmem:[#allocation2 + $0x18] sm:$0xff]  ;;  %347 = vst.msk [vmem:[#allocation2 + $0x20] sm:$0xff] %vm342_vm1, %v327_v44  ;;  %v3063_v47 = vpop.f32.mrb[6].mxu0  ;;  %v457_v53 = vpop.f32.mrb[5].mxu1 }
  0xf0   : > { %v483_v50 = vmax.f32 %v475_v46, %v3071_v38  ;;  %v473_v51 = vld [vmem:[#allocation2 + $0x8] sm:$0xff]  ;;  %350 = vst.msk [vmem:[#allocation2 + $0x38] sm:$0xff] %vm342_vm1, %v3063_v47  ;;  %v330_v52 = vpop.f32.mrb[7].mxu0  ;;  %v3075_v56 = vpop.f32.mrb[6].mxu1 }
  0xf1   : > { %v488_v54 = vmax.f32 %v480_v45, %v482_v42  ;;  %v481_v55 = vmax.f32 %v473_v51, %v444_v39  ;;  %348 = vst.msk [vmem:[#allocation2 + $0x28] sm:$0xff] %vm342_vm1, %v330_v52  ;;  %v460_v57 = vpop.f32.mrb[7].mxu1 }
  0xf3   : > { %v498_v58 = vadd.f32 %v3635_v49, %v488_v54  ;;  %v489_v59 = vmax.f32 %v481_v55, %v483_v50 }
  0xf5   : > { %v502_v60 = vmax.f32 %v498_v58, 0.0  ;;  %v499_v61 = vadd.f32 %v3635_v49, %v489_v59  ;;  %v478_v62 = vld [vmem:[#allocation2 + $0x30] sm:$0xff]  ;;  %v3082_v63 = vpop.f32.mrb[8].mxu0 }
  0xf6   : > { %v486_v0 = vmax.f32 %v478_v62, %v3074_v48  ;;  %v476_v1 = vld [vmem:[#allocation2 + $0x20] sm:$0xff]  ;;  %650 = vst.msk [vmem:[#allocation2 + $0x10] sm:$0xff] %vm342_vm1, %v3082_v63  ;;  %v617_v2 = vpop.f32.mrb[9].mxu0 }
  0xf7   : > { %v2924_v3 = vpack.c.bf16 %v502_v60, %v502_v60  ;;  %v503_v4 = vmax.f32 %v499_v61, 0.0  ;;  %v484_v5 = vmax.f32 %v476_v1, %v457_v53  ;;  %v479_v6 = vld [vmem:[#allocation2 + $0x38] sm:$0xff]  ;;  %648 = vst.msk [vmem:[#allocation2] sm:$0xff] %vm342_vm1, %v617_v2  ;;  %v3083_v7 = vpop.f32.mrb[10].mxu0  ;;  %v3094_v8 = vpop.f32.mrb[8].mxu1 }
  0xf8   : > { %v487_v9 = vmax.f32 %v479_v6, %v3075_v56  ;;  %v477_v10 = vld [vmem:[#allocation2 + $0x28] sm:$0xff]  ;;  %651 = vst.msk [vmem:[#allocation2 + $0x18] sm:$0xff] %vm342_vm1, %v3083_v7  ;;  %v620_v11 = vpop.f32.mrb[11].mxu0  ;;  %v746_v12 = vpop.f32.mrb[9].mxu1 }
  0xf9   : > { %523 = vst.msk [vmem:[%s3645_s23] sm:$0xf] %vm522_vm2, %v2924_v3  ;;  %v2925_v13 = vpack.c.bf16 %v503_v4, %v503_v4  ;;  %v490_v14 = vmax.f32 %v484_v5, %v486_v0  ;;  %v485_v15 = vmax.f32 %v477_v10, %v460_v57  ;;  %v3095_v16 = vpop.f32.mrb[10].mxu1 }
  0xfa   : > { %649 = vst.msk [vmem:[#allocation2 + $0x8] sm:$0xff] %vm342_vm1, %v620_v11  ;;  %v749_v17 = vpop.f32.mrb[11].mxu1 }
  0xfb   : > { %524 = vst.msk [vmem:[%s3645_s23 + $0x4] sm:$0xf] %vm522_vm2, %v2925_v13  ;;  %v500_v18 = vadd.f32 %v3635_v49, %v490_v14  ;;  %v491_v19 = vmax.f32 %v485_v15, %v487_v9 }
  0xfd   : > { %v504_v20 = vmax.f32 %v500_v18, 0.0  ;;  %v501_v21 = vadd.f32 %v3635_v49, %v491_v19  ;;  %v779_v22 = vld [vmem:[#allocation2 + $0x10] sm:$0xff]  ;;  %v3086_v23 = vpop.f32.mrb[12].mxu0 }
  0xfe   : > { %v787_v24 = vmax.f32 %v779_v22, %v3094_v8  ;;  %v777_v25 = vld [vmem:[#allocation2] sm:$0xff]  ;;  %654 = vst.msk [vmem:[#allocation2 + $0x30] sm:$0xff] %vm342_vm1, %v3086_v23  ;;  %v633_v26 = vpop.f32.mrb[13].mxu0 }
  0xff   : > { %v2926_v27 = vpack.c.bf16 %v504_v20, %v504_v20  ;;  %v505_v28 = vmax.f32 %v501_v21, 0.0  ;;  %v785_v29 = vmax.f32 %v777_v25, %v746_v12  ;;  %v780_v30 = vld [vmem:[#allocation2 + $0x18] sm:$0xff]  ;;  %652 = vst.msk [vmem:[#allocation2 + $0x20] sm:$0xff] %vm342_vm1, %v633_v26  ;;  %v3087_v31 = vpop.f32.mrb[14].mxu0  ;;  %v3098_v32 = vpop.f32.mrb[12].mxu1 }
 0x100   : > { %v788_v33 = vmax.f32 %v780_v30, %v3095_v16  ;;  %655 = vst.msk [vmem:[#allocation2 + $0x38] sm:$0xff] %vm342_vm1, %v3087_v31  ;;  %v636_v35 = vpop.f32.mrb[15].mxu0  ;;  %v762_v36 = vpop.f32.mrb[13].mxu1 }
 0x101   : > { %v778_v34 = vld [vmem:[#allocation2 + $0x8] sm:$0xff]  ;;  %525 = vst.msk [vmem:[%s3645_s23 + $0x8] sm:$0xf] %vm522_vm2, %v2926_v27  ;;  %v2927_v37 = vpack.c.bf16 %v505_v28, %v505_v28  ;;  %v793_v38 = vmax.f32 %v785_v29, %v787_v24  ;;  %v3099_v40 = vpop.f32.mrb[14].mxu1 }
 0x102   : > { %v786_v39 = vmax.f32 %v778_v34, %v749_v17  ;;  %653 = vst.msk [vmem:[#allocation2 + $0x28] sm:$0xff] %vm342_vm1, %v636_v35  ;;  %v765_v41 = vpop.f32.mrb[15].mxu1 }
 0x103   : > { %526 = vst.msk [vmem:[%s3645_s23 + $0xc] sm:$0xf] %vm522_vm2, %v2927_v37  ;;  %v797_v42 = vadd.f32 %v3635_v49, %v793_v38 }
 0x104   : > { %v794_v43 = vmax.f32 %v786_v39, %v788_v33 }
 0x105   : > { %v801_v44 = vmax.f32 %v797_v42, 0.0  ;;  %v783_v46 = vld [vmem:[#allocation2 + $0x30] sm:$0xff]  ;;  %v3106_v47 = vpop.f32.mrb[16].mxu0 }
 0x106   : > { %v798_v45 = vadd.f32 %v3635_v49, %v794_v43  ;;  %v791_v48 = vmax.f32 %v783_v46, %v3098_v32  ;;  %v781_v50 = vld [vmem:[#allocation2 + $0x20] sm:$0xff]  ;;  %949 = vst.msk [vmem:[#allocation2 + $0x10] sm:$0xff] %vm342_vm1, %v3106_v47  ;;  %v916_v51 = vpop.f32.mrb[17].mxu0 }
 0x107   : > { %v2928_v52 = vpack.c.bf16 %v801_v44, %v801_v44  ;;  %v789_v54 = vmax.f32 %v781_v50, %v762_v36  ;;  %v784_v55 = vld [vmem:[#allocation2 + $0x38] sm:$0xff]  ;;  %947 = vst.msk [vmem:[#allocation2] sm:$0xff] %vm342_vm1, %v916_v51  ;;  %v3107_v56 = vpop.f32.mrb[18].mxu0  ;;  %v3118_v57 = vpop.f32.mrb[16].mxu1 }
 0x108   : > { %v802_v53 = vmax.f32 %v798_v45, 0.0  ;;  %v792_v58 = vmax.f32 %v784_v55, %v3099_v40  ;;  %950 = vst.msk [vmem:[#allocation2 + $0x18] sm:$0xff] %vm342_vm1, %v3107_v56  ;;  %v919_v60 = vpop.f32.mrb[19].mxu0  ;;  %v1045_v61 = vpop.f32.mrb[17].mxu1 }
 0x109   : > { %v782_v59 = vld [vmem:[#allocation2 + $0x28] sm:$0xff]  ;;  %2747 = vst.msk [vmem:[%s3645_s23 + $0x10] sm:$0xf] %vm522_vm2, %v2928_v52  ;;  %v795_v63 = vmax.f32 %v789_v54, %v791_v48  ;;  %v3119_v1 = vpop.f32.mrb[18].mxu1 }
 0x10a   : > { %v2929_v62 = vpack.c.bf16 %v802_v53, %v802_v53  ;;  %v790_v0 = vmax.f32 %v782_v59, %v765_v41  ;;  %948 = vst.msk [vmem:[#allocation2 + $0x8] sm:$0xff] %vm342_vm1, %v919_v60  ;;  %v1048_v2 = vpop.f32.mrb[19].mxu1 }
 0x10b   : > { %v799_v3 = vadd.f32 %v3635_v49, %v795_v63 }
 0x10c   : > { %2748 = vst.msk [vmem:[%s3645_s23 + $0x14] sm:$0xf] %vm522_vm2, %v2929_v62  ;;  %v796_v4 = vmax.f32 %v790_v0, %v792_v58 }
 0x10d   : > { %v803_v5 = vmax.f32 %v799_v3, 0.0  ;;  %v1078_v7 = vld [vmem:[#allocation2 + $0x10] sm:$0xff]  ;;  %v3110_v8 = vpop.f32.mrb[20].mxu0 }
 0x10e   : > { %v800_v6 = vadd.f32 %v3635_v49, %v796_v4  ;;  %v1086_v9 = vmax.f32 %v1078_v7, %v3118_v57  ;;  %v1076_v10 = vld [vmem:[#allocation2] sm:$0xff]  ;;  %953 = vst.msk [vmem:[#allocation2 + $0x30] sm:$0xff] %vm342_vm1, %v3110_v8  ;;  %v932_v11 = vpop.f32.mrb[21].mxu0 }
 0x10f   : > { %v2930_v12 = vpack.c.bf16 %v803_v5, %v803_v5  ;;  %v1084_v14 = vmax.f32 %v1076_v10, %v1045_v61  ;;  %v1079_v15 = vld [vmem:[#allocation2 + $0x18] sm:$0xff]  ;;  %951 = vst.msk [vmem:[#allocation2 + $0x20] sm:$0xff] %vm342_vm1, %v932_v11  ;;  %v3111_v16 = vpop.f32.mrb[22].mxu0  ;;  %v3122_v17 = vpop.f32.mrb[20].mxu1 }
 0x110   : > { %v804_v13 = vmax.f32 %v800_v6, 0.0  ;;  %v1087_v18 = vmax.f32 %v1079_v15, %v3119_v1  ;;  %954 = vst.msk [vmem:[#allocation2 + $0x38] sm:$0xff] %vm342_vm1, %v3111_v16  ;;  %v935_v20 = vpop.f32.mrb[23].mxu0  ;;  %v1061_v21 = vpop.f32.mrb[21].mxu1 }
 0x111   : > { %v1077_v19 = vld [vmem:[#allocation2 + $0x8] sm:$0xff]  ;;  %2749 = vst.msk [vmem:[%s3645_s23 + $0x18] sm:$0xf] %vm522_vm2, %v2930_v12  ;;  %v1092_v23 = vmax.f32 %v1084_v14, %v1086_v9  ;;  %v3123_v25 = vpop.f32.mrb[22].mxu1 }
 0x112   : > { %v2931_v22 = vpack.c.bf16 %v804_v13, %v804_v13  ;;  %v1085_v24 = vmax.f32 %v1077_v19, %v1048_v2  ;;  %952 = vst.msk [vmem:[#allocation2 + $0x28] sm:$0xff] %vm342_vm1, %v935_v20  ;;  %v1064_v26 = vpop.f32.mrb[23].mxu1 }
 0x113   : > { %v1096_v27 = vadd.f32 %v3635_v49, %v1092_v23 }
 0x114   : > { %2750 = vst.msk [vmem:[%s3645_s23 + $0x1c] sm:$0xf] %vm522_vm2, %v2931_v22  ;;  %v1093_v28 = vmax.f32 %v1085_v24, %v1087_v18 }
 0x115   : > { %v1100_v29 = vmax.f32 %v1096_v27, 0.0  ;;  %v1082_v31 = vld [vmem:[#allocation2 + $0x30] sm:$0xff]  ;;  %v3130_v32 = vpop.f32.mrb[24].mxu0 }
 0x116   : > { %v1097_v30 = vadd.f32 %v3635_v49, %v1093_v28  ;;  %v1090_v33 = vmax.f32 %v1082_v31, %v3122_v17  ;;  %v1080_v34 = vld [vmem:[#allocation2 + $0x20] sm:$0xff]  ;;  %1248 = vst.msk [vmem:[#allocation2 + $0x10] sm:$0xff] %vm342_vm1, %v3130_v32  ;;  %v1215_v35 = vpop.f32.mrb[25].mxu0 }
 0x117   : > { %v2932_v36 = vpack.c.bf16 %v1100_v29, %v1100_v29  ;;  %v1088_v38 = vmax.f32 %v1080_v34, %v1061_v21  ;;  %v1083_v39 = vld [vmem:[#allocation2 + $0x38] sm:$0xff]  ;;  %1246 = vst.msk [vmem:[#allocation2] sm:$0xff] %vm342_vm1, %v1215_v35  ;;  %v3131_v40 = vpop.f32.mrb[26].mxu0  ;;  %v3142_v41 = vpop.f32.mrb[24].mxu1 }
 0x118   : > { %v1101_v37 = vmax.f32 %v1097_v30, 0.0  ;;  %v1091_v42 = vmax.f32 %v1083_v39, %v3123_v25  ;;  %1249 = vst.msk [vmem:[#allocation2 + $0x18] sm:$0xff] %vm342_vm1, %v3131_v40  ;;  %v1218_v44 = vpop.f32.mrb[27].mxu0  ;;  %v1344_v45 = vpop.f32.mrb[25].mxu1 }
 0x119   : > { %v1081_v43 = vld [vmem:[#allocation2 + $0x28] sm:$0xff]  ;;  %2775 = vst.msk [vmem:[%s3645_s23 + $0x20] sm:$0xf] %vm522_vm2, %v2932_v36  ;;  %v1094_v47 = vmax.f32 %v1088_v38, %v1090_v33  ;;  %v3143_v50 = vpop.f32.mrb[26].mxu1 }
 0x11a   : > { %v2933_v46 = vpack.c.bf16 %v1101_v37, %v1101_v37  ;;  %v1089_v48 = vmax.f32 %v1081_v43, %v1064_v26  ;;  %1247 = vst.msk [vmem:[#allocation2 + $0x8] sm:$0xff] %vm342_vm1, %v1218_v44  ;;  %v1347_v51 = vpop.f32.mrb[27].mxu1 }
 0x11b   : > { %v1098_v52 = vadd.f32 %v3635_v49, %v1094_v47 }
 0x11c   : > { %2776 = vst.msk [vmem:[%s3645_s23 + $0x24] sm:$0xf] %vm522_vm2, %v2933_v46  ;;  %v1095_v53 = vmax.f32 %v1089_v48, %v1091_v42 }
 0x11d   : > { %v1102_v54 = vmax.f32 %v1098_v52, 0.0  ;;  %v1377_v56 = vld [vmem:[#allocation2 + $0x10] sm:$0xff]  ;;  %v3134_v57 = vpop.f32.mrb[28].mxu0 }
 0x11e   : > { %v1099_v55 = vadd.f32 %v3635_v49, %v1095_v53  ;;  %v1385_v58 = vmax.f32 %v1377_v56, %v3142_v41  ;;  %v1375_v59 = vld [vmem:[#allocation2] sm:$0xff]  ;;  %1252 = vst.msk [vmem:[#allocation2 + $0x30] sm:$0xff] %vm342_vm1, %v3134_v57  ;;  %v1231_v60 = vpop.f32.mrb[29].mxu0 }
 0x11f   : > { %v2934_v61 = vpack.c.bf16 %v1102_v54, %v1102_v54  ;;  %v1383_v63 = vmax.f32 %v1375_v59, %v1344_v45  ;;  %v1378_v0 = vld [vmem:[#allocation2 + $0x18] sm:$0xff]  ;;  %1250 = vst.msk [vmem:[#allocation2 + $0x20] sm:$0xff] %vm342_vm1, %v1231_v60  ;;  %v3135_v1 = vpop.f32.mrb[30].mxu0  ;;  %v3146_v2 = vpop.f32.mrb[28].mxu1 }
 0x120   : > { %v1103_v62 = vmax.f32 %v1099_v55, 0.0  ;;  %v1386_v3 = vmax.f32 %v1378_v0, %v3143_v50  ;;  %1253 = vst.msk [vmem:[#allocation2 + $0x38] sm:$0xff] %vm342_vm1, %v3135_v1  ;;  %v1234_v5 = vpop.f32.mrb[31].mxu0  ;;  %v1360_v6 = vpop.f32.mrb[29].mxu1 }
 0x121   : > { %v1376_v4 = vld [vmem:[#allocation2 + $0x8] sm:$0xff]  ;;  %2777 = vst.msk [vmem:[%s3645_s23 + $0x28] sm:$0xf] %vm522_vm2, %v2934_v61  ;;  %v1391_v8 = vmax.f32 %v1383_v63, %v1385_v58  ;;  %v3147_v10 = vpop.f32.mrb[30].mxu1 }
 0x122   : > { %v2935_v7 = vpack.c.bf16 %v1103_v62, %v1103_v62  ;;  %v1384_v9 = vmax.f32 %v1376_v4, %v1347_v51  ;;  %1251 = vst.msk [vmem:[#allocation2 + $0x28] sm:$0xff] %vm342_vm1, %v1234_v5  ;;  %v1363_v11 = vpop.f32.mrb[31].mxu1 }
 0x123   : > { %v1395_v12 = vadd.f32 %v3635_v49, %v1391_v8 }
 0x124   : > { %2778 = vst.msk [vmem:[%s3645_s23 + $0x2c] sm:$0xf] %vm522_vm2, %v2935_v7  ;;  %v1392_v13 = vmax.f32 %v1384_v9, %v1386_v3 }
 0x125   : > { %v1399_v14 = vmax.f32 %v1395_v12, 0.0  ;;  %v1381_v16 = vld [vmem:[#allocation2 + $0x30] sm:$0xff]  ;;  %v3154_v17 = vpop.f32.mrb[32].mxu0 }
 0x126   : > { %v1396_v15 = vadd.f32 %v3635_v49, %v1392_v13  ;;  %v1389_v18 = vmax.f32 %v1381_v16, %v3146_v2  ;;  %v1379_v19 = vld [vmem:[#allocation2 + $0x20] sm:$0xff]  ;;  %1547 = vst.msk [vmem:[#allocation2 + $0x10] sm:$0xff] %vm342_vm1, %v3154_v17  ;;  %v1514_v20 = vpop.f32.mrb[33].mxu0 }
 0x127   : > { %v2936_v21 = vpack.c.bf16 %v1399_v14, %v1399_v14  ;;  %v1387_v23 = vmax.f32 %v1379_v19, %v1360_v6  ;;  %v1382_v24 = vld [vmem:[#allocation2 + $0x38] sm:$0xff]  ;;  %1545 = vst.msk [vmem:[#allocation2] sm:$0xff] %vm342_vm1, %v1514_v20  ;;  %v3155_v25 = vpop.f32.mrb[34].mxu0  ;;  %v3166_v26 = vpop.f32.mrb[32].mxu1 }
 0x128   : > { %v1400_v22 = vmax.f32 %v1396_v15, 0.0  ;;  %v1390_v27 = vmax.f32 %v1382_v24, %v3147_v10  ;;  %1548 = vst.msk [vmem:[#allocation2 + $0x18] sm:$0xff] %vm342_vm1, %v3155_v25  ;;  %v1517_v29 = vpop.f32.mrb[35].mxu0  ;;  %v1643_v30 = vpop.f32.mrb[33].mxu1 }
 0x129   : > { %v1380_v28 = vld [vmem:[#allocation2 + $0x28] sm:$0xff]  ;;  %2803 = vst.msk [vmem:[%s3645_s23 + $0x30] sm:$0xf] %vm522_vm2, %v2936_v21  ;;  %v1393_v32 = vmax.f32 %v1387_v23, %v1389_v18  ;;  %v3167_v34 = vpop.f32.mrb[34].mxu1 }
 0x12a   : > { %v2937_v31 = vpack.c.bf16 %v1400_v22, %v1400_v22  ;;  %v1388_v33 = vmax.f32 %v1380_v28, %v1363_v11  ;;  %1546 = vst.msk [vmem:[#allocation2 + $0x8] sm:$0xff] %vm342_vm1, %v1517_v29  ;;  %v1646_v35 = vpop.f32.mrb[35].mxu1 }
 0x12b   : > { %v1397_v36 = vadd.f32 %v3635_v49, %v1393_v32 }
 0x12c   : > { %2804 = vst.msk [vmem:[%s3645_s23 + $0x34] sm:$0xf] %vm522_vm2, %v2937_v31  ;;  %v1394_v37 = vmax.f32 %v1388_v33, %v1390_v27 }
 0x12d   : > { %v1401_v38 = vmax.f32 %v1397_v36, 0.0  ;;  %v1676_v40 = vld [vmem:[#allocation2 + $0x10] sm:$0xff]  ;;  %v3158_v41 = vpop.f32.mrb[36].mxu0 }
 0x12e   : > { %v1398_v39 = vadd.f32 %v3635_v49, %v1394_v37  ;;  %v1684_v42 = vmax.f32 %v1676_v40, %v3166_v26  ;;  %v1674_v43 = vld [vmem:[#allocation2] sm:$0xff]  ;;  %1551 = vst.msk [vmem:[#allocation2 + $0x30] sm:$0xff] %vm342_vm1, %v3158_v41  ;;  %v1530_v44 = vpop.f32.mrb[37].mxu0 }
 0x12f   : > { %v2938_v45 = vpack.c.bf16 %v1401_v38, %v1401_v38  ;;  %v1682_v47 = vmax.f32 %v1674_v43, %v1643_v30  ;;  %v1677_v48 = vld [vmem:[#allocation2 + $0x18] sm:$0xff]  ;;  %1549 = vst.msk [vmem:[#allocation2 + $0x20] sm:$0xff] %vm342_vm1, %v1530_v44  ;;  %v3159_v50 = vpop.f32.mrb[38].mxu0  ;;  %v3170_v51 = vpop.f32.mrb[36].mxu1 }
 0x130   : > { %v1402_v46 = vmax.f32 %v1398_v39, 0.0  ;;  %v1685_v52 = vmax.f32 %v1677_v48, %v3167_v34  ;;  %1552 = vst.msk [vmem:[#allocation2 + $0x38] sm:$0xff] %vm342_vm1, %v3159_v50  ;;  %v1533_v54 = vpop.f32.mrb[39].mxu0  ;;  %v1659_v55 = vpop.f32.mrb[37].mxu1 }
 0x131   : > { %v1675_v53 = vld [vmem:[#allocation2 + $0x8] sm:$0xff]  ;;  %2805 = vst.msk [vmem:[%s3645_s23 + $0x38] sm:$0xf] %vm522_vm2, %v2938_v45  ;;  %v1690_v57 = vmax.f32 %v1682_v47, %v1684_v42  ;;  %v3171_v59 = vpop.f32.mrb[38].mxu1 }
 0x132   : > { %v2939_v56 = vpack.c.bf16 %v1402_v46, %v1402_v46  ;;  %v1683_v58 = vmax.f32 %v1675_v53, %v1646_v35  ;;  %1550 = vst.msk [vmem:[#allocation2 + $0x28] sm:$0xff] %vm342_vm1, %v1533_v54  ;;  %v1662_v60 = vpop.f32.mrb[39].mxu1 }
 0x133   : > { %v1694_v61 = vadd.f32 %v3635_v49, %v1690_v57 }
 0x134   : > { %2806 = vst.msk [vmem:[%s3645_s23 + $0x3c] sm:$0xf] %vm522_vm2, %v2939_v56  ;;  %v1691_v62 = vmax.f32 %v1683_v58, %v1685_v52 }
 0x135   : > { %v1698_v63 = vmax.f32 %v1694_v61, 0.0  ;;  %v1680_v1 = vld [vmem:[#allocation2 + $0x30] sm:$0xff]  ;;  %v3178_v2 = vpop.f32.mrb[40].mxu0 }
 0x136   : > { %v1695_v0 = vadd.f32 %v3635_v49, %v1691_v62  ;;  %v1688_v3 = vmax.f32 %v1680_v1, %v3170_v51  ;;  %v1678_v4 = vld [vmem:[#allocation2 + $0x20] sm:$0xff]  ;;  %1846 = vst.msk [vmem:[#allocation2 + $0x10] sm:$0xff] %vm342_vm1, %v3178_v2  ;;  %v1813_v5 = vpop.f32.mrb[41].mxu0 }
 0x137   : > { %v2940_v6 = vpack.c.bf16 %v1698_v63, %v1698_v63  ;;  %v1686_v8 = vmax.f32 %v1678_v4, %v1659_v55  ;;  %v1681_v9 = vld [vmem:[#allocation2 + $0x38] sm:$0xff]  ;;  %1844 = vst.msk [vmem:[#allocation2] sm:$0xff] %vm342_vm1, %v1813_v5  ;;  %v3179_v10 = vpop.f32.mrb[42].mxu0  ;;  %v3190_v11 = vpop.f32.mrb[40].mxu1 }
 0x138   : > { %v1699_v7 = vmax.f32 %v1695_v0, 0.0  ;;  %v1689_v12 = vmax.f32 %v1681_v9, %v3171_v59  ;;  %1847 = vst.msk [vmem:[#allocation2 + $0x18] sm:$0xff] %vm342_vm1, %v3179_v10  ;;  %v1816_v14 = vpop.f32.mrb[43].mxu0  ;;  %v1942_v15 = vpop.f32.mrb[41].mxu1 }
 0x139   : > { %v1679_v13 = vld [vmem:[#allocation2 + $0x28] sm:$0xff]  ;;  %2831 = vst.msk [vmem:[%s3645_s23 + $0x40] sm:$0xf] %vm522_vm2, %v2940_v6  ;;  %v1692_v17 = vmax.f32 %v1686_v8, %v1688_v3  ;;  %v3191_v19 = vpop.f32.mrb[42].mxu1 }
 0x13a   : > { %v2941_v16 = vpack.c.bf16 %v1699_v7, %v1699_v7  ;;  %v1687_v18 = vmax.f32 %v1679_v13, %v1662_v60  ;;  %1845 = vst.msk [vmem:[#allocation2 + $0x8] sm:$0xff] %vm342_vm1, %v1816_v14  ;;  %v1945_v20 = vpop.f32.mrb[43].mxu1 }
 0x13b   : > { %v1696_v21 = vadd.f32 %v3635_v49, %v1692_v17 }
 0x13c   : > { %2832 = vst.msk [vmem:[%s3645_s23 + $0x44] sm:$0xf] %vm522_vm2, %v2941_v16  ;;  %v1693_v22 = vmax.f32 %v1687_v18, %v1689_v12 }
 0x13d   : > { %v1700_v23 = vmax.f32 %v1696_v21, 0.0  ;;  %v1975_v25 = vld [vmem:[#allocation2 + $0x10] sm:$0xff]  ;;  %v3182_v26 = vpop.f32.mrb[44].mxu0 }
 0x13e   : > { %v1697_v24 = vadd.f32 %v3635_v49, %v1693_v22  ;;  %v1983_v27 = vmax.f32 %v1975_v25, %v3190_v11  ;;  %v1973_v28 = vld [vmem:[#allocation2] sm:$0xff]  ;;  %1850 = vst.msk [vmem:[#allocation2 + $0x30] sm:$0xff] %vm342_vm1, %v3182_v26  ;;  %v1829_v29 = vpop.f32.mrb[45].mxu0 }
 0x13f   : > { %v2942_v30 = vpack.c.bf16 %v1700_v23, %v1700_v23  ;;  %v1981_v32 = vmax.f32 %v1973_v28, %v1942_v15  ;;  %v1976_v33 = vld [vmem:[#allocation2 + $0x18] sm:$0xff]  ;;  %1848 = vst.msk [vmem:[#allocation2 + $0x20] sm:$0xff] %vm342_vm1, %v1829_v29  ;;  %v3183_v34 = vpop.f32.mrb[46].mxu0  ;;  %v3194_v35 = vpop.f32.mrb[44].mxu1 }
 0x140   : > { %v1701_v31 = vmax.f32 %v1697_v24, 0.0  ;;  %v1984_v36 = vmax.f32 %v1976_v33, %v3191_v19  ;;  %1851 = vst.msk [vmem:[#allocation2 + $0x38] sm:$0xff] %vm342_vm1, %v3183_v34  ;;  %v1832_v38 = vpop.f32.mrb[47].mxu0  ;;  %v1958_v39 = vpop.f32.mrb[45].mxu1 }
 0x141   : > { %v1974_v37 = vld [vmem:[#allocation2 + $0x8] sm:$0xff]  ;;  %2833 = vst.msk [vmem:[%s3645_s23 + $0x48] sm:$0xf] %vm522_vm2, %v2942_v30  ;;  %v1989_v41 = vmax.f32 %v1981_v32, %v1983_v27  ;;  %v3195_v43 = vpop.f32.mrb[46].mxu1 }
 0x142   : > { %v2943_v40 = vpack.c.bf16 %v1701_v31, %v1701_v31  ;;  %v1982_v42 = vmax.f32 %v1974_v37, %v1945_v20  ;;  %1849 = vst.msk [vmem:[#allocation2 + $0x28] sm:$0xff] %vm342_vm1, %v1832_v38  ;;  %v1961_v44 = vpop.f32.mrb[47].mxu1 }
 0x143   : > { %v1993_v45 = vadd.f32 %v3635_v49, %v1989_v41 }
 0x144   : > { %2834 = vst.msk [vmem:[%s3645_s23 + $0x4c] sm:$0xf] %vm522_vm2, %v2943_v40  ;;  %v1990_v46 = vmax.f32 %v1982_v42, %v1984_v36 }
 0x145   : > { %v1997_v47 = vmax.f32 %v1993_v45, 0.0  ;;  %v1979_v50 = vld [vmem:[#allocation2 + $0x30] sm:$0xff]  ;;  %v3202_v51 = vpop.f32.mrb[48].mxu0 }
 0x146   : > { %v1994_v48 = vadd.f32 %v3635_v49, %v1990_v46  ;;  %v1987_v52 = vmax.f32 %v1979_v50, %v3194_v35  ;;  %v1977_v53 = vld [vmem:[#allocation2 + $0x20] sm:$0xff]  ;;  %2145 = vst.msk [vmem:[#allocation2 + $0x10] sm:$0xff] %vm342_vm1, %v3202_v51  ;;  %v2112_v54 = vpop.f32.mrb[49].mxu0 }
 0x147   : > { %v2944_v55 = vpack.c.bf16 %v1997_v47, %v1997_v47  ;;  %v1985_v57 = vmax.f32 %v1977_v53, %v1958_v39  ;;  %v1980_v58 = vld [vmem:[#allocation2 + $0x38] sm:$0xff]  ;;  %2143 = vst.msk [vmem:[#allocation2] sm:$0xff] %vm342_vm1, %v2112_v54  ;;  %v3203_v59 = vpop.f32.mrb[50].mxu0  ;;  %v3214_v60 = vpop.f32.mrb[48].mxu1 }
 0x148   : > { %v1998_v56 = vmax.f32 %v1994_v48, 0.0  ;;  %v1988_v61 = vmax.f32 %v1980_v58, %v3195_v43  ;;  %2146 = vst.msk [vmem:[#allocation2 + $0x18] sm:$0xff] %vm342_vm1, %v3203_v59  ;;  %v2115_v63 = vpop.f32.mrb[51].mxu0  ;;  %v2241_v0 = vpop.f32.mrb[49].mxu1 }
 0x149   : > { %v1978_v62 = vld [vmem:[#allocation2 + $0x28] sm:$0xff]  ;;  %2859 = vst.msk [vmem:[%s3645_s23 + $0x50] sm:$0xf] %vm522_vm2, %v2944_v55  ;;  %v1991_v2 = vmax.f32 %v1985_v57, %v1987_v52  ;;  %v3215_v4 = vpop.f32.mrb[50].mxu1 }
 0x14a   : > { %v2945_v1 = vpack.c.bf16 %v1998_v56, %v1998_v56  ;;  %v1986_v3 = vmax.f32 %v1978_v62, %v1961_v44  ;;  %2144 = vst.msk [vmem:[#allocation2 + $0x8] sm:$0xff] %vm342_vm1, %v2115_v63  ;;  %v2244_v5 = vpop.f32.mrb[51].mxu1 }
 0x14b   : > { %v1995_v6 = vadd.f32 %v3635_v49, %v1991_v2 }
 0x14c   : > { %2860 = vst.msk [vmem:[%s3645_s23 + $0x54] sm:$0xf] %vm522_vm2, %v2945_v1  ;;  %v1992_v7 = vmax.f32 %v1986_v3, %v1988_v61 }
 0x14d   : > { %v1999_v8 = vmax.f32 %v1995_v6, 0.0  ;;  %v2274_v10 = vld [vmem:[#allocation2 + $0x10] sm:$0xff]  ;;  %v3206_v11 = vpop.f32.mrb[52].mxu0 }
 0x14e   : > { %v1996_v9 = vadd.f32 %v3635_v49, %v1992_v7  ;;  %v2282_v12 = vmax.f32 %v2274_v10, %v3214_v60  ;;  %v2272_v13 = vld [vmem:[#allocation2] sm:$0xff]  ;;  %2149 = vst.msk [vmem:[#allocation2 + $0x30] sm:$0xff] %vm342_vm1, %v3206_v11  ;;  %v2128_v14 = vpop.f32.mrb[53].mxu0 }
 0x14f   : > { %v2946_v15 = vpack.c.bf16 %v1999_v8, %v1999_v8  ;;  %v2280_v17 = vmax.f32 %v2272_v13, %v2241_v0  ;;  %v2275_v18 = vld [vmem:[#allocation2 + $0x18] sm:$0xff]  ;;  %2147 = vst.msk [vmem:[#allocation2 + $0x20] sm:$0xff] %vm342_vm1, %v2128_v14  ;;  %v3207_v19 = vpop.f32.mrb[54].mxu0  ;;  %v3218_v20 = vpop.f32.mrb[52].mxu1 }
 0x150   : > { %v2000_v16 = vmax.f32 %v1996_v9, 0.0  ;;  %v2283_v21 = vmax.f32 %v2275_v18, %v3215_v4  ;;  %2150 = vst.msk [vmem:[#allocation2 + $0x38] sm:$0xff] %vm342_vm1, %v3207_v19  ;;  %v2131_v23 = vpop.f32.mrb[55].mxu0  ;;  %v2257_v24 = vpop.f32.mrb[53].mxu1 }
 0x151   : > { %v2273_v22 = vld [vmem:[#allocation2 + $0x8] sm:$0xff]  ;;  %2861 = vst.msk [vmem:[%s3645_s23 + $0x58] sm:$0xf] %vm522_vm2, %v2946_v15  ;;  %v2288_v26 = vmax.f32 %v2280_v17, %v2282_v12  ;;  %v3219_v28 = vpop.f32.mrb[54].mxu1 }
 0x152   : > { %v2947_v25 = vpack.c.bf16 %v2000_v16, %v2000_v16  ;;  %v2281_v27 = vmax.f32 %v2273_v22, %v2244_v5  ;;  %2148 = vst.msk [vmem:[#allocation2 + $0x28] sm:$0xff] %vm342_vm1, %v2131_v23  ;;  %v2260_v29 = vpop.f32.mrb[55].mxu1 }
 0x153   : > { %v2292_v30 = vadd.f32 %v3635_v49, %v2288_v26 }
 0x154   : > { %2862 = vst.msk [vmem:[%s3645_s23 + $0x5c] sm:$0xf] %vm522_vm2, %v2947_v25  ;;  %v2289_v31 = vmax.f32 %v2281_v27, %v2283_v21 }
 0x155   : > { %v2296_v32 = vmax.f32 %v2292_v30, 0.0  ;;  %v2278_v34 = vld [vmem:[#allocation2 + $0x30] sm:$0xff]  ;;  %v3226_v35 = vpop.f32.mrb[56].mxu0 }
 0x156   : > { %v2293_v33 = vadd.f32 %v3635_v49, %v2289_v31  ;;  %v2286_v36 = vmax.f32 %v2278_v34, %v3218_v20  ;;  %v2276_v37 = vld [vmem:[#allocation2 + $0x20] sm:$0xff]  ;;  %2444 = vst.msk [vmem:[#allocation2 + $0x10] sm:$0xff] %vm342_vm1, %v3226_v35  ;;  %v2411_v38 = vpop.f32.mrb[57].mxu0 }
 0x157   : > { %v2948_v39 = vpack.c.bf16 %v2296_v32, %v2296_v32  ;;  %v2284_v41 = vmax.f32 %v2276_v37, %v2257_v24  ;;  %v2279_v42 = vld [vmem:[#allocation2 + $0x38] sm:$0xff]  ;;  %2442 = vst.msk [vmem:[#allocation2] sm:$0xff] %vm342_vm1, %v2411_v38  ;;  %v3227_v43 = vpop.f32.mrb[58].mxu0  ;;  %v3238_v44 = vpop.f32.mrb[56].mxu1 }
 0x158   : > { %v2297_v40 = vmax.f32 %v2293_v33, 0.0  ;;  %v2287_v45 = vmax.f32 %v2279_v42, %v3219_v28  ;;  %2445 = vst.msk [vmem:[#allocation2 + $0x18] sm:$0xff] %vm342_vm1, %v3227_v43  ;;  %v2414_v47 = vpop.f32.mrb[59].mxu0  ;;  %v2540_v48 = vpop.f32.mrb[57].mxu1 }
 0x159   : > { %v2277_v46 = vld [vmem:[#allocation2 + $0x28] sm:$0xff]  ;;  %2887 = vst.msk [vmem:[%s3645_s23 + $0x60] sm:$0xf] %vm522_vm2, %v2948_v39  ;;  %v2290_v51 = vmax.f32 %v2284_v41, %v2286_v36  ;;  %v3239_v53 = vpop.f32.mrb[58].mxu1 }
 0x15a   : > { %v2949_v50 = vpack.c.bf16 %v2297_v40, %v2297_v40  ;;  %v2285_v52 = vmax.f32 %v2277_v46, %v2260_v29  ;;  %2443 = vst.msk [vmem:[#allocation2 + $0x8] sm:$0xff] %vm342_vm1, %v2414_v47  ;;  %v2543_v54 = vpop.f32.mrb[59].mxu1 }
 0x15b   : > { %v2294_v55 = vadd.f32 %v3635_v49, %v2290_v51 }
 0x15c   : > { %2888 = vst.msk [vmem:[%s3645_s23 + $0x64] sm:$0xf] %vm522_vm2, %v2949_v50  ;;  %v2291_v56 = vmax.f32 %v2285_v52, %v2287_v45 }
 0x15d   : > { %v2298_v57 = vmax.f32 %v2294_v55, 0.0  ;;  %v2573_v59 = vld [vmem:[#allocation2 + $0x10] sm:$0xff]  ;;  %v3230_v60 = vpop.f32.mrb[60].mxu0 }
 0x15e   : > { %v2295_v58 = vadd.f32 %v3635_v49, %v2291_v56  ;;  %v2581_v61 = vmax.f32 %v2573_v59, %v3238_v44  ;;  %v2571_v62 = vld [vmem:[#allocation2] sm:$0xff]  ;;  %2448 = vst.msk [vmem:[#allocation2 + $0x30] sm:$0xff] %vm342_vm1, %v3230_v60  ;;  %v2427_v63 = vpop.f32.mrb[61].mxu0 }
 0x15f   : > { %v2950_v0 = vpack.c.bf16 %v2298_v57, %v2298_v57  ;;  %v2579_v2 = vmax.f32 %v2571_v62, %v2540_v48  ;;  %v2574_v3 = vld [vmem:[#allocation2 + $0x18] sm:$0xff]  ;;  %2446 = vst.msk [vmem:[#allocation2 + $0x20] sm:$0xff] %vm342_vm1, %v2427_v63  ;;  %v3231_v4 = vpop.f32.mrb[62].mxu0  ;;  %v3242_v5 = vpop.f32.mrb[60].mxu1 }
 0x160   : > { %v2299_v1 = vmax.f32 %v2295_v58, 0.0  ;;  %v2582_v6 = vmax.f32 %v2574_v3, %v3239_v53  ;;  %2449 = vst.msk [vmem:[#allocation2 + $0x38] sm:$0xff] %vm342_vm1, %v3231_v4  ;;  %v2430_v8 = vpop.f32.mrb[63].mxu0  ;;  %v2556_v9 = vpop.f32.mrb[61].mxu1 }
 0x161   : > { %v2572_v7 = vld [vmem:[#allocation2 + $0x8] sm:$0xff]  ;;  %2889 = vst.msk [vmem:[%s3645_s23 + $0x68] sm:$0xf] %vm522_vm2, %v2950_v0  ;;  %v2587_v11 = vmax.f32 %v2579_v2, %v2581_v61  ;;  %v3243_v13 = vpop.f32.mrb[62].mxu1 }
 0x162   : > { %v2951_v10 = vpack.c.bf16 %v2299_v1, %v2299_v1  ;;  %v2580_v12 = vmax.f32 %v2572_v7, %v2543_v54  ;;  %2447 = vst.msk [vmem:[#allocation2 + $0x28] sm:$0xff] %vm342_vm1, %v2430_v8  ;;  %v2559_v14 = vpop.f32.mrb[63].mxu1 }
 0x163   : > { %v2591_v15 = vadd.f32 %v3635_v49, %v2587_v11 }
 0x164   : > { %2890 = vst.msk [vmem:[%s3645_s23 + $0x6c] sm:$0xf] %vm522_vm2, %v2951_v10  ;;  %v2588_v16 = vmax.f32 %v2580_v12, %v2582_v6 }
 0x165   : > { %v2595_v17 = vmax.f32 %v2591_v15, 0.0  ;;  %v2577_v19 = vld [vmem:[#allocation2 + $0x30] sm:$0xff] }
 0x166   : > { %v2592_v18 = vadd.f32 %v3635_v49, %v2588_v16  ;;  %v2585_v20 = vmax.f32 %v2577_v19, %v3242_v5  ;;  %v2575_v21 = vld [vmem:[#allocation2 + $0x20] sm:$0xff] }
 0x167   : > { %v2952_v22 = vpack.c.bf16 %v2595_v17, %v2595_v17  ;;  %v2583_v24 = vmax.f32 %v2575_v21, %v2556_v9  ;;  %v2578_v25 = vld [vmem:[#allocation2 + $0x38] sm:$0xff] }
 0x168   : > { %v2596_v23 = vmax.f32 %v2592_v18, 0.0  ;;  %v2586_v26 = vmax.f32 %v2578_v25, %v3243_v13 }
 0x169   : > { %v2576_v27 = vld [vmem:[#allocation2 + $0x28] sm:$0xff]  ;;  %2915 = vst.msk [vmem:[%s3645_s23 + $0x70] sm:$0xf] %vm522_vm2, %v2952_v22  ;;  %v2589_v29 = vmax.f32 %v2583_v24, %v2585_v20 }
 0x16a   : > { %v2953_v28 = vpack.c.bf16 %v2596_v23, %v2596_v23  ;;  %v2584_v30 = vmax.f32 %v2576_v27, %v2559_v14 }
 0x16b   : > { %v2593_v31 = vadd.f32 %v3635_v49, %v2589_v29 }
 0x16c   : > { %2916 = vst.msk [vmem:[%s3645_s23 + $0x74] sm:$0xf] %vm522_vm2, %v2953_v28  ;;  %v2590_v32 = vmax.f32 %v2584_v30, %v2586_v26 }
 0x16d   : > { %v2597_v33 = vmax.f32 %v2593_v31, 0.0 }
 0x16e   : > { %v2594_v34 = vadd.f32 %v3635_v49, %v2590_v32 }
 0x16f   : > { %v2954_v35 = vpack.c.bf16 %v2597_v33, %v2597_v33 }
 0x170   : > { %v2598_v36 = vmax.f32 %v2594_v34, 0.0 }
 0x171   : > { %2917 = vst.msk [vmem:[%s3645_s23 + $0x78] sm:$0xf] %vm522_vm2, %v2954_v35 }
 0x172   : > { %v2955_v37 = vpack.c.bf16 %v2598_v36, %v2598_v36 }
 0x174   : > { %2918 = vst.msk [vmem:[%s3645_s23 + $0x7c] sm:$0xf] %vm522_vm2, %v2955_v37 }
 0x175 PF: > { %s14_s15 = sadd.s32 1, %s3354_s15  }
 0x176   : > { %p11_p4 = scmp.ge.s32.totalorder %s14_s15, 4  }
 0x178   :  { %13 = sbr.rel (!%p11_p4) target bundleno = 1 (0x1), region = 76 }

// kernel: cnn_forward.6
= control target key start
LH: loop header
LB: loop body
LE: loop exit
PB: predicated region body
PF: predicated region fallthrough
CT: control target
= control target key end

     0   :  { %s5169_s15 = smov 0   ;;  %s5905_s0 = inlined_call_operand.vmem [shape: bf16[2,88,128], index: 0, kind: input, shape index: {}]   ;;  %s5906_s1 = inlined_call_operand.vmem [shape: bf16[2,88,128], index: 1, kind: input, shape index: {}]   ;;  %s5907_s2 = inlined_call_operand.vmem [shape: bf16[9,128,128], index: 2, kind: input, shape index: {}]   ;;  %s5908_s3 = inlined_call_operand.vmem [shape: f32[1,128], index: 3, kind: input, shape index: {}]   ;;  %s5909_s4 = inlined_call_operand.vmem [shape: bf16[2,4,4,128], index: 4, kind: output, shape index: {}]  }
   0x1 LB: > { %s3632_s16 = sadd.s32 4294967295, %s5142_s15   ;;  %p3636_p0 = scmp.ge.s32.totalorder %s5142_s15, 1  ;;  %s5142_s15 = sphi %s5169_s15, %s14_s15  }
   0x2   : > { %p172_p1 = scmp.lt.s32.totalorder %s5142_s15, 3 }
   0x4   : > { %p173_p2 = pnand %p3636_p0, %p172_p1 }
   0x5   : > { %v4911_v0 = vld [vmem:[%s5907_s2 + $0x40] sm:$0xff] (!%p173_p2)   ;;  %v4913_v2 = vld [vmem:[%s5907_s2 + $0x48] sm:$0xff] (!%p173_p2)   ;;  %p203_p3 = scmp.lt.s32.totalorder (!%p173_p2), %s3632_s16, 1  ;;  %v4915_v4 = vld [vmem:[%s5907_s2 + $0x50] sm:$0xff] (!%p173_p2)   ;;  %vm592_vm0 = vsmask.f32 (!%p173_p2), 7424 }
   0x6   : > { %176 = sbr.rel (%p173_p2) target bundleno = 529 (0x211), region = 36  ;;  %v4912_v1 = vld [vmem:[%s5907_s2 + $0x40] sm:$0xff] (!%p173_p2)   ;;  %4342 = vmatprep.subr.bf16.mxu0 (!%p173_p2), %v4911_v0  ;;  %v4914_v3 = vld [vmem:[%s5907_s2 + $0x48] sm:$0xff] (!%p173_p2)   ;;  %v4916_v5 = vld [vmem:[%s5907_s2 + $0x50] sm:$0xff] (!%p173_p2)  }
   0x7   : > { %4558 = vmatprep.subr.bf16.mxu1 (!%p173_p2), %v4912_v1  ;;  %4343 = vmatpush3.bf16.msra.mxu0 (!%p173_p2), %v4911_v0  ;;  %v4917_v6 = vld [vmem:[%s5907_s2 + $0x58] sm:$0xff] (!%p173_p2)   ;;  %v4919_v8 = vld [vmem:[%s5907_s2 + $0x60] sm:$0xff] (!%p173_p2)   ;;  %v4921_v10 = vld [vmem:[%s5907_s2 + $0x68] sm:$0xff] (!%p173_p2)  }
   0x8   : > { %4559 = vmatpush3.bf16.msra.mxu1 (!%p173_p2), %v4912_v1  ;;  %4344 = vmatprep.subr.bf16.mxu0 (!%p173_p2), %v4913_v2  ;;  %v4918_v7 = vld [vmem:[%s5907_s2 + $0x58] sm:$0xff] (!%p173_p2)   ;;  %v4920_v9 = vld [vmem:[%s5907_s2 + $0x60] sm:$0xff] (!%p173_p2)   ;;  %v4922_v12 = vld [vmem:[%s5907_s2 + $0x68] sm:$0xff] (!%p173_p2)  }
   0x9   : > { %4560 = vmatprep.subr.bf16.mxu1 (!%p173_p2), %v4914_v3  ;;  %v4923_v13 = vld [vmem:[%s5907_s2 + $0x70] sm:$0xff] (!%p173_p2)   ;;  %v4925_v21 = vld [vmem:[%s5907_s2 + $0x78] sm:$0xff] (!%p173_p2)   ;;  %v4928_v29 = vld [vmem:[%s5907_s2] sm:$0xff] (!%p173_p2)  }
   0xa   : > { %v4924_v14 = vld [vmem:[%s5907_s2 + $0x70] sm:$0xff] (!%p173_p2)   ;;  %v4926_v23 = vld [vmem:[%s5907_s2 + $0x78] sm:$0xff] (!%p173_p2)   ;;  %v4931_v32 = vld [vmem:[%s5907_s2] sm:$0xff] (!%p173_p2)  }
   0xb   : > { %4345 = vmatpush3.bf16.msra.mxu0 (!%p173_p2), %v4913_v2  ;;  %v4934_v35 = vld [vmem:[%s5907_s2 + $0x8] sm:$0xff] (!%p173_p2)   ;;  %v4936_v39 = vld [vmem:[%s5907_s2 + $0x10] sm:$0xff] (!%p173_p2)   ;;  %v4938_v47 = vld [vmem:[%s5907_s2 + $0x18] sm:$0xff] (!%p173_p2)  }
   0xc   : > { %4561 = vmatpush3.bf16.msra.mxu1 (!%p173_p2), %v4914_v3  ;;  %4346 = vmatprep.subr.bf16.mxu0 (!%p173_p2), %v4915_v4  ;;  %v4935_v36 = vld [vmem:[%s5907_s2 + $0x8] sm:$0xff] (!%p173_p2)   ;;  %v4937_v41 = vld [vmem:[%s5907_s2 + $0x10] sm:$0xff] (!%p173_p2)   ;;  %v4939_v49 = vld [vmem:[%s5907_s2 + $0x18] sm:$0xff] (!%p173_p2)  }
   0xd   : > { %s5911_s16 = smov (!%p203_p3, %s3632_s16), 1  ;;  %4562 = vmatprep.subr.bf16.mxu1 %v4916_v5  ;;  %v4940_v54 = vld [vmem:[%s5907_s2 + $0x20] sm:$0xff]   ;;  %v4942_v59 = vld [vmem:[%s5907_s2 + $0x28] sm:$0xff]   ;;  %v4945_v61 = vld [vmem:[%s5907_s2 + $0x30] sm:$0xff]  }
   0xe   : > { %s4902_s7 = smul.u32 44, %s5911_s16  ;;  %v4941_v57 = vld [vmem:[%s5907_s2 + $0x20] sm:$0xff]   ;;  %v4943_v60 = vld [vmem:[%s5907_s2 + $0x28] sm:$0xff]   ;;  %v4947_v62 = vld [vmem:[%s5907_s2 + $0x30] sm:$0xff]   ;;  %s4125_s24 = sshll.u32 %s5911_s16, 3 }
   0xf   : > { %4347 = vmatpush3.bf16.msra.mxu0 %v4915_v4  ;;  %v4950_v63 = vld [vmem:[%s5907_s2 + $0x38] sm:$0xff]   ;;  %v4953_v1 = vld [vmem:[%s5907_s2 + $0x80] sm:$0xff]   ;;  %s217_s27 = scalar_lea.vmem %s5909_s4, %s4125_s24 }
  0x10   : > { %4563 = vmatpush3.bf16.msra.mxu1 %v4916_v5  ;;  %4348 = vmatprep.subr.bf16.mxu0 %v4917_v6  ;;  %s5213_s14 = scalar_lea.vmem %s5906_s1, %s4902_s7  ;;  %s5221_s21 = scalar_lea.vmem %s5905_s0, %s4902_s7  ;;  %v4951_v0 = vld [vmem:[%s5907_s2 + $0x38] sm:$0xff]   ;;  %v4955_v2 = vld [vmem:[%s5907_s2 + $0x80] sm:$0xff]   ;;  %v4958_v5 = vld [vmem:[%s5907_s2 + $0x88] sm:$0xff]  }
  0x11   : > { %4564 = vmatprep.subr.bf16.mxu1 %v4918_v7  ;;  %v4927_v11 = vld [vmem:[%s5213_s14] sm:$0xff]   ;;  %v4930_v16 = vld [vmem:[%s5221_s21 + $0x8] sm:$0xff]   ;;  %v4933_v20 = vld [vmem:[%s5221_s21 + $0x10] sm:$0xff]  }
  0x12   : > { %4358 = vmatprep.mubr.bf16.mxu0 %v4927_v11  ;;  %v4929_v15 = vld [vmem:[%s5221_s21] sm:$0xff]   ;;  %v1900_v19 = vshll.u32 %v4930_v16, 16  ;;  %v1904_v25 = vshrl.u32 %v4930_v16, 16  ;;  %v1908_v26 = vshll.u32 %v4933_v20, 16  ;;  %v4932_v33 = vld [vmem:[%s5213_s14 + $0x8] sm:$0xff]   ;;  %v4944_v37 = vld [vmem:[%s5213_s14 + $0x10] sm:$0xff]  }
  0x13   : > { %4349 = vmatpush3.bf16.msra.mxu0 %v4917_v6  ;;  %v1893_v17 = vshrl.u32 %v4929_v15, 16  ;;  %v1895_v18 = vshll.u32 %v4929_v15, 16  ;;  %v1912_v38 = vshrl.u32 %v4933_v20, 16  ;;  %v4946_v40 = vld [vmem:[%s5221_s21 + $0x18] sm:$0xff]   ;;  %v4952_v53 = vld [vmem:[%s5221_s21] sm:$0xff]   ;;  %v4956_v3 = vld [vmem:[%s5221_s21 + $0x8] sm:$0xff]  }
  0x14   : > { %4565 = vmatpush3.bf16.msra.mxu1 %v4918_v7  ;;  %4350 = vmatprep.subr.bf16.mxu0 %v4919_v8  ;;  %v1902_v24 = vrot.slane %v1900_v19, 1  ;;  %v1910_v31 = vrot.slane %v1908_v26, 1  ;;  %v1916_v43 = vshll.u32 %v4946_v40, 16  ;;  %v4948_v44 = vld [vmem:[%s5213_s14 + $0x18] sm:$0xff]   ;;  %v1920_v46 = vshrl.u32 %v4946_v40, 16  ;;  %v4954_v56 = vld [vmem:[%s5213_s14] sm:$0xff]  }
  0x15   : > { %4566 = vmatprep.subr.bf16.mxu1 %v4920_v9  ;;  %v1897_v22 = vrot.slane %v1895_v18, 1  ;;  %v4949_v45 = vld [vmem:[%s5221_s21 + $0x20] ss:$0 sps:$4 sm:$0x11]   ;;  %v4957_v4 = vld [vmem:[%s5213_s14 + $0x8] sm:$0xff]   ;;  %v4968_v7 = vld [vmem:[%s5221_s21 + $0x10] sm:$0xff]  }
  0x16   : > { %v1906_v30 = vor.u32 %v1904_v25, %v1902_v24  ;;  %v1914_v42 = vor.u32 %v1912_v38, %v1910_v31  ;;  %v1918_v48 = vrot.slane %v1916_v43, 1  ;;  %v1924_v50 = vshll.u32 %v4949_v45, 16  ;;  %v4959_v6 = vld [vmem:[%s5907_s2 + $0x88] sm:$0xff]   ;;  %v4960_v15 = vld [vmem:[%s5907_s2 + $0x90] sm:$0xff]   ;;  %v2182_v16 = vld [vmem:[%s5213_s14] sm:$0xf] }
  0x17   : > { %4351 = vmatpush3.bf16.msra.mxu0 %v4919_v8  ;;  %v1898_v27 = vor.u32 %v1897_v22, %v1893_v17  ;;  %v4970_v8 = vld [vmem:[%s5213_s14 + $0x10] sm:$0xff]   ;;  %v5322_v11 = vld [vmem:[%s5221_s21 + $0x8] sm:$0xf]  ;;  %v5337_v17 = vld [vmem:[%s5213_s14 + $0x4] sm:$0xf] }
  0x18   : > { %4567 = vmatpush3.bf16.msra.mxu1 %v4920_v9  ;;  %4352 = vmatprep.subr.bf16.mxu0 %v4921_v10  ;;  %v1911_v34 = vsel %vm592_vm0, %v1906_v30, %v1910_v31  ;;  %v1919_v51 = vsel %vm592_vm0, %v1914_v42, %v1918_v48  ;;  %v1922_v52 = vor.u32 %v1920_v46, %v1918_v48  ;;  %v1926_v55 = vrot.slane %v1924_v50, 1  ;;  %v543_v9 = vld [vmem:[%s5221_s21] sm:$0xf]  ;;  %v4961_v18 = vld [vmem:[%s5907_s2 + $0x90] sm:$0xff]   ;;  %v5344_v22 = vld [vmem:[%s5213_s14 + $0x8] sm:$0xf] }
  0x19   : > { %4568 = vmatprep.subr.bf16.mxu1 %v4922_v12  ;;  %v1903_v28 = vsel %vm592_vm0, %v1898_v27, %v1902_v24  ;;  %v5348_v24 = vld [vmem:[%s5213_s14 + $0xc] sm:$0xf]  ;;  %v3937_v25 = vcombine.low %v2182_v16, %v5337_v17  ;;  %v4973_v26 = vld [vmem:[%s5213_s14 + $0x18] sm:$0xff]   ;;  %v5377_v43 = vld [vmem:[%s5221_s21 + $0x10] sm:$0xf] }
  0x1a   : > { %4574 = vmatprep.mubr.bf16.mxu1 %v1903_v28  ;;  %v1927_v58 = vsel %vm592_vm0, %v1922_v52, %v1926_v55  ;;  %v4962_v30 = vld [vmem:[%s5907_s2 + $0x98] sm:$0xff]   ;;  %v4966_v42 = vld [vmem:[%s5907_s2 + $0xa8] sm:$0xff]   ;;  %v5381_v45 = vld [vmem:[%s5221_s21 + $0x14] sm:$0xf] }
  0x1b   : > { %4353 = vmatpush3.bf16.msra.mxu0 %v4921_v10  ;;  %v5319_v10 = vld [vmem:[%s5221_s21 + $0x4] sm:$0xf]  ;;  %v2231_v31 = vshrl.u32 %v3937_v25, 16  ;;  %v4967_v46 = vld [vmem:[%s5907_s2 + $0xa8] sm:$0xff]   ;;  %v5390_v48 = vld [vmem:[%s5213_s14 + $0x14] sm:$0xf] }
  0x1c   : > { %4569 = vmatpush3.bf16.msra.mxu1 %v4922_v12  ;;  %4354 = vmatprep.subr.bf16.mxu0 %v4923_v13  ;;  %v5325_v12 = vld [vmem:[%s5221_s21 + $0xc] sm:$0xf]  ;;  %v4969_v50 = vld [vmem:[%s5907_s2 + $0xb0] sm:$0xff]   ;;  %v5401_v52 = vld [vmem:[%s5221_s21 + $0x1c] sm:$0xf] }
  0x1d   : > { %4570 = vmatprep.subr.bf16.mxu1 %v4924_v14  ;;  %v5409_v55 = vld [vmem:[%s5213_s14 + $0x18] sm:$0xf]  ;;  %v4986_v16 = vld [vmem:[%s5907_s2 + $0xc8] sm:$0xff]  }
  0x1f   : > { %4355 = vmatpush3.bf16.msra.mxu0 %v4923_v13  ;;  %v3697_v13 = vcombine.low %v543_v9, %v5319_v10  ;;  %v4979_v9 = vld [vmem:[%s5907_s2 + $0xc0] sm:$0xff]  }
  0x20   : > { %4571 = vmatpush3.bf16.msra.mxu1 %v4924_v14  ;;  %4356 = vmatprep.subr.bf16.mxu0 %v4925_v21  ;;  %v5330_v14 = vcombine.low %v5322_v11, %v5325_v12 }
  0x21   : > { %4572 = vmatprep.subr.bf16.mxu1 %v4926_v23  ;;  %v594_v19 = vshrl.u32 %v3697_v13, 16  ;;  %v596_v20 = vshll.u32 %v3697_v13, 16 }
  0x23   : > { %4357 = vmatpush3.bf16.msra.mxu0 %v4925_v21  ;;  %v601_v21 = vshll.u32 %v5330_v14, 16  ;;  %v598_v27 = vrot.slane %v596_v20, 1 }
  0x24   : > { %4573 = vmatpush3.bf16.msra.mxu1 %v4926_v23  ;;  %4366 = vmatprep.subr.bf16.mxu0 %v4928_v29  ;;  %v4972_v23 = vld [vmem:[%s5221_s21 + $0x18] sm:$0xff]  }
  0x25   : > { %4582 = vmatprep.subr.bf16.mxu1 %v4931_v32  ;;  %v5352_v28 = vrot.slane %v601_v21, 1 }
  0x26   : > { %4359 = vmatmul.mubr.bf16.vlgmr.msra.gmra.mrb[0].mxu0 %v4932_v33  ;;  %v4963_v33 = vld [vmem:[%s5907_s2 + $0x98] sm:$0xff]  }
  0x27   : > { %4367 = vmatpush3.bf16.msra.mxu0 %v4928_v29  ;;  %4575 = vmatmul.mubr.bf16.vlgmr.msra.gmra.mrb[0].mxu1 %v1911_v34  ;;  %v5356_v29 = vcombine.low %v5344_v22, %v5348_v24  ;;  %v599_v34 = vor.u32 %v598_v27, %v594_v19 }
  0x28   : > { %4583 = vmatpush3.bf16.msra.mxu1 %v4931_v32  ;;  %4368 = vmatprep.subr.bf16.mxu0 %v4934_v35  ;;  %v2233_v32 = vshll.u32 %v3937_v25, 16 }
  0x29   : > { %4584 = vmatprep.subr.bf16.mxu1 %v4935_v36  ;;  %4362 = vmatprep.mubr.bf16.mxu0 %v4944_v37  ;;  %v604_v37 = vsel %vm592_vm0, %v599_v34, %v5352_v28 }
  0x2a   : > { %4578 = vmatprep.mubr.bf16.mxu1 %v1919_v51  ;;  %v5398_v51 = vld [vmem:[%s5221_s21 + $0x18] sm:$0xf] }
  0x2b   : > { %4369 = vmatpush3.bf16.msra.mxu0 %v4934_v35  ;;  %v2238_v35 = vshll.u32 %v5356_v29, 16 }
  0x2c   : > { %4585 = vmatpush3.bf16.msra.mxu1 %v4935_v36  ;;  %4370 = vmatprep.subr.bf16.mxu0 %v4936_v39  ;;  %v2235_v36 = vrot.slane %v2233_v32, 1 }
  0x2d   : > { %4586 = vmatprep.subr.bf16.mxu1 %v4937_v41  ;;  %v2240_v38 = vrot.slane %v2238_v35, 1  ;;  %v4988_v35 = vld [vmem:[%s5907_s2 + $0xd0] sm:$0xff]  }
  0x2e   : > { %4363 = vmatmul.mubr.bf16.gmra.mrb[4].mxu0 %v4948_v44  ;;  %v2236_v40 = vor.u32 %v2235_v36, %v2231_v31 }
  0x2f   : > { %4371 = vmatpush3.bf16.msra.mxu0 %v4936_v39  ;;  %4382 = vmatprep.mubr.bf16.mxu0 %v4952_v53  ;;  %v4964_v39 = vld [vmem:[%s5907_s2 + $0xa0] sm:$0xff]   ;;  %v4971_v53 = vld [vmem:[%s5907_s2 + $0xb0] sm:$0xff]  }
  0x30   : > { %4587 = vmatpush3.bf16.msra.mxu1 %v4937_v41  ;;  %4372 = vmatprep.subr.bf16.mxu0 %v4938_v47  ;;  %v4965_v41 = vld [vmem:[%s5907_s2 + $0xa0] sm:$0xff]   ;;  %v2241_v44 = vsel %vm592_vm0, %v2236_v40, %v2240_v38  ;;  %v4990_v40 = vld [vmem:[%s5907_s2 + $0xd8] sm:$0xff]  }
  0x31   : > { %4588 = vmatprep.subr.bf16.mxu1 %v4939_v49  ;;  %4579 = vmatmul.mubr.bf16.gmra.mrb[4].mxu1 %v1927_v58  ;;  %v3700_v58 = vcombine.low %v5398_v51, %v5401_v52 }
  0x32   : > { %4598 = vmatprep.mubr.bf16.mxu1 %v4954_v56  ;;  %v5412_v56 = vld [vmem:[%s5213_s14 + $0x1c] sm:$0xf] }
  0x33   : > { %4373 = vmatpush3.bf16.msra.mxu0 %v4938_v47  ;;  %v5387_v47 = vld [vmem:[%s5213_s14 + $0x10] sm:$0xf]  ;;  %v621_v20 = vshrl.u32 %v3700_v58, 16 }
  0x34   : > { %4589 = vmatpush3.bf16.msra.mxu1 %v4939_v49  ;;  %4374 = vmatprep.subr.bf16.mxu0 %v4940_v54  ;;  %v3699_v49 = vcombine.low %v5377_v43, %v5381_v45 }
  0x35   : > { %4590 = vmatprep.subr.bf16.mxu1 %v4941_v57 }
  0x37   : > { %4375 = vmatpush3.bf16.msra.mxu0 %v4940_v54  ;;  %v3939_v54 = vcombine.low %v5387_v47, %v5390_v48 }
  0x38   : > { %4591 = vmatpush3.bf16.msra.mxu1 %v4941_v57  ;;  %4376 = vmatprep.subr.bf16.mxu0 %v4942_v59  ;;  %v609_v57 = vshll.u32 %v3699_v49, 16 }
  0x39   : > { %4592 = vmatprep.subr.bf16.mxu1 %v4943_v60 }
  0x3b   : > { %4377 = vmatpush3.bf16.msra.mxu0 %v4942_v59  ;;  %v605_v59 = vshrl.u32 %v5330_v14, 16 }
  0x3c   : > { %4593 = vmatpush3.bf16.msra.mxu1 %v4943_v60  ;;  %4378 = vmatprep.subr.bf16.mxu0 %v4945_v61  ;;  %v3940_v60 = vcombine.low %v5409_v55, %v5412_v56 }
  0x3d   : > { %4594 = vmatprep.subr.bf16.mxu1 %v4947_v62 }
  0x3f   : > { %4379 = vmatpush3.bf16.msra.mxu0 %v4945_v61  ;;  %v4974_v61 = vld [vmem:[%s5907_s2 + $0xb8] sm:$0xff]  }
  0x40   : > { %4595 = vmatpush3.bf16.msra.mxu1 %v4947_v62  ;;  %4380 = vmatprep.subr.bf16.mxu0 %v4950_v63  ;;  %v2242_v62 = vshrl.u32 %v5356_v29, 16 }
  0x41   : > { %4596 = vmatprep.subr.bf16.mxu1 %v4951_v0 }
  0x42   : > { %v2244_v13 = vor.u32 %v2242_v62, %v2240_v38  ;;  %v4989_v38 = vld [vmem:[%s5907_s2 + $0xd0] sm:$0xff]  }
  0x43   : > { %4381 = vmatpush3.bf16.msra.mxu0 %v4950_v63  ;;  %v2246_v63 = vshll.u32 %v3939_v54, 16  ;;  %v5499_v62 = vld [vmem:[%s5221_s21 + $0xc] sm:$0xff]  }
  0x44   : > { %4597 = vmatpush3.bf16.msra.mxu1 %v4951_v0  ;;  %4390 = vmatprep.subr.bf16.mxu0 %v4953_v1  ;;  %v4975_v0 = vld [vmem:[%s5907_s2 + $0xb8] sm:$0xff]  }
  0x45   : > { %4606 = vmatprep.subr.bf16.mxu1 %v4955_v2  ;;  %v2248_v14 = vrot.slane %v2246_v63, 1 }
  0x46   : > { %4383 = vmatmul.mubr.bf16.vlgmr.msra.gmra.mrb[0].mxu0 %v4956_v3  ;;  %v611_v3 = vrot.slane %v609_v57, 1  ;;  %v5028_v57 = vld [vmem:[%s5221_s21 + $0x4] sm:$0xff]  }
  0x47   : > { %4391 = vmatpush3.bf16.msra.mxu0 %v4953_v1  ;;  %4599 = vmatmul.mubr.bf16.vlgmr.msra.gmra.mrb[0].mxu1 %v4957_v4  ;;  %v613_v1 = vshrl.u32 %v3699_v49, 16  ;;  %v617_v4 = vshll.u32 %v3700_v58, 16  ;;  %v2249_v27 = vsel %vm592_vm0, %v2244_v13, %v2248_v14  ;;  %v4992_v49 = vld [vmem:[%s5907_s2 + $0xe0] sm:$0xff]   ;;  %v2590_v63 = vshll.u32 %v5028_v57, 16 }
  0x48   : > { %4607 = vmatpush3.bf16.msra.mxu1 %v4955_v2  ;;  %4392 = vmatprep.subr.bf16.mxu0 %v4958_v5  ;;  %v5000_v2 = vld [vmem:[%s5221_s21 + $0x20] ss:$0 sps:$4 sm:$0x11]  }
  0x49   : > { %4608 = vmatprep.subr.bf16.mxu1 %v4959_v6  ;;  %4386 = vmatprep.mubr.bf16.mxu0 %v4968_v7  ;;  %v2250_v7 = vshrl.u32 %v3939_v54, 16  ;;  %v619_v19 = vrot.slane %v617_v4, 1  ;;  %v5003_v54 = vld [vmem:[%s5907_s2 + $0xf8] sm:$0xff]   ;;  %v5005_v58 = vld [vmem:[%s5907_s2 + $0x100] sm:$0xff]   ;;  %v2595_v4 = vshll.u32 %v5499_v62, 16 }
  0x4a   : > { %4602 = vmatprep.mubr.bf16.mxu1 %v4970_v8  ;;  %v2254_v8 = vshll.u32 %v3940_v60, 16  ;;  %v5015_v13 = vld [vmem:[%s5907_s2 + $0x120] sm:$0xff]  }
  0x4b   : > { %4393 = vmatpush3.bf16.msra.mxu0 %v4958_v5  ;;  %v5001_v5 = vld [vmem:[%s5213_s14 + $0x20] ss:$0 sps:$4 sm:$0x11]  }
  0x4c   : > { %4609 = vmatpush3.bf16.msra.mxu1 %v4959_v6  ;;  %4394 = vmatprep.subr.bf16.mxu0 %v4960_v15  ;;  %v607_v6 = vor.u32 %v605_v59, %v5352_v28  ;;  %v2256_v25 = vrot.slane %v2254_v8, 1  ;;  %v2258_v28 = vshrl.u32 %v3940_v60, 16  ;;  %v2262_v29 = vshll.u32 %v5001_v5, 16  ;;  %v5007_v59 = vld [vmem:[%s5907_s2 + $0x100] sm:$0xff]   ;;  %v5013_v8 = vld [vmem:[%s5907_s2 + $0x118] sm:$0xff]  }
  0x4d   : > { %4610 = vmatprep.subr.bf16.mxu1 %v4961_v18  ;;  %v3727_v60 = vcombine.low %v5325_v12, %v5377_v43  ;;  %v3728_v12 = vcombine.low %v5381_v45, %v5398_v51  ;;  %v754_v43 = vld [vmem:[%s5221_s21 + $0x20] sm:$0xf]  ;;  %v5011_v45 = vld [vmem:[%s5907_s2 + $0x110] sm:$0xff]  }
  0x4e   : > { %4387 = vmatmul.mubr.bf16.gmra.mrb[4].mxu0 %v4972_v23  ;;  %v612_v21 = vsel %vm592_vm0, %v607_v6, %v611_v3  ;;  %v2252_v23 = vor.u32 %v2250_v7, %v2248_v14  ;;  %v2260_v36 = vor.u32 %v2258_v28, %v2256_v25  ;;  %v2391_v5 = vld [vmem:[%s5213_s14 + $0x20] sm:$0xf]  ;;  %v2597_v6 = vrot.slane %v2595_v4, 1  ;;  %v5012_v7 = vld [vmem:[%s5907_s2 + $0x118] sm:$0xff]   ;;  %v5016_v14 = vld [vmem:[%s5907_s2 + $0x128] sm:$0xff]  }
  0x4f   : > { %4395 = vmatpush3.bf16.msra.mxu0 %v4960_v15  ;;  %4603 = vmatmul.mubr.bf16.gmra.mrb[4].mxu1 %v4973_v26  ;;  %v4983_v15 = vld [vmem:[%s5907_s2 + $0xc0] sm:$0xff]   ;;  %v625_v26 = vshll.u32 %v5000_v2, 16  ;;  %v2588_v2 = vshrl.u32 %v5028_v57, 16  ;;  %v3969_v51 = vcombine.low %v5412_v56, %v2391_v5 }
  0x50   : > { %4611 = vmatpush3.bf16.msra.mxu1 %v4961_v18  ;;  %4396 = vmatprep.subr.bf16.mxu0 %v4962_v30  ;;  %v615_v18 = vor.u32 %v613_v1, %v611_v3  ;;  %v2257_v32 = vsel %vm592_vm0, %v2252_v23, %v2256_v25  ;;  %v5009_v1 = vld [vmem:[%s5907_s2 + $0x108] sm:$0xff]   ;;  %v2592_v3 = vrot.slane %v2590_v63, 1  ;;  %v5014_v56 = vld [vmem:[%s5907_s2 + $0x120] sm:$0xff]  }
  0x51   : > { %4612 = vmatprep.subr.bf16.mxu1 %v4963_v33  ;;  %4406 = vmatprep.mubr.bf16.mxu0 %v604_v37  ;;  %v627_v34 = vrot.slane %v625_v26, 1  ;;  %v2264_v37 = vrot.slane %v2262_v29, 1  ;;  %v5045_v25 = vld [vmem:[%s5221_s21 + $0x1c] sm:$0xff]   ;;  %v1073_v26 = vld [vmem:[%s5221_s21 + $0x4] sm:$0xf] }
  0x52   : > { %4622 = vmatprep.mubr.bf16.mxu1 %v2241_v44  ;;  %v620_v31 = vsel %vm592_vm0, %v615_v18, %v619_v19  ;;  %v3726_v44 = vcombine.low %v5319_v10, %v5322_v11  ;;  %v4994_v10 = vld [vmem:[%s5907_s2 + $0xe8] sm:$0xff]   ;;  %v5019_v18 = vld [vmem:[%s5907_s2 + $0x130] sm:$0xff]   ;;  %v2748_v28 = vld [vmem:[%s5213_s14 + $0x4] sm:$0xf] }
  0x53   : > { %4397 = vmatpush3.bf16.msra.mxu0 %v4962_v30  ;;  %v4987_v30 = vld [vmem:[%s5907_s2 + $0xc8] sm:$0xff]   ;;  %v5047_v4 = vld [vmem:[%s5213_s14 + $0x1c] sm:$0xff]  }
  0x54   : > { %4613 = vmatpush3.bf16.msra.mxu1 %v4963_v33  ;;  %4398 = vmatprep.subr.bf16.mxu0 %v4964_v39  ;;  %v623_v33 = vor.u32 %v621_v20, %v619_v19  ;;  %v4995_v11 = vld [vmem:[%s5907_s2 + $0xe8] sm:$0xff]   ;;  %v5021_v19 = vld [vmem:[%s5907_s2 + $0x130] sm:$0xff]   ;;  %v2599_v20 = vshrl.u32 %v5499_v62, 16 }
  0x55   : > { %4614 = vmatprep.subr.bf16.mxu1 %v4965_v41  ;;  %v5560_v29 = vld [vmem:[%s5213_s14 + $0x8] sm:$0xf] }
  0x57   : > { %4399 = vmatpush3.bf16.msra.mxu0 %v4964_v39  ;;  %v628_v39 = vsel %vm592_vm0, %v623_v33, %v627_v34  ;;  %v5027_v33 = vld [vmem:[%s5907_s2 + $0x140] sm:$0xff]   ;;  %v5572_v34 = vld [vmem:[%s5221_s21 + $0x10] sm:$0xf] }
  0x58   : > { %4615 = vmatpush3.bf16.msra.mxu1 %v4965_v41  ;;  %4400 = vmatprep.subr.bf16.mxu0 %v4966_v42  ;;  %v2265_v41 = vsel %vm592_vm0, %v2260_v36, %v2264_v37  ;;  %v2611_v36 = vshll.u32 %v5045_v25, 16  ;;  %v5048_v37 = vld [vmem:[%s5221_s21 + $0x24] ss:$0 sps:$4 sm:$0x11]  }
  0x59   : > { %4616 = vmatprep.subr.bf16.mxu1 %v4967_v46 }
  0x5b   : > { %4401 = vmatpush3.bf16.msra.mxu0 %v4966_v42  ;;  %v4991_v42 = vld [vmem:[%s5907_s2 + $0xd8] sm:$0xff]  }
  0x5c   : > { %4617 = vmatpush3.bf16.msra.mxu1 %v4967_v46  ;;  %4402 = vmatprep.subr.bf16.mxu0 %v4969_v50  ;;  %v3966_v46 = vcombine.low %v5337_v17, %v5344_v22  ;;  %v4997_v17 = vld [vmem:[%s5907_s2 + $0xf0] sm:$0xff]  }
  0x5d   : > { %4618 = vmatprep.subr.bf16.mxu1 %v4971_v53  ;;  %v4999_v22 = vld [vmem:[%s5907_s2 + $0xf0] sm:$0xff]  }
  0x5f   : > { %4403 = vmatpush3.bf16.msra.mxu0 %v4969_v50  ;;  %v4993_v50 = vld [vmem:[%s5907_s2 + $0xe0] sm:$0xff]  }
  0x60   : > { %4619 = vmatpush3.bf16.msra.mxu1 %v4971_v53  ;;  %4404 = vmatprep.subr.bf16.mxu0 %v4974_v61  ;;  %v5002_v53 = vld [vmem:[%s5907_s2 + $0xf8] sm:$0xff]  }
  0x61   : > { %4620 = vmatprep.subr.bf16.mxu1 %v4975_v0 }
  0x63   : > { %4405 = vmatpush3.bf16.msra.mxu0 %v4974_v61  ;;  %v3967_v61 = vcombine.low %v5348_v24, %v5387_v47  ;;  %v3968_v24 = vcombine.low %v5390_v48, %v5409_v55  ;;  %v5010_v47 = vld [vmem:[%s5907_s2 + $0x110] sm:$0xff]   ;;  %v3729_v48 = vcombine.low %v5401_v52, %v754_v43  ;;  %v2593_v55 = vor.u32 %v2592_v3, %v2588_v2 }
  0x64   : > { %4621 = vmatpush3.bf16.msra.mxu1 %v4975_v0  ;;  %4414 = vmatprep.subr.bf16.mxu0 %v4979_v9  ;;  %v5008_v0 = vld [vmem:[%s5907_s2 + $0x108] sm:$0xff]   ;;  %v5035_v43 = vld [vmem:[%s5907_s2 + $0x150] sm:$0xff]  }
  0x65   : > { %4630 = vmatprep.subr.bf16.mxu1 %v4983_v15  ;;  %v2598_v52 = vsel %vm592_vm0, %v2593_v55, %v2597_v6  ;;  %v5036_v3 = vld [vmem:[%s5907_s2 + $0x150] sm:$0xff]   ;;  %v5037_v55 = vld [vmem:[%s5907_s2 + $0x158] sm:$0xff]  }
  0x66   : > { %4407 = vmatmul.mubr.bf16.vlgmr.msra.gmra.mrb[0].mxu0 %v612_v21  ;;  %v5024_v21 = vld [vmem:[%s5907_s2 + $0x138] sm:$0xff]  }
  0x67   : > { %4415 = vmatpush3.bf16.msra.mxu0 %v4979_v9  ;;  %4623 = vmatmul.mubr.bf16.vlgmr.msra.gmra.mrb[0].mxu1 %v2249_v27  ;;  %v5026_v9 = vld [vmem:[%s5213_s14 + $0x4] sm:$0xff]  }
  0x68   : > { %4631 = vmatpush3.bf16.msra.mxu1 %v4983_v15  ;;  %4416 = vmatprep.subr.bf16.mxu0 %v4986_v16  ;;  %v5017_v15 = vld [vmem:[%s5907_s2 + $0x128] sm:$0xff]  }
  0x69   : > { %4632 = vmatprep.subr.bf16.mxu1 %v4987_v30  ;;  %4410 = vmatprep.mubr.bf16.mxu0 %v620_v31  ;;  %v5556_v27 = vld [vmem:[%s5221_s21 + $0x8] sm:$0xf] }
  0x6a   : > { %4626 = vmatprep.mubr.bf16.mxu1 %v2257_v32  ;;  %v5566_v32 = vld [vmem:[%s5221_s21 + $0xc] sm:$0xf] }
  0x6b   : > { %4417 = vmatpush3.bf16.msra.mxu0 %v4986_v16  ;;  %v5032_v16 = vld [vmem:[%s5221_s21 + $0x14] sm:$0xff]  }
  0x6c   : > { %4633 = vmatpush3.bf16.msra.mxu1 %v4987_v30  ;;  %4418 = vmatprep.subr.bf16.mxu0 %v4988_v35  ;;  %v2603_v23 = vshll.u32 %v5032_v16, 16  ;;  %v5025_v30 = vld [vmem:[%s5907_s2 + $0x138] sm:$0xff]   ;;  %v2607_v31 = vshrl.u32 %v5032_v16, 16  ;;  %v5042_v16 = vld [vmem:[%s5907_s2 + $0x168] sm:$0xff]  }
  0x6d   : > { %4634 = vmatprep.subr.bf16.mxu1 %v4989_v38 }
  0x6e   : > { %4411 = vmatmul.mubr.bf16.gmra.mrb[4].mxu0 %v628_v39  ;;  %v2601_v39 = vor.u32 %v2599_v20, %v2597_v6  ;;  %v5650_v20 = vld [vmem:[%s5221_s21 + $0x1c] sm:$0xf] }
  0x6f   : > { %4419 = vmatpush3.bf16.msra.mxu0 %v4988_v35  ;;  %4627 = vmatmul.mubr.bf16.gmra.mrb[4].mxu1 %v2265_v41  ;;  %v3782_v35 = vcombine.low %v1073_v26, %v5556_v27  ;;  %v2605_v41 = vrot.slane %v2603_v23, 1  ;;  %v5660_v26 = vld [vmem:[%s5221_s21 + $0x20] sm:$0xf] }
  0x70   : > { %4635 = vmatpush3.bf16.msra.mxu1 %v4989_v38  ;;  %4420 = vmatprep.subr.bf16.mxu0 %v4990_v40  ;;  %v4023_v38 = vcombine.low %v2748_v28, %v5560_v29  ;;  %v5663_v28 = vld [vmem:[%s5213_s14 + $0x1c] sm:$0xf] }
  0x71   : > { %4636 = vmatprep.subr.bf16.mxu1 %v4991_v42  ;;  %4430 = vmatprep.mubr.bf16.mxu0 %v3726_v44  ;;  %v5584_v44 = vld [vmem:[%s5213_s14 + $0x10] sm:$0xf] }
  0x72   : > { %4646 = vmatprep.mubr.bf16.mxu1 %v3966_v46  ;;  %v5031_v46 = vld [vmem:[%s5213_s14 + $0xc] sm:$0xff]   ;;  %v2799_v57 = vshll.u32 %v4023_v38, 16 }
  0x73   : > { %4421 = vmatpush3.bf16.msra.mxu0 %v4990_v40  ;;  %v5030_v40 = vld [vmem:[%s5907_s2 + $0x140] sm:$0xff]  }
  0x74   : > { %4637 = vmatpush3.bf16.msra.mxu1 %v4991_v42  ;;  %4422 = vmatprep.subr.bf16.mxu0 %v4992_v49  ;;  %v5581_v42 = vld [vmem:[%s5213_s14 + $0xc] sm:$0xf] }
  0x75   : > { %4638 = vmatprep.subr.bf16.mxu1 %v4993_v50 }
  0x77   : > { %4423 = vmatpush3.bf16.msra.mxu0 %v4992_v49  ;;  %v5589_v49 = vcombine.low %v5566_v32, %v5572_v34 }
  0x78   : > { %4639 = vmatpush3.bf16.msra.mxu1 %v4993_v50  ;;  %4424 = vmatprep.subr.bf16.mxu0 %v4994_v10  ;;  %v5033_v50 = vld [vmem:[%s5907_s2 + $0x148] sm:$0xff]  }
  0x79   : > { %4640 = vmatprep.subr.bf16.mxu1 %v4995_v11  ;;  %v1130_v62 = vshll.u32 %v5589_v49, 16 }
  0x7b   : > { %4425 = vmatpush3.bf16.msra.mxu0 %v4994_v10  ;;  %v1125_v10 = vshll.u32 %v3782_v35, 16 }
  0x7c   : > { %4641 = vmatpush3.bf16.msra.mxu1 %v4995_v11  ;;  %4426 = vmatprep.subr.bf16.mxu0 %v4997_v17  ;;  %v5034_v11 = vld [vmem:[%s5907_s2 + $0x148] sm:$0xff]  }
  0x7d   : > { %4642 = vmatprep.subr.bf16.mxu1 %v4999_v22  ;;  %v1127_v63 = vrot.slane %v1125_v10, 1 }
  0x7f   : > { %4427 = vmatpush3.bf16.msra.mxu0 %v4997_v17  ;;  %v5043_v17 = vld [vmem:[%s5213_s14 + $0x14] sm:$0xff]  }
  0x80   : > { %4643 = vmatpush3.bf16.msra.mxu1 %v4999_v22  ;;  %4428 = vmatprep.subr.bf16.mxu0 %v5002_v53  ;;  %v2609_v22 = vor.u32 %v2607_v31, %v2605_v41  ;;  %v5046_v31 = vld [vmem:[%s5907_s2 + $0x170] sm:$0xff]  }
  0x81   : > { %4644 = vmatprep.subr.bf16.mxu1 %v5003_v54 }
  0x83   : > { %4429 = vmatpush3.bf16.msra.mxu0 %v5002_v53  ;;  %v2613_v53 = vrot.slane %v2611_v36, 1  ;;  %v5049_v36 = vld [vmem:[%s5907_s2 + $0x178] sm:$0xff]  }
  0x84   : > { %4645 = vmatpush3.bf16.msra.mxu1 %v5003_v54  ;;  %4438 = vmatprep.subr.bf16.mxu0 %v5005_v58  ;;  %v5600_v54 = vcombine.low %v5581_v42, %v5584_v44 }
  0x85   : > { %4654 = vmatprep.subr.bf16.mxu1 %v5007_v59 }
  0x86   : > { %4431 = vmatmul.mubr.bf16.vlgmr.msra.gmra.mrb[0].mxu0 %v3727_v60  ;;  %v2619_v60 = vshll.u32 %v5048_v37, 16  ;;  %v1134_v37 = vshrl.u32 %v5589_v49, 16 }
  0x87   : > { %4439 = vmatpush3.bf16.msra.mxu0 %v5005_v58  ;;  %4647 = vmatmul.mubr.bf16.vlgmr.msra.gmra.mrb[0].mxu1 %v3967_v61  ;;  %v2606_v58 = vsel %vm592_vm0, %v2601_v39, %v2605_v41  ;;  %v1123_v61 = vshrl.u32 %v3782_v35, 16  ;;  %v3785_v35 = vcombine.low %v5650_v20, %v5660_v26  ;;  %v5050_v41 = vld [vmem:[%s5907_s2 + $0x178] sm:$0xff]  }
  0x88   : > { %4655 = vmatpush3.bf16.msra.mxu1 %v5007_v59  ;;  %4440 = vmatprep.subr.bf16.mxu0 %v5008_v0  ;;  %v2615_v59 = vshrl.u32 %v5045_v25, 16  ;;  %v2621_v2 = vrot.slane %v2619_v60, 1  ;;  %v5061_v60 = vld [vmem:[%s5907_s2 + $0x188] sm:$0xff]  }
  0x89   : > { %4656 = vmatprep.subr.bf16.mxu1 %v5009_v1  ;;  %4434 = vmatprep.mubr.bf16.mxu0 %v3728_v12  ;;  %v2801_v12 = vrot.slane %v2799_v57, 1  ;;  %v1128_v5 = vor.u32 %v1127_v63, %v1123_v61  ;;  %v1150_v63 = vshrl.u32 %v3785_v35, 16 }
  0x8a   : > { %4650 = vmatprep.mubr.bf16.mxu1 %v3968_v24  ;;  %v2804_v24 = vshll.u32 %v5600_v54, 16 }
  0x8b   : > { %4441 = vmatpush3.bf16.msra.mxu0 %v5008_v0  ;;  %v2797_v0 = vshrl.u32 %v4023_v38, 16  ;;  %v2808_v38 = vshrl.u32 %v5600_v54, 16  ;;  %v5054_v54 = vld [vmem:[%s5907_s2 + $0x180] sm:$0xff]  }
  0x8c   : > { %4657 = vmatpush3.bf16.msra.mxu1 %v5009_v1  ;;  %4442 = vmatprep.subr.bf16.mxu0 %v5010_v47  ;;  %v2614_v1 = vsel %vm592_vm0, %v2609_v22, %v2613_v53 }
  0x8d   : > { %4658 = vmatprep.subr.bf16.mxu1 %v5011_v45 }
  0x8e   : > { %4435 = vmatmul.mubr.bf16.gmra.mrb[4].mxu0 %v3729_v48  ;;  %v2802_v48 = vor.u32 %v2801_v12, %v2797_v0 }
  0x8f   : > { %4443 = vmatpush3.bf16.msra.mxu0 %v5010_v47  ;;  %4651 = vmatmul.mubr.bf16.gmra.mrb[4].mxu1 %v3969_v51  ;;  %v2617_v47 = vor.u32 %v2615_v59, %v2613_v53  ;;  %v5613_v51 = vrot.slane %v2804_v24, 1  ;;  %v5058_v59 = vld [vmem:[%s5907_s2 + $0x180] sm:$0xff]  }
  0x90   : > { %4659 = vmatpush3.bf16.msra.mxu1 %v5011_v45  ;;  %4444 = vmatprep.subr.bf16.mxu0 %v5012_v7  ;;  %v1132_v45 = vrot.slane %v1130_v62, 1 }
  0x91   : > { %4660 = vmatprep.subr.bf16.mxu1 %v5013_v8  ;;  %4454 = vmatprep.mubr.bf16.mxu0 %v5026_v9  ;;  %v2622_v6 = vsel %vm592_vm0, %v2617_v47, %v2621_v2  ;;  %v2807_v9 = vsel %vm592_vm0, %v2802_v48, %v5613_v51  ;;  %v2810_v57 = vor.u32 %v2808_v38, %v5613_v51  ;;  %v5063_v51 = vld [vmem:[%s5907_s2 + $0x190] sm:$0xff]  }
  0x92   : > { %4670 = vmatprep.mubr.bf16.mxu1 %v2598_v52  ;;  %v5039_v52 = vld [vmem:[%s5907_s2 + $0x160] sm:$0xff]   ;;  %v1136_v49 = vor.u32 %v1134_v37, %v1132_v45 }
  0x93   : > { %4445 = vmatpush3.bf16.msra.mxu0 %v5012_v7  ;;  %v5038_v7 = vld [vmem:[%s5907_s2 + $0x158] sm:$0xff]  }
  0x94   : > { %4661 = vmatpush3.bf16.msra.mxu1 %v5013_v8  ;;  %4446 = vmatprep.subr.bf16.mxu0 %v5014_v56  ;;  %v1133_v8 = vsel %vm592_vm0, %v1128_v5, %v1132_v45 }
  0x95   : > { %4662 = vmatprep.subr.bf16.mxu1 %v5015_v13 }
  0x97   : > { %4447 = vmatpush3.bf16.msra.mxu0 %v5014_v56  ;;  %v5040_v56 = vld [vmem:[%s5907_s2 + $0x160] sm:$0xff]  }
  0x98   : > { %4663 = vmatpush3.bf16.msra.mxu1 %v5015_v13  ;;  %4448 = vmatprep.subr.bf16.mxu0 %v5016_v14  ;;  %v5632_v13 = vld [vmem:[%s5221_s21 + $0x14] sm:$0xf] }
  0x99   : > { %4664 = vmatprep.subr.bf16.mxu1 %v5017_v15  ;;  %v3812_v37 = vcombine.low %v5572_v34, %v5632_v13 }
  0x9b   : > { %4449 = vmatpush3.bf16.msra.mxu0 %v5016_v14  ;;  %v5041_v14 = vld [vmem:[%s5907_s2 + $0x168] sm:$0xff]  }
  0x9c   : > { %4665 = vmatpush3.bf16.msra.mxu1 %v5017_v15  ;;  %4450 = vmatprep.subr.bf16.mxu0 %v5019_v18  ;;  %v5638_v15 = vld [vmem:[%s5213_s14 + $0x14] sm:$0xf] }
  0x9d   : > { %4666 = vmatprep.subr.bf16.mxu1 %v5021_v19  ;;  %v4053_v38 = vcombine.low %v5584_v44, %v5638_v15 }
  0x9f   : > { %4451 = vmatpush3.bf16.msra.mxu0 %v5019_v18  ;;  %v5644_v18 = vld [vmem:[%s5221_s21 + $0x18] sm:$0xf] }
  0xa0   : > { %4667 = vmatpush3.bf16.msra.mxu1 %v5021_v19  ;;  %4452 = vmatprep.subr.bf16.mxu0 %v5024_v21  ;;  %v5647_v19 = vld [vmem:[%s5213_s14 + $0x18] sm:$0xf]  ;;  %v3784_v23 = vcombine.low %v5632_v13, %v5644_v18  ;;  %v3813_v34 = vcombine.low %v5644_v18, %v5650_v20  ;;  %v1283_v13 = vld [vmem:[%s5221_s21 + $0x24] sm:$0xf]  ;;  %v5086_v18 = vld [vmem:[%s5907_s2 + $0x1d0] sm:$0xff]  }
  0xa1   : > { %4668 = vmatprep.subr.bf16.mxu1 %v5025_v30  ;;  %v4025_v25 = vcombine.low %v5638_v15, %v5647_v19  ;;  %v4054_v44 = vcombine.low %v5647_v19, %v5663_v28  ;;  %v3814_v19 = vcombine.low %v5660_v26, %v1283_v13 }
  0xa3   : > { %4453 = vmatpush3.bf16.msra.mxu0 %v5024_v21  ;;  %v5044_v21 = vld [vmem:[%s5907_s2 + $0x170] sm:$0xff]   ;;  %v2812_v39 = vshll.u32 %v4025_v25, 16  ;;  %v2816_v22 = vshrl.u32 %v4025_v25, 16  ;;  %v5077_v25 = vld [vmem:[%s5907_s2 + $0x1b8] sm:$0xff]  }
  0xa4   : > { %4669 = vmatpush3.bf16.msra.mxu1 %v5025_v30  ;;  %4462 = vmatprep.subr.bf16.mxu0 %v5027_v33  ;;  %v5666_v30 = vld [vmem:[%s5213_s14 + $0x20] sm:$0xf] }
  0xa5   : > { %4678 = vmatprep.subr.bf16.mxu1 %v5030_v40 }
  0xa6   : > { %4455 = vmatmul.mubr.bf16.vlgmr.msra.gmra.mrb[0].mxu0 %v5031_v46  ;;  %v1142_v46 = vshrl.u32 %v3784_v23, 16 }
  0xa7   : > { %4463 = vmatpush3.bf16.msra.mxu0 %v5027_v33  ;;  %4671 = vmatmul.mubr.bf16.vlgmr.msra.gmra.mrb[0].mxu1 %v2606_v58  ;;  %v1138_v33 = vshll.u32 %v3784_v23, 16  ;;  %v2814_v58 = vrot.slane %v2812_v39, 1  ;;  %v5068_v23 = vld [vmem:[%s5907_s2 + $0x1a0] sm:$0xff]   ;;  %v5756_v39 = vld [vmem:[%s5221_s21 + $0x10] sm:$0xff]  }
  0xa8   : > { %4679 = vmatpush3.bf16.msra.mxu1 %v5030_v40  ;;  %4464 = vmatprep.subr.bf16.mxu0 %v5033_v50  ;;  %v4026_v40 = vcombine.low %v5663_v28, %v5666_v30 }
  0xa9   : > { %4680 = vmatprep.subr.bf16.mxu1 %v5034_v11  ;;  %4458 = vmatprep.mubr.bf16.mxu0 %v5043_v17  ;;  %v1140_v10 = vrot.slane %v1138_v33, 1  ;;  %v5076_v17 = vld [vmem:[%s5213_s14 + $0x24] ss:$0 sps:$4 sm:$0x11]   ;;  %v5103_v33 = vld [vmem:[%s5221_s21 + $0x8] sm:$0xff]  }
  0xaa   : > { %4674 = vmatprep.mubr.bf16.mxu1 %v2614_v1  ;;  %v2820_v53 = vshll.u32 %v4026_v40, 16  ;;  %v2818_v1 = vor.u32 %v2816_v22, %v2814_v58  ;;  %v2824_v47 = vshrl.u32 %v4026_v40, 16  ;;  %v2828_v2 = vshll.u32 %v5076_v17, 16  ;;  %v2957_v17 = vld [vmem:[%s5213_s14 + $0x24] sm:$0xf]  ;;  %v5087_v22 = vld [vmem:[%s5907_s2 + $0x1d8] sm:$0xff]  }
  0xab   : > { %4465 = vmatpush3.bf16.msra.mxu0 %v5033_v50  ;;  %v5075_v50 = vld [vmem:[%s5221_s21 + $0x24] ss:$0 sps:$4 sm:$0x11]   ;;  %v1144_v61 = vor.u32 %v1142_v46, %v1140_v10  ;;  %v1141_v0 = vsel %vm592_vm0, %v1136_v49, %v1140_v10  ;;  %v3156_v40 = vshll.u32 %v5103_v33, 16  ;;  %v5084_v46 = vld [vmem:[%s5907_s2 + $0x1c8] sm:$0xff]   ;;  %v3154_v15 = vshrl.u32 %v5103_v33, 16 }
  0xac   : > { %4681 = vmatpush3.bf16.msra.mxu1 %v5034_v11  ;;  %4466 = vmatprep.subr.bf16.mxu0 %v5035_v43  ;;  %v1146_v11 = vshll.u32 %v3785_v35, 16  ;;  %v2822_v12 = vrot.slane %v2820_v53, 1  ;;  %v1154_v24 = vshll.u32 %v5075_v50, 16  ;;  %v5080_v35 = vld [vmem:[%s5907_s2 + $0x1c0] sm:$0xff]   ;;  %v3161_v10 = vshll.u32 %v5756_v39, 16  ;;  %v5088_v53 = vld [vmem:[%s5907_s2 + $0x1d8] sm:$0xff]  }
  0xad   : > { %4682 = vmatprep.subr.bf16.mxu1 %v5036_v3  ;;  %v3158_v50 = vrot.slane %v3156_v40, 1  ;;  %v4055_v20 = vcombine.low %v5666_v30, %v2957_v17  ;;  %v5089_v30 = vld [vmem:[%s5907_s2 + $0x1e0] sm:$0xff]   ;;  %v5111_v40 = vld [vmem:[%s5907_s2 + $0x210] sm:$0xff]  }
  0xae   : > { %4459 = vmatmul.mubr.bf16.gmra.mrb[4].mxu0 %v5047_v4  ;;  %v1148_v62 = vrot.slane %v1146_v11, 1  ;;  %v2823_v5 = vsel %vm592_vm0, %v2818_v1, %v2822_v12  ;;  %v1156_v48 = vrot.slane %v1154_v24, 1  ;;  %v5085_v11 = vld [vmem:[%s5907_s2 + $0x1d0] sm:$0xff]   ;;  %v3163_v49 = vrot.slane %v3161_v10, 1  ;;  %v5100_v24 = vld [vmem:[%s5907_s2 + $0x1f8] sm:$0xff]  }
  0xaf   : > { %4467 = vmatpush3.bf16.msra.mxu0 %v5035_v43  ;;  %4675 = vmatmul.mubr.bf16.gmra.mrb[4].mxu1 %v2622_v6  ;;  %v2815_v43 = vsel %vm592_vm0, %v2810_v57, %v2814_v58  ;;  %v2830_v6 = vrot.slane %v2828_v2, 1  ;;  %v3159_v28 = vor.u32 %v3158_v50, %v3154_v15  ;;  %v5090_v57 = vld [vmem:[%s5907_s2 + $0x1e0] sm:$0xff]   ;;  %v5091_v58 = vld [vmem:[%s5907_s2 + $0x1e8] sm:$0xff]   ;;  %v3165_v1 = vshrl.u32 %v5756_v39, 16  ;;  %v5112_v15 = vld [vmem:[%s5907_s2 + $0x218] sm:$0xff]  }
  0xb0   : > { %4683 = vmatpush3.bf16.msra.mxu1 %v5036_v3  ;;  %4468 = vmatprep.subr.bf16.mxu0 %v5037_v55  ;;  %v5062_v3 = vld [vmem:[%s5907_s2 + $0x188] sm:$0xff]   ;;  %v1149_v4 = vsel %vm592_vm0, %v1144_v61, %v1148_v62  ;;  %v1152_v45 = vor.u32 %v1150_v63, %v1148_v62  ;;  %v5107_v61 = vld [vmem:[%s5221_s21 + $0x18] sm:$0xff]   ;;  %v5096_v62 = vld [vmem:[%s5907_s2 + $0x1f0] sm:$0xff]  }
  0xb1   : > { %4684 = vmatprep.subr.bf16.mxu1 %v5038_v7  ;;  %4478 = vmatprep.mubr.bf16.mxu0 %v1133_v8  ;;  %v3164_v26 = vsel %vm592_vm0, %v3159_v28, %v3163_v49  ;;  %v5119_v63 = vld [vmem:[%s5221_s21 + $0x20] sm:$0xff]   ;;  %v5113_v10 = vld [vmem:[%s5907_s2 + $0x218] sm:$0xff]   ;;  %v5117_v28 = vld [vmem:[%s5907_s2 + $0x228] sm:$0xff]  }
  0xb2   : > { %4694 = vmatprep.mubr.bf16.mxu1 %v2807_v9  ;;  %v1157_v8 = vsel %vm592_vm0, %v1152_v45, %v1156_v48  ;;  %v5065_v9 = vld [vmem:[%s5907_s2 + $0x198] sm:$0xff]   ;;  %v3177_v2 = vshll.u32 %v5119_v63, 16  ;;  %v5122_v48 = vld [vmem:[%s5221_s21 + $0x28] ss:$0 sps:$4 sm:$0x11]  }
  0xb3   : > { %4469 = vmatpush3.bf16.msra.mxu0 %v5037_v55  ;;  %v2826_v55 = vor.u32 %v2824_v47, %v2822_v12  ;;  %v3169_v12 = vshll.u32 %v5107_v61, 16  ;;  %v3173_v47 = vshrl.u32 %v5107_v61, 16 }
  0xb4   : > { %4685 = vmatpush3.bf16.msra.mxu1 %v5038_v7  ;;  %4470 = vmatprep.subr.bf16.mxu0 %v5039_v52  ;;  %v5064_v7 = vld [vmem:[%s5907_s2 + $0x190] sm:$0xff]  }
  0xb5   : > { %4686 = vmatprep.subr.bf16.mxu1 %v5040_v56  ;;  %v3171_v45 = vrot.slane %v3169_v12, 1 }
  0xb7   : > { %4471 = vmatpush3.bf16.msra.mxu0 %v5039_v52  ;;  %v2831_v52 = vsel %vm592_vm0, %v2826_v55, %v2830_v6  ;;  %v5106_v55 = vld [vmem:[%s5213_s14 + $0x10] sm:$0xff]  }
  0xb8   : > { %4687 = vmatpush3.bf16.msra.mxu1 %v5040_v56  ;;  %4472 = vmatprep.subr.bf16.mxu0 %v5041_v14  ;;  %v5066_v56 = vld [vmem:[%s5907_s2 + $0x198] sm:$0xff]   ;;  %v5825_v6 = vld [vmem:[%s5221_s21 + $0x10] sm:$0xff]  }
  0xb9   : > { %4688 = vmatprep.subr.bf16.mxu1 %v5042_v16 }
  0xbb   : > { %4473 = vmatpush3.bf16.msra.mxu0 %v5041_v14  ;;  %v3811_v14 = vcombine.low %v5556_v27, %v5566_v32  ;;  %v5069_v27 = vld [vmem:[%s5907_s2 + $0x1a8] sm:$0xff]   ;;  %v5072_v32 = vld [vmem:[%s5907_s2 + $0x1b0] sm:$0xff]  }
  0xbc   : > { %4689 = vmatpush3.bf16.msra.mxu1 %v5042_v16  ;;  %4474 = vmatprep.subr.bf16.mxu0 %v5044_v21  ;;  %v4052_v16 = vcombine.low %v5560_v29, %v5581_v42  ;;  %v5070_v29 = vld [vmem:[%s5907_s2 + $0x1a8] sm:$0xff]   ;;  %v5074_v42 = vld [vmem:[%s5907_s2 + $0x1b0] sm:$0xff]  }
  0xbd   : > { %4690 = vmatprep.subr.bf16.mxu1 %v5046_v31 }
  0xbf   : > { %4475 = vmatpush3.bf16.msra.mxu0 %v5044_v21  ;;  %v5067_v21 = vld [vmem:[%s5907_s2 + $0x1a0] sm:$0xff]  }
  0xc0   : > { %4691 = vmatpush3.bf16.msra.mxu1 %v5046_v31  ;;  %4476 = vmatprep.subr.bf16.mxu0 %v5049_v36  ;;  %v5078_v31 = vld [vmem:[%s5907_s2 + $0x1b8] sm:$0xff]  }
  0xc1   : > { %4692 = vmatprep.subr.bf16.mxu1 %v5050_v41 }
  0xc3   : > { %4477 = vmatpush3.bf16.msra.mxu0 %v5049_v36  ;;  %v5082_v36 = vld [vmem:[%s5907_s2 + $0x1c0] sm:$0xff]  }
  0xc4   : > { %4693 = vmatpush3.bf16.msra.mxu1 %v5050_v41  ;;  %4486 = vmatprep.subr.bf16.mxu0 %v5054_v54  ;;  %v5083_v41 = vld [vmem:[%s5907_s2 + $0x1c8] sm:$0xff]  }
  0xc5   : > { %4702 = vmatprep.subr.bf16.mxu1 %v5058_v59 }
  0xc6   : > { %4479 = vmatmul.mubr.bf16.vlgmr.msra.gmra.mrb[0].mxu0 %v1141_v0  ;;  %v5099_v0 = vld [vmem:[%s5907_s2 + $0x1f8] sm:$0xff]  }
  0xc7   : > { %4487 = vmatpush3.bf16.msra.mxu0 %v5054_v54  ;;  %4695 = vmatmul.mubr.bf16.vlgmr.msra.gmra.mrb[0].mxu1 %v2815_v43  ;;  %v5101_v54 = vld [vmem:[%s5213_s14 + $0x8] sm:$0xff]  }
  0xc8   : > { %4703 = vmatpush3.bf16.msra.mxu1 %v5058_v59  ;;  %4488 = vmatprep.subr.bf16.mxu0 %v5061_v60  ;;  %v5092_v59 = vld [vmem:[%s5907_s2 + $0x1e8] sm:$0xff]  }
  0xc9   : > { %4704 = vmatprep.subr.bf16.mxu1 %v5062_v3  ;;  %4482 = vmatprep.mubr.bf16.mxu0 %v1149_v4  ;;  %v5126_v43 = vld [vmem:[%s5221_s21 + $0x8] sm:$0xff]   ;;  %v5102_v4 = vld [vmem:[%s5907_s2 + $0x200] sm:$0xff]  }
  0xca   : > { %4698 = vmatprep.mubr.bf16.mxu1 %v2823_v5  ;;  %v3167_v5 = vor.u32 %v3165_v1, %v3163_v49  ;;  %v5130_v49 = vld [vmem:[%s5221_s21 + $0x18] sm:$0xff]  }
  0xcb   : > { %4489 = vmatpush3.bf16.msra.mxu0 %v5061_v60  ;;  %v5094_v60 = vld [vmem:[%s5907_s2 + $0x1f0] sm:$0xff]  }
  0xcc   : > { %4705 = vmatpush3.bf16.msra.mxu1 %v5062_v3  ;;  %4490 = vmatprep.subr.bf16.mxu0 %v5063_v51  ;;  %v5128_v3 = vld [vmem:[%s5213_s14 + $0x8] sm:$0xff]  }
  0xcd   : > { %4706 = vmatprep.subr.bf16.mxu1 %v5064_v7  ;;  %v3363_v33 = vshrl.u32 %v5128_v3, 16 }
  0xce   : > { %4483 = vmatmul.mubr.bf16.gmra.mrb[4].mxu0 %v1157_v8  ;;  %v3175_v8 = vor.u32 %v3173_v47, %v3171_v45 }
  0xcf   : > { %4491 = vmatpush3.bf16.msra.mxu0 %v5063_v51  ;;  %4699 = vmatmul.mubr.bf16.gmra.mrb[4].mxu1 %v2831_v52  ;;  %v5105_v51 = vld [vmem:[%s5907_s2 + $0x200] sm:$0xff]   ;;  %v5828_v52 = vld [vmem:[%s5213_s14 + $0x10] sm:$0xff]  }
  0xd0   : > { %4707 = vmatpush3.bf16.msra.mxu1 %v5064_v7  ;;  %4492 = vmatprep.subr.bf16.mxu0 %v5065_v9  ;;  %v1654_v7 = vshll.u32 %v5126_v43, 16  ;;  %v3374_v61 = vshrl.u32 %v5828_v52, 16 }
  0xd1   : > { %4708 = vmatprep.subr.bf16.mxu1 %v5066_v56  ;;  %4502 = vmatprep.mubr.bf16.mxu0 %v3811_v14  ;;  %v3172_v14 = vsel %vm592_vm0, %v3167_v5, %v3171_v45  ;;  %v5135_v45 = vld [vmem:[%s5213_s14 + $0x28] ss:$0 sps:$4 sm:$0x11]  }
  0xd2   : > { %4718 = vmatprep.mubr.bf16.mxu1 %v4052_v16  ;;  %v5108_v16 = vld [vmem:[%s5907_s2 + $0x208] sm:$0xff]  }
  0xd3   : > { %4493 = vmatpush3.bf16.msra.mxu0 %v5065_v9  ;;  %v3179_v9 = vrot.slane %v3177_v2, 1  ;;  %v5134_v2 = vld [vmem:[%s5221_s21 + $0x28] ss:$0 sps:$4 sm:$0x11]  }
  0xd4   : > { %4709 = vmatpush3.bf16.msra.mxu1 %v5066_v56  ;;  %4494 = vmatprep.subr.bf16.mxu0 %v5067_v21  ;;  %v3365_v56 = vshll.u32 %v5128_v3, 16 }
  0xd5   : > { %4710 = vmatprep.subr.bf16.mxu1 %v5068_v23 }
  0xd7   : > { %4495 = vmatpush3.bf16.msra.mxu0 %v5067_v21  ;;  %v3181_v21 = vshrl.u32 %v5119_v63, 16 }
  0xd8   : > { %4711 = vmatpush3.bf16.msra.mxu1 %v5068_v23  ;;  %4496 = vmatprep.subr.bf16.mxu0 %v5069_v27  ;;  %v3185_v23 = vshll.u32 %v5122_v48, 16 }
  0xd9   : > { %4712 = vmatprep.subr.bf16.mxu1 %v5070_v29 }
  0xda   : > { %v3187_v39 = vrot.slane %v3185_v23, 1 }
  0xdb   : > { %4497 = vmatpush3.bf16.msra.mxu0 %v5069_v27  ;;  %v5109_v27 = vld [vmem:[%s5907_s2 + $0x208] sm:$0xff]  }
  0xdc   : > { %4713 = vmatpush3.bf16.msra.mxu1 %v5070_v29  ;;  %4498 = vmatprep.subr.bf16.mxu0 %v5072_v32  ;;  %v5118_v29 = vld [vmem:[%s5213_s14 + $0x18] sm:$0xff]  }
  0xdd   : > { %4714 = vmatprep.subr.bf16.mxu1 %v5074_v42 }
  0xdf   : > { %4499 = vmatpush3.bf16.msra.mxu0 %v5072_v32  ;;  %v1652_v32 = vshrl.u32 %v5126_v43, 16 }
  0xe0   : > { %4715 = vmatpush3.bf16.msra.mxu1 %v5074_v42  ;;  %4500 = vmatprep.subr.bf16.mxu0 %v5077_v25  ;;  %v1656_v42 = vrot.slane %v1654_v7, 1  ;;  %v1683_v7 = vshll.u32 %v5134_v2, 16 }
  0xe1   : > { %4716 = vmatprep.subr.bf16.mxu1 %v5078_v31 }
  0xe3   : > { %4501 = vmatpush3.bf16.msra.mxu0 %v5077_v25  ;;  %v1659_v25 = vshll.u32 %v5825_v6, 16 }
  0xe4   : > { %4717 = vmatpush3.bf16.msra.mxu1 %v5078_v31  ;;  %4510 = vmatprep.subr.bf16.mxu0 %v5080_v35  ;;  %v3180_v31 = vsel %vm592_vm0, %v3175_v8, %v3179_v9 }
  0xe5   : > { %4726 = vmatprep.subr.bf16.mxu1 %v5082_v36 }
  0xe6   : > { %4503 = vmatmul.mubr.bf16.vlgmr.msra.gmra.mrb[0].mxu0 %v3812_v37  ;;  %v5110_v37 = vld [vmem:[%s5907_s2 + $0x210] sm:$0xff]  }
  0xe7   : > { %4511 = vmatpush3.bf16.msra.mxu0 %v5080_v35  ;;  %4719 = vmatmul.mubr.bf16.vlgmr.msra.gmra.mrb[0].mxu1 %v4053_v38  ;;  %v3367_v35 = vrot.slane %v3365_v56, 1  ;;  %v3183_v38 = vor.u32 %v3181_v21, %v3179_v9  ;;  %v3394_v56 = vshll.u32 %v5135_v45, 16  ;;  %v1685_v21 = vrot.slane %v1683_v7, 1 }
  0xe8   : > { %4727 = vmatpush3.bf16.msra.mxu1 %v5082_v36  ;;  %4512 = vmatprep.subr.bf16.mxu0 %v5083_v41  ;;  %v3370_v36 = vshll.u32 %v5828_v52, 16 }
  0xe9   : > { %4728 = vmatprep.subr.bf16.mxu1 %v5084_v46  ;;  %4506 = vmatprep.mubr.bf16.mxu0 %v3813_v34  ;;  %v1661_v34 = vrot.slane %v1659_v25, 1  ;;  %v3188_v50 = vsel %vm592_vm0, %v3183_v38, %v3187_v39 }
  0xea   : > { %4722 = vmatprep.mubr.bf16.mxu1 %v4054_v44  ;;  %v3368_v44 = vor.u32 %v3367_v35, %v3363_v33  ;;  %v3372_v13 = vrot.slane %v3370_v36, 1 }
  0xeb   : > { %4513 = vmatpush3.bf16.msra.mxu0 %v5083_v41  ;;  %v5120_v41 = vld [vmem:[%s5213_s14 + $0x20] sm:$0xff]  }
  0xec   : > { %4729 = vmatpush3.bf16.msra.mxu1 %v5084_v46  ;;  %4514 = vmatprep.subr.bf16.mxu0 %v5085_v11  ;;  %v1657_v46 = vor.u32 %v1656_v42, %v1652_v32  ;;  %v3373_v17 = vsel %vm592_vm0, %v3368_v44, %v3372_v13  ;;  %v3376_v3 = vor.u32 %v3374_v61, %v3372_v13 }
  0xed   : > { %4730 = vmatprep.subr.bf16.mxu1 %v5086_v18 }
  0xee   : > { %4507 = vmatmul.mubr.bf16.gmra.mrb[4].mxu0 %v3814_v19  ;;  %v5115_v19 = vld [vmem:[%s5907_s2 + $0x220] sm:$0xff]  }
  0xef   : > { %4515 = vmatpush3.bf16.msra.mxu0 %v5085_v11  ;;  %4723 = vmatmul.mubr.bf16.gmra.mrb[4].mxu1 %v4055_v20  ;;  %v1662_v11 = vsel %vm592_vm0, %v1657_v46, %v1661_v34  ;;  %v5116_v20 = vld [vmem:[%s5907_s2 + $0x228] sm:$0xff]   ;;  %v4122_v46 = vld [vmem:[%s5908_s3] ss:$0 sm:$0xff] }
  0xf0   : > { %4731 = vmatpush3.bf16.msra.mxu1 %v5086_v18  ;;  %4516 = vmatprep.subr.bf16.mxu0 %v5087_v22  ;;  %v5114_v18 = vld [vmem:[%s5907_s2 + $0x220] sm:$0xff]  }
  0xf1   : > { %4732 = vmatprep.subr.bf16.mxu1 %v5088_v53  ;;  %4526 = vmatprep.mubr.bf16.mxu0 %v5101_v54  ;;  %v5132_v54 = vld [vmem:[%s5221_s21 + $0x20] sm:$0xff]  }
  0xf2   : > { %4742 = vmatprep.mubr.bf16.mxu1 %v3164_v26  ;;  %v5123_v26 = vld [vmem:[%s5907_s2 + $0x230] sm:$0xff]   ;;  %v1675_v63 = vshll.u32 %v5132_v54, 16 }
  0xf3   : > { %4517 = vmatpush3.bf16.msra.mxu0 %v5087_v22  ;;  %v5131_v22 = vld [vmem:[%s5213_s14 + $0x18] sm:$0xff]  }
  0xf4   : > { %4733 = vmatpush3.bf16.msra.mxu1 %v5088_v53  ;;  %4518 = vmatprep.subr.bf16.mxu0 %v5089_v30  ;;  %v5121_v53 = vld [vmem:[%s5907_s2 + $0x230] sm:$0xff]   ;;  %v3382_v1 = vshrl.u32 %v5131_v22, 16  ;;  %v1677_v5 = vrot.slane %v1675_v63, 1 }
  0xf5   : > { %4734 = vmatprep.subr.bf16.mxu1 %v5090_v57 }
  0xf7   : > { %4519 = vmatpush3.bf16.msra.mxu0 %v5089_v30  ;;  %v5133_v30 = vld [vmem:[%s5213_s14 + $0x20] sm:$0xff]  }
  0xf8   : > { %4735 = vmatpush3.bf16.msra.mxu1 %v5090_v57  ;;  %4520 = vmatprep.subr.bf16.mxu0 %v5091_v58  ;;  %v1667_v57 = vshll.u32 %v5130_v49, 16  ;;  %v3386_v12 = vshll.u32 %v5133_v30, 16  ;;  %v3390_v52 = vshrl.u32 %v5133_v30, 16 }
  0xf9   : > { %4736 = vmatprep.subr.bf16.mxu1 %v5092_v59 }
  0xfb   : > { %4521 = vmatpush3.bf16.msra.mxu0 %v5091_v58  ;;  %v1663_v58 = vshrl.u32 %v5825_v6, 16  ;;  %v1679_v6 = vshrl.u32 %v5132_v54, 16 }
  0xfc   : > { %4737 = vmatpush3.bf16.msra.mxu1 %v5092_v59  ;;  %4522 = vmatprep.subr.bf16.mxu0 %v5094_v60  ;;  %v3378_v59 = vshll.u32 %v5131_v22, 16 }
  0xfd   : > { %4738 = vmatprep.subr.bf16.mxu1 %v5096_v62  ;;  %v1665_v43 = vor.u32 %v1663_v58, %v1661_v34 }
  0xfe   : > { %v3380_v47 = vrot.slane %v3378_v59, 1 }
  0xff   : > { %4523 = vmatpush3.bf16.msra.mxu0 %v5094_v60  ;;  %v5124_v60 = vld [vmem:[%s5907_s2 + $0x238] sm:$0xff]  }
 0x100   : > { %4739 = vmatpush3.bf16.msra.mxu1 %v5096_v62  ;;  %4524 = vmatprep.subr.bf16.mxu0 %v5099_v0  ;;  %v1671_v62 = vshrl.u32 %v5130_v49, 16  ;;  %v3384_v48 = vor.u32 %v3382_v1, %v3380_v47  ;;  %v3381_v8 = vsel %vm592_vm0, %v3376_v3, %v3380_v47 }
 0x101   : > { %4740 = vmatprep.subr.bf16.mxu1 %v5100_v24 }
 0x103   : > { %4525 = vmatpush3.bf16.msra.mxu0 %v5099_v0  ;;  %v5125_v0 = vld [vmem:[%s5907_s2 + $0x238] sm:$0xff]  }
 0x104   : > { %4741 = vmatpush3.bf16.msra.mxu1 %v5100_v24  ;;  %4534 = vmatprep.subr.bf16.mxu0 %v5102_v4  ;;  %v1669_v24 = vrot.slane %v1667_v57, 1 }
 0x105   : > { %4750 = vmatprep.subr.bf16.mxu1 %v5105_v51 }
 0x106   : > { %4527 = vmatmul.mubr.bf16.vlgmr.msra.gmra.mrb[0].mxu0 %v5106_v55  ;;  %v1670_v55 = vsel %vm592_vm0, %v1665_v43, %v1669_v24 }
 0x107   : > { %4535 = vmatpush3.bf16.msra.mxu0 %v5102_v4  ;;  %4743 = vmatmul.mubr.bf16.vlgmr.msra.gmra.mrb[0].mxu1 %v3172_v14  ;;  %v1673_v4 = vor.u32 %v1671_v62, %v1669_v24 }
 0x108   : > { %4751 = vmatpush3.bf16.msra.mxu1 %v5105_v51  ;;  %4536 = vmatprep.subr.bf16.mxu0 %v5108_v16  ;;  %v3388_v51 = vrot.slane %v3386_v12, 1 }
 0x109   : > { %4752 = vmatprep.subr.bf16.mxu1 %v5109_v27  ;;  %4530 = vmatprep.mubr.bf16.mxu0 %v5118_v29  ;;  %v1678_v9 = vsel %vm592_vm0, %v1673_v4, %v1677_v5 }
 0x10a   : > { %4746 = vmatprep.mubr.bf16.mxu1 %v3180_v31  ;;  %v3389_v14 = vsel %vm592_vm0, %v3384_v48, %v3388_v51  ;;  %v3392_v23 = vor.u32 %v3390_v52, %v3388_v51 }
 0x10b   : > { %4537 = vmatpush3.bf16.msra.mxu0 %v5108_v16  ;;  %v1681_v16 = vor.u32 %v1679_v6, %v1677_v5 }
 0x10c   : > { %4753 = vmatpush3.bf16.msra.mxu1 %v5109_v27  ;;  %4538 = vmatprep.subr.bf16.mxu0 %v5110_v37  ;;  %v3396_v27 = vrot.slane %v3394_v56, 1 }
 0x10d   : > { %4754 = vmatprep.subr.bf16.mxu1 %v5111_v40  ;;  %v1686_v29 = vsel %vm592_vm0, %v1681_v16, %v1685_v21 }
 0x10e   : > { %4531 = vmatmul.mubr.bf16.gmra.mrb[4].mxu0 %v5120_v41  ;;  %v3397_v32 = vsel %vm592_vm0, %v3392_v23, %v3396_v27 }
 0x10f   : > { %4539 = vmatpush3.bf16.msra.mxu0 %v5110_v37  ;;  %4747 = vmatmul.mubr.bf16.gmra.mrb[4].mxu1 %v3188_v50 }
 0x110   : > { %4755 = vmatpush3.bf16.msra.mxu1 %v5111_v40  ;;  %4540 = vmatprep.subr.bf16.mxu0 %v5112_v15 }
 0x111   : > { %4756 = vmatprep.subr.bf16.mxu1 %v5113_v10  ;;  %4550 = vmatprep.mubr.bf16.mxu0 %v1662_v11 }
 0x112   : > { %4766 = vmatprep.mubr.bf16.mxu1 %v3373_v17 }
 0x113   : > { %4541 = vmatpush3.bf16.msra.mxu0 %v5112_v15 }
 0x114   : > { %4757 = vmatpush3.bf16.msra.mxu1 %v5113_v10  ;;  %4542 = vmatprep.subr.bf16.mxu0 %v5114_v18 }
 0x115   : > { %4758 = vmatprep.subr.bf16.mxu1 %v5115_v19 }
 0x117   : > { %4543 = vmatpush3.bf16.msra.mxu0 %v5114_v18 }
 0x118   : > { %4759 = vmatpush3.bf16.msra.mxu1 %v5115_v19  ;;  %4544 = vmatprep.subr.bf16.mxu0 %v5116_v20 }
 0x119   : > { %4760 = vmatprep.subr.bf16.mxu1 %v5117_v28 }
 0x11b   : > { %4545 = vmatpush3.bf16.msra.mxu0 %v5116_v20 }
 0x11c   : > { %4761 = vmatpush3.bf16.msra.mxu1 %v5117_v28  ;;  %4546 = vmatprep.subr.bf16.mxu0 %v5121_v53 }
 0x11d   : > { %4762 = vmatprep.subr.bf16.mxu1 %v5123_v26 }
 0x11f   : > { %4547 = vmatpush3.bf16.msra.mxu0 %v5121_v53 }
 0x120   : > { %4763 = vmatpush3.bf16.msra.mxu1 %v5123_v26  ;;  %4548 = vmatprep.subr.bf16.mxu0 %v5124_v60 }
 0x121   : > { %4764 = vmatprep.subr.bf16.mxu1 %v5125_v0 }
 0x123   : > { %4549 = vmatpush3.bf16.msra.mxu0 %v5124_v60 }
 0x124   : > { %4765 = vmatpush3.bf16.msra.mxu1 %v5125_v0 }
 0x126   : > { %4551 = vmatmul.mubr.bf16.vlgmr.msra.gmra.mrb[0].mxu0 %v1670_v55 }
 0x127   : > { %4767 = vmatmul.mubr.bf16.vlgmr.msra.gmra.mrb[0].mxu1 %v3381_v8  ;;  %4554 = vmatprep.mubr.bf16.mxu0 %v1678_v9 }
 0x128   : > { %4770 = vmatprep.mubr.bf16.mxu1 %v3389_v14 }
 0x12e   : > { %4555 = vmatmul.mubr.bf16.gmra.mrb[4].mxu0 %v1686_v29 }
 0x12f   : > { %4771 = vmatmul.mubr.bf16.gmra.mrb[4].mxu1 %v3397_v32 }
 0x1f9   : > { %v4552_v42 = vpop.f32.mrb[0].mxu0 }
 0x1fa   : > { %v4768_v25 = vpop.f32.mrb[0].mxu1  ;;  %v1773_v31 = vpop.f32.mrb[1].mxu0 }
 0x1fb   : > { %v3533_v33 = vmax.f32 %v4552_v42, %v4768_v25  ;;  %v3484_v35 = vpop.f32.mrb[1].mxu1  ;;  %v4553_v36 = vpop.f32.mrb[2].mxu0 }
 0x1fc   : > { %v3531_v37 = vmax.f32 %v1773_v31, %v3484_v35  ;;  %v4769_v38 = vpop.f32.mrb[2].mxu1  ;;  %v1776_v39 = vpop.f32.mrb[3].mxu0 }
 0x1fd   : > { %v3534_v40 = vmax.f32 %v4553_v36, %v4769_v38  ;;  %v3487_v41 = vpop.f32.mrb[3].mxu1 }
 0x1fe   : > { %v3532_v34 = vmax.f32 %v1776_v39, %v3487_v41 }
 0x1ff   : > { %v3540_v44 = vmax.f32 %v3533_v33, %v3534_v40 }
 0x200   : > { %v3539_v13 = vmax.f32 %v3531_v37, %v3532_v34 }
 0x201   : > { %v3550_v15 = vadd.f32 %v4122_v46, %v3540_v44  ;;  %v4556_v50 = vpop.f32.mrb[4].mxu0 }
 0x202   : > { %v3549_v10 = vadd.f32 %v4122_v46, %v3539_v13  ;;  %v4772_v11 = vpop.f32.mrb[4].mxu1  ;;  %v1789_v17 = vpop.f32.mrb[5].mxu0 }
 0x203   : > { %v3554_v18 = vmax.f32 %v3550_v15, 0.0  ;;  %v3537_v19 = vmax.f32 %v4556_v50, %v4772_v11  ;;  %v3500_v20 = vpop.f32.mrb[5].mxu1  ;;  %v4557_v28 = vpop.f32.mrb[6].mxu0 }
 0x204   : > { %v3553_v49 = vmax.f32 %v3549_v10, 0.0  ;;  %v3535_v22 = vmax.f32 %v1789_v17, %v3500_v20  ;;  %v4773_v53 = vpop.f32.mrb[6].mxu1  ;;  %v1792_v54 = vpop.f32.mrb[7].mxu0 }
 0x205   : > { %v3558_v26 = vpack.c.bf16 %v3554_v18, %v3554_v18  ;;  %v3538_v30 = vmax.f32 %v4557_v28, %v4773_v53  ;;  %v3503_v57 = vpop.f32.mrb[7].mxu1 }
 0x206   : > { %v3557_v58 = vpack.c.bf16 %v3553_v49, %v3553_v49  ;;  %v3536_v59 = vmax.f32 %v1792_v54, %v3503_v57 }
 0x207   : > { %3562 = vst [vmem:[%s217_s27 + $0x2] sm:$0x3] %v3558_v26  ;;  %v3542_v60 = vmax.f32 %v3537_v19, %v3538_v30 }
 0x208   : > { %3561 = vst [vmem:[%s217_s27] sm:$0x3] %v3557_v58  ;;  %v3541_v61 = vmax.f32 %v3535_v22, %v3536_v59 }
 0x209   : > { %v3552_v62 = vadd.f32 %v4122_v46, %v3542_v60 }
 0x20a   : > { %v3551_v63 = vadd.f32 %v4122_v46, %v3541_v61 }
 0x20b   : > { %v3556_v0 = vmax.f32 %v3552_v62, 0.0 }
 0x20c   : > { %v3555_v1 = vmax.f32 %v3551_v63, 0.0 }
 0x20d   : > { %v3560_v12 = vpack.c.bf16 %v3556_v0, %v3556_v0 }
 0x20e   : > { %v3559_v24 = vpack.c.bf16 %v3555_v1, %v3555_v1 }
 0x20f   : > { %3564 = vst [vmem:[%s217_s27 + $0x6] sm:$0x3] %v3560_v12 }
 0x210   : > { %3563 = vst [vmem:[%s217_s27 + $0x4] sm:$0x3] %v3559_v24 }
 0x211 PF: > { %s14_s15 = sadd.s32 1, %s5142_s15  }
 0x212   : > { %p11_p4 = scmp.ge.s32.totalorder %s14_s15, 4  }
 0x214   :  { %13 = sbr.rel (!%p11_p4) target bundleno = 1 (0x1), region = 77 }

// kernel: cnn_forward.7
= control target key start
LH: loop header
LB: loop body
LE: loop exit
PB: predicated region body
PF: predicated region fallthrough
CT: control target
= control target key end

     0   :  { %v282_v36 = vlaneseq  ;;  %v2961_v37 = vmov 1966171168   ;;  %s3887_s0 = inlined_call_operand.vmem [shape: bf16[2,2048], index: 0, kind: input, shape index: {}]   ;;  %s3888_s1 = inlined_call_operand.vmem [shape: bf16[2048,256], index: 1, kind: input, shape index: {}]   ;;  %s3889_s2 = inlined_call_operand.vmem [shape: f32[1,256], index: 2, kind: input, shape index: {}]   ;;  %s3890_s3 = inlined_call_operand.vmem [shape: bf16[256,128], index: 3, kind: input, shape index: {}]   ;;  %s3891_s4 = inlined_call_operand.vmem [shape: f32[1,128], index: 4, kind: input, shape index: {}]   ;;  %s3892_s5 = inlined_call_operand.hbm [shape: f32[2,128], index: 5, kind: output, shape index: {}]  }
   0x1   :  { %v2535_v0 = vld [vmem:[%s3888_s1 + $0x4] ss:$8 sps:$4 sm:$0xff]   ;;  %v2539_v2 = vld [vmem:[%s3888_s1] ss:$8 sps:$4 sm:$0xff]   ;;  %v2541_v4 = vld [vmem:[%s3888_s1 + $0x14] ss:$8 sps:$4 sm:$0xff]   ;;  %v296_v38 = vunpack.c.l.s4 %v2961_v37 }
   0x2   :  { %v2537_v1 = vld [vmem:[%s3888_s1 + $0x404] ss:$8 sps:$4 sm:$0xff]   ;;  %1688 = vmatprep.subr.bf16.mxu1 %v2535_v0  ;;  %v2540_v3 = vld [vmem:[%s3888_s1 + $0x400] ss:$8 sps:$4 sm:$0xff]   ;;  %v2543_v5 = vld [vmem:[%s3888_s1 + $0x414] ss:$8 sps:$4 sm:$0xff]  }
   0x3   :  { %1852 = vmatprep.subr.bf16.mxu0 %v2537_v1  ;;  %1689 = vmatpush1.bf16.msra.mxu1 %v2539_v2  ;;  %v2545_v6 = vld [vmem:[%s3888_s1 + $0x10] ss:$8 sps:$4 sm:$0xff]   ;;  %v2547_v8 = vld [vmem:[%s3888_s1 + $0x24] ss:$8 sps:$4 sm:$0xff]   ;;  %v2551_v10 = vld [vmem:[%s3888_s1 + $0x20] ss:$8 sps:$4 sm:$0xff]   ;;  %v297_v43 = vunpack.c.0.s8 %v296_v38 }
   0x4   :  { %1853 = vmatpush1.bf16.msra.mxu0 %v2540_v3  ;;  %1690 = vmatprep.subr.bf16.mxu1 %v2541_v4  ;;  %v2546_v7 = vld [vmem:[%s3888_s1 + $0x410] ss:$8 sps:$4 sm:$0xff]   ;;  %v2549_v9 = vld [vmem:[%s3888_s1 + $0x424] ss:$8 sps:$4 sm:$0xff]   ;;  %v2552_v11 = vld [vmem:[%s3888_s1 + $0x420] ss:$8 sps:$4 sm:$0xff]  }
   0x5   :  { %1854 = vmatprep.subr.bf16.mxu0 %v2543_v5  ;;  %v2553_v12 = vld [vmem:[%s3888_s1 + $0x34] ss:$8 sps:$4 sm:$0xff]   ;;  %v2557_v14 = vld [vmem:[%s3888_s1 + $0x30] ss:$8 sps:$4 sm:$0xff]   ;;  %v2559_v16 = vld [vmem:[%s3888_s1 + $0x44] ss:$8 sps:$4 sm:$0xff]  }
   0x6   :  { %v2555_v13 = vld [vmem:[%s3888_s1 + $0x434] ss:$8 sps:$4 sm:$0xff]   ;;  %v2558_v15 = vld [vmem:[%s3888_s1 + $0x430] ss:$8 sps:$4 sm:$0xff]   ;;  %v2561_v17 = vld [vmem:[%s3888_s1 + $0x444] ss:$8 sps:$4 sm:$0xff]  }
   0x7   :  { %1691 = vmatpush1.bf16.msra.mxu1 %v2545_v6  ;;  %v2563_v18 = vld [vmem:[%s3888_s1 + $0x40] ss:$8 sps:$4 sm:$0xff]   ;;  %v2565_v20 = vld [vmem:[%s3888_s1 + $0x54] ss:$8 sps:$4 sm:$0xff]   ;;  %v2569_v22 = vld [vmem:[%s3888_s1 + $0x50] ss:$8 sps:$4 sm:$0xff]  }
   0x8   :  { %1855 = vmatpush1.bf16.msra.mxu0 %v2546_v7  ;;  %1692 = vmatprep.subr.bf16.mxu1 %v2547_v8  ;;  %v2564_v19 = vld [vmem:[%s3888_s1 + $0x440] ss:$8 sps:$4 sm:$0xff]   ;;  %v2567_v21 = vld [vmem:[%s3888_s1 + $0x454] ss:$8 sps:$4 sm:$0xff]   ;;  %v2570_v23 = vld [vmem:[%s3888_s1 + $0x450] ss:$8 sps:$4 sm:$0xff]  }
   0x9   :  { %1856 = vmatprep.subr.bf16.mxu0 %v2549_v9  ;;  %v2571_v24 = vld [vmem:[%s3888_s1 + $0x64] ss:$8 sps:$4 sm:$0xff]   ;;  %v2575_v26 = vld [vmem:[%s3888_s1 + $0x60] ss:$8 sps:$4 sm:$0xff]   ;;  %v2577_v28 = vld [vmem:[%s3888_s1 + $0x74] ss:$8 sps:$4 sm:$0xff]  }
   0xa   :  { %v2573_v25 = vld [vmem:[%s3888_s1 + $0x464] ss:$8 sps:$4 sm:$0xff]   ;;  %v2576_v27 = vld [vmem:[%s3888_s1 + $0x460] ss:$8 sps:$4 sm:$0xff]   ;;  %v2579_v29 = vld [vmem:[%s3888_s1 + $0x474] ss:$8 sps:$4 sm:$0xff]  }
   0xb   :  { %1693 = vmatpush1.bf16.msra.mxu1 %v2551_v10  ;;  %v2581_v30 = vld [vmem:[%s3888_s1 + $0x70] ss:$8 sps:$4 sm:$0xff]   ;;  %v2583_v32 = vld [vmem:[%s3888_s1 + $0x84] ss:$8 sps:$4 sm:$0xff]   ;;  %v2587_v34 = vld [vmem:[%s3888_s1 + $0x80] ss:$8 sps:$4 sm:$0xff]  }
   0xc   :  { %1857 = vmatpush1.bf16.msra.mxu0 %v2552_v11  ;;  %1694 = vmatprep.subr.bf16.mxu1 %v2553_v12  ;;  %v2582_v31 = vld [vmem:[%s3888_s1 + $0x470] ss:$8 sps:$4 sm:$0xff]   ;;  %v2585_v33 = vld [vmem:[%s3888_s1 + $0x484] ss:$8 sps:$4 sm:$0xff]   ;;  %v2588_v35 = vld [vmem:[%s3888_s1 + $0x480] ss:$8 sps:$4 sm:$0xff]  }
   0xd   :  { %1858 = vmatprep.subr.bf16.mxu0 %v2555_v13  ;;  %v2589_v39 = vld [vmem:[%s3888_s1 + $0x94] ss:$8 sps:$4 sm:$0xff]   ;;  %v2593_v41 = vld [vmem:[%s3888_s1 + $0x90] ss:$8 sps:$4 sm:$0xff]   ;;  %v3110_v42 = vshrl.u32 %v282_v36, 7  ;;  %v22_v52 = vld [vmem:[%s3887_s0] sm:$0xff] }
   0xe   :  { %v2591_v40 = vld [vmem:[%s3888_s1 + $0x494] ss:$8 sps:$4 sm:$0xff]   ;;  %v2594_v44 = vld [vmem:[%s3888_s1 + $0x490] ss:$8 sps:$4 sm:$0xff]   ;;  %v2595_v45 = vld [vmem:[%s3888_s1 + $0xa4] ss:$8 sps:$4 sm:$0xff]   ;;  %v294_v12 = vcombine.high %v22_v52, %v22_v52 }
   0xf   :  { %1695 = vmatpush1.bf16.msra.mxu1 %v2557_v14  ;;  %v2597_v46 = vld [vmem:[%s3888_s1 + $0x4a4] ss:$8 sps:$4 sm:$0xff]   ;;  %v2599_v47 = vld [vmem:[%s3888_s1 + $0xa0] ss:$8 sps:$4 sm:$0xff]   ;;  %v3128_v49 = vsub.s32 %v297_v43, %v3110_v42  ;;  %v2601_v50 = vld [vmem:[%s3888_s1 + $0xb4] ss:$8 sps:$4 sm:$0xff]  }
  0x10   :  { %1859 = vmatpush1.bf16.msra.mxu0 %v2558_v15  ;;  %1696 = vmatprep.subr.bf16.mxu1 %v2559_v16  ;;  %v2600_v48 = vld [vmem:[%s3888_s1 + $0x4a0] ss:$8 sps:$4 sm:$0xff]   ;;  %v2603_v51 = vld [vmem:[%s3888_s1 + $0x4b4] ss:$8 sps:$4 sm:$0xff]   ;;  %v2605_v53 = vld [vmem:[%s3888_s1 + $0xb0] ss:$8 sps:$4 sm:$0xff]  }
  0x11   :  { %1860 = vmatprep.subr.bf16.mxu0 %v2561_v17  ;;  %v301_v54 = vrot.slane %v22_v52, %v3128_v49  ;;  %v2606_v55 = vld [vmem:[%s3888_s1 + $0x4b0] ss:$8 sps:$4 sm:$0xff]   ;;  %v23_v56 = vld [vmem:[%s3887_s0 + $0x8] sm:$0xff]  ;;  %v2613_v1 = vld [vmem:[%s3888_s1 + $0xd4] ss:$8 sps:$4 sm:$0xff]  }
  0x12   :  { %v2607_v57 = vld [vmem:[%s3888_s1 + $0xc4] ss:$8 sps:$4 sm:$0xff]   ;;  %v350_v60 = vrot.slane %v23_v56, %v3128_v49  ;;  %v2611_v63 = vld [vmem:[%s3888_s1 + $0xc0] ss:$8 sps:$4 sm:$0xff]   ;;  %v2615_v2 = vld [vmem:[%s3888_s1 + $0x4d4] ss:$8 sps:$4 sm:$0xff]   ;;  %v343_v13 = vcombine.high %v23_v56, %v23_v56 }
  0x13   :  { %1697 = vmatpush1.bf16.msra.mxu1 %v2563_v18  ;;  %v2609_v58 = vld [vmem:[%s3888_s1 + $0x4c4] ss:$8 sps:$4 sm:$0xff]   ;;  %v309_v59 = vcombine.high %v301_v54, %v301_v54  ;;  %v2612_v0 = vld [vmem:[%s3888_s1 + $0x4c0] ss:$8 sps:$4 sm:$0xff]   ;;  %v2617_v4 = vld [vmem:[%s3888_s1 + $0xd0] ss:$8 sps:$4 sm:$0xff]   ;;  %v308_v18 = vrot.slane %v294_v12, %v3128_v49 }
  0x14   :  { %1861 = vmatpush1.bf16.msra.mxu0 %v2564_v19  ;;  %1698 = vmatprep.subr.bf16.mxu1 %v2565_v20  ;;  %v358_v62 = vcombine.high %v350_v60, %v350_v60  ;;  %v2618_v5 = vld [vmem:[%s3888_s1 + $0x4d0] ss:$8 sps:$4 sm:$0xff]   ;;  %v2619_v6 = vld [vmem:[%s3888_s1 + $0xe4] ss:$8 sps:$4 sm:$0xff]   ;;  %v2623_v8 = vld [vmem:[%s3888_s1 + $0xe0] ss:$8 sps:$4 sm:$0xff]   ;;  %v357_v19 = vrot.slane %v343_v13, %v3128_v49  ;;  %v3212_v20 = vrot.slane %v301_v54, %v3128_v49 }
  0x15   :  { %1862 = vmatprep.subr.bf16.mxu0 %v2567_v21  ;;  %v3157_v61 = vrot.slane %v309_v59, %v3128_v49  ;;  %v2621_v7 = vld [vmem:[%s3888_s1 + $0x4e4] ss:$8 sps:$4 sm:$0xff]   ;;  %v2624_v9 = vld [vmem:[%s3888_s1 + $0x4e0] ss:$8 sps:$4 sm:$0xff]   ;;  %v2625_v10 = vld [vmem:[%s3888_s1 + $0xf4] ss:$8 sps:$4 sm:$0xff]   ;;  %v3215_v21 = vrot.slane %v350_v60, %v3128_v49 }
  0x16   :  { %v380_v3 = vrot.slane %v358_v62, %v3128_v49  ;;  %v2627_v11 = vld [vmem:[%s3888_s1 + $0x4f4] ss:$8 sps:$4 sm:$0xff]   ;;  %v2629_v14 = vld [vmem:[%s3888_s1 + $0xf0] ss:$8 sps:$4 sm:$0xff]   ;;  %v2634_v16 = vld [vmem:[%s3888_s1 + $0x104] ss:$8 sps:$4 sm:$0xff]  }
  0x17   :  { %1699 = vmatpush1.bf16.msra.mxu1 %v2569_v22  ;;  %1720 = vmatprep.mubr.bf16.mxu1 %v3157_v61  ;;  %v2630_v15 = vld [vmem:[%s3888_s1 + $0x4f0] ss:$8 sps:$4 sm:$0xff]   ;;  %v2638_v17 = vld [vmem:[%s3888_s1 + $0x504] ss:$8 sps:$4 sm:$0xff]   ;;  %v310_v22 = vcombine.high %v308_v18, %v308_v18  ;;  %v2645_v38 = vld [vmem:[%s3888_s1 + $0x120] ss:$8 sps:$4 sm:$0xff]  }
  0x18   :  { %1863 = vmatpush1.bf16.msra.mxu0 %v2570_v23  ;;  %1700 = vmatprep.subr.bf16.mxu1 %v2571_v24  ;;  %v359_v23 = vcombine.high %v357_v19, %v357_v19  ;;  %v2632_v24 = vld [vmem:[%s3888_s1 + $0x100] ss:$8 sps:$4 sm:$0xff]   ;;  %v2647_v36 = vld [vmem:[%s3888_s1 + $0x124] ss:$8 sps:$4 sm:$0xff]   ;;  %v2651_v43 = vld [vmem:[%s3888_s1 + $0x130] ss:$8 sps:$4 sm:$0xff]  }
  0x19   :  { %1864 = vmatprep.subr.bf16.mxu0 %v2573_v25  ;;  %1884 = vmatprep.mubr.bf16.mxu0 %v380_v3  ;;  %v2636_v25 = vld [vmem:[%s3888_s1 + $0x500] ss:$8 sps:$4 sm:$0xff]   ;;  %v2650_v37 = vld [vmem:[%s3888_s1 + $0x524] ss:$8 sps:$4 sm:$0xff]   ;;  %v2666_v52 = vld [vmem:[%s3888_s1 + $0x550] ss:$8 sps:$4 sm:$0xff]  }
  0x1a   :  { %v2674_v54 = vld [vmem:[%s3888_s1 + $0x564] ss:$8 sps:$4 sm:$0xff]   ;;  %v2672_v56 = vld [vmem:[%s3888_s1 + $0x560] ss:$8 sps:$4 sm:$0xff]   ;;  %v2675_v59 = vld [vmem:[%s3888_s1 + $0x170] ss:$8 sps:$4 sm:$0xff]  }
  0x1b   :  { %1701 = vmatpush1.bf16.msra.mxu1 %v2575_v26  ;;  %v2641_v26 = vld [vmem:[%s3888_s1 + $0x114] ss:$8 sps:$4 sm:$0xff]   ;;  %v2678_v60 = vld [vmem:[%s3888_s1 + $0x570] ss:$8 sps:$4 sm:$0xff]   ;;  %v2686_v62 = vld [vmem:[%s3888_s1 + $0x584] ss:$8 sps:$4 sm:$0xff]  }
  0x1c   :  { %1865 = vmatpush1.bf16.msra.mxu0 %v2576_v27  ;;  %1702 = vmatprep.subr.bf16.mxu1 %v2577_v28  ;;  %v2644_v27 = vld [vmem:[%s3888_s1 + $0x514] ss:$8 sps:$4 sm:$0xff]   ;;  %v3230_v28 = vrot.slane %v310_v22, %v3128_v49  ;;  %v2702_v12 = vld [vmem:[%s3888_s1 + $0x5b0] ss:$8 sps:$4 sm:$0xff]   ;;  %v2707_v13 = vld [vmem:[%s3888_s1 + $0x1c4] ss:$8 sps:$4 sm:$0xff]  }
  0x1d   :  { %1866 = vmatprep.subr.bf16.mxu0 %v2579_v29  ;;  %v3233_v29 = vrot.slane %v359_v23, %v3128_v49  ;;  %v2714_v22 = vld [vmem:[%s3888_s1 + $0x5d0] ss:$8 sps:$4 sm:$0xff]   ;;  %v2719_v23 = vld [vmem:[%s3888_s1 + $0x1e4] ss:$8 sps:$4 sm:$0xff]  }
  0x1f   :  { %1703 = vmatpush1.bf16.msra.mxu1 %v2581_v30  ;;  %v3236_v30 = vrot.slane %v308_v18, %v3128_v49  ;;  %v2716_v18 = vld [vmem:[%s3888_s1 + $0x5d4] ss:$8 sps:$4 sm:$0xff]  }
  0x20   :  { %1867 = vmatpush1.bf16.msra.mxu0 %v2582_v31  ;;  %1704 = vmatprep.subr.bf16.mxu1 %v2583_v32  ;;  %v341_v31 = vcombine.high %v3157_v61, %v3157_v61  ;;  %v390_v32 = vcombine.high %v380_v3, %v380_v3  ;;  %v2683_v61 = vld [vmem:[%s3888_s1 + $0x184] ss:$8 sps:$4 sm:$0xff]   ;;  %v2687_v3 = vld [vmem:[%s3888_s1 + $0x190] ss:$8 sps:$4 sm:$0xff]  }
  0x21   :  { %1868 = vmatprep.subr.bf16.mxu0 %v2585_v33  ;;  %v3241_v33 = vrot.slane %v357_v19, %v3128_v49  ;;  %v2665_v49 = vld [vmem:[%s3888_s1 + $0x154] ss:$8 sps:$4 sm:$0xff]   ;;  %v2711_v19 = vld [vmem:[%s3888_s1 + $0x1d0] ss:$8 sps:$4 sm:$0xff]  }
  0x23   :  { %1705 = vmatpush1.bf16.msra.mxu1 %v2587_v34  ;;  %v2639_v34 = vld [vmem:[%s3888_s1 + $0x110] ss:$8 sps:$4 sm:$0xff]  }
  0x24   :  { %1869 = vmatpush1.bf16.msra.mxu0 %v2588_v35  ;;  %1706 = vmatprep.subr.bf16.mxu1 %v2589_v39  ;;  %v2642_v35 = vld [vmem:[%s3888_s1 + $0x510] ss:$8 sps:$4 sm:$0xff]   ;;  %v2648_v39 = vld [vmem:[%s3888_s1 + $0x520] ss:$8 sps:$4 sm:$0xff]  }
  0x25   :  { %1870 = vmatprep.subr.bf16.mxu0 %v2591_v40  ;;  %v2653_v40 = vld [vmem:[%s3888_s1 + $0x134] ss:$8 sps:$4 sm:$0xff]  }
  0x27   :  { %1707 = vmatpush1.bf16.msra.mxu1 %v2593_v41  ;;  %v2656_v41 = vld [vmem:[%s3888_s1 + $0x534] ss:$8 sps:$4 sm:$0xff]  }
  0x28   :  { %1871 = vmatpush1.bf16.msra.mxu0 %v2594_v44  ;;  %1708 = vmatprep.subr.bf16.mxu1 %v2595_v45  ;;  %v2654_v44 = vld [vmem:[%s3888_s1 + $0x530] ss:$8 sps:$4 sm:$0xff]   ;;  %v2659_v45 = vld [vmem:[%s3888_s1 + $0x144] ss:$8 sps:$4 sm:$0xff]  }
  0x29   :  { %1872 = vmatprep.subr.bf16.mxu0 %v2597_v46  ;;  %v2662_v46 = vld [vmem:[%s3888_s1 + $0x544] ss:$8 sps:$4 sm:$0xff]  }
  0x2b   :  { %1709 = vmatpush1.bf16.msra.mxu1 %v2599_v47  ;;  %v2657_v47 = vld [vmem:[%s3888_s1 + $0x140] ss:$8 sps:$4 sm:$0xff]  }
  0x2c   :  { %1873 = vmatpush1.bf16.msra.mxu0 %v2600_v48  ;;  %1710 = vmatprep.subr.bf16.mxu1 %v2601_v50  ;;  %v2660_v48 = vld [vmem:[%s3888_s1 + $0x540] ss:$8 sps:$4 sm:$0xff]   ;;  %v2668_v50 = vld [vmem:[%s3888_s1 + $0x554] ss:$8 sps:$4 sm:$0xff]  }
  0x2d   :  { %1874 = vmatprep.subr.bf16.mxu0 %v2603_v51  ;;  %v2663_v51 = vld [vmem:[%s3888_s1 + $0x150] ss:$8 sps:$4 sm:$0xff]  }
  0x2f   :  { %1711 = vmatpush1.bf16.msra.mxu1 %v2605_v53  ;;  %v2671_v53 = vld [vmem:[%s3888_s1 + $0x164] ss:$8 sps:$4 sm:$0xff]  }
  0x30   :  { %1875 = vmatpush1.bf16.msra.mxu0 %v2606_v55  ;;  %1712 = vmatprep.subr.bf16.mxu1 %v2607_v57  ;;  %v2669_v55 = vld [vmem:[%s3888_s1 + $0x160] ss:$8 sps:$4 sm:$0xff]   ;;  %v2677_v57 = vld [vmem:[%s3888_s1 + $0x174] ss:$8 sps:$4 sm:$0xff]  }
  0x31   :  { %1876 = vmatprep.subr.bf16.mxu0 %v2609_v58  ;;  %v2680_v58 = vld [vmem:[%s3888_s1 + $0x574] ss:$8 sps:$4 sm:$0xff]  }
  0x33   :  { %1713 = vmatpush1.bf16.msra.mxu1 %v2611_v63  ;;  %v2681_v63 = vld [vmem:[%s3888_s1 + $0x180] ss:$8 sps:$4 sm:$0xff]  }
  0x34   :  { %1877 = vmatpush1.bf16.msra.mxu0 %v2612_v0  ;;  %1714 = vmatprep.subr.bf16.mxu1 %v2613_v1  ;;  %v2684_v0 = vld [vmem:[%s3888_s1 + $0x580] ss:$8 sps:$4 sm:$0xff]   ;;  %v2689_v1 = vld [vmem:[%s3888_s1 + $0x194] ss:$8 sps:$4 sm:$0xff]  }
  0x35   :  { %1878 = vmatprep.subr.bf16.mxu0 %v2615_v2  ;;  %v2692_v2 = vld [vmem:[%s3888_s1 + $0x594] ss:$8 sps:$4 sm:$0xff]  }
  0x37   :  { %1715 = vmatpush1.bf16.msra.mxu1 %v2617_v4  ;;  %v2690_v4 = vld [vmem:[%s3888_s1 + $0x590] ss:$8 sps:$4 sm:$0xff]  }
  0x38   :  { %1879 = vmatpush1.bf16.msra.mxu0 %v2618_v5  ;;  %1716 = vmatprep.subr.bf16.mxu1 %v2619_v6  ;;  %v2695_v5 = vld [vmem:[%s3888_s1 + $0x1a4] ss:$8 sps:$4 sm:$0xff]  }
  0x39   :  { %1880 = vmatprep.subr.bf16.mxu0 %v2621_v7  ;;  %v2698_v6 = vld [vmem:[%s3888_s1 + $0x5a4] ss:$8 sps:$4 sm:$0xff]   ;;  %v2693_v7 = vld [vmem:[%s3888_s1 + $0x1a0] ss:$8 sps:$4 sm:$0xff]  }
  0x3b   :  { %1717 = vmatpush1.bf16.msra.mxu1 %v2623_v8  ;;  %v2696_v8 = vld [vmem:[%s3888_s1 + $0x5a0] ss:$8 sps:$4 sm:$0xff]  }
  0x3c   :  { %1881 = vmatpush1.bf16.msra.mxu0 %v2624_v9  ;;  %1718 = vmatprep.subr.bf16.mxu1 %v2625_v10  ;;  %v2701_v9 = vld [vmem:[%s3888_s1 + $0x1b4] ss:$8 sps:$4 sm:$0xff]  }
  0x3d   :  { %1882 = vmatprep.subr.bf16.mxu0 %v2627_v11  ;;  %v2704_v10 = vld [vmem:[%s3888_s1 + $0x5b4] ss:$8 sps:$4 sm:$0xff]   ;;  %v2699_v11 = vld [vmem:[%s3888_s1 + $0x1b0] ss:$8 sps:$4 sm:$0xff]  }
  0x3f   :  { %1719 = vmatpush1.bf16.msra.mxu1 %v2629_v14  ;;  %v2710_v14 = vld [vmem:[%s3888_s1 + $0x5c4] ss:$8 sps:$4 sm:$0xff]  }
  0x40   :  { %1883 = vmatpush1.bf16.msra.mxu0 %v2630_v15  ;;  %1729 = vmatprep.subr.bf16.mxu1 %v2634_v16  ;;  %v2705_v15 = vld [vmem:[%s3888_s1 + $0x1c0] ss:$8 sps:$4 sm:$0xff]  }
  0x41   :  { %1893 = vmatprep.subr.bf16.mxu0 %v2638_v17  ;;  %v2708_v16 = vld [vmem:[%s3888_s1 + $0x5c0] ss:$8 sps:$4 sm:$0xff]   ;;  %v2713_v17 = vld [vmem:[%s3888_s1 + $0x1d4] ss:$8 sps:$4 sm:$0xff]  }
  0x42   :  { %1721 = vmatmul.mubr.bf16.vlgmr.msra.gmra.mrb[0].mxu1 %v3212_v20 }
  0x43   :  { %1885 = vmatmul.mubr.bf16.vlgmr.msra.gmra.mrb[0].mxu0 %v3215_v21  ;;  %1730 = vmatpush1.bf16.msra.mxu1 %v2632_v24  ;;  %v2722_v24 = vld [vmem:[%s3888_s1 + $0x5e4] ss:$8 sps:$4 sm:$0xff]  }
  0x44   :  { %1894 = vmatpush1.bf16.msra.mxu0 %v2636_v25  ;;  %1731 = vmatprep.subr.bf16.mxu1 %v2641_v26  ;;  %v2717_v25 = vld [vmem:[%s3888_s1 + $0x1e0] ss:$8 sps:$4 sm:$0xff]  }
  0x45   :  { %1895 = vmatprep.subr.bf16.mxu0 %v2644_v27  ;;  %1761 = vmatprep.mubr.bf16.mxu1 %v341_v31  ;;  %v2720_v26 = vld [vmem:[%s3888_s1 + $0x5e0] ss:$8 sps:$4 sm:$0xff]   ;;  %v2725_v27 = vld [vmem:[%s3888_s1 + $0x1f4] ss:$8 sps:$4 sm:$0xff]  }
  0x46   :  { %1925 = vmatprep.mubr.bf16.mxu0 %v390_v32  ;;  %v2728_v31 = vld [vmem:[%s3888_s1 + $0x5f4] ss:$8 sps:$4 sm:$0xff]   ;;  %v2723_v32 = vld [vmem:[%s3888_s1 + $0x1f0] ss:$8 sps:$4 sm:$0xff]  }
  0x47   :  { %1732 = vmatpush1.bf16.msra.mxu1 %v2639_v34  ;;  %v2726_v34 = vld [vmem:[%s3888_s1 + $0x5f0] ss:$8 sps:$4 sm:$0xff]  }
  0x48   :  { %1896 = vmatpush1.bf16.msra.mxu0 %v2642_v35  ;;  %1733 = vmatprep.subr.bf16.mxu1 %v2647_v36  ;;  %v2731_v35 = vld [vmem:[%s3888_s1 + $0x204] ss:$8 sps:$4 sm:$0xff]  }
  0x49   :  { %1897 = vmatprep.subr.bf16.mxu0 %v2650_v37  ;;  %v2734_v36 = vld [vmem:[%s3888_s1 + $0x604] ss:$8 sps:$4 sm:$0xff]   ;;  %v339_v37 = vcombine.high %v3212_v20, %v3212_v20  ;;  %v2740_v20 = vld [vmem:[%s3888_s1 + $0x614] ss:$8 sps:$4 sm:$0xff]  }
  0x4b   :  { %1734 = vmatpush1.bf16.msra.mxu1 %v2645_v38  ;;  %v388_v38 = vcombine.high %v3215_v21, %v3215_v21  ;;  %v2735_v21 = vld [vmem:[%s3888_s1 + $0x210] ss:$8 sps:$4 sm:$0xff]  }
  0x4c   :  { %1898 = vmatpush1.bf16.msra.mxu0 %v2648_v39  ;;  %1735 = vmatprep.subr.bf16.mxu1 %v2653_v40  ;;  %v2729_v39 = vld [vmem:[%s3888_s1 + $0x200] ss:$8 sps:$4 sm:$0xff]  }
  0x4d   :  { %1899 = vmatprep.subr.bf16.mxu0 %v2656_v41  ;;  %v2732_v40 = vld [vmem:[%s3888_s1 + $0x600] ss:$8 sps:$4 sm:$0xff]   ;;  %v2737_v41 = vld [vmem:[%s3888_s1 + $0x214] ss:$8 sps:$4 sm:$0xff]  }
  0x4f   :  { %1736 = vmatpush1.bf16.msra.mxu1 %v2651_v43  ;;  %v2738_v43 = vld [vmem:[%s3888_s1 + $0x610] ss:$8 sps:$4 sm:$0xff]  }
  0x50   :  { %1900 = vmatpush1.bf16.msra.mxu0 %v2654_v44  ;;  %1737 = vmatprep.subr.bf16.mxu1 %v2659_v45  ;;  %v2743_v44 = vld [vmem:[%s3888_s1 + $0x224] ss:$8 sps:$4 sm:$0xff]  }
  0x51   :  { %1901 = vmatprep.subr.bf16.mxu0 %v2662_v46  ;;  %v2746_v45 = vld [vmem:[%s3888_s1 + $0x624] ss:$8 sps:$4 sm:$0xff]   ;;  %v2741_v46 = vld [vmem:[%s3888_s1 + $0x220] ss:$8 sps:$4 sm:$0xff]  }
  0x53   :  { %1738 = vmatpush1.bf16.msra.mxu1 %v2657_v47  ;;  %v2744_v47 = vld [vmem:[%s3888_s1 + $0x620] ss:$8 sps:$4 sm:$0xff]  }
  0x54   :  { %1902 = vmatpush1.bf16.msra.mxu0 %v2660_v48  ;;  %1739 = vmatprep.subr.bf16.mxu1 %v2665_v49  ;;  %v2749_v48 = vld [vmem:[%s3888_s1 + $0x234] ss:$8 sps:$4 sm:$0xff]  }
  0x55   :  { %1903 = vmatprep.subr.bf16.mxu0 %v2668_v50  ;;  %v2752_v49 = vld [vmem:[%s3888_s1 + $0x634] ss:$8 sps:$4 sm:$0xff]   ;;  %v2747_v50 = vld [vmem:[%s3888_s1 + $0x230] ss:$8 sps:$4 sm:$0xff]  }
  0x57   :  { %1740 = vmatpush1.bf16.msra.mxu1 %v2663_v51  ;;  %v2750_v51 = vld [vmem:[%s3888_s1 + $0x630] ss:$8 sps:$4 sm:$0xff]  }
  0x58   :  { %1904 = vmatpush1.bf16.msra.mxu0 %v2666_v52  ;;  %1741 = vmatprep.subr.bf16.mxu1 %v2671_v53  ;;  %v2755_v52 = vld [vmem:[%s3888_s1 + $0x244] ss:$8 sps:$4 sm:$0xff]  }
  0x59   :  { %1905 = vmatprep.subr.bf16.mxu0 %v2674_v54  ;;  %v2758_v53 = vld [vmem:[%s3888_s1 + $0x644] ss:$8 sps:$4 sm:$0xff]   ;;  %v2753_v54 = vld [vmem:[%s3888_s1 + $0x240] ss:$8 sps:$4 sm:$0xff]  }
  0x5b   :  { %1742 = vmatpush1.bf16.msra.mxu1 %v2669_v55  ;;  %v2756_v55 = vld [vmem:[%s3888_s1 + $0x640] ss:$8 sps:$4 sm:$0xff]  }
  0x5c   :  { %1906 = vmatpush1.bf16.msra.mxu0 %v2672_v56  ;;  %1743 = vmatprep.subr.bf16.mxu1 %v2677_v57  ;;  %v2761_v56 = vld [vmem:[%s3888_s1 + $0x254] ss:$8 sps:$4 sm:$0xff]  }
  0x5d   :  { %1907 = vmatprep.subr.bf16.mxu0 %v2680_v58  ;;  %v2764_v57 = vld [vmem:[%s3888_s1 + $0x654] ss:$8 sps:$4 sm:$0xff]   ;;  %v2759_v58 = vld [vmem:[%s3888_s1 + $0x250] ss:$8 sps:$4 sm:$0xff]  }
  0x5f   :  { %1744 = vmatpush1.bf16.msra.mxu1 %v2675_v59  ;;  %v2762_v59 = vld [vmem:[%s3888_s1 + $0x650] ss:$8 sps:$4 sm:$0xff]  }
  0x60   :  { %1908 = vmatpush1.bf16.msra.mxu0 %v2678_v60  ;;  %1745 = vmatprep.subr.bf16.mxu1 %v2683_v61  ;;  %v2767_v60 = vld [vmem:[%s3888_s1 + $0x264] ss:$8 sps:$4 sm:$0xff]  }
  0x61   :  { %1909 = vmatprep.subr.bf16.mxu0 %v2686_v62  ;;  %v2770_v61 = vld [vmem:[%s3888_s1 + $0x664] ss:$8 sps:$4 sm:$0xff]   ;;  %v2765_v62 = vld [vmem:[%s3888_s1 + $0x260] ss:$8 sps:$4 sm:$0xff]  }
  0x63   :  { %1746 = vmatpush1.bf16.msra.mxu1 %v2681_v63  ;;  %v2768_v63 = vld [vmem:[%s3888_s1 + $0x660] ss:$8 sps:$4 sm:$0xff]  }
  0x64   :  { %1910 = vmatpush1.bf16.msra.mxu0 %v2684_v0  ;;  %1747 = vmatprep.subr.bf16.mxu1 %v2689_v1  ;;  %v2773_v0 = vld [vmem:[%s3888_s1 + $0x274] ss:$8 sps:$4 sm:$0xff]  }
  0x65   :  { %1911 = vmatprep.subr.bf16.mxu0 %v2692_v2  ;;  %v2776_v1 = vld [vmem:[%s3888_s1 + $0x674] ss:$8 sps:$4 sm:$0xff]   ;;  %v2771_v2 = vld [vmem:[%s3888_s1 + $0x270] ss:$8 sps:$4 sm:$0xff]  }
  0x67   :  { %1748 = vmatpush1.bf16.msra.mxu1 %v2687_v3  ;;  %v2774_v3 = vld [vmem:[%s3888_s1 + $0x670] ss:$8 sps:$4 sm:$0xff]  }
  0x68   :  { %1912 = vmatpush1.bf16.msra.mxu0 %v2690_v4  ;;  %1749 = vmatprep.subr.bf16.mxu1 %v2695_v5  ;;  %v2779_v4 = vld [vmem:[%s3888_s1 + $0x284] ss:$8 sps:$4 sm:$0xff]  }
  0x69   :  { %1913 = vmatprep.subr.bf16.mxu0 %v2698_v6  ;;  %v2782_v5 = vld [vmem:[%s3888_s1 + $0x684] ss:$8 sps:$4 sm:$0xff]   ;;  %v2777_v6 = vld [vmem:[%s3888_s1 + $0x280] ss:$8 sps:$4 sm:$0xff]  }
  0x6b   :  { %1750 = vmatpush1.bf16.msra.mxu1 %v2693_v7  ;;  %v2780_v7 = vld [vmem:[%s3888_s1 + $0x680] ss:$8 sps:$4 sm:$0xff]  }
  0x6c   :  { %1914 = vmatpush1.bf16.msra.mxu0 %v2696_v8  ;;  %1751 = vmatprep.subr.bf16.mxu1 %v2701_v9  ;;  %v2785_v8 = vld [vmem:[%s3888_s1 + $0x294] ss:$8 sps:$4 sm:$0xff]  }
  0x6d   :  { %1915 = vmatprep.subr.bf16.mxu0 %v2704_v10  ;;  %v2788_v9 = vld [vmem:[%s3888_s1 + $0x694] ss:$8 sps:$4 sm:$0xff]   ;;  %v2783_v10 = vld [vmem:[%s3888_s1 + $0x290] ss:$8 sps:$4 sm:$0xff]  }
  0x6f   :  { %1752 = vmatpush1.bf16.msra.mxu1 %v2699_v11  ;;  %v2786_v11 = vld [vmem:[%s3888_s1 + $0x690] ss:$8 sps:$4 sm:$0xff]  }
  0x70   :  { %1916 = vmatpush1.bf16.msra.mxu0 %v2702_v12  ;;  %1753 = vmatprep.subr.bf16.mxu1 %v2707_v13  ;;  %v2791_v12 = vld [vmem:[%s3888_s1 + $0x2a4] ss:$8 sps:$4 sm:$0xff]  }
  0x71   :  { %1917 = vmatprep.subr.bf16.mxu0 %v2710_v14  ;;  %v2794_v13 = vld [vmem:[%s3888_s1 + $0x6a4] ss:$8 sps:$4 sm:$0xff]   ;;  %v2789_v14 = vld [vmem:[%s3888_s1 + $0x2a0] ss:$8 sps:$4 sm:$0xff]  }
  0x73   :  { %1754 = vmatpush1.bf16.msra.mxu1 %v2705_v15  ;;  %v2792_v15 = vld [vmem:[%s3888_s1 + $0x6a0] ss:$8 sps:$4 sm:$0xff]  }
  0x74   :  { %1918 = vmatpush1.bf16.msra.mxu0 %v2708_v16  ;;  %1755 = vmatprep.subr.bf16.mxu1 %v2713_v17  ;;  %v2797_v16 = vld [vmem:[%s3888_s1 + $0x2b4] ss:$8 sps:$4 sm:$0xff]  }
  0x75   :  { %1919 = vmatprep.subr.bf16.mxu0 %v2716_v18  ;;  %v2800_v17 = vld [vmem:[%s3888_s1 + $0x6b4] ss:$8 sps:$4 sm:$0xff]   ;;  %v2795_v18 = vld [vmem:[%s3888_s1 + $0x2b0] ss:$8 sps:$4 sm:$0xff]  }
  0x77   :  { %1756 = vmatpush1.bf16.msra.mxu1 %v2711_v19  ;;  %v2798_v19 = vld [vmem:[%s3888_s1 + $0x6b0] ss:$8 sps:$4 sm:$0xff]  }
  0x78   :  { %1920 = vmatpush1.bf16.msra.mxu0 %v2714_v22  ;;  %1757 = vmatprep.subr.bf16.mxu1 %v2719_v23  ;;  %v2803_v22 = vld [vmem:[%s3888_s1 + $0x2c4] ss:$8 sps:$4 sm:$0xff]  }
  0x79   :  { %1921 = vmatprep.subr.bf16.mxu0 %v2722_v24  ;;  %v2806_v23 = vld [vmem:[%s3888_s1 + $0x6c4] ss:$8 sps:$4 sm:$0xff]   ;;  %v2801_v24 = vld [vmem:[%s3888_s1 + $0x2c0] ss:$8 sps:$4 sm:$0xff]  }
  0x7b   :  { %1758 = vmatpush1.bf16.msra.mxu1 %v2717_v25  ;;  %v2804_v25 = vld [vmem:[%s3888_s1 + $0x6c0] ss:$8 sps:$4 sm:$0xff]  }
  0x7c   :  { %1922 = vmatpush1.bf16.msra.mxu0 %v2720_v26  ;;  %1759 = vmatprep.subr.bf16.mxu1 %v2725_v27  ;;  %v2809_v26 = vld [vmem:[%s3888_s1 + $0x2d4] ss:$8 sps:$4 sm:$0xff]  }
  0x7d   :  { %1923 = vmatprep.subr.bf16.mxu0 %v2728_v31  ;;  %v2812_v27 = vld [vmem:[%s3888_s1 + $0x6d4] ss:$8 sps:$4 sm:$0xff]   ;;  %v2807_v31 = vld [vmem:[%s3888_s1 + $0x2d0] ss:$8 sps:$4 sm:$0xff]  }
  0x7f   :  { %1760 = vmatpush1.bf16.msra.mxu1 %v2723_v32  ;;  %v2810_v32 = vld [vmem:[%s3888_s1 + $0x6d0] ss:$8 sps:$4 sm:$0xff]  }
  0x80   :  { %1924 = vmatpush1.bf16.msra.mxu0 %v2726_v34  ;;  %1770 = vmatprep.subr.bf16.mxu1 %v2731_v35  ;;  %v2815_v34 = vld [vmem:[%s3888_s1 + $0x2e4] ss:$8 sps:$4 sm:$0xff]  }
  0x81   :  { %1934 = vmatprep.subr.bf16.mxu0 %v2734_v36  ;;  %v2818_v35 = vld [vmem:[%s3888_s1 + $0x6e4] ss:$8 sps:$4 sm:$0xff]   ;;  %v2813_v36 = vld [vmem:[%s3888_s1 + $0x2e0] ss:$8 sps:$4 sm:$0xff]  }
  0x82   :  { %1762 = vmatmul.mubr.bf16.vlgmr.msra.gmra.mrb[0].mxu1 %v339_v37  ;;  %v2816_v37 = vld [vmem:[%s3888_s1 + $0x6e0] ss:$8 sps:$4 sm:$0xff]  }
  0x83   :  { %1926 = vmatmul.mubr.bf16.vlgmr.msra.gmra.mrb[0].mxu0 %v388_v38  ;;  %1771 = vmatpush1.bf16.msra.mxu1 %v2729_v39  ;;  %v2821_v38 = vld [vmem:[%s3888_s1 + $0x2f4] ss:$8 sps:$4 sm:$0xff]  }
  0x84   :  { %1935 = vmatpush1.bf16.msra.mxu0 %v2732_v40  ;;  %1772 = vmatprep.subr.bf16.mxu1 %v2737_v41  ;;  %v2824_v39 = vld [vmem:[%s3888_s1 + $0x6f4] ss:$8 sps:$4 sm:$0xff]  }
  0x85   :  { %1936 = vmatprep.subr.bf16.mxu0 %v2740_v20  ;;  %1802 = vmatprep.mubr.bf16.mxu1 %v3230_v28 }
  0x86   :  { %1966 = vmatprep.mubr.bf16.mxu0 %v3233_v29 }
  0x87   :  { %1773 = vmatpush1.bf16.msra.mxu1 %v2735_v21 }
  0x88   :  { %1937 = vmatpush1.bf16.msra.mxu0 %v2738_v43  ;;  %1774 = vmatprep.subr.bf16.mxu1 %v2743_v44 }
  0x89   :  { %1938 = vmatprep.subr.bf16.mxu0 %v2746_v45 }
  0x8b   :  { %1775 = vmatpush1.bf16.msra.mxu1 %v2741_v46 }
  0x8c   :  { %1939 = vmatpush1.bf16.msra.mxu0 %v2744_v47  ;;  %1776 = vmatprep.subr.bf16.mxu1 %v2749_v48 }
  0x8d   :  { %1940 = vmatprep.subr.bf16.mxu0 %v2752_v49 }
  0x8f   :  { %1777 = vmatpush1.bf16.msra.mxu1 %v2747_v50 }
  0x90   :  { %1941 = vmatpush1.bf16.msra.mxu0 %v2750_v51  ;;  %1778 = vmatprep.subr.bf16.mxu1 %v2755_v52 }
  0x91   :  { %1942 = vmatprep.subr.bf16.mxu0 %v2758_v53 }
  0x93   :  { %1779 = vmatpush1.bf16.msra.mxu1 %v2753_v54 }
  0x94   :  { %1943 = vmatpush1.bf16.msra.mxu0 %v2756_v55  ;;  %1780 = vmatprep.subr.bf16.mxu1 %v2761_v56 }
  0x95   :  { %1944 = vmatprep.subr.bf16.mxu0 %v2764_v57 }
  0x97   :  { %1781 = vmatpush1.bf16.msra.mxu1 %v2759_v58 }
  0x98   :  { %1945 = vmatpush1.bf16.msra.mxu0 %v2762_v59  ;;  %1782 = vmatprep.subr.bf16.mxu1 %v2767_v60 }
  0x99   :  { %1946 = vmatprep.subr.bf16.mxu0 %v2770_v61 }
  0x9b   :  { %1783 = vmatpush1.bf16.msra.mxu1 %v2765_v62 }
  0x9c   :  { %1947 = vmatpush1.bf16.msra.mxu0 %v2768_v63  ;;  %1784 = vmatprep.subr.bf16.mxu1 %v2773_v0 }
  0x9d   :  { %1948 = vmatprep.subr.bf16.mxu0 %v2776_v1 }
  0x9f   :  { %1785 = vmatpush1.bf16.msra.mxu1 %v2771_v2 }
  0xa0   :  { %1949 = vmatpush1.bf16.msra.mxu0 %v2774_v3  ;;  %1786 = vmatprep.subr.bf16.mxu1 %v2779_v4 }
  0xa1   :  { %1950 = vmatprep.subr.bf16.mxu0 %v2782_v5 }
  0xa3   :  { %1787 = vmatpush1.bf16.msra.mxu1 %v2777_v6 }
  0xa4   :  { %1951 = vmatpush1.bf16.msra.mxu0 %v2780_v7  ;;  %1788 = vmatprep.subr.bf16.mxu1 %v2785_v8 }
  0xa5   :  { %1952 = vmatprep.subr.bf16.mxu0 %v2788_v9 }
  0xa7   :  { %1789 = vmatpush1.bf16.msra.mxu1 %v2783_v10 }
  0xa8   :  { %1953 = vmatpush1.bf16.msra.mxu0 %v2786_v11  ;;  %1790 = vmatprep.subr.bf16.mxu1 %v2791_v12 }
  0xa9   :  { %1954 = vmatprep.subr.bf16.mxu0 %v2794_v13 }
  0xab   :  { %1791 = vmatpush1.bf16.msra.mxu1 %v2789_v14 }
  0xac   :  { %1955 = vmatpush1.bf16.msra.mxu0 %v2792_v15  ;;  %1792 = vmatprep.subr.bf16.mxu1 %v2797_v16 }
  0xad   :  { %1956 = vmatprep.subr.bf16.mxu0 %v2800_v17 }
  0xaf   :  { %1793 = vmatpush1.bf16.msra.mxu1 %v2795_v18 }
  0xb0   :  { %1957 = vmatpush1.bf16.msra.mxu0 %v2798_v19  ;;  %1794 = vmatprep.subr.bf16.mxu1 %v2803_v22 }
  0xb1   :  { %1958 = vmatprep.subr.bf16.mxu0 %v2806_v23 }
  0xb3   :  { %1795 = vmatpush1.bf16.msra.mxu1 %v2801_v24 }
  0xb4   :  { %1959 = vmatpush1.bf16.msra.mxu0 %v2804_v25  ;;  %1796 = vmatprep.subr.bf16.mxu1 %v2809_v26 }
  0xb5   :  { %1960 = vmatprep.subr.bf16.mxu0 %v2812_v27 }
  0xb7   :  { %1797 = vmatpush1.bf16.msra.mxu1 %v2807_v31 }
  0xb8   :  { %1961 = vmatpush1.bf16.msra.mxu0 %v2810_v32  ;;  %1798 = vmatprep.subr.bf16.mxu1 %v2815_v34 }
  0xb9   :  { %1962 = vmatprep.subr.bf16.mxu0 %v2818_v35 }
  0xba   :  { %10 = vsyncpa [#allocation3], 0  ;;  %v2819_v40 = vld [vmem:[%s3888_s1 + $0x2f0] ss:$8 sps:$4 sm:$0xff]   ;;  %v2827_v20 = vld [vmem:[%s3888_s1 + $0x304] ss:$8 sps:$4 sm:$0xff]   ;;  %v342_v47 = vcombine.high %v3230_v28, %v3230_v28  ;;  %v391_v48 = vcombine.high %v3233_v29, %v3233_v29 }
  0xbb   :  { %1799 = vmatpush1.bf16.msra.mxu1 %v2813_v36  ;;  %v2822_v41 = vld [vmem:[%s3888_s1 + $0x6f0] ss:$8 sps:$4 sm:$0xff]   ;;  %v2830_v21 = vld [vmem:[%s3888_s1 + $0x704] ss:$8 sps:$4 sm:$0xff]   ;;  %v2825_v43 = vld [vmem:[%s3888_s1 + $0x300] ss:$8 sps:$4 sm:$0xff]  }
  0xbc   :  { %1963 = vmatpush1.bf16.msra.mxu0 %v2816_v37  ;;  %1800 = vmatprep.subr.bf16.mxu1 %v2821_v38  ;;  %v2828_v44 = vld [vmem:[%s3888_s1 + $0x700] ss:$8 sps:$4 sm:$0xff]   ;;  %v2833_v45 = vld [vmem:[%s3888_s1 + $0x314] ss:$8 sps:$4 sm:$0xff]   ;;  %v2831_v49 = vld [vmem:[%s3888_s1 + $0x310] ss:$8 sps:$4 sm:$0xff]  }
  0xbd   :  { %1964 = vmatprep.subr.bf16.mxu0 %v2824_v39  ;;  %v2836_v46 = vld [vmem:[%s3888_s1 + $0x714] ss:$8 sps:$4 sm:$0xff]   ;;  %v2834_v50 = vld [vmem:[%s3888_s1 + $0x710] ss:$8 sps:$4 sm:$0xff]   ;;  %v2839_v28 = vld [vmem:[%s3888_s1 + $0x324] ss:$8 sps:$4 sm:$0xff]  }
  0xbe   :  { %v2842_v29 = vld [vmem:[%s3888_s1 + $0x724] ss:$8 sps:$4 sm:$0xff]   ;;  %v2837_v51 = vld [vmem:[%s3888_s1 + $0x320] ss:$8 sps:$4 sm:$0xff]   ;;  %v2845_v53 = vld [vmem:[%s3888_s1 + $0x334] ss:$8 sps:$4 sm:$0xff]  }
  0xbf   :  { %1801 = vmatpush1.bf16.msra.mxu1 %v2819_v40  ;;  %v2840_v52 = vld [vmem:[%s3888_s1 + $0x720] ss:$8 sps:$4 sm:$0xff]   ;;  %v2848_v54 = vld [vmem:[%s3888_s1 + $0x734] ss:$8 sps:$4 sm:$0xff]   ;;  %v2843_v55 = vld [vmem:[%s3888_s1 + $0x330] ss:$8 sps:$4 sm:$0xff]  }
  0xc0   :  { %1965 = vmatpush1.bf16.msra.mxu0 %v2822_v41  ;;  %1811 = vmatprep.subr.bf16.mxu1 %v2827_v20  ;;  %v2846_v56 = vld [vmem:[%s3888_s1 + $0x730] ss:$8 sps:$4 sm:$0xff]   ;;  %v2851_v57 = vld [vmem:[%s3888_s1 + $0x344] ss:$8 sps:$4 sm:$0xff]   ;;  %v2849_v59 = vld [vmem:[%s3888_s1 + $0x340] ss:$8 sps:$4 sm:$0xff]  }
  0xc1   :  { %1975 = vmatprep.subr.bf16.mxu0 %v2830_v21  ;;  %v2854_v58 = vld [vmem:[%s3888_s1 + $0x744] ss:$8 sps:$4 sm:$0xff]   ;;  %v2852_v60 = vld [vmem:[%s3888_s1 + $0x740] ss:$8 sps:$4 sm:$0xff]   ;;  %v2857_v61 = vld [vmem:[%s3888_s1 + $0x354] ss:$8 sps:$4 sm:$0xff]  }
  0xc2   :  { %1803 = vmatmul.mubr.bf16.vlgmr.msra.gmra.mrb[0].mxu1 %v3236_v30  ;;  %v2860_v62 = vld [vmem:[%s3888_s1 + $0x754] ss:$8 sps:$4 sm:$0xff]   ;;  %v2855_v63 = vld [vmem:[%s3888_s1 + $0x350] ss:$8 sps:$4 sm:$0xff]   ;;  %v2863_v1 = vld [vmem:[%s3888_s1 + $0x364] ss:$8 sps:$4 sm:$0xff]  }
  0xc3   :  { %1967 = vmatmul.mubr.bf16.vlgmr.msra.gmra.mrb[0].mxu0 %v3241_v33  ;;  %1812 = vmatpush1.bf16.msra.mxu1 %v2825_v43  ;;  %v2858_v0 = vld [vmem:[%s3888_s1 + $0x750] ss:$8 sps:$4 sm:$0xff]   ;;  %v2866_v2 = vld [vmem:[%s3888_s1 + $0x764] ss:$8 sps:$4 sm:$0xff]   ;;  %v2861_v3 = vld [vmem:[%s3888_s1 + $0x360] ss:$8 sps:$4 sm:$0xff]  }
  0xc4   :  { %1976 = vmatpush1.bf16.msra.mxu0 %v2828_v44  ;;  %1813 = vmatprep.subr.bf16.mxu1 %v2833_v45  ;;  %v2864_v4 = vld [vmem:[%s3888_s1 + $0x760] ss:$8 sps:$4 sm:$0xff]   ;;  %v2869_v5 = vld [vmem:[%s3888_s1 + $0x374] ss:$8 sps:$4 sm:$0xff]   ;;  %v2867_v7 = vld [vmem:[%s3888_s1 + $0x370] ss:$8 sps:$4 sm:$0xff]  }
  0xc5   :  { %1977 = vmatprep.subr.bf16.mxu0 %v2836_v46  ;;  %1843 = vmatprep.mubr.bf16.mxu1 %v342_v47  ;;  %v2872_v6 = vld [vmem:[%s3888_s1 + $0x774] ss:$8 sps:$4 sm:$0xff]   ;;  %v2870_v8 = vld [vmem:[%s3888_s1 + $0x770] ss:$8 sps:$4 sm:$0xff]   ;;  %v2875_v9 = vld [vmem:[%s3888_s1 + $0x384] ss:$8 sps:$4 sm:$0xff]   ;;  %v340_v47 = vcombine.high %v3236_v30, %v3236_v30 }
  0xc6   :  { %2007 = vmatprep.mubr.bf16.mxu0 %v391_v48  ;;  %v2878_v10 = vld [vmem:[%s3888_s1 + $0x784] ss:$8 sps:$4 sm:$0xff]   ;;  %v2873_v11 = vld [vmem:[%s3888_s1 + $0x380] ss:$8 sps:$4 sm:$0xff]   ;;  %v2881_v13 = vld [vmem:[%s3888_s1 + $0x394] ss:$8 sps:$4 sm:$0xff]   ;;  %v389_v48 = vcombine.high %v3241_v33, %v3241_v33 }
  0xc7   :  { %1814 = vmatpush1.bf16.msra.mxu1 %v2831_v49  ;;  %v2876_v12 = vld [vmem:[%s3888_s1 + $0x780] ss:$8 sps:$4 sm:$0xff]   ;;  %v2884_v14 = vld [vmem:[%s3888_s1 + $0x794] ss:$8 sps:$4 sm:$0xff]   ;;  %v2879_v15 = vld [vmem:[%s3888_s1 + $0x390] ss:$8 sps:$4 sm:$0xff]  }
  0xc8   :  { %1978 = vmatpush1.bf16.msra.mxu0 %v2834_v50  ;;  %1815 = vmatprep.subr.bf16.mxu1 %v2839_v28  ;;  %v2882_v16 = vld [vmem:[%s3888_s1 + $0x790] ss:$8 sps:$4 sm:$0xff]   ;;  %v2887_v17 = vld [vmem:[%s3888_s1 + $0x3a4] ss:$8 sps:$4 sm:$0xff]   ;;  %v2885_v19 = vld [vmem:[%s3888_s1 + $0x3a0] ss:$8 sps:$4 sm:$0xff]  }
  0xc9   :  { %1979 = vmatprep.subr.bf16.mxu0 %v2842_v29  ;;  %v2890_v18 = vld [vmem:[%s3888_s1 + $0x7a4] ss:$8 sps:$4 sm:$0xff]   ;;  %v2888_v22 = vld [vmem:[%s3888_s1 + $0x7a0] ss:$8 sps:$4 sm:$0xff]   ;;  %v2893_v23 = vld [vmem:[%s3888_s1 + $0x3b4] ss:$8 sps:$4 sm:$0xff]  }
  0xca   :  { %v2896_v24 = vld [vmem:[%s3888_s1 + $0x7b4] ss:$8 sps:$4 sm:$0xff]   ;;  %v2891_v25 = vld [vmem:[%s3888_s1 + $0x3b0] ss:$8 sps:$4 sm:$0xff]   ;;  %v2899_v27 = vld [vmem:[%s3888_s1 + $0x3c4] ss:$8 sps:$4 sm:$0xff]  }
  0xcb   :  { %1816 = vmatpush1.bf16.msra.mxu1 %v2837_v51  ;;  %v2894_v26 = vld [vmem:[%s3888_s1 + $0x7b0] ss:$8 sps:$4 sm:$0xff]   ;;  %v2902_v31 = vld [vmem:[%s3888_s1 + $0x7c4] ss:$8 sps:$4 sm:$0xff]   ;;  %v2897_v32 = vld [vmem:[%s3888_s1 + $0x3c0] ss:$8 sps:$4 sm:$0xff]  }
  0xcc   :  { %1980 = vmatpush1.bf16.msra.mxu0 %v2840_v52  ;;  %1817 = vmatprep.subr.bf16.mxu1 %v2845_v53  ;;  %v2900_v34 = vld [vmem:[%s3888_s1 + $0x7c0] ss:$8 sps:$4 sm:$0xff]   ;;  %v2905_v35 = vld [vmem:[%s3888_s1 + $0x3d4] ss:$8 sps:$4 sm:$0xff]   ;;  %v2903_v37 = vld [vmem:[%s3888_s1 + $0x3d0] ss:$8 sps:$4 sm:$0xff]  }
  0xcd   :  { %1981 = vmatprep.subr.bf16.mxu0 %v2848_v54  ;;  %v2908_v36 = vld [vmem:[%s3888_s1 + $0x7d4] ss:$8 sps:$4 sm:$0xff]   ;;  %v2906_v38 = vld [vmem:[%s3888_s1 + $0x7d0] ss:$8 sps:$4 sm:$0xff]   ;;  %v2911_v39 = vld [vmem:[%s3888_s1 + $0x3e4] ss:$8 sps:$4 sm:$0xff]  }
  0xce   :  { %v2914_v40 = vld [vmem:[%s3888_s1 + $0x7e4] ss:$8 sps:$4 sm:$0xff]   ;;  %v2909_v41 = vld [vmem:[%s3888_s1 + $0x3e0] ss:$8 sps:$4 sm:$0xff]   ;;  %v2917_v21 = vld [vmem:[%s3888_s1 + $0x3f4] ss:$8 sps:$4 sm:$0xff]  }
  0xcf   :  { %1818 = vmatpush1.bf16.msra.mxu1 %v2843_v55  ;;  %v2912_v20 = vld [vmem:[%s3888_s1 + $0x7e0] ss:$8 sps:$4 sm:$0xff]   ;;  %v2920_v43 = vld [vmem:[%s3888_s1 + $0x7f4] ss:$8 sps:$4 sm:$0xff]   ;;  %v2915_v44 = vld [vmem:[%s3888_s1 + $0x3f0] ss:$8 sps:$4 sm:$0xff]  }
  0xd0   :  { %1982 = vmatpush1.bf16.msra.mxu0 %v2846_v56  ;;  %1819 = vmatprep.subr.bf16.mxu1 %v2851_v57  ;;  %v2918_v45 = vld [vmem:[%s3888_s1 + $0x7f0] ss:$8 sps:$4 sm:$0xff]   ;;  %v2921_v46 = vld [vmem:[%s3890_s3 + $0x40] sm:$0xff]   ;;  %v2923_v50 = vld [vmem:[%s3890_s3 + $0x48] sm:$0xff]   ;;  %s2962_s23 = smov [#allocation2]  }
  0xd1   :  { %1983 = vmatprep.subr.bf16.mxu0 %v2854_v58  ;;  %v2922_v49 = vld [vmem:[%s3890_s3] sm:$0xff]   ;;  %v2924_v30 = vld [vmem:[%s3890_s3 + $0x8] sm:$0xff]   ;;  %v2925_v33 = vld [vmem:[%s3890_s3 + $0x50] sm:$0xff]   ;;  %s2202_s24 = sshll.u32 %s2962_s23, 4  ;;  %s2203_s24 = int_to_ptr.vmem [resolvable:$true] %s2202_s24 }
  0xd2   :  { %v2926_v28 = vld [vmem:[%s3890_s3 + $0x10] sm:$0xff]   ;;  %v2927_v29 = vld [vmem:[%s3890_s3 + $0x58] sm:$0xff]   ;;  %v2929_v52 = vld [vmem:[%s3890_s3 + $0x60] sm:$0xff]   ;;  %s2937_s25 = scalar_lea.vmem %s2203_s24, 32  ;;  %p2942_p1 = scmp.lt.s32.totalorder %s2203_s24, %s2203_s24 }
  0xd3   :  { %1820 = vmatpush1.bf16.msra.mxu1 %v2849_v59  ;;  %v2928_v51 = vld [vmem:[%s3890_s3 + $0x18] sm:$0xff]   ;;  %v2930_v53 = vld [vmem:[%s3890_s3 + $0x20] sm:$0xff]   ;;  %v2931_v54 = vld [vmem:[%s3890_s3 + $0x68] sm:$0xff]   ;;  %p2938_p0 = scmp.ne.s32.totalorder %s2203_s24, %s2937_s25  ;;  %p2943_p2 = scmp.lt.s32.totalorder %s2937_s25, %s2937_s25 }
  0xd4   :  { %1984 = vmatpush1.bf16.msra.mxu0 %v2852_v60  ;;  %1821 = vmatprep.subr.bf16.mxu1 %v2857_v61  ;;  %v2932_v55 = vld [vmem:[%s3890_s3 + $0x28] sm:$0xff]   ;;  %v2933_v56 = vld [vmem:[%s3890_s3 + $0x70] sm:$0xff]   ;;  %v2935_v58 = vld [vmem:[%s3890_s3 + $0x78] sm:$0xff]   ;;  %v284_v60 = vsub.s32 0, %v3110_v42 }
  0xd5   :  { %1985 = vmatprep.subr.bf16.mxu0 %v2860_v62  ;;  %v2934_v57 = vld [vmem:[%s3890_s3 + $0x30] sm:$0xff]   ;;  %v2936_v59 = vld [vmem:[%s3890_s3 + $0x38] sm:$0xff]   ;;  %v280_v61 = vld [vmem:[%s3889_s2] sm:$0x3]  ;;  %v288_v62 = vsub.s32 1, %v3110_v42  ;;  %p2944_p3 = por %p2943_p2, %p2942_p1 }
  0xd7   :  { %1822 = vmatpush1.bf16.msra.mxu1 %v2855_v63  ;;  %v285_v63 = vrot.slane %v280_v61, %v284_v60  ;;  %p2945_p4 = pnand %p2944_p3, %p2938_p0 }
  0xd8   :  { %1986 = vmatpush1.bf16.msra.mxu0 %v2858_v0  ;;  %1823 = vmatprep.subr.bf16.mxu1 %v2863_v1  ;;  %v289_v0 = vrot.slane %v280_v61, %v288_v62 }
  0xd9   :  { %1987 = vmatprep.subr.bf16.mxu0 %v2866_v2 }
  0xdb   :  { %1824 = vmatpush1.bf16.msra.mxu1 %v2861_v3 }
  0xdc   :  { %1988 = vmatpush1.bf16.msra.mxu0 %v2864_v4  ;;  %1825 = vmatprep.subr.bf16.mxu1 %v2869_v5 }
  0xdd   :  { %1989 = vmatprep.subr.bf16.mxu0 %v2872_v6 }
  0xdf   :  { %1826 = vmatpush1.bf16.msra.mxu1 %v2867_v7 }
  0xe0   :  { %1990 = vmatpush1.bf16.msra.mxu0 %v2870_v8  ;;  %1827 = vmatprep.subr.bf16.mxu1 %v2875_v9 }
  0xe1   :  { %1991 = vmatprep.subr.bf16.mxu0 %v2878_v10 }
  0xe3   :  { %1828 = vmatpush1.bf16.msra.mxu1 %v2873_v11 }
  0xe4   :  { %1992 = vmatpush1.bf16.msra.mxu0 %v2876_v12  ;;  %1829 = vmatprep.subr.bf16.mxu1 %v2881_v13 }
  0xe5   :  { %1993 = vmatprep.subr.bf16.mxu0 %v2884_v14 }
  0xe7   :  { %1830 = vmatpush1.bf16.msra.mxu1 %v2879_v15 }
  0xe8   :  { %1994 = vmatpush1.bf16.msra.mxu0 %v2882_v16  ;;  %1831 = vmatprep.subr.bf16.mxu1 %v2887_v17 }
  0xe9   :  { %1995 = vmatprep.subr.bf16.mxu0 %v2890_v18  ;;  %v2466_v18 = vld [vmem:[%s3891_s4] ss:$0 sm:$0xff] }
  0xeb   :  { %1832 = vmatpush1.bf16.msra.mxu1 %v2885_v19 }
  0xec   :  { %1996 = vmatpush1.bf16.msra.mxu0 %v2888_v22  ;;  %1833 = vmatprep.subr.bf16.mxu1 %v2893_v23 }
  0xed   :  { %1997 = vmatprep.subr.bf16.mxu0 %v2896_v24 }
  0xef   :  { %1834 = vmatpush1.bf16.msra.mxu1 %v2891_v25 }
  0xf0   :  { %1998 = vmatpush1.bf16.msra.mxu0 %v2894_v26  ;;  %1835 = vmatprep.subr.bf16.mxu1 %v2899_v27 }
  0xf1   :  { %1999 = vmatprep.subr.bf16.mxu0 %v2902_v31 }
  0xf3   :  { %1836 = vmatpush1.bf16.msra.mxu1 %v2897_v32 }
  0xf4   :  { %2000 = vmatpush1.bf16.msra.mxu0 %v2900_v34  ;;  %1837 = vmatprep.subr.bf16.mxu1 %v2905_v35 }
  0xf5   :  { %2001 = vmatprep.subr.bf16.mxu0 %v2908_v36 }
  0xf7   :  { %1838 = vmatpush1.bf16.msra.mxu1 %v2903_v37 }
  0xf8   :  { %2002 = vmatpush1.bf16.msra.mxu0 %v2906_v38  ;;  %1839 = vmatprep.subr.bf16.mxu1 %v2911_v39 }
  0xf9   :  { %2003 = vmatprep.subr.bf16.mxu0 %v2914_v40 }
  0xfb   :  { %1840 = vmatpush1.bf16.msra.mxu1 %v2909_v41 }
  0xfc   :  { %2004 = vmatpush1.bf16.msra.mxu0 %v2912_v20  ;;  %1841 = vmatprep.subr.bf16.mxu1 %v2917_v21 }
  0xfd   :  { %2005 = vmatprep.subr.bf16.mxu0 %v2920_v43 }
  0xff   :  { %1842 = vmatpush1.bf16.msra.mxu1 %v2915_v44 }
 0x100   :  { %2006 = vmatpush1.bf16.msra.mxu0 %v2918_v45  ;;  %2483 = vmatprep.subr.bf16.mxu1 %v2921_v46 }
 0x102   :  { %1844 = vmatmul.mubr.bf16.vlgmr.msra.gmra.mrb[0].mxu1 %v340_v47 }
 0x103   :  { %2008 = vmatmul.mubr.bf16.vlgmr.msra.gmra.mrb[0].mxu0 %v389_v48  ;;  %2484 = vmatpush3.bf16.msra.mxu1 %v2922_v49 }
 0x104   :  { %2485 = vmatprep.subr.bf16.mxu1 %v2923_v50 }
 0x107   :  { %2486 = vmatpush3.bf16.msra.mxu1 %v2924_v30 }
 0x108   :  { %2487 = vmatprep.subr.bf16.mxu1 %v2925_v33 }
 0x10b   :  { %2488 = vmatpush3.bf16.msra.mxu1 %v2926_v28 }
 0x10c   :  { %2489 = vmatprep.subr.bf16.mxu1 %v2927_v29 }
 0x10f   :  { %2490 = vmatpush3.bf16.msra.mxu1 %v2928_v51 }
 0x110   :  { %2491 = vmatprep.subr.bf16.mxu1 %v2929_v52 }
 0x113   :  { %2492 = vmatpush3.bf16.msra.mxu1 %v2930_v53 }
 0x114   :  { %2493 = vmatprep.subr.bf16.mxu1 %v2931_v54 }
 0x117   :  { %2494 = vmatpush3.bf16.msra.mxu1 %v2932_v55 }
 0x118   :  { %2495 = vmatprep.subr.bf16.mxu1 %v2933_v56 }
 0x11b   :  { %2496 = vmatpush3.bf16.msra.mxu1 %v2934_v57 }
 0x11c   :  { %2497 = vmatprep.subr.bf16.mxu1 %v2935_v58 }
 0x11f   :  { %2498 = vmatpush3.bf16.msra.mxu1 %v2936_v59 }
 0x1d5   :  { %v1845_v1 = vpop.f32.mrb[0].mxu1 }
 0x1d6   :  { %v2009_v2 = vpop.f32.mrb[0].mxu0  ;;  %v2505_v3 = vadd.f32 %v1845_v1, %v285_v63  ;;  %v1847_v4 = vpop.f32.mrb[1].mxu1 }
 0x1d7   :  { %v2011_v5 = vpop.f32.mrb[1].mxu0  ;;  %v2507_v6 = vadd.f32 %v1847_v4, %v289_v0  ;;  %v1849_v7 = vpop.f32.mrb[2].mxu1 }
 0x1d8   :  { %v2013_v8 = vpop.f32.mrb[2].mxu0  ;;  %v2506_v9 = vadd.f32 %v2505_v3, %v2009_v2  ;;  %v1850_v10 = vpop.f32.mrb[3].mxu1 }
 0x1d9   :  { %v2014_v11 = vpop.f32.mrb[3].mxu0  ;;  %v2508_v12 = vadd.f32 %v2507_v6, %v2011_v5 }
 0x1da   :  { %v2016_v13 = vmax.f32 %v2506_v9, 0.0 }
 0x1db   :  { %v2017_v14 = vmax.f32 %v2508_v12, 0.0 }
 0x1dc   :  { %v2018_v16 = vpack.c.bf16 %v2016_v13, %v2016_v13 }
 0x1dd   :  { %v2019_v15 = vpack.c.bf16 %v2017_v14, %v2017_v14 }
 0x1df   :  { %2187 = vmatprep.mubr.bf16.mxu1 %v2019_v15 }
 0x1e0   :  { %2188 = vmatmul.mubr.bf16.vlgmr.msra.gmra.mrb[4].mxu1 %v2018_v16 }
 0x2b3   :  { %v2499_v42 = vpop.f32.mrb[4].mxu1 }
 0x2b4   :  { %v2500_v17 = vpop.f32.mrb[5].mxu1 }
 0x2b5   :  { %v2501_v19 = vadd.f32 %v2500_v17, %v2499_v42  ;;  %v2502_v22 = vpop.f32.mrb[6].mxu1 }
 0x2b6   :  { %v2503_v23 = vpop.f32.mrb[7].mxu1 }
 0x2b7   :  { %v2190_v24 = vadd.f32 %v2501_v19, %v2466_v18 }
 0x2b9   :  { %2195 = vst [vmem:[#allocation2] sm:$0x3] %v2190_v24 }
 0x2ba   :  { %2948 = shalt.err (!%p2945_p4)
}
 0x2bb   :  { %s2949_s28 = scalar_lea.hbm %s3892_s5, 32 }
 0x2bc   :  { %p2950_p5 = scmp.ne.s32.totalorder %s3892_s5, %s2949_s28  ;;  %p2953_p6 = scmp.lt.u32.totalorder %s2949_s28, %s3892_s5 }
 0x2be   :  { %p2955_p7 = pnand %p2953_p6, %p2950_p5 }
 0x2c0   :  { %2958 = shalt.err (!%p2955_p7)
}
 0x2c1   :  { %2205 = dma.vmem_to_hbm [thread:$0]  %s2203_s24, 32, %s3892_s5, [#allocation3]  }
 0x2c2   :  { %2959 = dma.done.wait [#allocation3], 32  }
 0x2c3   :  { %2960 = vsyncadd [#allocation3], 4294967264 }
 0x2c4   :  { %2209 = vsyncpa [#allocation3], 1 }

// kernel: cnn_forward.5
= control target key start
LH: loop header
LB: loop body
LE: loop exit
PB: predicated region body
PF: predicated region fallthrough
CT: control target
= control target key end

     0   :  { %s16256_s15 = smov 0   ;;  %s17919_s0 = inlined_call_operand.vmem [shape: bf16[2,304,64], index: 0, kind: input, shape index: {}]   ;;  %s17920_s1 = inlined_call_operand.vmem [shape: bf16[2,304,64], index: 1, kind: input, shape index: {}]   ;;  %s17921_s2 = inlined_call_operand.vmem [shape: bf16[9,64,128], index: 2, kind: input, shape index: {}]   ;;  %s17922_s3 = inlined_call_operand.vmem [shape: f32[1,128], index: 3, kind: input, shape index: {}]   ;;  %s17923_s4 = inlined_call_operand.vmem [shape: bf16[2,8,8,128], index: 4, kind: output, shape index: {}]  }
   0x1 LB: > { %s11906_s16 = sadd.s32 4294967295, %s16229_s15   ;;  %p11910_p0 = scmp.ge.s32.totalorder %s16229_s15, 1  ;;  %s16229_s15 = sphi %s16256_s15, %s14_s15  }
   0x2   : > { %p172_p1 = scmp.lt.s32.totalorder %s16229_s15, 3 }
   0x4   : > { %p173_p2 = pnand %p11910_p0, %p172_p1 }
   0x5   : > { %v15609_v0 = vld [vmem:[%s17921_s2 + $0x20] sm:$0xff] (!%p173_p2)   ;;  %p203_p3 = scmp.lt.s32.totalorder (!%p173_p2), %s11906_s16, 1  ;;  %v15611_v2 = vld [vmem:[%s17921_s2 + $0x28] sm:$0xff] (!%p173_p2)   ;;  %v15613_v4 = vld [vmem:[%s17921_s2 + $0x30] sm:$0xff] (!%p173_p2)   ;;  %vm297_vm0 = vcmask (!%p173_p2), 523264  }
   0x6   : > { %176 = sbr.rel (%p173_p2) target bundleno = 819 (0x333), region = 36  ;;  %v15610_v1 = vld [vmem:[%s17921_s2 + $0x20] sm:$0xff] (!%p173_p2)   ;;  %13936 = vmatprep.subr.bf16.mxu0 (!%p173_p2), %v15609_v0  ;;  %v15612_v3 = vld [vmem:[%s17921_s2 + $0x28] sm:$0xff] (!%p173_p2)   ;;  %v15614_v5 = vld [vmem:[%s17921_s2 + $0x30] sm:$0xff] (!%p173_p2)   ;;  %vm537_vm1 = vsmask.f32 (!%p173_p2), 7424 }
   0x7   : > { %14080 = vmatprep.subr.bf16.mxu1 (!%p173_p2), %v15610_v1  ;;  %13937 = vmatpush3.bf16.msra.mxu0 (!%p173_p2), %v15609_v0  ;;  %v15615_v6 = vld [vmem:[%s17921_s2 + $0x38] sm:$0xff] (!%p173_p2)   ;;  %v15621_v14 = vld [vmem:[%s17921_s2] sm:$0xff] (!%p173_p2)   ;;  %v15624_v23 = vld [vmem:[%s17921_s2 + $0x8] sm:$0xff] (!%p173_p2)  }
   0x8   : > { %14081 = vmatpush3.bf16.msra.mxu1 (!%p173_p2), %v15610_v1  ;;  %13938 = vmatprep.subr.bf16.mxu0 (!%p173_p2), %v15611_v2  ;;  %v15616_v7 = vld [vmem:[%s17921_s2 + $0x38] sm:$0xff] (!%p173_p2)   ;;  %v15623_v20 = vld [vmem:[%s17921_s2] sm:$0xff] (!%p173_p2)   ;;  %v15625_v25 = vld [vmem:[%s17921_s2 + $0x8] sm:$0xff] (!%p173_p2)  }
   0x9   : > { %14082 = vmatprep.subr.bf16.mxu1 (!%p173_p2), %v15612_v3  ;;  %v15629_v35 = vld [vmem:[%s17921_s2 + $0x10] sm:$0xff] (!%p173_p2)   ;;  %v15632_v41 = vld [vmem:[%s17921_s2 + $0x18] sm:$0xff] (!%p173_p2)   ;;  %v15637_v49 = vld [vmem:[%s17921_s2 + $0x40] sm:$0xff] (!%p173_p2)  }
   0xa   : > { %v15631_v39 = vld [vmem:[%s17921_s2 + $0x10] sm:$0xff] (!%p173_p2)   ;;  %v15633_v44 = vld [vmem:[%s17921_s2 + $0x18] sm:$0xff] (!%p173_p2)   ;;  %v15639_v52 = vld [vmem:[%s17921_s2 + $0x40] sm:$0xff] (!%p173_p2)  }
   0xb   : > { %13939 = vmatpush3.bf16.msra.mxu0 (!%p173_p2), %v15611_v2  ;;  %v15640_v53 = vld [vmem:[%s17921_s2 + $0x48] sm:$0xff] (!%p173_p2)   ;;  %v15645_v57 = vld [vmem:[%s17921_s2 + $0x50] sm:$0xff] (!%p173_p2)   ;;  %v15648_v61 = vld [vmem:[%s17921_s2 + $0x58] sm:$0xff] (!%p173_p2)  }
   0xc   : > { %14083 = vmatpush3.bf16.msra.mxu1 (!%p173_p2), %v15612_v3  ;;  %13940 = vmatprep.subr.bf16.mxu0 (!%p173_p2), %v15613_v4  ;;  %v15641_v54 = vld [vmem:[%s17921_s2 + $0x48] sm:$0xff] (!%p173_p2)   ;;  %v15647_v60 = vld [vmem:[%s17921_s2 + $0x50] sm:$0xff] (!%p173_p2)   ;;  %v15649_v62 = vld [vmem:[%s17921_s2 + $0x58] sm:$0xff] (!%p173_p2)  }
   0xd   : > { %s17925_s16 = smov (!%p203_p3, %s11906_s16), 1  ;;  %14084 = vmatprep.subr.bf16.mxu1 %v15614_v5 }
   0xe   : > { %s15600_s27 = smul.u32 152, %s17925_s16  ;;  %s13336_s18 = sshll.u32 %s17925_s16, 5 }
   0xf   : > { %13941 = vmatpush3.bf16.msra.mxu0 %v15613_v4  ;;  %s17298_s21 = scalar_lea.vmem %s17923_s4, %s13336_s18 }
  0x10   : > { %s16291_s8 = scalar_lea.vmem %s17920_s1, %s15600_s27  ;;  %s16299_s13 = scalar_lea.vmem %s17919_s0, %s15600_s27  ;;  %14085 = vmatpush3.bf16.msra.mxu1 %v15614_v5  ;;  %13942 = vmatprep.subr.bf16.mxu0 %v15615_v6 }
  0x11   : > { %v15617_v8 = vld [vmem:[%s16291_s8] sm:$0xff]   ;;  %v15619_v10 = vld [vmem:[%s16299_s13 + $0x8] sm:$0xff]   ;;  %14086 = vmatprep.subr.bf16.mxu1 %v15616_v7  ;;  %v15622_v18 = vld [vmem:[%s16299_s13 + $0x10] sm:$0xff]  }
  0x12   : > { %13944 = vmatprep.mubr.msk.bf16.mxu0 %vm297_vm0, %v15617_v8  ;;  %v15618_v9 = vld [vmem:[%s16299_s13] sm:$0xff]   ;;  %v15620_v13 = vld [vmem:[%s16291_s8 + $0x8] sm:$0xff]   ;;  %v1711_v15 = vshll.u32 %v15619_v10, 16  ;;  %v1715_v16 = vshrl.u32 %v15619_v10, 16  ;;  %v1719_v22 = vshll.u32 %v15622_v18, 16  ;;  %v1723_v26 = vshrl.u32 %v15622_v18, 16 }
  0x13   : > { %v1704_v11 = vshrl.u32 %v15618_v9, 16  ;;  %v1706_v12 = vshll.u32 %v15618_v9, 16  ;;  %13943 = vmatpush3.bf16.msra.mxu0 %v15615_v6  ;;  %v15626_v29 = vld [vmem:[%s16291_s8 + $0x10] sm:$0xff]   ;;  %v15627_v30 = vld [vmem:[%s16299_s13 + $0x18] sm:$0xff]   ;;  %v15634_v46 = vld [vmem:[%s16299_s13] sm:$0xff]  }
  0x14   : > { %v1713_v19 = vrot.slane %v1711_v15, 1  ;;  %14087 = vmatpush3.bf16.msra.mxu1 %v15616_v7  ;;  %13952 = vmatprep.subr.bf16.mxu0 %v15621_v14  ;;  %v1721_v28 = vrot.slane %v1719_v22, 1  ;;  %v1727_v33 = vshll.u32 %v15627_v30, 16  ;;  %v15628_v34 = vld [vmem:[%s16291_s8 + $0x18] sm:$0xff]   ;;  %v1731_v37 = vshrl.u32 %v15627_v30, 16  ;;  %v15635_v47 = vld [vmem:[%s16291_s8] sm:$0xff]  }
  0x15   : > { %v1708_v17 = vrot.slane %v1706_v12, 1  ;;  %14096 = vmatprep.subr.bf16.mxu1 %v15623_v20  ;;  %v15630_v36 = vld [vmem:[%s16299_s13 + $0x20] ss:$0 sps:$4 sm:$0x11]   ;;  %v15636_v50 = vld [vmem:[%s16299_s13 + $0x8] sm:$0xff]   ;;  %v15642_v55 = vld [vmem:[%s16299_s13 + $0x10] sm:$0xff]  }
  0x16   : > { %v1717_v24 = vor.u32 %v1715_v16, %v1713_v19  ;;  %13945 = vmatmul.mubr.msk.bf16.vlgmr.msra.gmra.mrb[0].mxu0 %vm297_vm0, %v15620_v13  ;;  %v1725_v32 = vor.u32 %v1723_v26, %v1721_v28  ;;  %v1729_v38 = vrot.slane %v1727_v33, 1  ;;  %v1735_v40 = vshll.u32 %v15630_v36, 16  ;;  %v15638_v51 = vld [vmem:[%s16291_s8 + $0x8] sm:$0xff]   ;;  %v15643_v56 = vld [vmem:[%s16291_s8 + $0x10] sm:$0xff]   ;;  %v15644_v58 = vld [vmem:[%s16299_s13 + $0x18] sm:$0xff]  }
  0x17   : > { %v1709_v21 = vor.u32 %v1708_v17, %v1704_v11  ;;  %13953 = vmatpush3.bf16.msra.mxu0 %v15621_v14  ;;  %13948 = vmatprep.mubr.msk.bf16.mxu0 %vm297_vm0, %v15626_v29  ;;  %v15646_v59 = vld [vmem:[%s16291_s8 + $0x18] sm:$0xff]   ;;  %v15650_v63 = vld [vmem:[%s16299_s13] sm:$0xff]   ;;  %v15651_v0 = vld [vmem:[%s16299_s13 + $0x8] sm:$0xff]  }
  0x18   : > { %v1722_v31 = vsel %vm537_vm1, %v1717_v24, %v1721_v28  ;;  %13954 = vmatprep.subr.bf16.mxu0 %v15624_v23  ;;  %v1730_v42 = vsel %vm537_vm1, %v1725_v32, %v1729_v38  ;;  %v1733_v43 = vor.u32 %v1731_v37, %v1729_v38  ;;  %v1737_v45 = vrot.slane %v1735_v40, 1  ;;  %v15652_v5 = vld [vmem:[%s16291_s8] sm:$0xff]   ;;  %v15653_v6 = vld [vmem:[%s16291_s8 + $0x8] sm:$0xff]   ;;  %v15654_v7 = vld [vmem:[%s16299_s13 + $0x10] sm:$0xff]  }
  0x19   : > { %v1714_v27 = vsel %vm537_vm1, %v1709_v21, %v1713_v19  ;;  %v539_v1 = vshrl.u32 %v15650_v63, 16  ;;  %v541_v2 = vshll.u32 %v15650_v63, 16  ;;  %v546_v3 = vshll.u32 %v15651_v0, 16  ;;  %v15655_v15 = vld [vmem:[%s17921_s2 + $0x60] sm:$0xff]   ;;  %v15656_v19 = vld [vmem:[%s16291_s8 + $0x10] sm:$0xff]   ;;  %v15658_v28 = vld [vmem:[%s17921_s2 + $0x68] sm:$0xff]  }
  0x1a   : > { %14088 = vmatprep.mubr.msk.bf16.mxu1 %vm297_vm0, %v1714_v27  ;;  %v1738_v48 = vsel %vm537_vm1, %v1733_v43, %v1737_v45  ;;  %v550_v4 = vshrl.u32 %v15651_v0, 16  ;;  %v1994_v10 = vshrl.u32 %v15652_v5, 16  ;;  %v1996_v11 = vshll.u32 %v15652_v5, 16  ;;  %v15659_v32 = vld [vmem:[%s17921_s2 + $0x68] sm:$0xff]   ;;  %v15660_v33 = vld [vmem:[%s16299_s13 + $0x18] sm:$0xff]   ;;  %v15671_v63 = vld [vmem:[%s17921_s2 + $0x80] sm:$0xff]  }
  0x1b   : > { %14089 = vmatmul.mubr.msk.bf16.vlgmr.msra.gmra.mrb[0].mxu1 %vm297_vm0, %v1722_v31  ;;  %13955 = vmatpush3.bf16.msra.mxu0 %v15624_v23  ;;  %v543_v8 = vrot.slane %v541_v2, 1  ;;  %v548_v9 = vrot.slane %v546_v3, 1  ;;  %v2001_v12 = vshll.u32 %v15653_v6, 16  ;;  %v2005_v13 = vshrl.u32 %v15653_v6, 16  ;;  %v15661_v36 = vld [vmem:[%s16291_s8 + $0x18] sm:$0xff]   ;;  %v15670_v0 = vld [vmem:[%s16299_s13 + $0x10] sm:$0xff]  }
  0x1c   : > { %14097 = vmatpush3.bf16.msra.mxu1 %v15623_v20  ;;  %13956 = vmatprep.subr.bf16.mxu0 %v15629_v35  ;;  %v554_v14 = vshll.u32 %v15654_v7, 16  ;;  %v1998_v18 = vrot.slane %v1996_v11, 1  ;;  %v2009_v24 = vshll.u32 %v15656_v19, 16  ;;  %v558_v29 = vshrl.u32 %v15654_v7, 16  ;;  %v15673_v2 = vld [vmem:[%s17921_s2 + $0x80] sm:$0xff]   ;;  %v15674_v3 = vld [vmem:[%s17921_s2 + $0x88] sm:$0xff]  }
  0x1d   : > { %14098 = vmatprep.subr.bf16.mxu1 %v15625_v25  ;;  %14092 = vmatprep.mubr.msk.bf16.mxu1 %vm297_vm0, %v1730_v42  ;;  %v544_v16 = vor.u32 %v543_v8, %v539_v1  ;;  %v552_v17 = vor.u32 %v550_v4, %v548_v9  ;;  %v2003_v20 = vrot.slane %v2001_v12, 1  ;;  %v15662_v37 = vld [vmem:[%s16299_s13 + $0x20] ss:$0 sps:$4 sm:$0x11]   ;;  %v566_v40 = vshrl.u32 %v15660_v33, 16  ;;  %v15672_v1 = vld [vmem:[%s16291_s8 + $0x10] sm:$0xff]  }
  0x1e   : > { %13949 = vmatmul.mubr.msk.bf16.gmra.mrb[4].mxu0 %vm297_vm0, %v15628_v34  ;;  %v556_v21 = vrot.slane %v554_v14, 1  ;;  %v1999_v23 = vor.u32 %v1998_v18, %v1994_v10  ;;  %v2011_v31 = vrot.slane %v2009_v24, 1  ;;  %v2013_v34 = vshrl.u32 %v15656_v19, 16  ;;  %v15675_v4 = vld [vmem:[%s17921_s2 + $0x88] sm:$0xff]   ;;  %v15676_v5 = vld [vmem:[%s16299_s13 + $0x18] sm:$0xff]   ;;  %v15679_v7 = vld [vmem:[%s17921_s2 + $0x90] sm:$0xff]  }
  0x1f   : > { %13957 = vmatpush3.bf16.msra.mxu0 %v15629_v35  ;;  %13960 = vmatprep.mubr.msk.bf16.mxu0 %vm297_vm0, %v15634_v46  ;;  %v549_v22 = vsel %vm537_vm1, %v544_v16, %v548_v9  ;;  %v2007_v26 = vor.u32 %v2005_v13, %v2003_v20  ;;  %v2017_v42 = vshll.u32 %v15661_v36, 16  ;;  %v570_v43 = vshll.u32 %v15662_v37, 16  ;;  %v15677_v6 = vld [vmem:[%s16291_s8 + $0x18] sm:$0xff]   ;;  %v15678_v8 = vld [vmem:[%s16299_s13 + $0x20] sm:$0xff]   ;;  %v15681_v10 = vld [vmem:[%s17921_s2 + $0x90] sm:$0xff]  }
  0x20   : > { %14099 = vmatpush3.bf16.msra.mxu1 %v15625_v25  ;;  %13958 = vmatprep.subr.bf16.mxu0 %v15632_v41  ;;  %v15657_v25 = vld [vmem:[%s17921_s2 + $0x60] sm:$0xff]   ;;  %v557_v27 = vsel %vm537_vm1, %v552_v17, %v556_v21  ;;  %v2004_v30 = vsel %vm537_vm1, %v1999_v23, %v2003_v20  ;;  %v560_v38 = vor.u32 %v558_v29, %v556_v21  ;;  %v2021_v45 = vshrl.u32 %v15661_v36, 16  ;;  %v15682_v11 = vld [vmem:[%s17921_s2 + $0x98] sm:$0xff]   ;;  %v15684_v13 = vld [vmem:[%s16291_s8 + $0x8] sm:$0xff]  }
  0x21   : > { %14100 = vmatprep.subr.bf16.mxu1 %v15631_v39  ;;  %v2012_v35 = vsel %vm537_vm1, %v2007_v26, %v2011_v31  ;;  %v15680_v9 = vld [vmem:[%s16291_s8 + $0x20] sm:$0xff]   ;;  %v15683_v12 = vld [vmem:[%s17921_s2 + $0x98] sm:$0xff]   ;;  %v15685_v14 = vld [vmem:[%s16299_s13 + $0x8] sm:$0xff]  }
  0x22   : > { %v15687_v16 = vld [vmem:[%s16291_s8 + $0x10] sm:$0xff]   ;;  %v2308_v17 = vshrl.u32 %v15685_v14, 16  ;;  %v2310_v18 = vshll.u32 %v15685_v14, 16  ;;  %v15688_v21 = vld [vmem:[%s17921_s2 + $0xa0] sm:$0xff]   ;;  %v15689_v24 = vld [vmem:[%s16299_s13 + $0x18] sm:$0xff]  }
  0x23   : > { %14093 = vmatmul.mubr.msk.bf16.gmra.mrb[4].mxu1 %vm297_vm0, %v1738_v48  ;;  %13959 = vmatpush3.bf16.msra.mxu0 %v15632_v41  ;;  %v2015_v41 = vor.u32 %v2013_v34, %v2011_v31  ;;  %v2019_v48 = vrot.slane %v2017_v42, 1  ;;  %v15691_v29 = vld [vmem:[%s17921_s2 + $0xa8] sm:$0xff]   ;;  %v2327_v31 = vshrl.u32 %v15689_v24, 16  ;;  %v15693_v34 = vld [vmem:[%s16291_s8 + $0x18] sm:$0xff]  }
  0x24   : > { %14101 = vmatpush3.bf16.msra.mxu1 %v15631_v39  ;;  %14104 = vmatprep.mubr.msk.bf16.mxu1 %vm297_vm0, %v15635_v47  ;;  %v562_v39 = vshll.u32 %v15660_v33, 16  ;;  %v15664_v47 = vld [vmem:[%s16291_s8 + $0x20] ss:$0 sps:$4 sm:$0x11]  }
  0x25   : > { %14102 = vmatprep.subr.bf16.mxu1 %v15633_v44  ;;  %13968 = vmatprep.subr.bf16.mxu0 %v15637_v49  ;;  %v15697_v42 = vld [vmem:[%s16299_s13 + $0x28] ss:$0 sps:$4 sm:$0x11]  }
  0x26   : > { %13961 = vmatmul.mubr.msk.bf16.vlgmr.msra.gmra.mrb[0].mxu0 %vm297_vm0, %v15636_v50  ;;  %v564_v46 = vrot.slane %v562_v39, 1  ;;  %v15665_v50 = vld [vmem:[%s17921_s2 + $0x70] sm:$0xff]   ;;  %v15695_v39 = vld [vmem:[%s16291_s8 + $0x20] sm:$0xff]  }
  0x27   : > { %13969 = vmatpush3.bf16.msra.mxu0 %v15637_v49  ;;  %13964 = vmatprep.mubr.msk.bf16.mxu0 %vm297_vm0, %v15642_v55  ;;  %v572_v49 = vrot.slane %v570_v43, 1  ;;  %v2020_v55 = vsel %vm537_vm1, %v2015_v41, %v2019_v48  ;;  %v15698_v43 = vld [vmem:[%s17921_s2 + $0xb0] sm:$0xff]  }
  0x28   : > { %14103 = vmatpush3.bf16.msra.mxu1 %v15633_v44  ;;  %13970 = vmatprep.subr.bf16.mxu0 %v15640_v53  ;;  %v15663_v44 = vld [vmem:[%s17921_s2 + $0x70] sm:$0xff]  }
  0x29   : > { %14112 = vmatprep.subr.bf16.mxu1 %v15639_v52 }
  0x2b   : > { %14105 = vmatmul.mubr.msk.bf16.vlgmr.msra.gmra.mrb[0].mxu1 %vm297_vm0, %v15638_v51  ;;  %13971 = vmatpush3.bf16.msra.mxu0 %v15640_v53  ;;  %v565_v51 = vsel %vm537_vm1, %v560_v38, %v564_v46  ;;  %v2025_v53 = vshll.u32 %v15664_v47, 16  ;;  %v15701_v47 = vld [vmem:[%s16299_s13 + $0x8] sm:$0xff]  }
  0x2c   : > { %14113 = vmatpush3.bf16.msra.mxu1 %v15639_v52  ;;  %14108 = vmatprep.mubr.msk.bf16.mxu1 %vm297_vm0, %v15643_v56  ;;  %v568_v52 = vor.u32 %v566_v40, %v564_v46  ;;  %v2023_v56 = vor.u32 %v2021_v45, %v2019_v48  ;;  %v15696_v40 = vld [vmem:[%s17921_s2 + $0xb0] sm:$0xff]   ;;  %v15699_v45 = vld [vmem:[%s17921_s2 + $0xb8] sm:$0xff]   ;;  %v2339_v46 = vshll.u32 %v15697_v42, 16 }
  0x2d   : > { %14114 = vmatprep.subr.bf16.mxu1 %v15641_v54  ;;  %13972 = vmatprep.subr.bf16.mxu0 %v15645_v57 }
  0x2e   : > { %13965 = vmatmul.mubr.msk.bf16.gmra.mrb[4].mxu0 %vm297_vm0, %v15644_v58  ;;  %v573_v58 = vsel %vm537_vm1, %v568_v52, %v572_v49  ;;  %v15702_v52 = vld [vmem:[%s16299_s13 + $0x10] sm:$0xff]  }
  0x2f   : > { %13973 = vmatpush3.bf16.msra.mxu0 %v15645_v57  ;;  %13976 = vmatprep.mubr.msk.bf16.mxu0 %vm297_vm0, %v549_v22  ;;  %v15667_v57 = vld [vmem:[%s17921_s2 + $0x78] sm:$0xff]   ;;  %v2312_v22 = vrot.slane %v2310_v18, 1 }
  0x30   : > { %14115 = vmatpush3.bf16.msra.mxu1 %v15641_v54  ;;  %13974 = vmatprep.subr.bf16.mxu0 %v15648_v61  ;;  %v15666_v54 = vld [vmem:[%s17921_s2 + $0x78] sm:$0xff]  }
  0x31   : > { %14116 = vmatprep.subr.bf16.mxu1 %v15647_v60  ;;  %v2313_v26 = vor.u32 %v2312_v22, %v2308_v17  ;;  %v15712_v22 = vld [vmem:[%s16291_s8 + $0x20] sm:$0xff]  }
  0x33   : > { %14109 = vmatmul.mubr.msk.bf16.gmra.mrb[4].mxu1 %vm297_vm0, %v15646_v59  ;;  %13975 = vmatpush3.bf16.msra.mxu0 %v15648_v61  ;;  %v2027_v59 = vrot.slane %v2025_v53, 1  ;;  %v15669_v61 = vld [vmem:[%s16291_s8 + $0x8] sm:$0xff]   ;;  %v1017_v53 = vshrl.u32 %v15701_v47, 16 }
  0x34   : > { %14117 = vmatpush3.bf16.msra.mxu1 %v15647_v60  ;;  %13984 = vmatprep.subr.bf16.mxu0 %v15655_v15  ;;  %v15668_v60 = vld [vmem:[%s16299_s13 + $0x8] sm:$0xff]  }
  0x35   : > { %14118 = vmatprep.subr.bf16.mxu1 %v15649_v62  ;;  %14120 = vmatprep.mubr.msk.bf16.mxu1 %vm297_vm0, %v2004_v30  ;;  %v15692_v30 = vld [vmem:[%s17921_s2 + $0xa8] sm:$0xff]  }
  0x36   : > { %13977 = vmatmul.mubr.msk.bf16.vlgmr.msra.gmra.mrb[0].mxu0 %vm297_vm0, %v557_v27 }
  0x37   : > { %13985 = vmatpush3.bf16.msra.mxu0 %v15655_v15  ;;  %13980 = vmatprep.mubr.msk.bf16.mxu0 %vm297_vm0, %v565_v51  ;;  %v15686_v15 = vld [vmem:[%s16299_s13 + $0x10] sm:$0xff]   ;;  %v2341_v51 = vrot.slane %v2339_v46, 1  ;;  %v15717_v46 = vld [vmem:[%s17921_s2 + $0xd8] sm:$0xff]  }
  0x38   : > { %14119 = vmatpush3.bf16.msra.mxu1 %v15649_v62  ;;  %13986 = vmatprep.subr.bf16.mxu0 %v15658_v28  ;;  %v2028_v62 = vsel %vm537_vm1, %v2023_v56, %v2027_v59  ;;  %v2315_v19 = vshll.u32 %v15686_v15, 16  ;;  %v2319_v20 = vshrl.u32 %v15686_v15, 16  ;;  %v1024_v56 = vshll.u32 %v15702_v52, 16  ;;  %v15703_v59 = vld [vmem:[%s16291_s8 + $0x8] sm:$0xff]  }
  0x39   : > { %14128 = vmatprep.subr.bf16.mxu1 %v15657_v25 }
  0x3a   : > { %v2317_v23 = vrot.slane %v2315_v19, 1 }
  0x3b   : > { %14121 = vmatmul.mubr.msk.bf16.vlgmr.msra.gmra.mrb[0].mxu1 %vm297_vm0, %v2012_v35  ;;  %13987 = vmatpush3.bf16.msra.mxu0 %v15658_v28  ;;  %v2323_v28 = vshll.u32 %v15689_v24, 16  ;;  %v15694_v35 = vld [vmem:[%s16299_s13 + $0x20] sm:$0xff]  }
  0x3c   : > { %14129 = vmatpush3.bf16.msra.mxu1 %v15657_v25  ;;  %13988 = vmatprep.subr.bf16.mxu0 %v15663_v44  ;;  %v15690_v25 = vld [vmem:[%s17921_s2 + $0xa0] sm:$0xff]   ;;  %v2321_v27 = vor.u32 %v2319_v20, %v2317_v23  ;;  %v2331_v38 = vshll.u32 %v15694_v35, 16  ;;  %v2335_v41 = vshrl.u32 %v15694_v35, 16 }
  0x3d   : > { %14130 = vmatprep.subr.bf16.mxu1 %v15659_v32  ;;  %14124 = vmatprep.mubr.msk.bf16.mxu1 %vm297_vm0, %v2020_v55  ;;  %v2325_v33 = vrot.slane %v2323_v28, 1  ;;  %v15711_v20 = vld [vmem:[%s16299_s13 + $0x20] sm:$0xff]   ;;  %v2508_v28 = vshll.u32 %v15712_v22, 16 }
  0x3e   : > { %13981 = vmatmul.mubr.msk.bf16.gmra.mrb[4].mxu0 %vm297_vm0, %v573_v58 }
  0x3f   : > { %13989 = vmatpush3.bf16.msra.mxu0 %v15663_v44  ;;  %13992 = vmatprep.mubr.msk.bf16.mxu0 %vm297_vm0, %v15668_v60  ;;  %v2326_v36 = vsel %vm537_vm1, %v2321_v27, %v2325_v33  ;;  %v2329_v37 = vor.u32 %v2327_v31, %v2325_v33  ;;  %v2333_v44 = vrot.slane %v2331_v38, 1  ;;  %v15704_v60 = vld [vmem:[%s16291_s8 + $0x10] sm:$0xff]   ;;  %v1040_v27 = vshll.u32 %v15711_v20, 16 }
  0x40   : > { %14131 = vmatpush3.bf16.msra.mxu1 %v15659_v32  ;;  %13990 = vmatprep.subr.bf16.mxu0 %v15666_v54  ;;  %v2318_v32 = vsel %vm537_vm1, %v2313_v26, %v2317_v23  ;;  %v15710_v23 = vld [vmem:[%s17921_s2 + $0xc8] sm:$0xff]   ;;  %v2512_v33 = vshrl.u32 %v15712_v22, 16  ;;  %v2510_v35 = vrot.slane %v2508_v28, 1  ;;  %v15716_v38 = vld [vmem:[%s17921_s2 + $0xd0] sm:$0xff]  }
  0x41   : > { %14132 = vmatprep.subr.bf16.mxu1 %v15665_v50  ;;  %v2334_v48 = vsel %vm537_vm1, %v2329_v37, %v2333_v44  ;;  %v2337_v49 = vor.u32 %v2335_v41, %v2333_v44  ;;  %v15715_v37 = vld [vmem:[%s16291_s8 + $0x28] ss:$0 sps:$4 sm:$0x11]  }
  0x42   : > { %v2514_v44 = vor.u32 %v2512_v33, %v2510_v35  ;;  %v15746_v28 = vld [vmem:[%s16291_s8 + $0x28] sm:$0xff]  }
  0x43   : > { %14125 = vmatmul.mubr.msk.bf16.gmra.mrb[4].mxu1 %vm297_vm0, %v2028_v62  ;;  %13991 = vmatpush3.bf16.msra.mxu0 %v15666_v54  ;;  %v1019_v54 = vshll.u32 %v15701_v47, 16  ;;  %v2342_v55 = vsel %vm537_vm1, %v2337_v49, %v2341_v51  ;;  %v15705_v62 = vld [vmem:[%s16299_s13 + $0x18] sm:$0xff]  }
  0x44   : > { %14133 = vmatpush3.bf16.msra.mxu1 %v15665_v50  ;;  %14136 = vmatprep.mubr.msk.bf16.mxu1 %vm297_vm0, %v15669_v61  ;;  %v15700_v50 = vld [vmem:[%s17921_s2 + $0xb8] sm:$0xff]   ;;  %v1026_v61 = vrot.slane %v1024_v56, 1  ;;  %v15725_v56 = vld [vmem:[%s17921_s2 + $0xe8] sm:$0xff]  }
  0x45   : > { %14134 = vmatprep.subr.bf16.mxu1 %v15667_v57  ;;  %14000 = vmatprep.subr.bf16.mxu0 %v15671_v63  ;;  %v1021_v58 = vrot.slane %v1019_v54, 1  ;;  %v15723_v54 = vld [vmem:[%s16291_s8 + $0x18] sm:$0xff]  }
  0x46   : > { %13993 = vmatmul.mubr.msk.bf16.vlgmr.msra.gmra.mrb[0].mxu0 %vm297_vm0, %v15670_v0  ;;  %v2485_v0 = vshrl.u32 %v15703_v59, 16 }
  0x47   : > { %14001 = vmatpush3.bf16.msra.mxu0 %v15671_v63  ;;  %13996 = vmatprep.mubr.msk.bf16.mxu0 %vm297_vm0, %v15676_v5  ;;  %v1022_v63 = vor.u32 %v1021_v58, %v1017_v53  ;;  %v2496_v5 = vshrl.u32 %v15704_v60, 16  ;;  %v15721_v53 = vld [vmem:[%s16299_s13 + $0x18] sm:$0xff]   ;;  %v15728_v58 = vld [vmem:[%s16291_s8 + $0x20] sm:$0xff]  }
  0x48   : > { %14135 = vmatpush3.bf16.msra.mxu1 %v15667_v57  ;;  %14002 = vmatprep.subr.bf16.mxu0 %v15674_v3  ;;  %v1028_v57 = vshrl.u32 %v15702_v52, 16  ;;  %v15722_v52 = vld [vmem:[%s17921_s2 + $0xe0] sm:$0xff]  }
  0x49   : > { %14144 = vmatprep.subr.bf16.mxu1 %v15673_v2 }
  0x4b   : > { %14137 = vmatmul.mubr.msk.bf16.vlgmr.msra.gmra.mrb[0].mxu1 %vm297_vm0, %v15672_v1  ;;  %14003 = vmatpush3.bf16.msra.mxu0 %v15674_v3  ;;  %v2487_v1 = vshll.u32 %v15703_v59, 16  ;;  %v15706_v3 = vld [vmem:[%s17921_s2 + $0xc0] sm:$0xff]   ;;  %v15726_v59 = vld [vmem:[%s17921_s2 + $0xe8] sm:$0xff]  }
  0x4c   : > { %14145 = vmatpush3.bf16.msra.mxu1 %v15673_v2  ;;  %14140 = vmatprep.mubr.msk.bf16.mxu1 %vm297_vm0, %v15677_v6  ;;  %v2492_v2 = vshll.u32 %v15704_v60, 16  ;;  %v1032_v6 = vshll.u32 %v15705_v62, 16  ;;  %v15730_v60 = vld [vmem:[%s17921_s2 + $0xf0] sm:$0xff]  }
  0x4d   : > { %14146 = vmatprep.subr.bf16.mxu1 %v15675_v4  ;;  %14004 = vmatprep.subr.bf16.mxu0 %v15679_v7 }
  0x4e   : > { %13997 = vmatmul.mubr.msk.bf16.gmra.mrb[4].mxu0 %vm297_vm0, %v15678_v8  ;;  %v2489_v8 = vrot.slane %v2487_v1, 1  ;;  %v15734_v1 = vld [vmem:[%s17921_s2 + $0xf8] sm:$0xff]  }
  0x4f   : > { %14005 = vmatpush3.bf16.msra.mxu0 %v15679_v7  ;;  %14008 = vmatprep.mubr.msk.bf16.mxu0 %vm297_vm0, %v15684_v13  ;;  %v1027_v7 = vsel %vm537_vm1, %v1022_v63, %v1026_v61  ;;  %v15732_v63 = vld [vmem:[%s17921_s2 + $0xf0] sm:$0xff]  }
  0x50   : > { %14147 = vmatpush3.bf16.msra.mxu1 %v15675_v4  ;;  %14006 = vmatprep.subr.bf16.mxu0 %v15682_v11  ;;  %v1030_v4 = vor.u32 %v1028_v57, %v1026_v61  ;;  %v2490_v13 = vor.u32 %v2489_v8, %v2485_v0  ;;  %v15727_v57 = vld [vmem:[%s16299_s13 + $0x20] sm:$0xff]   ;;  %v15729_v61 = vld [vmem:[%s16299_s13 + $0x28] sm:$0xff]   ;;  %v15733_v0 = vld [vmem:[%s17921_s2 + $0xf8] sm:$0xff]  }
  0x51   : > { %14148 = vmatprep.subr.bf16.mxu1 %v15681_v10 }
  0x53   : > { %14141 = vmatmul.mubr.msk.bf16.gmra.mrb[4].mxu1 %vm297_vm0, %v15680_v9  ;;  %14007 = vmatpush3.bf16.msra.mxu0 %v15682_v11  ;;  %v2494_v9 = vrot.slane %v2492_v2, 1  ;;  %v15708_v11 = vld [vmem:[%s17921_s2 + $0xc0] sm:$0xff]   ;;  %v15735_v2 = vld [vmem:[%s16291_s8 + $0x10] sm:$0xff]  }
  0x54   : > { %14149 = vmatpush3.bf16.msra.mxu1 %v15681_v10  ;;  %14016 = vmatprep.subr.bf16.mxu0 %v15688_v21  ;;  %v15707_v10 = vld [vmem:[%s16291_s8 + $0x18] sm:$0xff]  }
  0x55   : > { %14150 = vmatprep.subr.bf16.mxu1 %v15683_v12  ;;  %14152 = vmatprep.mubr.msk.bf16.mxu1 %vm297_vm0, %v2318_v32  ;;  %v2498_v14 = vor.u32 %v2496_v5, %v2494_v9  ;;  %v2500_v15 = vshll.u32 %v15707_v10, 16  ;;  %v2495_v18 = vsel %vm537_vm1, %v2490_v13, %v2494_v9  ;;  %v2504_v24 = vshrl.u32 %v15707_v10, 16  ;;  %v15738_v5 = vld [vmem:[%s16291_s8 + $0x18] sm:$0xff]   ;;  %v15739_v10 = vld [vmem:[%s17921_s2 + $0x100] sm:$0xff]  }
  0x56   : > { %14009 = vmatmul.mubr.msk.bf16.vlgmr.msra.gmra.mrb[0].mxu0 %vm297_vm0, %v15687_v16  ;;  %v15709_v16 = vld [vmem:[%s17921_s2 + $0xc8] sm:$0xff]   ;;  %v1044_v32 = vshrl.u32 %v15711_v20, 16  ;;  %v15740_v13 = vld [vmem:[%s16299_s13 + $0x20] sm:$0xff]  }
  0x57   : > { %14017 = vmatpush3.bf16.msra.mxu0 %v15688_v21  ;;  %14012 = vmatprep.mubr.msk.bf16.mxu0 %vm297_vm0, %v15693_v34  ;;  %v2502_v19 = vrot.slane %v2500_v15, 1  ;;  %v1036_v21 = vshrl.u32 %v15705_v62, 16  ;;  %v1042_v34 = vrot.slane %v1040_v27, 1  ;;  %v15731_v62 = vld [vmem:[%s16291_s8 + $0x28] sm:$0xff]   ;;  %v2818_v20 = vshrl.u32 %v15740_v13, 16 }
  0x58   : > { %14151 = vmatpush3.bf16.msra.mxu1 %v15683_v12  ;;  %14018 = vmatprep.subr.bf16.mxu0 %v15691_v29  ;;  %v1034_v12 = vrot.slane %v1032_v6, 1 }
  0x59   : > { %14160 = vmatprep.subr.bf16.mxu1 %v15690_v25  ;;  %v2506_v31 = vor.u32 %v2504_v24, %v2502_v19  ;;  %v1046_v41 = vor.u32 %v1044_v32, %v1042_v34  ;;  %v15745_v24 = vld [vmem:[%s16299_s13 + $0x28] sm:$0xff]   ;;  %v15749_v32 = vld [vmem:[%s17921_s2 + $0x110] sm:$0xff]  }
  0x5a   : > { %v1035_v17 = vsel %vm537_vm1, %v1030_v4, %v1034_v12  ;;  %v1038_v26 = vor.u32 %v1036_v21, %v1034_v12  ;;  %v15737_v4 = vld [vmem:[%s16299_s13 + $0x18] sm:$0xff]   ;;  %v2822_v27 = vshll.u32 %v15745_v24, 16 }
  0x5b   : > { %14153 = vmatmul.mubr.msk.bf16.vlgmr.msra.gmra.mrb[0].mxu1 %vm297_vm0, %v2326_v36  ;;  %14019 = vmatpush3.bf16.msra.mxu0 %v15691_v29  ;;  %v15713_v29 = vld [vmem:[%s16299_s13 + $0x28] ss:$0 sps:$4 sm:$0x11]   ;;  %v2806_v8 = vshll.u32 %v15737_v4, 16  ;;  %v2810_v9 = vshrl.u32 %v15737_v4, 16 }
  0x5c   : > { %14161 = vmatpush3.bf16.msra.mxu1 %v15690_v25  ;;  %14020 = vmatprep.subr.bf16.mxu0 %v15696_v40  ;;  %v2503_v25 = vsel %vm537_vm1, %v2498_v14, %v2502_v19  ;;  %v1048_v36 = vshll.u32 %v15713_v29, 16  ;;  %v15741_v14 = vld [vmem:[%s17921_s2 + $0x100] sm:$0xff]   ;;  %v15743_v19 = vld [vmem:[%s17921_s2 + $0x108] sm:$0xff]   ;;  %v15747_v29 = vld [vmem:[%s17921_s2 + $0x110] sm:$0xff]   ;;  %v2824_v33 = vrot.slane %v2822_v27, 1 }
  0x5d   : > { %14162 = vmatprep.subr.bf16.mxu1 %v15692_v30  ;;  %14156 = vmatprep.mubr.msk.bf16.mxu1 %vm297_vm0, %v2334_v48  ;;  %v15718_v48 = vld [vmem:[%s17921_s2 + $0xd8] sm:$0xff]   ;;  %v2808_v12 = vrot.slane %v2806_v8, 1  ;;  %v15761_v8 = vld [vmem:[%s17921_s2 + $0x28] sm:$0xff]  }
  0x5e   : > { %14013 = vmatmul.mubr.msk.bf16.gmra.mrb[4].mxu0 %vm297_vm0, %v15695_v39  ;;  %v1043_v39 = vsel %vm537_vm1, %v1038_v26, %v1042_v34  ;;  %v1050_v42 = vrot.slane %v1048_v36, 1  ;;  %v15750_v34 = vld [vmem:[%s17921_s2 + $0x118] sm:$0xff]   ;;  %v15752_v36 = vld [vmem:[%s16299_s13 + $0x10] sm:$0xff]  }
  0x5f   : > { %14021 = vmatpush3.bf16.msra.mxu0 %v15696_v40  ;;  %14024 = vmatprep.mubr.msk.bf16.mxu0 %vm297_vm0, %v1027_v7  ;;  %v2511_v40 = vsel %vm537_vm1, %v2506_v31, %v2510_v35  ;;  %v15748_v31 = vld [vmem:[%s16299_s13 + $0x30] ss:$0 sps:$4 sm:$0x11]  }
  0x60   : > { %14163 = vmatpush3.bf16.msra.mxu1 %v15692_v30  ;;  %14022 = vmatprep.subr.bf16.mxu0 %v15699_v45  ;;  %v15714_v30 = vld [vmem:[%s17921_s2 + $0xd0] sm:$0xff]   ;;  %v1051_v47 = vsel %vm537_vm1, %v1046_v41, %v1050_v42  ;;  %v2830_v35 = vshll.u32 %v15748_v31, 16  ;;  %v15753_v41 = vld [vmem:[%s16299_s13 + $0x18] sm:$0xff]   ;;  %v1495_v42 = vshrl.u32 %v15752_v36, 16 }
  0x61   : > { %14164 = vmatprep.subr.bf16.mxu1 %v15698_v43 }
  0x63   : > { %14157 = vmatmul.mubr.msk.bf16.gmra.mrb[4].mxu1 %vm297_vm0, %v2342_v55  ;;  %14023 = vmatpush3.bf16.msra.mxu0 %v15699_v45  ;;  %v2516_v45 = vshll.u32 %v15715_v37, 16  ;;  %v15724_v55 = vld [vmem:[%s17921_s2 + $0xe0] sm:$0xff]  }
  0x64   : > { %14165 = vmatpush3.bf16.msra.mxu1 %v15698_v43  ;;  %14032 = vmatprep.subr.bf16.mxu0 %v15706_v3  ;;  %v15719_v43 = vld [vmem:[%s16299_s13 + $0x10] sm:$0xff]  }
  0x65   : > { %14166 = vmatprep.subr.bf16.mxu1 %v15700_v50  ;;  %14168 = vmatprep.mubr.msk.bf16.mxu1 %vm297_vm0, %v2495_v18  ;;  %v2518_v49 = vrot.slane %v2516_v45, 1  ;;  %v15742_v18 = vld [vmem:[%s17921_s2 + $0x108] sm:$0xff]   ;;  %v1502_v45 = vshll.u32 %v15753_v41, 16 }
  0x66   : > { %14025 = vmatmul.mubr.msk.bf16.vlgmr.msra.gmra.mrb[0].mxu0 %vm297_vm0, %v1035_v17  ;;  %v2814_v17 = vshll.u32 %v15740_v13, 16 }
  0x67   : > { %14033 = vmatpush3.bf16.msra.mxu0 %v15706_v3  ;;  %14028 = vmatprep.mubr.msk.bf16.mxu0 %vm297_vm0, %v1043_v39  ;;  %v2519_v51 = vsel %vm537_vm1, %v2514_v44, %v2518_v49  ;;  %v15736_v3 = vld [vmem:[%s16299_s13 + $0x10] sm:$0xff]   ;;  %v15751_v39 = vld [vmem:[%s17921_s2 + $0x118] sm:$0xff]  }
  0x68   : > { %14167 = vmatpush3.bf16.msra.mxu1 %v15700_v50  ;;  %14034 = vmatprep.subr.bf16.mxu0 %v15709_v16  ;;  %v15720_v50 = vld [vmem:[%s16291_s8 + $0x10] sm:$0xff]   ;;  %v2799_v6 = vshrl.u32 %v15736_v3, 16  ;;  %v2801_v7 = vshll.u32 %v15736_v3, 16  ;;  %v2816_v22 = vrot.slane %v2814_v17, 1  ;;  %v15755_v49 = vld [vmem:[%s16291_s8 + $0x18] sm:$0xff]  }
  0x69   : > { %14176 = vmatprep.subr.bf16.mxu1 %v15708_v11  ;;  %v15764_v17 = vld [vmem:[%s16299_s13 + $0x30] ss:$0 sps:$4 sm:$0x11]  }
  0x6a   : > { %v2820_v26 = vor.u32 %v2818_v20, %v2816_v22 }
  0x6b   : > { %14169 = vmatmul.mubr.msk.bf16.vlgmr.msra.gmra.mrb[0].mxu1 %vm297_vm0, %v2503_v25  ;;  %14035 = vmatpush3.bf16.msra.mxu0 %v15709_v16  ;;  %v2812_v16 = vor.u32 %v2810_v9, %v2808_v12 }
  0x6c   : > { %14177 = vmatpush3.bf16.msra.mxu1 %v15708_v11  ;;  %14036 = vmatprep.subr.bf16.mxu0 %v15714_v30  ;;  %v2803_v11 = vrot.slane %v2801_v7, 1  ;;  %v2825_v37 = vsel %vm537_vm1, %v2820_v26, %v2824_v33  ;;  %v15767_v26 = vld [vmem:[%s17921_s2 + $0x30] sm:$0xff]  }
  0x6d   : > { %14178 = vmatprep.subr.bf16.mxu1 %v15710_v23  ;;  %14172 = vmatprep.mubr.msk.bf16.mxu1 %vm297_vm0, %v2511_v40  ;;  %v2817_v25 = vsel %vm537_vm1, %v2812_v16, %v2816_v22  ;;  %v2832_v40 = vrot.slane %v2830_v35, 1  ;;  %v15765_v22 = vld [vmem:[%s16291_s8 + $0x30] ss:$0 sps:$4 sm:$0x11]  }
  0x6e   : > { %14029 = vmatmul.mubr.msk.bf16.gmra.mrb[4].mxu0 %vm297_vm0, %v1051_v47  ;;  %v2804_v15 = vor.u32 %v2803_v11, %v2799_v6  ;;  %v15760_v6 = vld [vmem:[%s17921_s2 + $0x28] sm:$0xff]  }
  0x6f   : > { %14037 = vmatpush3.bf16.msra.mxu0 %v15714_v30  ;;  %14040 = vmatprep.mubr.msk.bf16.mxu0 %vm297_vm0, %v15719_v43  ;;  %v2826_v30 = vshrl.u32 %v15745_v24, 16  ;;  %v1497_v43 = vshll.u32 %v15752_v36, 16  ;;  %v1526_v24 = vshll.u32 %v15764_v17, 16  ;;  %v15769_v36 = vld [vmem:[%s17921_s2 + $0x38] sm:$0xff]   ;;  %v15789_v17 = vld [vmem:[%s16299_s13 + $0x28] sm:$0xff]  }
  0x70   : > { %14179 = vmatpush3.bf16.msra.mxu1 %v15710_v23  ;;  %14038 = vmatprep.subr.bf16.mxu0 %v15717_v46  ;;  %v2809_v21 = vsel %vm537_vm1, %v2804_v15, %v2808_v12  ;;  %v15744_v23 = vld [vmem:[%s16291_s8 + $0x20] sm:$0xff]   ;;  %v15762_v12 = vld [vmem:[%s16299_s13 + $0x28] sm:$0xff]  }
  0x71   : > { %14180 = vmatprep.subr.bf16.mxu1 %v15716_v38  ;;  %v1499_v47 = vrot.slane %v1497_v43, 1  ;;  %v1518_v16 = vshll.u32 %v15762_v12, 16  ;;  %v1528_v31 = vrot.slane %v1526_v24, 1  ;;  %v15798_v24 = vld [vmem:[%s17921_s2 + $0x50] sm:$0xff]  }
  0x73   : > { %14173 = vmatmul.mubr.msk.bf16.gmra.mrb[4].mxu1 %vm297_vm0, %v2519_v51  ;;  %14039 = vmatpush3.bf16.msra.mxu0 %v15717_v46  ;;  %v1506_v46 = vshrl.u32 %v15753_v41, 16  ;;  %v15756_v51 = vld [vmem:[%s16299_s13 + $0x20] sm:$0xff]   ;;  %v15772_v41 = vld [vmem:[%s16299_s13 + $0x28] sm:$0xff]  }
  0x74   : > { %14181 = vmatpush3.bf16.msra.mxu1 %v15716_v38  ;;  %14184 = vmatprep.mubr.msk.bf16.mxu1 %vm297_vm0, %v15720_v50  ;;  %v2828_v38 = vor.u32 %v2826_v30, %v2824_v33  ;;  %v1504_v50 = vrot.slane %v1502_v45, 1  ;;  %v1514_v9 = vshrl.u32 %v15756_v51, 16  ;;  %v15774_v45 = vld [vmem:[%s17921_s2] sm:$0xff]  }
  0x75   : > { %14182 = vmatprep.subr.bf16.mxu1 %v15718_v48  ;;  %14048 = vmatprep.subr.bf16.mxu0 %v15722_v52 }
  0x76   : > { %14041 = vmatmul.mubr.msk.bf16.vlgmr.msra.gmra.mrb[0].mxu0 %vm297_vm0, %v15721_v53  ;;  %v2833_v44 = vsel %vm537_vm1, %v2828_v38, %v2832_v40  ;;  %v15771_v40 = vld [vmem:[%s16299_s13 + $0x20] sm:$0xff]  }
  0x77   : > { %14049 = vmatpush3.bf16.msra.mxu0 %v15722_v52  ;;  %14044 = vmatprep.mubr.msk.bf16.mxu0 %vm297_vm0, %v15727_v57  ;;  %v1500_v52 = vor.u32 %v1499_v47, %v1495_v42  ;;  %v1508_v57 = vor.u32 %v1506_v46, %v1504_v50  ;;  %v4610_v42 = vshrl.u32 %v15771_v40, 16  ;;  %v4612_v43 = vshll.u32 %v15771_v40, 16 }
  0x78   : > { %14183 = vmatpush3.bf16.msra.mxu1 %v15718_v48  ;;  %14050 = vmatprep.subr.bf16.mxu0 %v15725_v56  ;;  %v15754_v48 = vld [vmem:[%s16291_s8 + $0x10] sm:$0xff]   ;;  %v4617_v46 = vshll.u32 %v15772_v41, 16  ;;  %v4621_v47 = vshrl.u32 %v15772_v41, 16 }
  0x79   : > { %14192 = vmatprep.subr.bf16.mxu1 %v15724_v55  ;;  %v2976_v53 = vshrl.u32 %v15754_v48, 16 }
  0x7b   : > { %14185 = vmatmul.mubr.msk.bf16.vlgmr.msra.gmra.mrb[0].mxu1 %vm297_vm0, %v15723_v54  ;;  %14051 = vmatpush3.bf16.msra.mxu0 %v15725_v56  ;;  %v2978_v54 = vshll.u32 %v15754_v48, 16  ;;  %v15757_v56 = vld [vmem:[%s16291_s8 + $0x20] sm:$0xff]   ;;  %v4614_v48 = vrot.slane %v4612_v43, 1 }
  0x7c   : > { %14193 = vmatpush3.bf16.msra.mxu1 %v15724_v55  ;;  %14188 = vmatprep.mubr.msk.bf16.mxu1 %vm297_vm0, %v15728_v58  ;;  %v2983_v55 = vshll.u32 %v15755_v49, 16  ;;  %v2987_v58 = vshrl.u32 %v15755_v49, 16  ;;  %v2995_v13 = vshrl.u32 %v15757_v56, 16  ;;  %v15775_v49 = vld [vmem:[%s16299_s13 + $0x30] sm:$0xff]  }
  0x7d   : > { %14194 = vmatprep.subr.bf16.mxu1 %v15726_v59  ;;  %14052 = vmatprep.subr.bf16.mxu0 %v15730_v60 }
  0x7e   : > { %14045 = vmatmul.mubr.msk.bf16.gmra.mrb[4].mxu0 %vm297_vm0, %v15729_v61  ;;  %v2980_v61 = vrot.slane %v2978_v54, 1  ;;  %v15777_v54 = vld [vmem:[%s17921_s2 + $0x8] sm:$0xff]  }
  0x7f   : > { %14053 = vmatpush3.bf16.msra.mxu0 %v15730_v60  ;;  %14056 = vmatprep.mubr.msk.bf16.mxu0 %vm297_vm0, %v15735_v2  ;;  %v1505_v60 = vsel %vm537_vm1, %v1500_v52, %v1504_v50  ;;  %v15759_v2 = vld [vmem:[%s17921_s2 + $0x20] sm:$0xff]   ;;  %v4619_v50 = vrot.slane %v4617_v46, 1  ;;  %v4615_v52 = vor.u32 %v4614_v48, %v4610_v42 }
  0x80   : > { %14195 = vmatpush3.bf16.msra.mxu1 %v15726_v59  ;;  %14054 = vmatprep.subr.bf16.mxu0 %v15733_v0  ;;  %v1510_v59 = vshll.u32 %v15756_v51, 16  ;;  %v2981_v3 = vor.u32 %v2980_v61, %v2976_v53  ;;  %v15776_v51 = vld [vmem:[%s17921_s2] sm:$0xff]   ;;  %v4625_v53 = vshll.u32 %v15775_v49, 16  ;;  %v15780_v61 = vld [vmem:[%s16299_s13 + $0x38] sm:$0xff]  }
  0x81   : > { %14196 = vmatprep.subr.bf16.mxu1 %v15732_v63  ;;  %v15808_v46 = vld [vmem:[%s17921_s2 + $0x60] sm:$0xff]  }
  0x83   : > { %14189 = vmatmul.mubr.msk.bf16.gmra.mrb[4].mxu1 %vm297_vm0, %v15731_v62  ;;  %14055 = vmatpush3.bf16.msra.mxu0 %v15733_v0  ;;  %v2985_v62 = vrot.slane %v2983_v55, 1  ;;  %v15758_v0 = vld [vmem:[%s17921_s2 + $0x20] sm:$0xff]   ;;  %v4623_v55 = vor.u32 %v4621_v47, %v4619_v50 }
  0x84   : > { %14197 = vmatpush3.bf16.msra.mxu1 %v15732_v63  ;;  %14064 = vmatprep.subr.bf16.mxu0 %v15739_v10  ;;  %v2991_v63 = vshll.u32 %v15757_v56, 16  ;;  %v15778_v56 = vld [vmem:[%s17921_s2 + $0x8] sm:$0xff]  }
  0x85   : > { %14198 = vmatprep.subr.bf16.mxu1 %v15734_v1  ;;  %14200 = vmatprep.mubr.msk.bf16.mxu1 %vm297_vm0, %v2809_v21  ;;  %v2989_v4 = vor.u32 %v2987_v58, %v2985_v62  ;;  %v4620_v58 = vsel %vm537_vm1, %v4615_v52, %v4619_v50  ;;  %v15809_v50 = vld [vmem:[%s16291_s8 + $0x30] sm:$0xff]  }
  0x86   : > { %14057 = vmatmul.mubr.msk.bf16.vlgmr.msra.gmra.mrb[0].mxu0 %vm297_vm0, %v15738_v5  ;;  %v2993_v5 = vrot.slane %v2991_v63, 1  ;;  %v15781_v63 = vld [vmem:[%s16291_s8 + $0x38] sm:$0xff]  }
  0x87   : > { %14065 = vmatpush3.bf16.msra.mxu0 %v15739_v10  ;;  %14060 = vmatprep.mubr.msk.bf16.mxu0 %vm297_vm0, %v15744_v23  ;;  %v2986_v10 = vsel %vm537_vm1, %v2981_v3, %v2985_v62  ;;  %v1520_v23 = vrot.slane %v1518_v16, 1  ;;  %v15783_v3 = vld [vmem:[%s16299_s13 + $0x40] ss:$0 sps:$4 sm:$0x11]  }
  0x88   : > { %14199 = vmatpush3.bf16.msra.mxu1 %v15734_v1  ;;  %14066 = vmatprep.subr.bf16.mxu0 %v15742_v18  ;;  %v1512_v1 = vrot.slane %v1510_v59, 1  ;;  %v2994_v11 = vsel %vm537_vm1, %v2989_v4, %v2993_v5  ;;  %v2997_v20 = vor.u32 %v2995_v13, %v2993_v5  ;;  %v4627_v59 = vrot.slane %v4625_v53, 1  ;;  %v15787_v13 = vld [vmem:[%s16299_s13 + $0x20] sm:$0xff]  }
  0x89   : > { %14208 = vmatprep.subr.bf16.mxu1 %v15741_v14  ;;  %v4637_v4 = vshrl.u32 %v15780_v61, 16  ;;  %v15790_v16 = vld [vmem:[%s17921_s2 + $0x40] sm:$0xff]  }
  0x8a   : > { %v1513_v7 = vsel %vm537_vm1, %v1508_v57, %v1512_v1  ;;  %v1516_v15 = vor.u32 %v1514_v9, %v1512_v1  ;;  %v4629_v57 = vshrl.u32 %v15775_v49, 16  ;;  %v4628_v62 = vsel %vm537_vm1, %v4623_v55, %v4627_v59 }
  0x8b   : > { %14201 = vmatmul.mubr.msk.bf16.vlgmr.msra.gmra.mrb[0].mxu1 %vm297_vm0, %v2817_v25  ;;  %14067 = vmatpush3.bf16.msra.mxu0 %v15742_v18  ;;  %v1522_v18 = vshrl.u32 %v15762_v12, 16  ;;  %v4633_v1 = vshll.u32 %v15780_v61, 16  ;;  %v4915_v55 = vshll.u32 %v15809_v50, 16 }
  0x8c   : > { %14209 = vmatpush3.bf16.msra.mxu1 %v15741_v14  ;;  %14068 = vmatprep.subr.bf16.mxu0 %v15747_v29  ;;  %v15763_v14 = vld [vmem:[%s16291_s8 + $0x28] sm:$0xff]  }
  0x8d   : > { %14210 = vmatprep.subr.bf16.mxu1 %v15743_v19  ;;  %14204 = vmatprep.mubr.msk.bf16.mxu1 %vm297_vm0, %v2825_v37  ;;  %v2999_v21 = vshll.u32 %v15763_v14, 16  ;;  %v3003_v25 = vshrl.u32 %v15763_v14, 16  ;;  %v1524_v30 = vor.u32 %v1522_v18, %v1520_v23  ;;  %v4635_v5 = vrot.slane %v4633_v1, 1  ;;  %v15788_v14 = vld [vmem:[%s16291_s8 + $0x20] sm:$0xff]   ;;  %v15791_v18 = vld [vmem:[%s16291_s8 + $0x28] sm:$0xff]  }
  0x8e   : > { %14061 = vmatmul.mubr.msk.bf16.gmra.mrb[4].mxu0 %vm297_vm0, %v15746_v28  ;;  %v3007_v28 = vshll.u32 %v15765_v22, 16  ;;  %v15795_v22 = vld [vmem:[%s16299_s13 + $0x30] sm:$0xff]   ;;  %v4919_v1 = vshrl.u32 %v15809_v50, 16 }
  0x8f   : > { %14069 = vmatpush3.bf16.msra.mxu0 %v15747_v29  ;;  %14072 = vmatprep.mubr.msk.bf16.mxu0 %vm297_vm0, %v1505_v60  ;;  %v3001_v27 = vrot.slane %v2999_v21, 1  ;;  %v1521_v29 = vsel %vm537_vm1, %v1516_v15, %v1520_v23  ;;  %v1529_v37 = vsel %vm537_vm1, %v1524_v30, %v1528_v31  ;;  %v15779_v60 = vld [vmem:[%s16291_s8 + $0x30] sm:$0xff]   ;;  %v15794_v21 = vld [vmem:[%s17921_s2 + $0x48] sm:$0xff]   ;;  %v15803_v30 = vld [vmem:[%s16299_s13 + $0x20] sm:$0xff]  }
  0x90   : > { %14211 = vmatpush3.bf16.msra.mxu1 %v15743_v19  ;;  %14070 = vmatprep.subr.bf16.mxu0 %v15750_v34  ;;  %v15766_v19 = vld [vmem:[%s17921_s2 + $0x30] sm:$0xff]   ;;  %v3009_v35 = vrot.slane %v3007_v28, 1  ;;  %v15801_v28 = vld [vmem:[%s17921_s2 + $0x58] sm:$0xff]   ;;  %v15804_v31 = vld [vmem:[%s16299_s13 + $0x28] sm:$0xff]  }
  0x91   : > { %14212 = vmatprep.subr.bf16.mxu1 %v15749_v32  ;;  %v3002_v33 = vsel %vm537_vm1, %v2997_v20, %v3001_v27  ;;  %v15793_v20 = vld [vmem:[%s17921_s2 + $0x48] sm:$0xff]   ;;  %v15796_v23 = vld [vmem:[%s16291_s8 + $0x30] sm:$0xff]  }
  0x93   : > { %14205 = vmatmul.mubr.msk.bf16.gmra.mrb[4].mxu1 %vm297_vm0, %v2833_v44  ;;  %14071 = vmatpush3.bf16.msra.mxu0 %v15750_v34  ;;  %v3005_v34 = vor.u32 %v3003_v25, %v3001_v27  ;;  %v15773_v44 = vld [vmem:[%s16291_s8 + $0x28] sm:$0xff]   ;;  %v15797_v25 = vld [vmem:[%s16299_s13 + $0x38] sm:$0xff]   ;;  %v15800_v27 = vld [vmem:[%s17921_s2 + $0x50] sm:$0xff]  }
  0x94   : > { %14213 = vmatpush3.bf16.msra.mxu1 %v15749_v32  ;;  %14224 = vmatprep.subr.bf16.mxu0 %v15758_v0  ;;  %v15768_v32 = vld [vmem:[%s17921_s2 + $0x38] sm:$0xff]  }
  0x95   : > { %14214 = vmatprep.subr.bf16.mxu1 %v15751_v39  ;;  %14216 = vmatprep.mubr.msk.bf16.mxu1 %vm297_vm0, %v2986_v10  ;;  %v3010_v38 = vsel %vm537_vm1, %v3005_v34, %v3009_v35  ;;  %v4639_v10 = vor.u32 %v4637_v4, %v4635_v5  ;;  %v3458_v34 = vshll.u32 %v15804_v31, 16  ;;  %v3462_v35 = vshrl.u32 %v15804_v31, 16  ;;  %v15815_v4 = vld [vmem:[%s16299_s13 + $0x40] ss:$0 sps:$4 sm:$0x11]   ;;  %v15823_v31 = vld [vmem:[%s16299_s13 + $0x30] sm:$0xff]  }
  0x96   : > { %14073 = vmatmul.mubr.msk.bf16.vlgmr.msra.gmra.mrb[0].mxu0 %vm297_vm0, %v1513_v7  ;;  %v4641_v7 = vshll.u32 %v15783_v3, 16  ;;  %v15814_v3 = vld [vmem:[%s16291_s8 + $0x38] sm:$0xff]  }
  0x97   : > { %14225 = vmatpush3.bf16.msra.mxu0 %v15758_v0  ;;  %14076 = vmatprep.mubr.msk.bf16.mxu0 %vm297_vm0, %v1521_v29  ;;  %v4631_v0 = vor.u32 %v4629_v57, %v4627_v59  ;;  %v15802_v29 = vld [vmem:[%s17921_s2 + $0x58] sm:$0xff]   ;;  %v3460_v40 = vrot.slane %v3458_v34, 1  ;;  %v15811_v59 = vld [vmem:[%s17921_s2 + $0x68] sm:$0xff]  }
  0x98   : > { %14215 = vmatpush3.bf16.msra.mxu1 %v15751_v39  ;;  %14226 = vmatprep.subr.bf16.mxu0 %v15760_v6  ;;  %v15770_v39 = vld [vmem:[%s16291_s8 + $0x20] sm:$0xff]   ;;  %v4643_v12 = vrot.slane %v4641_v7, 1  ;;  %v15827_v34 = vld [vmem:[%s17921_s2 + $0x88] sm:$0xff]  }
  0x99   : > { %14368 = vmatprep.subr.bf16.mxu1 %v15759_v2  ;;  %v4636_v9 = vsel %vm537_vm1, %v4631_v0, %v4635_v5  ;;  %v3464_v48 = vor.u32 %v3462_v35, %v3460_v40  ;;  %v15813_v0 = vld [vmem:[%s16299_s13 + $0x38] sm:$0xff]   ;;  %v15828_v35 = vld [vmem:[%s17921_s2 + $0x88] sm:$0xff]  }
  0x9a   : > { %v4644_v15 = vsel %vm537_vm1, %v4639_v10, %v4643_v12  ;;  %v3478_v7 = vshrl.u32 %v15813_v0, 16  ;;  %v3482_v10 = vshll.u32 %v15815_v4, 16  ;;  %v4927_v12 = vshrl.u32 %v15814_v3, 16 }
  0x9b   : > { %14217 = vmatmul.mubr.msk.bf16.vlgmr.msra.gmra.mrb[0].mxu1 %vm297_vm0, %v2994_v11  ;;  %14227 = vmatpush3.bf16.msra.mxu0 %v15760_v6  ;;  %v15784_v6 = vld [vmem:[%s17921_s2 + $0x10] sm:$0xff]   ;;  %v15786_v11 = vld [vmem:[%s17921_s2 + $0x18] sm:$0xff]  }
  0x9c   : > { %14369 = vmatpush3.bf16.msra.mxu1 %v15759_v2  ;;  %14228 = vmatprep.subr.bf16.mxu0 %v15766_v19  ;;  %v15782_v2 = vld [vmem:[%s17921_s2 + $0x10] sm:$0xff]  }
  0x9d   : > { %14370 = vmatprep.subr.bf16.mxu1 %v15761_v8  ;;  %14220 = vmatprep.mubr.msk.bf16.mxu1 %vm297_vm0, %v3002_v33  ;;  %v3453_v33 = vshll.u32 %v15803_v30, 16 }
  0x9e   : > { %14077 = vmatmul.mubr.msk.bf16.gmra.mrb[4].mxu0 %vm297_vm0, %v1529_v37  ;;  %v15806_v37 = vld [vmem:[%s16291_s8 + $0x28] sm:$0xff]  }
  0x9f   : > { %14229 = vmatpush3.bf16.msra.mxu0 %v15766_v19  ;;  %14232 = vmatprep.mubr.msk.bf16.mxu0 %vm297_vm0, %v15770_v39  ;;  %v15792_v19 = vld [vmem:[%s17921_s2 + $0x40] sm:$0xff]   ;;  %v3455_v39 = vrot.slane %v3453_v33, 1  ;;  %v4907_v43 = vshll.u32 %v15806_v37, 16 }
  0xa0   : > { %14371 = vmatpush3.bf16.msra.mxu1 %v15761_v8  ;;  %14230 = vmatprep.subr.bf16.mxu0 %v15768_v32  ;;  %v15785_v8 = vld [vmem:[%s17921_s2 + $0x18] sm:$0xff]   ;;  %v15826_v33 = vld [vmem:[%s17921_s2 + $0x80] sm:$0xff]  }
  0xa1   : > { %14372 = vmatprep.subr.bf16.mxu1 %v15767_v26 }
  0xa3   : > { %14221 = vmatmul.mubr.msk.bf16.gmra.mrb[4].mxu1 %vm297_vm0, %v3010_v38  ;;  %14231 = vmatpush3.bf16.msra.mxu0 %v15768_v32  ;;  %v3451_v32 = vshrl.u32 %v15803_v30, 16  ;;  %v15807_v38 = vld [vmem:[%s16299_s13 + $0x30] sm:$0xff]   ;;  %v15824_v30 = vld [vmem:[%s17921_s2 + $0x80] sm:$0xff]  }
  0xa4   : > { %14373 = vmatpush3.bf16.msra.mxu1 %v15767_v26  ;;  %14240 = vmatprep.subr.bf16.mxu0 %v15774_v45  ;;  %v15799_v26 = vld [vmem:[%s16291_s8 + $0x38] sm:$0xff]  }
  0xa5   : > { %14374 = vmatprep.subr.bf16.mxu1 %v15769_v36  ;;  %14376 = vmatprep.mubr.msk.bf16.mxu1 %vm297_vm0, %v4620_v58  ;;  %v3456_v47 = vor.u32 %v3455_v39, %v3451_v32  ;;  %v15825_v32 = vld [vmem:[%s16291_s8 + $0x30] sm:$0xff]   ;;  %v15831_v39 = vld [vmem:[%s16299_s13 + $0x40] sm:$0xff]  }
  0xa6   : > { %14233 = vmatmul.mubr.msk.bf16.vlgmr.msra.gmra.mrb[8].mxu0 %vm297_vm0, %v15773_v44  ;;  %v4911_v44 = vshrl.u32 %v15806_v37, 16  ;;  %v15830_v37 = vld [vmem:[%s16291_s8 + $0x38] sm:$0xff]  }
  0xa7   : > { %14241 = vmatpush3.bf16.msra.mxu0 %v15774_v45  ;;  %14236 = vmatprep.mubr.msk.bf16.mxu0 %vm297_vm0, %v15779_v60  ;;  %v3466_v45 = vshll.u32 %v15807_v38, 16  ;;  %v3461_v53 = vsel %vm537_vm1, %v3456_v47, %v3460_v40  ;;  %v3470_v60 = vshrl.u32 %v15807_v38, 16  ;;  %v15832_v38 = vld [vmem:[%s17921_s2 + $0x90] sm:$0xff]   ;;  %v15833_v40 = vld [vmem:[%s16291_s8 + $0x40] sm:$0xff]  }
  0xa8   : > { %14375 = vmatpush3.bf16.msra.mxu1 %v15769_v36  ;;  %14242 = vmatprep.subr.bf16.mxu0 %v15777_v54  ;;  %v15805_v36 = vld [vmem:[%s16291_s8 + $0x20] sm:$0xff]   ;;  %v15840_v47 = vld [vmem:[%s16291_s8 + $0x30] sm:$0xff]  }
  0xa9   : > { %14384 = vmatprep.subr.bf16.mxu1 %v15776_v51  ;;  %v4900_v41 = vshrl.u32 %v15805_v36, 16  ;;  %v4902_v42 = vshll.u32 %v15805_v36, 16  ;;  %v3468_v52 = vrot.slane %v3466_v45, 1  ;;  %v15829_v36 = vld [vmem:[%s16299_s13 + $0x38] sm:$0xff]   ;;  %v15838_v45 = vld [vmem:[%s16299_s13 + $0x28] sm:$0xff]  }
  0xab   : > { %14377 = vmatmul.mubr.msk.bf16.vlgmr.msra.gmra.mrb[8].mxu1 %vm297_vm0, %v4628_v62  ;;  %14243 = vmatpush3.bf16.msra.mxu0 %v15777_v54  ;;  %v4904_v49 = vrot.slane %v4902_v42, 1  ;;  %v3469_v58 = vsel %vm537_vm1, %v3464_v48, %v3468_v52  ;;  %v4917_v62 = vrot.slane %v4915_v55, 1  ;;  %v3472_v5 = vor.u32 %v3470_v60, %v3468_v52  ;;  %v15835_v42 = vld [vmem:[%s17921_s2 + $0x98] sm:$0xff]   ;;  %v15841_v52 = vld [vmem:[%s17921_s2 + $0xa0] sm:$0xff]   ;;  %v15844_v60 = vld [vmem:[%s17921_s2 + $0xa8] sm:$0xff]  }
  0xac   : > { %14385 = vmatpush3.bf16.msra.mxu1 %v15776_v51  ;;  %14244 = vmatprep.subr.bf16.mxu0 %v15782_v2  ;;  %v4909_v51 = vrot.slane %v4907_v43, 1  ;;  %v15836_v43 = vld [vmem:[%s17921_s2 + $0x98] sm:$0xff]   ;;  %v5214_v48 = vshrl.u32 %v15838_v45, 16 }
  0xad   : > { %14386 = vmatprep.subr.bf16.mxu1 %v15778_v56  ;;  %14380 = vmatprep.mubr.msk.bf16.mxu1 %vm297_vm0, %v4636_v9  ;;  %v4905_v54 = vor.u32 %v4904_v49, %v4900_v41  ;;  %v4923_v9 = vshll.u32 %v15814_v3, 16  ;;  %v15834_v41 = vld [vmem:[%s17921_s2 + $0x90] sm:$0xff]   ;;  %v5216_v49 = vshll.u32 %v15838_v45, 16  ;;  %v15842_v55 = vld [vmem:[%s16299_s13 + $0x38] sm:$0xff]  }
  0xae   : > { %14237 = vmatmul.mubr.msk.bf16.gmra.mrb[12].mxu0 %vm297_vm0, %v15781_v63  ;;  %v4913_v57 = vor.u32 %v4911_v44, %v4909_v51  ;;  %v15812_v63 = vld [vmem:[%s17921_s2 + $0x68] sm:$0xff]  }
  0xaf   : > { %14245 = vmatpush3.bf16.msra.mxu0 %v15782_v2  ;;  %14248 = vmatprep.mubr.msk.bf16.mxu0 %vm297_vm0, %v15787_v13  ;;  %v4910_v61 = vsel %vm537_vm1, %v4905_v54, %v4909_v51  ;;  %v15837_v44 = vld [vmem:[%s16291_s8 + $0x28] sm:$0xff]  }
  0xb0   : > { %14387 = vmatpush3.bf16.msra.mxu1 %v15778_v56  ;;  %14246 = vmatprep.subr.bf16.mxu0 %v15785_v8  ;;  %v15810_v56 = vld [vmem:[%s17921_s2 + $0x60] sm:$0xff]   ;;  %v4918_v2 = vsel %vm537_vm1, %v4913_v57, %v4917_v62 }
  0xb1   : > { %14388 = vmatprep.subr.bf16.mxu1 %v15784_v6 }
  0xb3   : > { %14381 = vmatmul.mubr.msk.bf16.gmra.mrb[12].mxu1 %vm297_vm0, %v4644_v15  ;;  %14247 = vmatpush3.bf16.msra.mxu0 %v15785_v8  ;;  %v4921_v8 = vor.u32 %v4919_v1, %v4917_v62  ;;  %v4925_v15 = vrot.slane %v4923_v9, 1  ;;  %v5233_v62 = vshrl.u32 %v15842_v55, 16  ;;  %v15846_v1 = vld [vmem:[%s16291_s8 + $0x38] sm:$0xff]   ;;  %v15850_v9 = vld [vmem:[%s16299_s13 + $0x48] ss:$0 sps:$4 sm:$0x11]  }
  0xb4   : > { %14389 = vmatpush3.bf16.msra.mxu1 %v15784_v6  ;;  %14392 = vmatprep.mubr.msk.bf16.mxu1 %vm297_vm0, %v15788_v14  ;;  %v3474_v6 = vshll.u32 %v15813_v0, 16  ;;  %v15817_v14 = vld [vmem:[%s16291_s8 + $0x40] ss:$0 sps:$4 sm:$0x11]  }
  0xb5   : > { %14390 = vmatprep.subr.bf16.mxu1 %v15786_v11  ;;  %14256 = vmatprep.subr.bf16.mxu0 %v15790_v16 }
  0xb6   : > { %14249 = vmatmul.mubr.msk.bf16.vlgmr.msra.gmra.mrb[8].mxu0 %vm297_vm0, %v15789_v17  ;;  %v3476_v13 = vrot.slane %v3474_v6, 1  ;;  %v15818_v17 = vld [vmem:[%s17921_s2 + $0x70] sm:$0xff]   ;;  %v15848_v6 = vld [vmem:[%s16291_s8 + $0x40] sm:$0xff]  }
  0xb7   : > { %14257 = vmatpush3.bf16.msra.mxu0 %v15790_v16  ;;  %14252 = vmatprep.mubr.msk.bf16.mxu0 %vm297_vm0, %v15795_v22  ;;  %v3484_v16 = vrot.slane %v3482_v10, 1  ;;  %v4926_v22 = vsel %vm537_vm1, %v4921_v8, %v4925_v15  ;;  %v15851_v10 = vld [vmem:[%s17921_s2 + $0xb0] sm:$0xff]  }
  0xb8   : > { %14391 = vmatpush3.bf16.msra.mxu1 %v15786_v11  ;;  %14258 = vmatprep.subr.bf16.mxu0 %v15793_v20  ;;  %v15816_v11 = vld [vmem:[%s17921_s2 + $0x70] sm:$0xff]  }
  0xb9   : > { %14400 = vmatprep.subr.bf16.mxu1 %v15792_v19 }
  0xbb   : > { %14393 = vmatmul.mubr.msk.bf16.vlgmr.msra.gmra.mrb[8].mxu1 %vm297_vm0, %v15791_v18  ;;  %14259 = vmatpush3.bf16.msra.mxu0 %v15793_v20  ;;  %v3477_v18 = vsel %vm537_vm1, %v3472_v5, %v3476_v13  ;;  %v4931_v20 = vshll.u32 %v15817_v14, 16  ;;  %v15854_v14 = vld [vmem:[%s16299_s13 + $0x28] sm:$0xff]  }
  0xbc   : > { %14401 = vmatpush3.bf16.msra.mxu1 %v15792_v19  ;;  %14396 = vmatprep.mubr.msk.bf16.mxu1 %vm297_vm0, %v15796_v23  ;;  %v3480_v19 = vor.u32 %v3478_v7, %v3476_v13  ;;  %v4929_v23 = vor.u32 %v4927_v12, %v4925_v15  ;;  %v15849_v7 = vld [vmem:[%s17921_s2 + $0xb0] sm:$0xff]   ;;  %v15852_v12 = vld [vmem:[%s17921_s2 + $0xb8] sm:$0xff]   ;;  %v5245_v13 = vshll.u32 %v15850_v9, 16 }
  0xbd   : > { %14402 = vmatprep.subr.bf16.mxu1 %v15794_v21  ;;  %14260 = vmatprep.subr.bf16.mxu0 %v15798_v24 }
  0xbe   : > { %14253 = vmatmul.mubr.msk.bf16.gmra.mrb[12].mxu0 %vm297_vm0, %v15797_v25  ;;  %v3485_v25 = vsel %vm537_vm1, %v3480_v19, %v3484_v16  ;;  %v15855_v19 = vld [vmem:[%s16299_s13 + $0x30] sm:$0xff]  }
  0xbf   : > { %14261 = vmatpush3.bf16.msra.mxu0 %v15798_v24  ;;  %14264 = vmatprep.mubr.msk.bf16.mxu0 %vm297_vm0, %v3461_v53  ;;  %v15820_v24 = vld [vmem:[%s17921_s2 + $0x78] sm:$0xff]   ;;  %v5218_v53 = vrot.slane %v5216_v49, 1 }
  0xc0   : > { %14403 = vmatpush3.bf16.msra.mxu1 %v15794_v21  ;;  %14262 = vmatprep.subr.bf16.mxu0 %v15801_v28  ;;  %v15819_v21 = vld [vmem:[%s17921_s2 + $0x78] sm:$0xff]  }
  0xc1   : > { %14404 = vmatprep.subr.bf16.mxu1 %v15800_v27  ;;  %v5219_v57 = vor.u32 %v5218_v53, %v5214_v48  ;;  %v15865_v53 = vld [vmem:[%s16291_s8 + $0x40] sm:$0xff]  }
  0xc3   : > { %14397 = vmatmul.mubr.msk.bf16.gmra.mrb[12].mxu1 %vm297_vm0, %v15799_v26  ;;  %14263 = vmatpush3.bf16.msra.mxu0 %v15801_v28  ;;  %v4933_v26 = vrot.slane %v4931_v20, 1  ;;  %v15822_v28 = vld [vmem:[%s16291_s8 + $0x28] sm:$0xff]   ;;  %v3926_v20 = vshrl.u32 %v15854_v14, 16 }
  0xc4   : > { %14405 = vmatpush3.bf16.msra.mxu1 %v15800_v27  ;;  %14272 = vmatprep.subr.bf16.mxu0 %v15808_v46  ;;  %v15821_v27 = vld [vmem:[%s16299_s13 + $0x28] sm:$0xff]  }
  0xc5   : > { %14406 = vmatprep.subr.bf16.mxu1 %v15802_v29  ;;  %14408 = vmatprep.mubr.msk.bf16.mxu1 %vm297_vm0, %v4910_v61  ;;  %v15845_v61 = vld [vmem:[%s17921_s2 + $0xa8] sm:$0xff]  }
  0xc6   : > { %14265 = vmatmul.mubr.msk.bf16.vlgmr.msra.gmra.mrb[8].mxu0 %vm297_vm0, %v3469_v58 }
  0xc7   : > { %14273 = vmatpush3.bf16.msra.mxu0 %v15808_v46  ;;  %14268 = vmatprep.mubr.msk.bf16.mxu0 %vm297_vm0, %v3477_v18  ;;  %v15839_v46 = vld [vmem:[%s16299_s13 + $0x30] sm:$0xff]   ;;  %v5247_v18 = vrot.slane %v5245_v13, 1  ;;  %v15870_v13 = vld [vmem:[%s17921_s2 + $0xd8] sm:$0xff]  }
  0xc8   : > { %14407 = vmatpush3.bf16.msra.mxu1 %v15802_v29  ;;  %14274 = vmatprep.subr.bf16.mxu0 %v15811_v59  ;;  %v4934_v29 = vsel %vm537_vm1, %v4929_v23, %v4933_v26  ;;  %v5221_v50 = vshll.u32 %v15839_v46, 16  ;;  %v5225_v51 = vshrl.u32 %v15839_v46, 16  ;;  %v3933_v23 = vshll.u32 %v15855_v19, 16  ;;  %v15856_v26 = vld [vmem:[%s16291_s8 + $0x28] sm:$0xff]  }
  0xc9   : > { %14416 = vmatprep.subr.bf16.mxu1 %v15810_v56 }
  0xca   : > { %v5223_v54 = vrot.slane %v5221_v50, 1 }
  0xcb   : > { %14409 = vmatmul.mubr.msk.bf16.vlgmr.msra.gmra.mrb[8].mxu1 %vm297_vm0, %v4918_v2  ;;  %14275 = vmatpush3.bf16.msra.mxu0 %v15811_v59  ;;  %v5229_v59 = vshll.u32 %v15842_v55, 16  ;;  %v15847_v2 = vld [vmem:[%s16299_s13 + $0x40] sm:$0xff]  }
  0xcc   : > { %14417 = vmatpush3.bf16.msra.mxu1 %v15810_v56  ;;  %14276 = vmatprep.subr.bf16.mxu0 %v15816_v11  ;;  %v15843_v56 = vld [vmem:[%s17921_s2 + $0xa0] sm:$0xff]   ;;  %v5227_v58 = vor.u32 %v5225_v51, %v5223_v54  ;;  %v5237_v5 = vshll.u32 %v15847_v2, 16  ;;  %v5241_v8 = vshrl.u32 %v15847_v2, 16 }
  0xcd   : > { %14418 = vmatprep.subr.bf16.mxu1 %v15812_v63  ;;  %14412 = vmatprep.mubr.msk.bf16.mxu1 %vm297_vm0, %v4926_v22  ;;  %v5231_v0 = vrot.slane %v5229_v59, 1  ;;  %v15864_v51 = vld [vmem:[%s16299_s13 + $0x40] sm:$0xff]   ;;  %v5414_v59 = vshll.u32 %v15865_v53, 16 }
  0xce   : > { %14269 = vmatmul.mubr.msk.bf16.gmra.mrb[12].mxu0 %vm297_vm0, %v3485_v25 }
  0xcf   : > { %14277 = vmatpush3.bf16.msra.mxu0 %v15816_v11  ;;  %14280 = vmatprep.mubr.msk.bf16.mxu0 %vm297_vm0, %v15821_v27  ;;  %v5232_v3 = vsel %vm537_vm1, %v5227_v58, %v5231_v0  ;;  %v5235_v4 = vor.u32 %v5233_v62, %v5231_v0  ;;  %v5239_v11 = vrot.slane %v5237_v5, 1  ;;  %v15857_v27 = vld [vmem:[%s16291_s8 + $0x30] sm:$0xff]   ;;  %v3949_v58 = vshll.u32 %v15864_v51, 16 }
  0xd0   : > { %14419 = vmatpush3.bf16.msra.mxu1 %v15812_v63  ;;  %14278 = vmatprep.subr.bf16.mxu0 %v15819_v21  ;;  %v5224_v63 = vsel %vm537_vm1, %v5219_v57, %v5223_v54  ;;  %v15863_v54 = vld [vmem:[%s17921_s2 + $0xc8] sm:$0xff]   ;;  %v5418_v0 = vshrl.u32 %v15865_v53, 16  ;;  %v5416_v2 = vrot.slane %v5414_v59, 1  ;;  %v15869_v5 = vld [vmem:[%s17921_s2 + $0xd0] sm:$0xff]  }
  0xd1   : > { %14420 = vmatprep.subr.bf16.mxu1 %v15818_v17  ;;  %v5240_v15 = vsel %vm537_vm1, %v5235_v4, %v5239_v11  ;;  %v5243_v16 = vor.u32 %v5241_v8, %v5239_v11  ;;  %v15868_v4 = vld [vmem:[%s16291_s8 + $0x48] ss:$0 sps:$4 sm:$0x11]  }
  0xd2   : > { %v5420_v11 = vor.u32 %v5418_v0, %v5416_v2  ;;  %v15899_v59 = vld [vmem:[%s16291_s8 + $0x48] sm:$0xff]  }
  0xd3   : > { %14413 = vmatmul.mubr.msk.bf16.gmra.mrb[12].mxu1 %vm297_vm0, %v4934_v29  ;;  %14279 = vmatpush3.bf16.msra.mxu0 %v15819_v21  ;;  %v3928_v21 = vshll.u32 %v15854_v14, 16  ;;  %v5248_v22 = vsel %vm537_vm1, %v5243_v16, %v5247_v18  ;;  %v15858_v29 = vld [vmem:[%s16299_s13 + $0x38] sm:$0xff]  }
  0xd4   : > { %14421 = vmatpush3.bf16.msra.mxu1 %v15818_v17  ;;  %14424 = vmatprep.mubr.msk.bf16.mxu1 %vm297_vm0, %v15822_v28  ;;  %v15853_v17 = vld [vmem:[%s17921_s2 + $0xb8] sm:$0xff]   ;;  %v3935_v28 = vrot.slane %v3933_v23, 1  ;;  %v15878_v23 = vld [vmem:[%s17921_s2 + $0xe8] sm:$0xff]  }
  0xd5   : > { %14422 = vmatprep.subr.bf16.mxu1 %v15820_v24  ;;  %14288 = vmatprep.subr.bf16.mxu0 %v15824_v30  ;;  %v3930_v25 = vrot.slane %v3928_v21, 1  ;;  %v15876_v21 = vld [vmem:[%s16291_s8 + $0x38] sm:$0xff]  }
  0xd6   : > { %14281 = vmatmul.mubr.msk.bf16.vlgmr.msra.gmra.mrb[8].mxu0 %vm297_vm0, %v15823_v31  ;;  %v5391_v31 = vshrl.u32 %v15856_v26, 16 }
  0xd7   : > { %14289 = vmatpush3.bf16.msra.mxu0 %v15824_v30  ;;  %14284 = vmatprep.mubr.msk.bf16.mxu0 %vm297_vm0, %v15829_v36  ;;  %v3931_v30 = vor.u32 %v3930_v25, %v3926_v20  ;;  %v5402_v36 = vshrl.u32 %v15857_v27, 16  ;;  %v15874_v20 = vld [vmem:[%s16299_s13 + $0x38] sm:$0xff]   ;;  %v15881_v25 = vld [vmem:[%s16291_s8 + $0x40] sm:$0xff]  }
  0xd8   : > { %14423 = vmatpush3.bf16.msra.mxu1 %v15820_v24  ;;  %14290 = vmatprep.subr.bf16.mxu0 %v15827_v34  ;;  %v3937_v24 = vshrl.u32 %v15855_v19, 16  ;;  %v15875_v19 = vld [vmem:[%s17921_s2 + $0xe0] sm:$0xff]  }
  0xd9   : > { %14432 = vmatprep.subr.bf16.mxu1 %v15826_v33 }
  0xdb   : > { %14425 = vmatmul.mubr.msk.bf16.vlgmr.msra.gmra.mrb[8].mxu1 %vm297_vm0, %v15825_v32  ;;  %14291 = vmatpush3.bf16.msra.mxu0 %v15827_v34  ;;  %v5393_v32 = vshll.u32 %v15856_v26, 16  ;;  %v15859_v34 = vld [vmem:[%s17921_s2 + $0xc0] sm:$0xff]   ;;  %v15879_v26 = vld [vmem:[%s17921_s2 + $0xe8] sm:$0xff]  }
  0xdc   : > { %14433 = vmatpush3.bf16.msra.mxu1 %v15826_v33  ;;  %14428 = vmatprep.mubr.msk.bf16.mxu1 %vm297_vm0, %v15830_v37  ;;  %v5398_v33 = vshll.u32 %v15857_v27, 16  ;;  %v3941_v37 = vshll.u32 %v15858_v29, 16  ;;  %v15883_v27 = vld [vmem:[%s17921_s2 + $0xf0] sm:$0xff]  }
  0xdd   : > { %14434 = vmatprep.subr.bf16.mxu1 %v15828_v35  ;;  %14292 = vmatprep.subr.bf16.mxu0 %v15832_v38 }
  0xde   : > { %14285 = vmatmul.mubr.msk.bf16.gmra.mrb[12].mxu0 %vm297_vm0, %v15831_v39  ;;  %v5395_v39 = vrot.slane %v5393_v32, 1  ;;  %v15887_v32 = vld [vmem:[%s17921_s2 + $0xf8] sm:$0xff]  }
  0xdf   : > { %14293 = vmatpush3.bf16.msra.mxu0 %v15832_v38  ;;  %14296 = vmatprep.mubr.msk.bf16.mxu0 %vm297_vm0, %v15837_v44  ;;  %v3936_v38 = vsel %vm537_vm1, %v3931_v30, %v3935_v28  ;;  %v15885_v30 = vld [vmem:[%s17921_s2 + $0xf0] sm:$0xff]  }
  0xe0   : > { %14435 = vmatpush3.bf16.msra.mxu1 %v15828_v35  ;;  %14294 = vmatprep.subr.bf16.mxu0 %v15835_v42  ;;  %v3939_v35 = vor.u32 %v3937_v24, %v3935_v28  ;;  %v5396_v44 = vor.u32 %v5395_v39, %v5391_v31  ;;  %v15880_v24 = vld [vmem:[%s16299_s13 + $0x40] sm:$0xff]   ;;  %v15882_v28 = vld [vmem:[%s16299_s13 + $0x48] sm:$0xff]   ;;  %v15886_v31 = vld [vmem:[%s17921_s2 + $0xf8] sm:$0xff]  }
  0xe1   : > { %14436 = vmatprep.subr.bf16.mxu1 %v15834_v41 }
  0xe3   : > { %14429 = vmatmul.mubr.msk.bf16.gmra.mrb[12].mxu1 %vm297_vm0, %v15833_v40  ;;  %14295 = vmatpush3.bf16.msra.mxu0 %v15835_v42  ;;  %v5400_v40 = vrot.slane %v5398_v33, 1  ;;  %v15861_v42 = vld [vmem:[%s17921_s2 + $0xc0] sm:$0xff]   ;;  %v15888_v33 = vld [vmem:[%s16291_s8 + $0x30] sm:$0xff]  }
  0xe4   : > { %14437 = vmatpush3.bf16.msra.mxu1 %v15834_v41  ;;  %14304 = vmatprep.subr.bf16.mxu0 %v15841_v52  ;;  %v15860_v41 = vld [vmem:[%s16291_s8 + $0x38] sm:$0xff]  }
  0xe5   : > { %14438 = vmatprep.subr.bf16.mxu1 %v15836_v43  ;;  %14440 = vmatprep.mubr.msk.bf16.mxu1 %vm297_vm0, %v5224_v63  ;;  %v5404_v45 = vor.u32 %v5402_v36, %v5400_v40  ;;  %v5406_v46 = vshll.u32 %v15860_v41, 16  ;;  %v5401_v49 = vsel %vm537_vm1, %v5396_v44, %v5400_v40  ;;  %v5410_v55 = vshrl.u32 %v15860_v41, 16  ;;  %v15891_v36 = vld [vmem:[%s16291_s8 + $0x38] sm:$0xff]   ;;  %v15892_v41 = vld [vmem:[%s17921_s2 + $0x100] sm:$0xff]  }
  0xe6   : > { %14297 = vmatmul.mubr.msk.bf16.vlgmr.msra.gmra.mrb[8].mxu0 %vm297_vm0, %v15840_v47  ;;  %v15862_v47 = vld [vmem:[%s17921_s2 + $0xc8] sm:$0xff]   ;;  %v3953_v63 = vshrl.u32 %v15864_v51, 16  ;;  %v15893_v44 = vld [vmem:[%s16299_s13 + $0x40] sm:$0xff]  }
  0xe7   : > { %14305 = vmatpush3.bf16.msra.mxu0 %v15841_v52  ;;  %14300 = vmatprep.mubr.msk.bf16.mxu0 %vm297_vm0, %v15846_v1  ;;  %v5408_v50 = vrot.slane %v5406_v46, 1  ;;  %v3945_v52 = vshrl.u32 %v15858_v29, 16  ;;  %v3951_v1 = vrot.slane %v3949_v58, 1  ;;  %v15884_v29 = vld [vmem:[%s16291_s8 + $0x48] sm:$0xff]   ;;  %v5724_v51 = vshrl.u32 %v15893_v44, 16 }
  0xe8   : > { %14439 = vmatpush3.bf16.msra.mxu1 %v15836_v43  ;;  %14306 = vmatprep.subr.bf16.mxu0 %v15844_v60  ;;  %v3943_v43 = vrot.slane %v3941_v37, 1 }
  0xe9   : > { %14448 = vmatprep.subr.bf16.mxu1 %v15843_v56  ;;  %v5412_v62 = vor.u32 %v5410_v55, %v5408_v50  ;;  %v3955_v8 = vor.u32 %v3953_v63, %v3951_v1  ;;  %v15898_v55 = vld [vmem:[%s16299_s13 + $0x48] sm:$0xff]   ;;  %v15902_v63 = vld [vmem:[%s17921_s2 + $0x110] sm:$0xff]  }
  0xea   : > { %v3944_v48 = vsel %vm537_vm1, %v3939_v35, %v3943_v43  ;;  %v3947_v57 = vor.u32 %v3945_v52, %v3943_v43  ;;  %v15890_v35 = vld [vmem:[%s16299_s13 + $0x38] sm:$0xff]   ;;  %v5728_v58 = vshll.u32 %v15898_v55, 16 }
  0xeb   : > { %14441 = vmatmul.mubr.msk.bf16.vlgmr.msra.gmra.mrb[8].mxu1 %vm297_vm0, %v5232_v3  ;;  %14307 = vmatpush3.bf16.msra.mxu0 %v15844_v60  ;;  %v15866_v60 = vld [vmem:[%s16299_s13 + $0x48] ss:$0 sps:$4 sm:$0x11]   ;;  %v5712_v39 = vshll.u32 %v15890_v35, 16  ;;  %v5716_v40 = vshrl.u32 %v15890_v35, 16 }
  0xec   : > { %14449 = vmatpush3.bf16.msra.mxu1 %v15843_v56  ;;  %14308 = vmatprep.subr.bf16.mxu0 %v15849_v7  ;;  %v5409_v56 = vsel %vm537_vm1, %v5404_v45, %v5408_v50  ;;  %v3957_v3 = vshll.u32 %v15866_v60, 16  ;;  %v15894_v45 = vld [vmem:[%s17921_s2 + $0x100] sm:$0xff]   ;;  %v15896_v50 = vld [vmem:[%s17921_s2 + $0x108] sm:$0xff]   ;;  %v15900_v60 = vld [vmem:[%s17921_s2 + $0x110] sm:$0xff]   ;;  %v5730_v0 = vrot.slane %v5728_v58, 1 }
  0xed   : > { %14450 = vmatprep.subr.bf16.mxu1 %v15845_v61  ;;  %14444 = vmatprep.mubr.msk.bf16.mxu1 %vm297_vm0, %v5240_v15  ;;  %v15871_v15 = vld [vmem:[%s17921_s2 + $0xd8] sm:$0xff]   ;;  %v5714_v43 = vrot.slane %v5712_v39, 1  ;;  %v15914_v39 = vld [vmem:[%s17921_s2 + $0x28] sm:$0xff]  }
  0xee   : > { %14301 = vmatmul.mubr.msk.bf16.gmra.mrb[12].mxu0 %vm297_vm0, %v15848_v6  ;;  %v3952_v6 = vsel %vm537_vm1, %v3947_v57, %v3951_v1  ;;  %v3959_v9 = vrot.slane %v3957_v3, 1  ;;  %v15903_v1 = vld [vmem:[%s17921_s2 + $0x118] sm:$0xff]   ;;  %v15905_v3 = vld [vmem:[%s16299_s13 + $0x30] sm:$0xff]  }
  0xef   : > { %14309 = vmatpush3.bf16.msra.mxu0 %v15849_v7  ;;  %14312 = vmatprep.mubr.msk.bf16.mxu0 %vm297_vm0, %v3936_v38  ;;  %v5417_v7 = vsel %vm537_vm1, %v5412_v62, %v5416_v2  ;;  %v15901_v62 = vld [vmem:[%s16299_s13 + $0x50] ss:$0 sps:$4 sm:$0x11]  }
  0xf0   : > { %14451 = vmatpush3.bf16.msra.mxu1 %v15845_v61  ;;  %14310 = vmatprep.subr.bf16.mxu0 %v15852_v12  ;;  %v15867_v61 = vld [vmem:[%s17921_s2 + $0xd0] sm:$0xff]   ;;  %v3960_v14 = vsel %vm537_vm1, %v3955_v8, %v3959_v9  ;;  %v5736_v2 = vshll.u32 %v15901_v62, 16  ;;  %v15906_v8 = vld [vmem:[%s16299_s13 + $0x38] sm:$0xff]   ;;  %v4401_v9 = vshrl.u32 %v15905_v3, 16 }
  0xf1   : > { %14452 = vmatprep.subr.bf16.mxu1 %v15851_v10 }
  0xf3   : > { %14445 = vmatmul.mubr.msk.bf16.gmra.mrb[12].mxu1 %vm297_vm0, %v5248_v22  ;;  %14311 = vmatpush3.bf16.msra.mxu0 %v15852_v12  ;;  %v5422_v12 = vshll.u32 %v15868_v4, 16  ;;  %v15877_v22 = vld [vmem:[%s17921_s2 + $0xe0] sm:$0xff]  }
  0xf4   : > { %14453 = vmatpush3.bf16.msra.mxu1 %v15851_v10  ;;  %14320 = vmatprep.subr.bf16.mxu0 %v15859_v34  ;;  %v15872_v10 = vld [vmem:[%s16299_s13 + $0x30] sm:$0xff]  }
  0xf5   : > { %14454 = vmatprep.subr.bf16.mxu1 %v15853_v17  ;;  %14456 = vmatprep.mubr.msk.bf16.mxu1 %vm297_vm0, %v5401_v49  ;;  %v5424_v16 = vrot.slane %v5422_v12, 1  ;;  %v15895_v49 = vld [vmem:[%s17921_s2 + $0x108] sm:$0xff]   ;;  %v4408_v12 = vshll.u32 %v15906_v8, 16 }
  0xf6   : > { %14313 = vmatmul.mubr.msk.bf16.vlgmr.msra.gmra.mrb[8].mxu0 %vm297_vm0, %v3944_v48  ;;  %v5720_v48 = vshll.u32 %v15893_v44, 16 }
  0xf7   : > { %14321 = vmatpush3.bf16.msra.mxu0 %v15859_v34  ;;  %14316 = vmatprep.mubr.msk.bf16.mxu0 %vm297_vm0, %v3952_v6  ;;  %v5425_v18 = vsel %vm537_vm1, %v5420_v11, %v5424_v16  ;;  %v15889_v34 = vld [vmem:[%s16299_s13 + $0x30] sm:$0xff]   ;;  %v15904_v6 = vld [vmem:[%s17921_s2 + $0x118] sm:$0xff]  }
  0xf8   : > { %14455 = vmatpush3.bf16.msra.mxu1 %v15853_v17  ;;  %14322 = vmatprep.subr.bf16.mxu0 %v15862_v47  ;;  %v15873_v17 = vld [vmem:[%s16291_s8 + $0x30] sm:$0xff]   ;;  %v5705_v37 = vshrl.u32 %v15889_v34, 16  ;;  %v5707_v38 = vshll.u32 %v15889_v34, 16  ;;  %v5722_v53 = vrot.slane %v5720_v48, 1  ;;  %v15908_v16 = vld [vmem:[%s16291_s8 + $0x38] sm:$0xff]  }
  0xf9   : > { %14464 = vmatprep.subr.bf16.mxu1 %v15861_v42  ;;  %v15917_v48 = vld [vmem:[%s16299_s13 + $0x50] ss:$0 sps:$4 sm:$0x11]  }
  0xfa   : > { %v5726_v57 = vor.u32 %v5724_v51, %v5722_v53 }
  0xfb   : > { %14457 = vmatmul.mubr.msk.bf16.vlgmr.msra.gmra.mrb[8].mxu1 %vm297_vm0, %v5409_v56  ;;  %14323 = vmatpush3.bf16.msra.mxu0 %v15862_v47  ;;  %v5718_v47 = vor.u32 %v5716_v40, %v5714_v43 }
  0xfc   : > { %14465 = vmatpush3.bf16.msra.mxu1 %v15861_v42  ;;  %14324 = vmatprep.subr.bf16.mxu0 %v15867_v61  ;;  %v5709_v42 = vrot.slane %v5707_v38, 1  ;;  %v5731_v4 = vsel %vm537_vm1, %v5726_v57, %v5730_v0  ;;  %v15920_v57 = vld [vmem:[%s17921_s2 + $0x30] sm:$0xff]  }
  0xfd   : > { %14466 = vmatprep.subr.bf16.mxu1 %v15863_v54  ;;  %14460 = vmatprep.mubr.msk.bf16.mxu1 %vm297_vm0, %v5417_v7  ;;  %v5723_v56 = vsel %vm537_vm1, %v5718_v47, %v5722_v53  ;;  %v5738_v7 = vrot.slane %v5736_v2, 1  ;;  %v15918_v53 = vld [vmem:[%s16291_s8 + $0x50] ss:$0 sps:$4 sm:$0x11]  }
  0xfe   : > { %14317 = vmatmul.mubr.msk.bf16.gmra.mrb[12].mxu0 %vm297_vm0, %v3960_v14  ;;  %v5710_v46 = vor.u32 %v5709_v42, %v5705_v37  ;;  %v15913_v37 = vld [vmem:[%s17921_s2 + $0x28] sm:$0xff]  }
  0xff   : > { %14325 = vmatpush3.bf16.msra.mxu0 %v15867_v61  ;;  %14328 = vmatprep.mubr.msk.bf16.mxu0 %vm297_vm0, %v15872_v10  ;;  %v5732_v61 = vshrl.u32 %v15898_v55, 16  ;;  %v4403_v10 = vshll.u32 %v15905_v3, 16  ;;  %v4432_v55 = vshll.u32 %v15917_v48, 16  ;;  %v15922_v3 = vld [vmem:[%s17921_s2 + $0x38] sm:$0xff]   ;;  %v15942_v48 = vld [vmem:[%s16299_s13 + $0x48] sm:$0xff]  }
 0x100   : > { %14467 = vmatpush3.bf16.msra.mxu1 %v15863_v54  ;;  %14326 = vmatprep.subr.bf16.mxu0 %v15870_v13  ;;  %v5715_v52 = vsel %vm537_vm1, %v5710_v46, %v5714_v43  ;;  %v15897_v54 = vld [vmem:[%s16291_s8 + $0x40] sm:$0xff]   ;;  %v15915_v43 = vld [vmem:[%s16299_s13 + $0x48] sm:$0xff]  }
 0x101   : > { %14468 = vmatprep.subr.bf16.mxu1 %v15869_v5  ;;  %v4405_v14 = vrot.slane %v4403_v10, 1  ;;  %v4424_v47 = vshll.u32 %v15915_v43, 16  ;;  %v4434_v62 = vrot.slane %v4432_v55, 1  ;;  %v15951_v55 = vld [vmem:[%s17921_s2 + $0x50] sm:$0xff]  }
 0x103   : > { %14461 = vmatmul.mubr.msk.bf16.gmra.mrb[12].mxu1 %vm297_vm0, %v5425_v18  ;;  %14327 = vmatpush3.bf16.msra.mxu0 %v15870_v13  ;;  %v4412_v13 = vshrl.u32 %v15906_v8, 16  ;;  %v15909_v18 = vld [vmem:[%s16299_s13 + $0x40] sm:$0xff]   ;;  %v15925_v8 = vld [vmem:[%s16299_s13 + $0x48] sm:$0xff]  }
 0x104   : > { %14469 = vmatpush3.bf16.msra.mxu1 %v15869_v5  ;;  %14472 = vmatprep.mubr.msk.bf16.mxu1 %vm297_vm0, %v15873_v17  ;;  %v5734_v5 = vor.u32 %v5732_v61, %v5730_v0  ;;  %v4410_v17 = vrot.slane %v4408_v12, 1  ;;  %v4420_v40 = vshrl.u32 %v15909_v18, 16  ;;  %v15927_v12 = vld [vmem:[%s17921_s2] sm:$0xff]  }
 0x105   : > { %14470 = vmatprep.subr.bf16.mxu1 %v15871_v15  ;;  %14336 = vmatprep.subr.bf16.mxu0 %v15875_v19 }
 0x106   : > { %14329 = vmatmul.mubr.msk.bf16.vlgmr.msra.gmra.mrb[8].mxu0 %vm297_vm0, %v15874_v20  ;;  %v5739_v11 = vsel %vm537_vm1, %v5734_v5, %v5738_v7  ;;  %v15924_v7 = vld [vmem:[%s16299_s13 + $0x40] sm:$0xff]  }
 0x107   : > { %14337 = vmatpush3.bf16.msra.mxu0 %v15875_v19  ;;  %14332 = vmatprep.mubr.msk.bf16.mxu0 %vm297_vm0, %v15880_v24  ;;  %v4406_v19 = vor.u32 %v4405_v14, %v4401_v9  ;;  %v4414_v24 = vor.u32 %v4412_v13, %v4410_v17  ;;  %v7511_v9 = vshrl.u32 %v15924_v7, 16  ;;  %v7513_v10 = vshll.u32 %v15924_v7, 16 }
 0x108   : > { %14471 = vmatpush3.bf16.msra.mxu1 %v15871_v15  ;;  %14338 = vmatprep.subr.bf16.mxu0 %v15878_v23  ;;  %v15907_v15 = vld [vmem:[%s16291_s8 + $0x30] sm:$0xff]   ;;  %v7518_v13 = vshll.u32 %v15925_v8, 16  ;;  %v7522_v14 = vshrl.u32 %v15925_v8, 16 }
 0x109   : > { %14480 = vmatprep.subr.bf16.mxu1 %v15877_v22  ;;  %v5882_v20 = vshrl.u32 %v15907_v15, 16 }
 0x10b   : > { %14473 = vmatmul.mubr.msk.bf16.vlgmr.msra.gmra.mrb[8].mxu1 %vm297_vm0, %v15876_v21  ;;  %14339 = vmatpush3.bf16.msra.mxu0 %v15878_v23  ;;  %v5884_v21 = vshll.u32 %v15907_v15, 16  ;;  %v15910_v23 = vld [vmem:[%s16291_s8 + $0x40] sm:$0xff]   ;;  %v7515_v15 = vrot.slane %v7513_v10, 1 }
 0x10c   : > { %14481 = vmatpush3.bf16.msra.mxu1 %v15877_v22  ;;  %14476 = vmatprep.mubr.msk.bf16.mxu1 %vm297_vm0, %v15881_v25  ;;  %v5889_v22 = vshll.u32 %v15908_v16, 16  ;;  %v5893_v25 = vshrl.u32 %v15908_v16, 16  ;;  %v5901_v44 = vshrl.u32 %v15910_v23, 16  ;;  %v15928_v16 = vld [vmem:[%s16299_s13 + $0x50] sm:$0xff]  }
 0x10d   : > { %14482 = vmatprep.subr.bf16.mxu1 %v15879_v26  ;;  %14340 = vmatprep.subr.bf16.mxu0 %v15883_v27 }
 0x10e   : > { %14333 = vmatmul.mubr.msk.bf16.gmra.mrb[12].mxu0 %vm297_vm0, %v15882_v28  ;;  %v5886_v28 = vrot.slane %v5884_v21, 1  ;;  %v15930_v21 = vld [vmem:[%s17921_s2 + $0x8] sm:$0xff]  }
 0x10f   : > { %14341 = vmatpush3.bf16.msra.mxu0 %v15883_v27  ;;  %14344 = vmatprep.mubr.msk.bf16.mxu0 %vm297_vm0, %v15888_v33  ;;  %v4411_v27 = vsel %vm537_vm1, %v4406_v19, %v4410_v17  ;;  %v15912_v33 = vld [vmem:[%s17921_s2 + $0x20] sm:$0xff]   ;;  %v7520_v17 = vrot.slane %v7518_v13, 1  ;;  %v7516_v19 = vor.u32 %v7515_v15, %v7511_v9 }
 0x110   : > { %14483 = vmatpush3.bf16.msra.mxu1 %v15879_v26  ;;  %14342 = vmatprep.subr.bf16.mxu0 %v15886_v31  ;;  %v4416_v26 = vshll.u32 %v15909_v18, 16  ;;  %v5887_v34 = vor.u32 %v5886_v28, %v5882_v20  ;;  %v15929_v18 = vld [vmem:[%s17921_s2] sm:$0xff]   ;;  %v7526_v20 = vshll.u32 %v15928_v16, 16  ;;  %v15933_v28 = vld [vmem:[%s16299_s13 + $0x58] sm:$0xff]  }
 0x111   : > { %14484 = vmatprep.subr.bf16.mxu1 %v15885_v30  ;;  %v15961_v13 = vld [vmem:[%s17921_s2 + $0x60] sm:$0xff]  }
 0x113   : > { %14477 = vmatmul.mubr.msk.bf16.gmra.mrb[12].mxu1 %vm297_vm0, %v15884_v29  ;;  %14343 = vmatpush3.bf16.msra.mxu0 %v15886_v31  ;;  %v5891_v29 = vrot.slane %v5889_v22, 1  ;;  %v15911_v31 = vld [vmem:[%s17921_s2 + $0x20] sm:$0xff]   ;;  %v7524_v22 = vor.u32 %v7522_v14, %v7520_v17 }
 0x114   : > { %14485 = vmatpush3.bf16.msra.mxu1 %v15885_v30  ;;  %14352 = vmatprep.subr.bf16.mxu0 %v15892_v41  ;;  %v5897_v30 = vshll.u32 %v15910_v23, 16  ;;  %v15931_v23 = vld [vmem:[%s17921_s2 + $0x8] sm:$0xff]  }
 0x115   : > { %14486 = vmatprep.subr.bf16.mxu1 %v15887_v32  ;;  %14488 = vmatprep.mubr.msk.bf16.mxu1 %vm297_vm0, %v5715_v52  ;;  %v5895_v35 = vor.u32 %v5893_v25, %v5891_v29  ;;  %v7521_v25 = vsel %vm537_vm1, %v7516_v19, %v7520_v17  ;;  %v15962_v17 = vld [vmem:[%s16291_s8 + $0x50] sm:$0xff]  }
 0x116   : > { %14345 = vmatmul.mubr.msk.bf16.vlgmr.msra.gmra.mrb[8].mxu0 %vm297_vm0, %v15891_v36  ;;  %v5899_v36 = vrot.slane %v5897_v30, 1  ;;  %v15934_v30 = vld [vmem:[%s16291_s8 + $0x58] sm:$0xff]  }
 0x117   : > { %14353 = vmatpush3.bf16.msra.mxu0 %v15892_v41  ;;  %14348 = vmatprep.mubr.msk.bf16.mxu0 %vm297_vm0, %v15897_v54  ;;  %v5892_v41 = vsel %vm537_vm1, %v5887_v34, %v5891_v29  ;;  %v4426_v54 = vrot.slane %v4424_v47, 1  ;;  %v15936_v34 = vld [vmem:[%s16299_s13 + $0x60] ss:$0 sps:$4 sm:$0x11]  }
 0x118   : > { %14487 = vmatpush3.bf16.msra.mxu1 %v15887_v32  ;;  %14354 = vmatprep.subr.bf16.mxu0 %v15895_v49  ;;  %v4418_v32 = vrot.slane %v4416_v26, 1  ;;  %v5900_v42 = vsel %vm537_vm1, %v5895_v35, %v5899_v36  ;;  %v5903_v51 = vor.u32 %v5901_v44, %v5899_v36  ;;  %v7528_v26 = vrot.slane %v7526_v20, 1  ;;  %v15940_v44 = vld [vmem:[%s16299_s13 + $0x40] sm:$0xff]  }
 0x119   : > { %14496 = vmatprep.subr.bf16.mxu1 %v15894_v45  ;;  %v7538_v35 = vshrl.u32 %v15933_v28, 16  ;;  %v15943_v47 = vld [vmem:[%s17921_s2 + $0x40] sm:$0xff]  }
 0x11a   : > { %v4419_v38 = vsel %vm537_vm1, %v4414_v24, %v4418_v32  ;;  %v4422_v46 = vor.u32 %v4420_v40, %v4418_v32  ;;  %v7530_v24 = vshrl.u32 %v15928_v16, 16  ;;  %v7529_v29 = vsel %vm537_vm1, %v7524_v22, %v7528_v26 }
 0x11b   : > { %14489 = vmatmul.mubr.msk.bf16.vlgmr.msra.gmra.mrb[8].mxu1 %vm297_vm0, %v5723_v56  ;;  %14355 = vmatpush3.bf16.msra.mxu0 %v15895_v49  ;;  %v4428_v49 = vshrl.u32 %v15915_v43, 16  ;;  %v7534_v32 = vshll.u32 %v15933_v28, 16  ;;  %v7816_v22 = vshll.u32 %v15962_v17, 16 }
 0x11c   : > { %14497 = vmatpush3.bf16.msra.mxu1 %v15894_v45  ;;  %14356 = vmatprep.subr.bf16.mxu0 %v15900_v60  ;;  %v15916_v45 = vld [vmem:[%s16291_s8 + $0x48] sm:$0xff]  }
 0x11d   : > { %14498 = vmatprep.subr.bf16.mxu1 %v15896_v50  ;;  %14492 = vmatprep.mubr.msk.bf16.mxu1 %vm297_vm0, %v5731_v4  ;;  %v5905_v52 = vshll.u32 %v15916_v45, 16  ;;  %v5909_v56 = vshrl.u32 %v15916_v45, 16  ;;  %v4430_v61 = vor.u32 %v4428_v49, %v4426_v54  ;;  %v7536_v36 = vrot.slane %v7534_v32, 1  ;;  %v15941_v45 = vld [vmem:[%s16291_s8 + $0x40] sm:$0xff]   ;;  %v15944_v49 = vld [vmem:[%s16291_s8 + $0x48] sm:$0xff]  }
 0x11e   : > { %14349 = vmatmul.mubr.msk.bf16.gmra.mrb[12].mxu0 %vm297_vm0, %v15899_v59  ;;  %v5913_v59 = vshll.u32 %v15918_v53, 16  ;;  %v15948_v53 = vld [vmem:[%s16299_s13 + $0x50] sm:$0xff]   ;;  %v7820_v32 = vshrl.u32 %v15962_v17, 16  ;;  %v12268_v17 = vld [vmem:[%s17922_s3] ss:$0 sm:$0xff] }
 0x11f   : > { %14357 = vmatpush3.bf16.msra.mxu0 %v15900_v60  ;;  %14360 = vmatprep.mubr.msk.bf16.mxu0 %vm297_vm0, %v4411_v27  ;;  %v5907_v58 = vrot.slane %v5905_v52, 1  ;;  %v4427_v60 = vsel %vm537_vm1, %v4422_v46, %v4426_v54  ;;  %v4435_v4 = vsel %vm537_vm1, %v4430_v61, %v4434_v62  ;;  %v15932_v27 = vld [vmem:[%s16291_s8 + $0x50] sm:$0xff]   ;;  %v15947_v52 = vld [vmem:[%s17921_s2 + $0x48] sm:$0xff]   ;;  %v15956_v61 = vld [vmem:[%s16299_s13 + $0x40] sm:$0xff]  }
 0x120   : > { %14499 = vmatpush3.bf16.msra.mxu1 %v15896_v50  ;;  %14358 = vmatprep.subr.bf16.mxu0 %v15903_v1  ;;  %v15919_v50 = vld [vmem:[%s17921_s2 + $0x30] sm:$0xff]   ;;  %v5915_v2 = vrot.slane %v5913_v59, 1  ;;  %v15954_v59 = vld [vmem:[%s17921_s2 + $0x58] sm:$0xff]   ;;  %v15957_v62 = vld [vmem:[%s16299_s13 + $0x48] sm:$0xff]  }
 0x121   : > { %14500 = vmatprep.subr.bf16.mxu1 %v15902_v63  ;;  %v5908_v0 = vsel %vm537_vm1, %v5903_v51, %v5907_v58  ;;  %v15946_v51 = vld [vmem:[%s17921_s2 + $0x48] sm:$0xff]   ;;  %v15949_v54 = vld [vmem:[%s16291_s8 + $0x50] sm:$0xff]  }
 0x123   : > { %14493 = vmatmul.mubr.msk.bf16.gmra.mrb[12].mxu1 %vm297_vm0, %v5739_v11  ;;  %14359 = vmatpush3.bf16.msra.mxu0 %v15903_v1  ;;  %v5911_v1 = vor.u32 %v5909_v56, %v5907_v58  ;;  %v15926_v11 = vld [vmem:[%s16291_s8 + $0x48] sm:$0xff]   ;;  %v15950_v56 = vld [vmem:[%s16299_s13 + $0x58] sm:$0xff]   ;;  %v15953_v58 = vld [vmem:[%s17921_s2 + $0x50] sm:$0xff]  }
 0x124   : > { %14501 = vmatpush3.bf16.msra.mxu1 %v15902_v63  ;;  %14512 = vmatprep.subr.bf16.mxu0 %v15911_v31  ;;  %v15921_v63 = vld [vmem:[%s17921_s2 + $0x38] sm:$0xff]  }
 0x125   : > { %14502 = vmatprep.subr.bf16.mxu1 %v15904_v6  ;;  %14504 = vmatprep.mubr.msk.bf16.mxu1 %vm297_vm0, %v5892_v41  ;;  %v5916_v5 = vsel %vm537_vm1, %v5911_v1, %v5915_v2  ;;  %v7540_v41 = vor.u32 %v7538_v35, %v7536_v36  ;;  %v6359_v1 = vshll.u32 %v15957_v62, 16  ;;  %v6363_v2 = vshrl.u32 %v15957_v62, 16  ;;  %v15968_v35 = vld [vmem:[%s16299_s13 + $0x60] ss:$0 sps:$4 sm:$0x11]  }
 0x126   : > { %14361 = vmatmul.mubr.msk.bf16.vlgmr.msra.gmra.mrb[8].mxu0 %vm297_vm0, %v4419_v38  ;;  %v7542_v38 = vshll.u32 %v15936_v34, 16  ;;  %v15967_v34 = vld [vmem:[%s16291_s8 + $0x58] sm:$0xff]  }
 0x127   : > { %14513 = vmatpush3.bf16.msra.mxu0 %v15911_v31  ;;  %14364 = vmatprep.mubr.msk.bf16.mxu0 %vm297_vm0, %v4427_v60  ;;  %v7532_v31 = vor.u32 %v7530_v24, %v7528_v26  ;;  %v15955_v60 = vld [vmem:[%s17921_s2 + $0x58] sm:$0xff]   ;;  %v6361_v7 = vrot.slane %v6359_v1, 1  ;;  %v15964_v26 = vld [vmem:[%s17921_s2 + $0x68] sm:$0xff]  }
 0x128   : > { %14503 = vmatpush3.bf16.msra.mxu1 %v15904_v6  ;;  %14514 = vmatprep.subr.bf16.mxu0 %v15913_v37  ;;  %v15923_v6 = vld [vmem:[%s16291_s8 + $0x40] sm:$0xff]   ;;  %v7544_v43 = vrot.slane %v7542_v38, 1 }
 0x129   : > { %14656 = vmatprep.subr.bf16.mxu1 %v15912_v33  ;;  %v7537_v40 = vsel %vm537_vm1, %v7532_v31, %v7536_v36  ;;  %v6365_v15 = vor.u32 %v6363_v2, %v6361_v7  ;;  %v15966_v31 = vld [vmem:[%s16299_s13 + $0x58] sm:$0xff]   ;;  %v15976_v2 = vld [vmem:[%s16299_s13 + $0x50] sm:$0xff]  }
 0x12a   : > { %v7545_v46 = vsel %vm537_vm1, %v7540_v41, %v7544_v43  ;;  %v6379_v38 = vshrl.u32 %v15966_v31, 16  ;;  %v6383_v41 = vshll.u32 %v15968_v35, 16  ;;  %v7828_v43 = vshrl.u32 %v15967_v34, 16  ;;  %v15990_v35 = vld [vmem:[%s16291_s8 + $0x48] sm:$0xff]  }
 0x12b   : > { %14505 = vmatmul.mubr.msk.bf16.vlgmr.msra.gmra.mrb[8].mxu1 %vm297_vm0, %v5900_v42  ;;  %14515 = vmatpush3.bf16.msra.mxu0 %v15913_v37  ;;  %v15937_v37 = vld [vmem:[%s17921_s2 + $0x10] sm:$0xff]   ;;  %v15939_v42 = vld [vmem:[%s17921_s2 + $0x18] sm:$0xff]  }
 0x12c   : > { %14657 = vmatpush3.bf16.msra.mxu1 %v15912_v33  ;;  %14516 = vmatprep.subr.bf16.mxu0 %v15919_v50  ;;  %v15935_v33 = vld [vmem:[%s17921_s2 + $0x10] sm:$0xff]  }
 0x12d   : > { %14658 = vmatprep.subr.bf16.mxu1 %v15914_v39  ;;  %14508 = vmatprep.mubr.msk.bf16.mxu1 %vm297_vm0, %v5908_v0  ;;  %v6354_v0 = vshll.u32 %v15956_v61, 16 }
 0x12e   : > { %14365 = vmatmul.mubr.msk.bf16.gmra.mrb[12].mxu0 %vm297_vm0, %v4435_v4  ;;  %v15959_v4 = vld [vmem:[%s16291_s8 + $0x48] sm:$0xff]  }
 0x12f   : > { %14517 = vmatpush3.bf16.msra.mxu0 %v15919_v50  ;;  %14520 = vmatprep.mubr.msk.bf16.mxu0 %vm297_vm0, %v15923_v6  ;;  %v15945_v50 = vld [vmem:[%s17921_s2 + $0x40] sm:$0xff]   ;;  %v6356_v6 = vrot.slane %v6354_v0, 1  ;;  %v7808_v10 = vshll.u32 %v15959_v4, 16 }
 0x130   : > { %14659 = vmatpush3.bf16.msra.mxu1 %v15914_v39  ;;  %14518 = vmatprep.subr.bf16.mxu0 %v15921_v63  ;;  %v15938_v39 = vld [vmem:[%s17921_s2 + $0x18] sm:$0xff]  }
 0x131   : > { %14660 = vmatprep.subr.bf16.mxu1 %v15920_v57 }
 0x133   : > { %14509 = vmatmul.mubr.msk.bf16.gmra.mrb[12].mxu1 %vm297_vm0, %v5916_v5  ;;  %14519 = vmatpush3.bf16.msra.mxu0 %v15921_v63  ;;  %v6352_v63 = vshrl.u32 %v15956_v61, 16  ;;  %v15960_v5 = vld [vmem:[%s16299_s13 + $0x50] sm:$0xff]  }
 0x134   : > { %14661 = vmatpush3.bf16.msra.mxu1 %v15920_v57  ;;  %14528 = vmatprep.subr.bf16.mxu0 %v15927_v12  ;;  %v15952_v57 = vld [vmem:[%s16291_s8 + $0x58] sm:$0xff]  }
 0x135   : > { %14662 = vmatprep.subr.bf16.mxu1 %v15922_v3  ;;  %14664 = vmatprep.mubr.msk.bf16.mxu1 %vm297_vm0, %v7521_v25  ;;  %v6357_v14 = vor.u32 %v6356_v6, %v6352_v63  ;;  %v15977_v63 = vld [vmem:[%s17921_s2 + $0x80] sm:$0xff]  }
 0x136   : > { %14521 = vmatmul.mubr.msk.bf16.vlgmr.msra.gmra.mrb[16].mxu0 %vm297_vm0, %v15926_v11  ;;  %v7812_v11 = vshrl.u32 %v15959_v4, 16  ;;  %v15978_v4 = vld [vmem:[%s16291_s8 + $0x50] sm:$0xff]  }
 0x137   : > { %14529 = vmatpush3.bf16.msra.mxu0 %v15927_v12  ;;  %14524 = vmatprep.mubr.msk.bf16.mxu0 %vm297_vm0, %v15932_v27  ;;  %v6367_v12 = vshll.u32 %v15960_v5, 16  ;;  %v6362_v20 = vsel %vm537_vm1, %v6357_v14, %v6361_v7  ;;  %v6371_v27 = vshrl.u32 %v15960_v5, 16  ;;  %v15979_v5 = vld [vmem:[%s17921_s2 + $0x80] sm:$0xff]   ;;  %v15982_v14 = vld [vmem:[%s16299_s13 + $0x58] sm:$0xff]  }
 0x138   : > { %14663 = vmatpush3.bf16.msra.mxu1 %v15922_v3  ;;  %14530 = vmatprep.subr.bf16.mxu0 %v15930_v21  ;;  %v15958_v3 = vld [vmem:[%s16291_s8 + $0x40] sm:$0xff]  }
 0x139   : > { %14672 = vmatprep.subr.bf16.mxu1 %v15929_v18  ;;  %v7801_v8 = vshrl.u32 %v15958_v3, 16  ;;  %v7803_v9 = vshll.u32 %v15958_v3, 16  ;;  %v6369_v19 = vrot.slane %v6367_v12, 1 }
 0x13b   : > { %14665 = vmatmul.mubr.msk.bf16.vlgmr.msra.gmra.mrb[16].mxu1 %vm297_vm0, %v7529_v29  ;;  %14531 = vmatpush3.bf16.msra.mxu0 %v15930_v21  ;;  %v7805_v16 = vrot.slane %v7803_v9, 1  ;;  %v6370_v25 = vsel %vm537_vm1, %v6365_v15, %v6369_v19  ;;  %v7818_v29 = vrot.slane %v7816_v22, 1  ;;  %v6373_v36 = vor.u32 %v6371_v27, %v6369_v19  ;;  %v15983_v15 = vld [vmem:[%s16291_s8 + $0x58] sm:$0xff]   ;;  %v15985_v19 = vld [vmem:[%s17921_s2 + $0x90] sm:$0xff]  }
 0x13c   : > { %14673 = vmatpush3.bf16.msra.mxu1 %v15929_v18  ;;  %14532 = vmatprep.subr.bf16.mxu0 %v15935_v33  ;;  %v7810_v18 = vrot.slane %v7808_v10, 1  ;;  %v15988_v27 = vld [vmem:[%s17921_s2 + $0x98] sm:$0xff]  }
 0x13d   : > { %14674 = vmatprep.subr.bf16.mxu1 %v15931_v23  ;;  %14668 = vmatprep.mubr.msk.bf16.mxu1 %vm297_vm0, %v7537_v40  ;;  %v7806_v21 = vor.u32 %v7805_v16, %v7801_v8  ;;  %v7824_v40 = vshll.u32 %v15967_v34, 16  ;;  %v15980_v8 = vld [vmem:[%s17921_s2 + $0x88] sm:$0xff]  }
 0x13e   : > { %14525 = vmatmul.mubr.msk.bf16.gmra.mrb[20].mxu0 %vm297_vm0, %v15934_v30  ;;  %v7814_v24 = vor.u32 %v7812_v11, %v7810_v18  ;;  %v15965_v30 = vld [vmem:[%s17921_s2 + $0x68] sm:$0xff]  }
 0x13f   : > { %14533 = vmatpush3.bf16.msra.mxu0 %v15935_v33  ;;  %14536 = vmatprep.mubr.msk.bf16.mxu0 %vm297_vm0, %v15940_v44  ;;  %v7811_v28 = vsel %vm537_vm1, %v7806_v21, %v7810_v18  ;;  %v15981_v11 = vld [vmem:[%s17921_s2 + $0x88] sm:$0xff]   ;;  %v15984_v21 = vld [vmem:[%s16299_s13 + $0x60] sm:$0xff]  }
 0x140   : > { %14675 = vmatpush3.bf16.msra.mxu1 %v15931_v23  ;;  %14534 = vmatprep.subr.bf16.mxu0 %v15938_v39  ;;  %v15963_v23 = vld [vmem:[%s17921_s2 + $0x60] sm:$0xff]   ;;  %v7819_v33 = vsel %vm537_vm1, %v7814_v24, %v7818_v29  ;;  %v15987_v24 = vld [vmem:[%s17921_s2 + $0x90] sm:$0xff]  }
 0x141   : > { %14676 = vmatprep.subr.bf16.mxu1 %v15937_v37 }
 0x143   : > { %14669 = vmatmul.mubr.msk.bf16.gmra.mrb[20].mxu1 %vm297_vm0, %v7545_v46  ;;  %14535 = vmatpush3.bf16.msra.mxu0 %v15938_v39  ;;  %v7822_v39 = vor.u32 %v7820_v32, %v7818_v29  ;;  %v7826_v46 = vrot.slane %v7824_v40, 1 }
 0x144   : > { %14677 = vmatpush3.bf16.msra.mxu1 %v15937_v37  ;;  %14680 = vmatprep.mubr.msk.bf16.mxu1 %vm297_vm0, %v15941_v45  ;;  %v6375_v37 = vshll.u32 %v15966_v31, 16  ;;  %v15970_v45 = vld [vmem:[%s16291_s8 + $0x60] ss:$0 sps:$4 sm:$0x11]  }
 0x145   : > { %14678 = vmatprep.subr.bf16.mxu1 %v15939_v42  ;;  %14544 = vmatprep.subr.bf16.mxu0 %v15943_v47 }
 0x146   : > { %14537 = vmatmul.mubr.msk.bf16.vlgmr.msra.gmra.mrb[16].mxu0 %vm297_vm0, %v15942_v48  ;;  %v6377_v44 = vrot.slane %v6375_v37, 1  ;;  %v15971_v48 = vld [vmem:[%s17921_s2 + $0x70] sm:$0xff]   ;;  %v15991_v37 = vld [vmem:[%s16299_s13 + $0x48] sm:$0xff]  }
 0x147   : > { %14545 = vmatpush3.bf16.msra.mxu0 %v15943_v47  ;;  %14540 = vmatprep.mubr.msk.bf16.mxu0 %vm297_vm0, %v15948_v53  ;;  %v6385_v47 = vrot.slane %v6383_v41, 1  ;;  %v7827_v53 = vsel %vm537_vm1, %v7822_v39, %v7826_v46  ;;  %v15992_v39 = vld [vmem:[%s16299_s13 + $0x50] sm:$0xff]   ;;  %v8115_v41 = vshrl.u32 %v15991_v37, 16 }
 0x148   : > { %14679 = vmatpush3.bf16.msra.mxu1 %v15939_v42  ;;  %14546 = vmatprep.subr.bf16.mxu0 %v15946_v51  ;;  %v15969_v42 = vld [vmem:[%s17921_s2 + $0x70] sm:$0xff]  }
 0x149   : > { %14688 = vmatprep.subr.bf16.mxu1 %v15945_v50 }
 0x14b   : > { %14681 = vmatmul.mubr.msk.bf16.vlgmr.msra.gmra.mrb[16].mxu1 %vm297_vm0, %v15944_v49  ;;  %14547 = vmatpush3.bf16.msra.mxu0 %v15946_v51  ;;  %v6378_v49 = vsel %vm537_vm1, %v6373_v36, %v6377_v44  ;;  %v7832_v51 = vshll.u32 %v15970_v45, 16  ;;  %v8126_v45 = vshrl.u32 %v15992_v39, 16 }
 0x14c   : > { %14689 = vmatpush3.bf16.msra.mxu1 %v15945_v50  ;;  %14684 = vmatprep.mubr.msk.bf16.mxu1 %vm297_vm0, %v15949_v54  ;;  %v6381_v50 = vor.u32 %v6379_v38, %v6377_v44  ;;  %v7830_v54 = vor.u32 %v7828_v43, %v7826_v46  ;;  %v15993_v43 = vld [vmem:[%s16291_s8 + $0x50] sm:$0xff]   ;;  %v8122_v44 = vshll.u32 %v15992_v39, 16  ;;  %v15994_v46 = vld [vmem:[%s17921_s2 + $0xa0] sm:$0xff]  }
 0x14d   : > { %14690 = vmatprep.subr.bf16.mxu1 %v15947_v52  ;;  %14548 = vmatprep.subr.bf16.mxu0 %v15951_v55 }
 0x14e   : > { %14541 = vmatmul.mubr.msk.bf16.gmra.mrb[20].mxu0 %vm297_vm0, %v15950_v56  ;;  %v6386_v56 = vsel %vm537_vm1, %v6381_v50, %v6385_v47  ;;  %v15995_v47 = vld [vmem:[%s16299_s13 + $0x58] sm:$0xff]   ;;  %v15996_v50 = vld [vmem:[%s17921_s2 + $0xa0] sm:$0xff]  }
 0x14f   : > { %14549 = vmatpush3.bf16.msra.mxu0 %v15951_v55  ;;  %14552 = vmatprep.mubr.msk.bf16.mxu0 %vm297_vm0, %v6362_v20  ;;  %v15973_v55 = vld [vmem:[%s17921_s2 + $0x78] sm:$0xff]  }
 0x150   : > { %14691 = vmatpush3.bf16.msra.mxu1 %v15947_v52  ;;  %14550 = vmatprep.subr.bf16.mxu0 %v15954_v59  ;;  %v15972_v52 = vld [vmem:[%s17921_s2 + $0x78] sm:$0xff]  }
 0x151   : > { %14692 = vmatprep.subr.bf16.mxu1 %v15953_v58 }
 0x153   : > { %14685 = vmatmul.mubr.msk.bf16.gmra.mrb[20].mxu1 %vm297_vm0, %v15952_v57  ;;  %14551 = vmatpush3.bf16.msra.mxu0 %v15954_v59  ;;  %v7834_v57 = vrot.slane %v7832_v51, 1  ;;  %v15975_v59 = vld [vmem:[%s16291_s8 + $0x48] sm:$0xff]   ;;  %v8124_v51 = vrot.slane %v8122_v44, 1 }
 0x154   : > { %14693 = vmatpush3.bf16.msra.mxu1 %v15953_v58  ;;  %14560 = vmatprep.subr.bf16.mxu0 %v15961_v13  ;;  %v15974_v58 = vld [vmem:[%s16299_s13 + $0x48] sm:$0xff]  }
 0x155   : > { %14694 = vmatprep.subr.bf16.mxu1 %v15955_v60  ;;  %14696 = vmatprep.mubr.msk.bf16.mxu1 %vm297_vm0, %v7811_v28  ;;  %v7835_v61 = vsel %vm537_vm1, %v7830_v54, %v7834_v57  ;;  %v15997_v54 = vld [vmem:[%s17921_s2 + $0xa8] sm:$0xff]  }
 0x156   : > { %14553 = vmatmul.mubr.msk.bf16.vlgmr.msra.gmra.mrb[16].mxu0 %vm297_vm0, %v6370_v25 }
 0x157   : > { %14561 = vmatpush3.bf16.msra.mxu0 %v15961_v13  ;;  %14556 = vmatprep.mubr.msk.bf16.mxu0 %vm297_vm0, %v6378_v49 }
 0x158   : > { %14695 = vmatpush3.bf16.msra.mxu1 %v15955_v60  ;;  %14562 = vmatprep.subr.bf16.mxu0 %v15964_v26 }
 0x159   : > { %14704 = vmatprep.subr.bf16.mxu1 %v15963_v23 }
 0x15b   : > { %14697 = vmatmul.mubr.msk.bf16.vlgmr.msra.gmra.mrb[16].mxu1 %vm297_vm0, %v7819_v33  ;;  %14563 = vmatpush3.bf16.msra.mxu0 %v15964_v26 }
 0x15c   : > { %14705 = vmatpush3.bf16.msra.mxu1 %v15963_v23  ;;  %14564 = vmatprep.subr.bf16.mxu0 %v15969_v42  ;;  %v15986_v23 = vld [vmem:[%s16291_s8 + $0x60] sm:$0xff]  }
 0x15d   : > { %14706 = vmatprep.subr.bf16.mxu1 %v15965_v30  ;;  %14700 = vmatprep.mubr.msk.bf16.mxu1 %vm297_vm0, %v7827_v53 }
 0x15e   : > { %14557 = vmatmul.mubr.msk.bf16.gmra.mrb[20].mxu0 %vm297_vm0, %v6386_v56  ;;  %v8128_v56 = vor.u32 %v8126_v45, %v8124_v51 }
 0x15f   : > { %14565 = vmatpush3.bf16.msra.mxu0 %v15969_v42  ;;  %14568 = vmatprep.mubr.msk.bf16.mxu0 %vm297_vm0, %v15974_v58  ;;  %v8117_v42 = vshll.u32 %v15991_v37, 16  ;;  %v15998_v58 = vld [vmem:[%s17921_s2 + $0xa8] sm:$0xff]   ;;  %v16014_v37 = vld [vmem:[%s17921_s2 + $0xc0] sm:$0xff]  }
 0x160   : > { %14707 = vmatpush3.bf16.msra.mxu1 %v15965_v30  ;;  %14566 = vmatprep.subr.bf16.mxu0 %v15972_v52  ;;  %v15989_v30 = vld [vmem:[%s17921_s2 + $0x98] sm:$0xff]  }
 0x161   : > { %14708 = vmatprep.subr.bf16.mxu1 %v15971_v48  ;;  %v8119_v49 = vrot.slane %v8117_v42, 1  ;;  %v16015_v42 = vld [vmem:[%s17921_s2 + $0xc8] sm:$0xff]  }
 0x163   : > { %14701 = vmatmul.mubr.msk.bf16.gmra.mrb[20].mxu1 %vm297_vm0, %v7835_v61  ;;  %14567 = vmatpush3.bf16.msra.mxu0 %v15972_v52  ;;  %v8130_v52 = vshll.u32 %v15995_v47, 16  ;;  %v8120_v53 = vor.u32 %v8119_v49, %v8115_v41  ;;  %v16016_v49 = vld [vmem:[%s17921_s2 + $0xc8] sm:$0xff]  }
 0x164   : > { %14709 = vmatpush3.bf16.msra.mxu1 %v15971_v48  ;;  %14712 = vmatprep.mubr.msk.bf16.mxu1 %vm297_vm0, %v15975_v59 }
 0x165   : > { %14710 = vmatprep.subr.bf16.mxu1 %v15973_v55  ;;  %14576 = vmatprep.subr.bf16.mxu0 %v15977_v63  ;;  %v8132_v57 = vrot.slane %v8130_v52, 1  ;;  %v8125_v59 = vsel %vm537_vm1, %v8120_v53, %v8124_v51 }
 0x166   : > { %14569 = vmatmul.mubr.msk.bf16.vlgmr.msra.gmra.mrb[16].mxu0 %vm297_vm0, %v15976_v2  ;;  %v16002_v2 = vld [vmem:[%s17921_s2 + $0xb0] sm:$0xff]  }
 0x167   : > { %14577 = vmatpush3.bf16.msra.mxu0 %v15977_v63  ;;  %14572 = vmatprep.mubr.msk.bf16.mxu0 %vm297_vm0, %v15982_v14  ;;  %v8133_v61 = vsel %vm537_vm1, %v8128_v56, %v8132_v57  ;;  %v16001_v63 = vld [vmem:[%s16291_s8 + $0x60] sm:$0xff]   ;;  %v16008_v14 = vld [vmem:[%s16299_s13 + $0x50] sm:$0xff]  }
 0x168   : > { %14711 = vmatpush3.bf16.msra.mxu1 %v15973_v55  ;;  %14578 = vmatprep.subr.bf16.mxu0 %v15980_v8  ;;  %v8134_v55 = vshrl.u32 %v15995_v47, 16  ;;  %v16020_v56 = vld [vmem:[%s17921_s2 + $0xd0] sm:$0xff]  }
 0x169   : > { %v14074_v60 = vpop.f32.mrb[0].mxu0  ;;  %14720 = vmatprep.subr.bf16.mxu1 %v15979_v5 }
 0x16a   : > { %v1600_v1 = vpop.f32.mrb[1].mxu0 }
 0x16b   : > { %v14075_v7 = vpop.f32.mrb[2].mxu0  ;;  %14713 = vmatmul.mubr.msk.bf16.vlgmr.msra.gmra.mrb[16].mxu1 %vm297_vm0, %v15978_v4  ;;  %14579 = vmatpush3.bf16.msra.mxu0 %v15980_v8  ;;  %v16005_v8 = vld [vmem:[%s17921_s2 + $0xb8] sm:$0xff]  }
 0x16c   : > { %v1603_v12 = vpop.f32.mrb[3].mxu0  ;;  %14721 = vmatpush3.bf16.msra.mxu1 %v15979_v5  ;;  %14716 = vmatprep.mubr.msk.bf16.mxu1 %vm297_vm0, %v15983_v15 }
 0x16d   : > { %14722 = vmatprep.subr.bf16.mxu1 %v15981_v11  ;;  %14580 = vmatprep.subr.bf16.mxu0 %v15985_v19 }
 0x16e   : > { %v14218_v62 = vpop.f32.mrb[0].mxu1  ;;  %14573 = vmatmul.mubr.msk.bf16.gmra.mrb[20].mxu0 %vm297_vm0, %v15984_v21  ;;  %v16009_v21 = vld [vmem:[%s16291_s8 + $0x48] sm:$0xff]  }
 0x16f   : > { %v3117_v0 = vmax.f32 %v14074_v60, %v14218_v62  ;;  %v3081_v3 = vpop.f32.mrb[1].mxu1  ;;  %14581 = vmatpush3.bf16.msra.mxu0 %v15985_v19  ;;  %14584 = vmatprep.mubr.msk.bf16.mxu0 %vm297_vm0, %v15990_v35  ;;  %v15999_v60 = vld [vmem:[%s16291_s8 + $0x58] sm:$0xff]   ;;  %v16000_v62 = vld [vmem:[%s16299_s13 + $0x60] sm:$0xff]   ;;  %v6838_v19 = vshrl.u32 %v16008_v14, 16 }
 0x170   : > { %v3116_v6 = vmax.f32 %v1600_v1, %v3081_v3  ;;  %v14219_v9 = vpop.f32.mrb[2].mxu1  ;;  %14723 = vmatpush3.bf16.msra.mxu1 %v15981_v11  ;;  %14582 = vmatprep.subr.bf16.mxu0 %v15988_v27  ;;  %v8138_v1 = vshll.u32 %v16000_v62, 16  ;;  %v16003_v3 = vld [vmem:[%s16299_s13 + $0x68] ss:$0 sps:$4 sm:$0x11]   ;;  %v8142_v4 = vshrl.u32 %v16000_v62, 16 }
 0x171   : > { %v3084_v13 = vpop.f32.mrb[3].mxu1  ;;  %v14078_v16 = vpop.f32.mrb[4].mxu0  ;;  %14724 = vmatprep.subr.bf16.mxu1 %v15987_v24  ;;  %v8146_v7 = vshll.u32 %v16003_v3, 16  ;;  %v16006_v11 = vld [vmem:[%s17921_s2 + $0xb8] sm:$0xff]  }
 0x172   : > { %v3120_v10 = vmax.f32 %v3116_v6, %v3117_v0  ;;  %v1616_v22 = vpop.f32.mrb[5].mxu0  ;;  %v8136_v0 = vor.u32 %v8134_v55, %v8132_v57  ;;  %v8140_v5 = vrot.slane %v8138_v1, 1  ;;  %v16004_v6 = vld [vmem:[%s17921_s2 + $0xb0] sm:$0xff]   ;;  %v16007_v13 = vld [vmem:[%s16299_s13 + $0x48] sm:$0xff]  }
 0x173   : > { %v14079_v28 = vpop.f32.mrb[6].mxu0  ;;  %14717 = vmatmul.mubr.msk.bf16.gmra.mrb[20].mxu1 %vm297_vm0, %v15986_v23  ;;  %14583 = vmatpush3.bf16.msra.mxu0 %v15988_v27  ;;  %v8148_v12 = vrot.slane %v8146_v7, 1  ;;  %v8294_v27 = vshll.u32 %v16009_v21, 16  ;;  %v16019_v55 = vld [vmem:[%s16299_s13 + $0x68] ss:$0 sps:$4 sm:$0x11]  }
 0x174   : > { %v3128_v29 = vadd.f32 %v12268_v17, %v3120_v10  ;;  %v1619_v33 = vpop.f32.mrb[7].mxu0  ;;  %14725 = vmatpush3.bf16.msra.mxu1 %v15987_v24  ;;  %14592 = vmatprep.subr.bf16.mxu0 %v15994_v46  ;;  %v8141_v9 = vsel %vm537_vm1, %v8136_v0, %v8140_v5  ;;  %v8144_v10 = vor.u32 %v8142_v4, %v8140_v5  ;;  %v16011_v24 = vld [vmem:[%s16299_s13 + $0x58] sm:$0xff]   ;;  %v6858_v62 = vshll.u32 %v16019_v55, 16  ;;  %v16022_v0 = vld [vmem:[%s17921_s2 + $0xd0] sm:$0xff]  }
 0x175   : > { %14726 = vmatprep.subr.bf16.mxu1 %v15989_v30  ;;  %14728 = vmatprep.mubr.msk.bf16.mxu1 %vm297_vm0, %v8125_v59  ;;  %v6846_v47 = vshrl.u32 %v16011_v24, 16  ;;  %v16025_v5 = vld [vmem:[%s16299_s13 + $0x50] sm:$0xff]  }
 0x176   : > { %v14222_v18 = vpop.f32.mrb[4].mxu1  ;;  %v3130_v38 = vmax.f32 %v3128_v29, 0.0  ;;  %14585 = vmatmul.mubr.msk.bf16.vlgmr.msra.gmra.mrb[16].mxu0 %vm297_vm0, %v15993_v43  ;;  %v8149_v15 = vsel %vm537_vm1, %v8144_v10, %v8148_v12  ;;  %v16012_v29 = vld [vmem:[%s17921_s2 + $0xc0] sm:$0xff]   ;;  %v6860_v4 = vrot.slane %v6858_v62, 1  ;;  %v16024_v10 = vld [vmem:[%s17921_s2 + $0xd8] sm:$0xff]   ;;  %v16026_v12 = vld [vmem:[%s16291_s8 + $0x50] sm:$0xff]  }
 0x177   : > { %v3119_v20 = vmax.f32 %v14078_v16, %v14222_v18  ;;  %v3095_v25 = vpop.f32.mrb[5].mxu1  ;;  %14593 = vmatpush3.bf16.msra.mxu0 %v15994_v46  ;;  %14588 = vmatprep.mubr.msk.bf16.mxu0 %vm297_vm0, %v15999_v60  ;;  %v6827_v16 = vshrl.u32 %v16007_v13, 16  ;;  %v6834_v18 = vshll.u32 %v16008_v14, 16  ;;  %v16017_v46 = vld [vmem:[%s16299_s13 + $0x60] sm:$0xff]   ;;  %v16053_v55 = vld [vmem:[%s17921_s2 + $0x110] sm:$0xff]  }
 0x178   : > { %v3118_v26 = vmax.f32 %v1616_v22, %v3095_v25  ;;  %v14223_v31 = vpop.f32.mrb[6].mxu1  ;;  %14727 = vmatpush3.bf16.msra.mxu1 %v15989_v30  ;;  %14594 = vmatprep.subr.bf16.mxu0 %v15997_v54  ;;  %v16010_v22 = vld [vmem:[%s16291_s8 + $0x50] sm:$0xff]   ;;  %v6850_v53 = vshll.u32 %v16017_v46, 16  ;;  %v16028_v14 = vld [vmem:[%s17921_s2 + $0xe0] sm:$0xff]  }
 0x179   : > { %v3098_v34 = vpop.f32.mrb[7].mxu1  ;;  %14736 = vmatprep.subr.bf16.mxu1 %v15996_v50  ;;  %v6836_v23 = vrot.slane %v6834_v18, 1  ;;  %v8299_v28 = vshll.u32 %v16010_v22, 16  ;;  %v8303_v31 = vshrl.u32 %v16010_v22, 16  ;;  %v16031_v18 = vld [vmem:[%s17921_s2 + $0xe8] sm:$0xff]   ;;  %v16036_v22 = vld [vmem:[%s17921_s2 + $0xf0] sm:$0xff]  }
 0x17a   : > { %v3121_v32 = vmax.f32 %v3118_v26, %v3119_v20  ;;  %v8292_v26 = vshrl.u32 %v16009_v21, 16  ;;  %v8296_v34 = vrot.slane %v8294_v27, 1  ;;  %v6852_v60 = vrot.slane %v6850_v53, 1  ;;  %v16032_v21 = vld [vmem:[%s17921_s2 + $0xe8] sm:$0xff]   ;;  %v16040_v27 = vld [vmem:[%s17921_s2 + $0xf8] sm:$0xff]   ;;  %v16058_v62 = vld [vmem:[%s16299_s13 + $0x50] sm:$0xff]  }
 0x17b   : > { %14729 = vmatmul.mubr.msk.bf16.vlgmr.msra.gmra.mrb[16].mxu1 %vm297_vm0, %v8133_v61  ;;  %14595 = vmatpush3.bf16.msra.mxu0 %v15997_v54  ;;  %v6840_v30 = vor.u32 %v6838_v19, %v6836_v23  ;;  %v8301_v35 = vrot.slane %v8299_v28, 1  ;;  %v16033_v19 = vld [vmem:[%s16299_s13 + $0x60] sm:$0xff]   ;;  %v16041_v28 = vld [vmem:[%s16291_s8 + $0x50] sm:$0xff]  }
 0x17c   : > { %v3129_v36 = vadd.f32 %v12268_v17, %v3121_v32  ;;  %14737 = vmatpush3.bf16.msra.mxu1 %v15996_v50  ;;  %14596 = vmatprep.subr.bf16.mxu0 %v16002_v2  ;;  %v6829_v17 = vshll.u32 %v16007_v13, 16  ;;  %v6842_v32 = vshll.u32 %v16011_v24, 16  ;;  %v8297_v39 = vor.u32 %v8296_v34, %v8292_v26  ;;  %v16037_v24 = vld [vmem:[%s16291_s8 + $0x68] sm:$0xff]   ;;  %v16039_v26 = vld [vmem:[%s17921_s2 + $0xf8] sm:$0xff]  }
 0x17d   : > { %14738 = vmatprep.subr.bf16.mxu1 %v15998_v58  ;;  %14732 = vmatprep.mubr.msk.bf16.mxu1 %vm297_vm0, %v8141_v9 }
 0x17e   : > { %v3131_v40 = vmax.f32 %v3129_v36, 0.0  ;;  %14589 = vmatmul.mubr.msk.bf16.gmra.mrb[20].mxu0 %vm297_vm0, %v16001_v63  ;;  %v6831_v20 = vrot.slane %v6829_v17, 1  ;;  %v16013_v36 = vld [vmem:[%s16291_s8 + $0x58] sm:$0xff]   ;;  %v8302_v44 = vsel %vm537_vm1, %v8297_v39, %v8301_v35  ;;  %v16021_v63 = vld [vmem:[%s16291_s8 + $0x68] ss:$0 sps:$4 sm:$0x11]  }
 0x17f   : > { %14597 = vmatpush3.bf16.msra.mxu0 %v16002_v2  ;;  %v8307_v41 = vshll.u32 %v16013_v36, 16  ;;  %v8311_v50 = vshrl.u32 %v16013_v36, 16  ;;  %v8323_v7 = vshll.u32 %v16021_v63, 16  ;;  %v16030_v17 = vld [vmem:[%s17921_s2 + $0xe0] sm:$0xff]  }
 0x180   : > { %v13340_v48 = vpack.c.bf16 %v3131_v40, %v3130_v38  ;;  %14739 = vmatpush3.bf16.msra.mxu1 %v15998_v58  ;;  %14598 = vmatprep.subr.bf16.mxu0 %v16005_v8  ;;  %v6832_v25 = vor.u32 %v6831_v20, %v6827_v16  ;;  %v6844_v38 = vrot.slane %v6842_v32, 1  ;;  %v8305_v40 = vor.u32 %v8303_v31, %v8301_v35  ;;  %v16029_v16 = vld [vmem:[%s16291_s8 + $0x58] sm:$0xff]   ;;  %v16034_v20 = vld [vmem:[%s16291_s8 + $0x60] sm:$0xff]  }
 0x181   : > { %14740 = vmatprep.subr.bf16.mxu1 %v16004_v6  ;;  %v8309_v45 = vrot.slane %v8307_v41, 1  ;;  %v6854_v58 = vshrl.u32 %v16017_v46, 16  ;;  %v16044_v31 = vld [vmem:[%s16291_s8 + $0x58] sm:$0xff]   ;;  %v16045_v36 = vld [vmem:[%s17921_s2 + $0x100] sm:$0xff]  }
 0x182   : > { %13341 = vst [vmem:[%s17298_s21] sm:$0xff] %v13340_v48   ;;  %v6837_v33 = vsel %vm537_vm1, %v6832_v25, %v6836_v23  ;;  %v6845_v43 = vsel %vm537_vm1, %v6840_v30, %v6844_v38  ;;  %v16018_v48 = vld [vmem:[%s16291_s8 + $0x60] sm:$0xff]   ;;  %v6848_v52 = vor.u32 %v6846_v47, %v6844_v38  ;;  %v16035_v23 = vld [vmem:[%s16299_s13 + $0x68] sm:$0xff]   ;;  %v16038_v25 = vld [vmem:[%s17921_s2 + $0xf0] sm:$0xff]  }
 0x183   : > { %14733 = vmatmul.mubr.msk.bf16.gmra.mrb[20].mxu1 %vm297_vm0, %v8149_v15  ;;  %14599 = vmatpush3.bf16.msra.mxu0 %v16005_v8  ;;  %v8310_v51 = vsel %vm537_vm1, %v8305_v40, %v8309_v45  ;;  %v8315_v54 = vshll.u32 %v16018_v48, 16  ;;  %v8313_v57 = vor.u32 %v8311_v50, %v8309_v45  ;;  %v8319_v59 = vshrl.u32 %v16018_v48, 16  ;;  %v16023_v8 = vld [vmem:[%s17921_s2 + $0xd8] sm:$0xff]   ;;  %v16046_v39 = vld [vmem:[%s16299_s13 + $0x60] sm:$0xff]   ;;  %v16049_v45 = vld [vmem:[%s17921_s2 + $0x108] sm:$0xff]  }
 0x184   : > { %14741 = vmatpush3.bf16.msra.mxu1 %v16004_v6  ;;  %14608 = vmatprep.subr.bf16.mxu0 %v16012_v29  ;;  %v6853_v1 = vsel %vm537_vm1, %v6848_v52, %v6852_v60  ;;  %v6856_v3 = vor.u32 %v6854_v58, %v6852_v60  ;;  %v16027_v15 = vld [vmem:[%s16299_s13 + $0x58] sm:$0xff]   ;;  %v16047_v40 = vld [vmem:[%s17921_s2 + $0x100] sm:$0xff]   ;;  %v8625_v46 = vshrl.u32 %v16046_v39, 16  ;;  %v16051_v50 = vld [vmem:[%s16299_s13 + $0x68] sm:$0xff]  }
 0x185   : > { %14742 = vmatprep.subr.bf16.mxu1 %v16006_v11  ;;  %14600 = vmatprep.mubr.msk.bf16.mxu0 %vm297_vm0, %v6837_v33  ;;  %v8317_v61 = vrot.slane %v8315_v54, 1  ;;  %v16043_v30 = vld [vmem:[%s16299_s13 + $0x58] sm:$0xff]   ;;  %v8629_v53 = vshll.u32 %v16051_v50, 16  ;;  %v16052_v54 = vld [vmem:[%s16291_s8 + $0x68] sm:$0xff]   ;;  %v16055_v58 = vld [vmem:[%s17921_s2 + $0x110] sm:$0xff]  }
 0x186   : > { %14601 = vmatmul.mubr.msk.bf16.vlgmr.msra.gmra.mrb[16].mxu0 %vm297_vm0, %v6845_v43  ;;  %14744 = vmatprep.mubr.msk.bf16.mxu1 %vm297_vm0, %v8302_v44  ;;  %v6861_v9 = vsel %vm537_vm1, %v6856_v3, %v6860_v4  ;;  %v8613_v34 = vshll.u32 %v16043_v30, 16  ;;  %v8617_v35 = vshrl.u32 %v16043_v30, 16  ;;  %v8621_v43 = vshll.u32 %v16046_v39, 16  ;;  %v16048_v44 = vld [vmem:[%s17921_s2 + $0x108] sm:$0xff]   ;;  %v16056_v60 = vld [vmem:[%s17921_s2 + $0x118] sm:$0xff]  }
 0x187   : > { %14609 = vmatpush3.bf16.msra.mxu0 %v16012_v29  ;;  %v8318_v2 = vsel %vm537_vm1, %v8313_v57, %v8317_v61  ;;  %14604 = vmatprep.mubr.msk.bf16.mxu0 %vm297_vm0, %v6853_v1  ;;  %v8321_v6 = vor.u32 %v8319_v59, %v8317_v61  ;;  %v16042_v29 = vld [vmem:[%s16299_s13 + $0x50] sm:$0xff]   ;;  %v8631_v59 = vrot.slane %v8629_v53, 1  ;;  %v16057_v1 = vld [vmem:[%s17921_s2 + $0x118] sm:$0xff]   ;;  %v7302_v4 = vshrl.u32 %v16058_v62, 16 }
 0x188   : > { %14743 = vmatpush3.bf16.msra.mxu1 %v16006_v11  ;;  %14610 = vmatprep.subr.bf16.mxu0 %v16015_v42  ;;  %v8325_v11 = vrot.slane %v8323_v7, 1  ;;  %v8606_v32 = vshrl.u32 %v16042_v29, 16  ;;  %v8608_v33 = vshll.u32 %v16042_v29, 16  ;;  %v8615_v38 = vrot.slane %v8613_v34, 1  ;;  %v16059_v3 = vld [vmem:[%s16299_s13 + $0x58] sm:$0xff]   ;;  %v16067_v34 = vld [vmem:[%s17921_s2 + $0x28] sm:$0xff]  }
 0x189   : > { %14752 = vmatprep.subr.bf16.mxu1 %v16014_v37  ;;  %v8623_v48 = vrot.slane %v8621_v43, 1  ;;  %v16054_v57 = vld [vmem:[%s16299_s13 + $0x70] ss:$0 sps:$4 sm:$0x11]   ;;  %v7309_v7 = vshll.u32 %v16059_v3, 16 }
 0x18a   : > { %v8326_v13 = vsel %vm537_vm1, %v8321_v6, %v8325_v11  ;;  %v8637_v61 = vshll.u32 %v16054_v57, 16  ;;  %v16061_v11 = vld [vmem:[%s16291_s8 + $0x58] sm:$0xff]   ;;  %v16070_v43 = vld [vmem:[%s16299_s13 + $0x70] ss:$0 sps:$4 sm:$0x11]  }
 0x18b   : > { %14745 = vmatmul.mubr.msk.bf16.vlgmr.msra.gmra.mrb[16].mxu1 %vm297_vm0, %v8310_v51  ;;  %14611 = vmatpush3.bf16.msra.mxu0 %v16015_v42  ;;  %v8619_v42 = vor.u32 %v8617_v35, %v8615_v38  ;;  %v8627_v52 = vor.u32 %v8625_v46, %v8623_v48 }
 0x18c   : > { %14753 = vmatpush3.bf16.msra.mxu1 %v16014_v37  ;;  %14612 = vmatprep.subr.bf16.mxu0 %v16020_v56  ;;  %v8610_v37 = vrot.slane %v8608_v33, 1 }
 0x18d   : > { %14754 = vmatprep.subr.bf16.mxu1 %v16016_v49  ;;  %14748 = vmatprep.mubr.msk.bf16.mxu1 %vm297_vm0, %v8318_v2  ;;  %v8624_v51 = vsel %vm537_vm1, %v8619_v42, %v8623_v48  ;;  %v8632_v63 = vsel %vm537_vm1, %v8627_v52, %v8631_v59  ;;  %v8639_v2 = vrot.slane %v8637_v61, 1  ;;  %v16071_v48 = vld [vmem:[%s16291_s8 + $0x70] ss:$0 sps:$4 sm:$0x11]  }
 0x18e   : > { %14605 = vmatmul.mubr.msk.bf16.gmra.mrb[20].mxu0 %vm297_vm0, %v6861_v9  ;;  %v8611_v41 = vor.u32 %v8610_v37, %v8606_v32  ;;  %v16066_v32 = vld [vmem:[%s17921_s2 + $0x28] sm:$0xff]   ;;  %v16073_v52 = vld [vmem:[%s17921_s2 + $0x30] sm:$0xff]  }
 0x18f   : > { %14613 = vmatpush3.bf16.msra.mxu0 %v16020_v56  ;;  %14616 = vmatprep.mubr.msk.bf16.mxu0 %vm297_vm0, %v16025_v5  ;;  %v8633_v56 = vshrl.u32 %v16051_v50, 16  ;;  %v7304_v5 = vshll.u32 %v16058_v62, 16  ;;  %v7333_v50 = vshll.u32 %v16070_v43, 16  ;;  %v16075_v62 = vld [vmem:[%s17921_s2 + $0x38] sm:$0xff]   ;;  %v16095_v43 = vld [vmem:[%s16299_s13 + $0x68] sm:$0xff]  }
 0x190   : > { %14755 = vmatpush3.bf16.msra.mxu1 %v16016_v49  ;;  %14614 = vmatprep.subr.bf16.mxu0 %v16023_v8  ;;  %v8616_v47 = vsel %vm537_vm1, %v8611_v41, %v8615_v38  ;;  %v16050_v49 = vld [vmem:[%s16291_s8 + $0x60] sm:$0xff]   ;;  %v16068_v38 = vld [vmem:[%s16299_s13 + $0x68] sm:$0xff]  }
 0x191   : > { %14756 = vmatprep.subr.bf16.mxu1 %v16022_v0  ;;  %v7306_v9 = vrot.slane %v7304_v5, 1  ;;  %v7325_v42 = vshll.u32 %v16068_v38, 16  ;;  %v7335_v57 = vrot.slane %v7333_v50, 1  ;;  %v16104_v50 = vld [vmem:[%s17921_s2 + $0x50] sm:$0xff]  }
 0x193   : > { %14749 = vmatmul.mubr.msk.bf16.gmra.mrb[20].mxu1 %vm297_vm0, %v8326_v13  ;;  %14615 = vmatpush3.bf16.msra.mxu0 %v16023_v8  ;;  %v7313_v8 = vshrl.u32 %v16059_v3, 16  ;;  %v16062_v13 = vld [vmem:[%s16299_s13 + $0x60] sm:$0xff]   ;;  %v16078_v3 = vld [vmem:[%s16299_s13 + $0x68] sm:$0xff]  }
 0x194   : > { %14757 = vmatpush3.bf16.msra.mxu1 %v16022_v0  ;;  %14760 = vmatprep.mubr.msk.bf16.mxu1 %vm297_vm0, %v16026_v12  ;;  %v8635_v0 = vor.u32 %v8633_v56, %v8631_v59  ;;  %v7311_v12 = vrot.slane %v7309_v7, 1  ;;  %v7321_v35 = vshrl.u32 %v16062_v13, 16  ;;  %v16080_v7 = vld [vmem:[%s17921_s2] sm:$0xff]  }
 0x195   : > { %14758 = vmatprep.subr.bf16.mxu1 %v16024_v10  ;;  %14624 = vmatprep.subr.bf16.mxu0 %v16028_v14 }
 0x196   : > { %14617 = vmatmul.mubr.msk.bf16.vlgmr.msra.gmra.mrb[16].mxu0 %vm297_vm0, %v16027_v15  ;;  %v8640_v6 = vsel %vm537_vm1, %v8635_v0, %v8639_v2  ;;  %v16077_v2 = vld [vmem:[%s16299_s13 + $0x60] sm:$0xff]  }
 0x197   : > { %14625 = vmatpush3.bf16.msra.mxu0 %v16028_v14  ;;  %14620 = vmatprep.mubr.msk.bf16.mxu0 %vm297_vm0, %v16033_v19  ;;  %v7307_v14 = vor.u32 %v7306_v9, %v7302_v4  ;;  %v7315_v19 = vor.u32 %v7313_v8, %v7311_v12  ;;  %v10412_v4 = vshrl.u32 %v16077_v2, 16  ;;  %v10414_v5 = vshll.u32 %v16077_v2, 16 }
 0x198   : > { %14759 = vmatpush3.bf16.msra.mxu1 %v16024_v10  ;;  %14626 = vmatprep.subr.bf16.mxu0 %v16031_v18  ;;  %v16060_v10 = vld [vmem:[%s16291_s8 + $0x50] sm:$0xff]   ;;  %v10419_v8 = vshll.u32 %v16078_v3, 16  ;;  %v10423_v9 = vshrl.u32 %v16078_v3, 16 }
 0x199   : > { %14768 = vmatprep.subr.bf16.mxu1 %v16030_v17  ;;  %v8783_v15 = vshrl.u32 %v16060_v10, 16 }
 0x19b   : > { %14761 = vmatmul.mubr.msk.bf16.vlgmr.msra.gmra.mrb[16].mxu1 %vm297_vm0, %v16029_v16  ;;  %14627 = vmatpush3.bf16.msra.mxu0 %v16031_v18  ;;  %v8785_v16 = vshll.u32 %v16060_v10, 16  ;;  %v16063_v18 = vld [vmem:[%s16291_s8 + $0x60] sm:$0xff]   ;;  %v10416_v10 = vrot.slane %v10414_v5, 1 }
 0x19c   : > { %14769 = vmatpush3.bf16.msra.mxu1 %v16030_v17  ;;  %14764 = vmatprep.mubr.msk.bf16.mxu1 %vm297_vm0, %v16034_v20  ;;  %v8790_v17 = vshll.u32 %v16061_v11, 16  ;;  %v8794_v20 = vshrl.u32 %v16061_v11, 16  ;;  %v8802_v39 = vshrl.u32 %v16063_v18, 16  ;;  %v16081_v11 = vld [vmem:[%s16299_s13 + $0x70] sm:$0xff]  }
 0x19d   : > { %14770 = vmatprep.subr.bf16.mxu1 %v16032_v21  ;;  %14628 = vmatprep.subr.bf16.mxu0 %v16036_v22 }
 0x19e   : > { %14621 = vmatmul.mubr.msk.bf16.gmra.mrb[20].mxu0 %vm297_vm0, %v16035_v23  ;;  %v8787_v23 = vrot.slane %v8785_v16, 1  ;;  %v16083_v16 = vld [vmem:[%s17921_s2 + $0x8] sm:$0xff]  }
 0x19f   : > { %14629 = vmatpush3.bf16.msra.mxu0 %v16036_v22  ;;  %14632 = vmatprep.mubr.msk.bf16.mxu0 %vm297_vm0, %v16041_v28  ;;  %v7312_v22 = vsel %vm537_vm1, %v7307_v14, %v7311_v12  ;;  %v16065_v28 = vld [vmem:[%s17921_s2 + $0x20] sm:$0xff]   ;;  %v10421_v12 = vrot.slane %v10419_v8, 1  ;;  %v10417_v14 = vor.u32 %v10416_v10, %v10412_v4 }
 0x1a0   : > { %14771 = vmatpush3.bf16.msra.mxu1 %v16032_v21  ;;  %14630 = vmatprep.subr.bf16.mxu0 %v16039_v26  ;;  %v7317_v21 = vshll.u32 %v16062_v13, 16  ;;  %v8788_v29 = vor.u32 %v8787_v23, %v8783_v15  ;;  %v16082_v13 = vld [vmem:[%s17921_s2] sm:$0xff]   ;;  %v10427_v15 = vshll.u32 %v16081_v11, 16  ;;  %v16086_v23 = vld [vmem:[%s16299_s13 + $0x78] sm:$0xff]  }
 0x1a1   : > { %14772 = vmatprep.subr.bf16.mxu1 %v16038_v25  ;;  %v16114_v8 = vld [vmem:[%s17921_s2 + $0x60] sm:$0xff]  }
 0x1a3   : > { %14765 = vmatmul.mubr.msk.bf16.gmra.mrb[20].mxu1 %vm297_vm0, %v16037_v24  ;;  %14631 = vmatpush3.bf16.msra.mxu0 %v16039_v26  ;;  %v8792_v24 = vrot.slane %v8790_v17, 1  ;;  %v16064_v26 = vld [vmem:[%s17921_s2 + $0x20] sm:$0xff]   ;;  %v10425_v17 = vor.u32 %v10423_v9, %v10421_v12 }
 0x1a4   : > { %14773 = vmatpush3.bf16.msra.mxu1 %v16038_v25  ;;  %14640 = vmatprep.subr.bf16.mxu0 %v16045_v36  ;;  %v8798_v25 = vshll.u32 %v16063_v18, 16  ;;  %v16084_v18 = vld [vmem:[%s17921_s2 + $0x8] sm:$0xff]  }
 0x1a5   : > { %14774 = vmatprep.subr.bf16.mxu1 %v16040_v27  ;;  %14776 = vmatprep.mubr.msk.bf16.mxu1 %vm297_vm0, %v8616_v47  ;;  %v8796_v30 = vor.u32 %v8794_v20, %v8792_v24  ;;  %v10422_v20 = vsel %vm537_vm1, %v10417_v14, %v10421_v12  ;;  %v16115_v12 = vld [vmem:[%s16291_s8 + $0x70] sm:$0xff]  }
 0x1a6   : > { %14633 = vmatmul.mubr.msk.bf16.vlgmr.msra.gmra.mrb[16].mxu0 %vm297_vm0, %v16044_v31  ;;  %v8800_v31 = vrot.slane %v8798_v25, 1  ;;  %v16087_v25 = vld [vmem:[%s16291_s8 + $0x78] sm:$0xff]  }
 0x1a7   : > { %14641 = vmatpush3.bf16.msra.mxu0 %v16045_v36  ;;  %14636 = vmatprep.mubr.msk.bf16.mxu0 %vm297_vm0, %v16050_v49  ;;  %v8793_v36 = vsel %vm537_vm1, %v8788_v29, %v8792_v24  ;;  %v7327_v49 = vrot.slane %v7325_v42, 1  ;;  %v16089_v29 = vld [vmem:[%s16299_s13 + $0x80] ss:$0 sps:$4 sm:$0x11]  }
 0x1a8   : > { %14775 = vmatpush3.bf16.msra.mxu1 %v16040_v27  ;;  %14642 = vmatprep.subr.bf16.mxu0 %v16048_v44  ;;  %v7319_v27 = vrot.slane %v7317_v21, 1  ;;  %v8801_v37 = vsel %vm537_vm1, %v8796_v30, %v8800_v31  ;;  %v8804_v46 = vor.u32 %v8802_v39, %v8800_v31  ;;  %v10429_v21 = vrot.slane %v10427_v15, 1  ;;  %v16093_v39 = vld [vmem:[%s16299_s13 + $0x60] sm:$0xff]  }
 0x1a9   : > { %14784 = vmatprep.subr.bf16.mxu1 %v16047_v40  ;;  %v10439_v30 = vshrl.u32 %v16086_v23, 16  ;;  %v16096_v42 = vld [vmem:[%s17921_s2 + $0x40] sm:$0xff]  }
 0x1aa   : > { %v7320_v33 = vsel %vm537_vm1, %v7315_v19, %v7319_v27  ;;  %v7323_v41 = vor.u32 %v7321_v35, %v7319_v27  ;;  %v10431_v19 = vshrl.u32 %v16081_v11, 16  ;;  %v10430_v24 = vsel %vm537_vm1, %v10425_v17, %v10429_v21 }
 0x1ab   : > { %14777 = vmatmul.mubr.msk.bf16.vlgmr.msra.gmra.mrb[16].mxu1 %vm297_vm0, %v8624_v51  ;;  %14643 = vmatpush3.bf16.msra.mxu0 %v16048_v44  ;;  %v7329_v44 = vshrl.u32 %v16068_v38, 16  ;;  %v10435_v27 = vshll.u32 %v16086_v23, 16  ;;  %v10717_v17 = vshll.u32 %v16115_v12, 16 }
 0x1ac   : > { %14785 = vmatpush3.bf16.msra.mxu1 %v16047_v40  ;;  %14644 = vmatprep.subr.bf16.mxu0 %v16053_v55  ;;  %v16069_v40 = vld [vmem:[%s16291_s8 + $0x68] sm:$0xff]  }
 0x1ad   : > { %14786 = vmatprep.subr.bf16.mxu1 %v16049_v45  ;;  %14780 = vmatprep.mubr.msk.bf16.mxu1 %vm297_vm0, %v8632_v63  ;;  %v8806_v47 = vshll.u32 %v16069_v40, 16  ;;  %v8810_v51 = vshrl.u32 %v16069_v40, 16  ;;  %v7331_v56 = vor.u32 %v7329_v44, %v7327_v49  ;;  %v10437_v31 = vrot.slane %v10435_v27, 1  ;;  %v16094_v40 = vld [vmem:[%s16291_s8 + $0x60] sm:$0xff]   ;;  %v16097_v44 = vld [vmem:[%s16291_s8 + $0x68] sm:$0xff]  }
 0x1ae   : > { %14637 = vmatmul.mubr.msk.bf16.gmra.mrb[20].mxu0 %vm297_vm0, %v16052_v54  ;;  %v8814_v54 = vshll.u32 %v16071_v48, 16  ;;  %v16101_v48 = vld [vmem:[%s16299_s13 + $0x70] sm:$0xff]   ;;  %v10721_v27 = vshrl.u32 %v16115_v12, 16 }
 0x1af   : > { %14645 = vmatpush3.bf16.msra.mxu0 %v16053_v55  ;;  %14648 = vmatprep.mubr.msk.bf16.mxu0 %vm297_vm0, %v7312_v22  ;;  %v8808_v53 = vrot.slane %v8806_v47, 1  ;;  %v7328_v55 = vsel %vm537_vm1, %v7323_v41, %v7327_v49  ;;  %v7336_v63 = vsel %vm537_vm1, %v7331_v56, %v7335_v57  ;;  %v16085_v22 = vld [vmem:[%s16291_s8 + $0x70] sm:$0xff]   ;;  %v16100_v47 = vld [vmem:[%s17921_s2 + $0x48] sm:$0xff]   ;;  %v16109_v56 = vld [vmem:[%s16299_s13 + $0x60] sm:$0xff]  }
 0x1b0   : > { %14787 = vmatpush3.bf16.msra.mxu1 %v16049_v45  ;;  %14646 = vmatprep.subr.bf16.mxu0 %v16056_v60  ;;  %v16072_v45 = vld [vmem:[%s17921_s2 + $0x30] sm:$0xff]   ;;  %v8816_v61 = vrot.slane %v8814_v54, 1  ;;  %v16107_v54 = vld [vmem:[%s17921_s2 + $0x58] sm:$0xff]   ;;  %v16110_v57 = vld [vmem:[%s16299_s13 + $0x68] sm:$0xff]  }
 0x1b1   : > { %14788 = vmatprep.subr.bf16.mxu1 %v16055_v58  ;;  %v8809_v59 = vsel %vm537_vm1, %v8804_v46, %v8808_v53  ;;  %v16099_v46 = vld [vmem:[%s17921_s2 + $0x48] sm:$0xff]   ;;  %v16102_v49 = vld [vmem:[%s16291_s8 + $0x70] sm:$0xff]  }
 0x1b3   : > { %14781 = vmatmul.mubr.msk.bf16.gmra.mrb[20].mxu1 %vm297_vm0, %v8640_v6  ;;  %14647 = vmatpush3.bf16.msra.mxu0 %v16056_v60  ;;  %v8812_v60 = vor.u32 %v8810_v51, %v8808_v53  ;;  %v16079_v6 = vld [vmem:[%s16291_s8 + $0x68] sm:$0xff]   ;;  %v16103_v51 = vld [vmem:[%s16299_s13 + $0x78] sm:$0xff]   ;;  %v16106_v53 = vld [vmem:[%s17921_s2 + $0x50] sm:$0xff]  }
 0x1b4   : > { %14789 = vmatpush3.bf16.msra.mxu1 %v16055_v58  ;;  %14800 = vmatprep.subr.bf16.mxu0 %v16064_v26  ;;  %v16074_v58 = vld [vmem:[%s17921_s2 + $0x38] sm:$0xff]  }
 0x1b5   : > { %14790 = vmatprep.subr.bf16.mxu1 %v16057_v1  ;;  %14792 = vmatprep.mubr.msk.bf16.mxu1 %vm297_vm0, %v8793_v36  ;;  %v8817_v0 = vsel %vm537_vm1, %v8812_v60, %v8816_v61  ;;  %v10441_v36 = vor.u32 %v10439_v30, %v10437_v31  ;;  %v9260_v60 = vshll.u32 %v16110_v57, 16  ;;  %v9264_v61 = vshrl.u32 %v16110_v57, 16  ;;  %v16121_v30 = vld [vmem:[%s16299_s13 + $0x80] ss:$0 sps:$4 sm:$0x11]  }
 0x1b6   : > { %14649 = vmatmul.mubr.msk.bf16.vlgmr.msra.gmra.mrb[16].mxu0 %vm297_vm0, %v7320_v33  ;;  %v10443_v33 = vshll.u32 %v16089_v29, 16  ;;  %v16120_v29 = vld [vmem:[%s16291_s8 + $0x78] sm:$0xff]  }
 0x1b7   : > { %14801 = vmatpush3.bf16.msra.mxu0 %v16064_v26  ;;  %14652 = vmatprep.mubr.msk.bf16.mxu0 %vm297_vm0, %v7328_v55  ;;  %v10433_v26 = vor.u32 %v10431_v19, %v10429_v21  ;;  %v16108_v55 = vld [vmem:[%s17921_s2 + $0x58] sm:$0xff]   ;;  %v9262_v2 = vrot.slane %v9260_v60, 1  ;;  %v16117_v21 = vld [vmem:[%s17921_s2 + $0x68] sm:$0xff]  }
 0x1b8   : > { %14791 = vmatpush3.bf16.msra.mxu1 %v16057_v1  ;;  %14802 = vmatprep.subr.bf16.mxu0 %v16066_v32  ;;  %v16076_v1 = vld [vmem:[%s16291_s8 + $0x60] sm:$0xff]   ;;  %v10445_v38 = vrot.slane %v10443_v33, 1 }
 0x1b9   : > { %14944 = vmatprep.subr.bf16.mxu1 %v16065_v28  ;;  %v10438_v35 = vsel %vm537_vm1, %v10433_v26, %v10437_v31  ;;  %v9266_v10 = vor.u32 %v9264_v61, %v9262_v2  ;;  %v16119_v26 = vld [vmem:[%s16299_s13 + $0x78] sm:$0xff]   ;;  %v16129_v61 = vld [vmem:[%s16299_s13 + $0x70] sm:$0xff]  }
 0x1ba   : > { %v10446_v41 = vsel %vm537_vm1, %v10441_v36, %v10445_v38  ;;  %v9280_v33 = vshrl.u32 %v16119_v26, 16  ;;  %v9284_v36 = vshll.u32 %v16121_v30, 16  ;;  %v10729_v38 = vshrl.u32 %v16120_v29, 16 }
 0x1bb   : > { %14793 = vmatmul.mubr.msk.bf16.vlgmr.msra.gmra.mrb[16].mxu1 %vm297_vm0, %v8801_v37  ;;  %14803 = vmatpush3.bf16.msra.mxu0 %v16066_v32  ;;  %v16090_v32 = vld [vmem:[%s17921_s2 + $0x10] sm:$0xff]   ;;  %v16092_v37 = vld [vmem:[%s17921_s2 + $0x18] sm:$0xff]  }
 0x1bc   : > { %14945 = vmatpush3.bf16.msra.mxu1 %v16065_v28  ;;  %14804 = vmatprep.subr.bf16.mxu0 %v16072_v45  ;;  %v16088_v28 = vld [vmem:[%s17921_s2 + $0x10] sm:$0xff]  }
 0x1bd   : > { %14946 = vmatprep.subr.bf16.mxu1 %v16067_v34  ;;  %14796 = vmatprep.mubr.msk.bf16.mxu1 %vm297_vm0, %v8809_v59  ;;  %v9255_v59 = vshll.u32 %v16109_v56, 16 }
 0x1be   : > { %14653 = vmatmul.mubr.msk.bf16.gmra.mrb[20].mxu0 %vm297_vm0, %v7336_v63  ;;  %v16112_v63 = vld [vmem:[%s16291_s8 + $0x68] sm:$0xff]  }
 0x1bf   : > { %14805 = vmatpush3.bf16.msra.mxu0 %v16072_v45  ;;  %14808 = vmatprep.mubr.msk.bf16.mxu0 %vm297_vm0, %v16076_v1  ;;  %v16098_v45 = vld [vmem:[%s17921_s2 + $0x40] sm:$0xff]   ;;  %v9257_v1 = vrot.slane %v9255_v59, 1  ;;  %v10709_v5 = vshll.u32 %v16112_v63, 16 }
 0x1c0   : > { %14947 = vmatpush3.bf16.msra.mxu1 %v16067_v34  ;;  %14806 = vmatprep.subr.bf16.mxu0 %v16074_v58  ;;  %v16091_v34 = vld [vmem:[%s17921_s2 + $0x18] sm:$0xff]  }
 0x1c1   : > { %14948 = vmatprep.subr.bf16.mxu1 %v16073_v52 }
 0x1c3   : > { %14797 = vmatmul.mubr.msk.bf16.gmra.mrb[20].mxu1 %vm297_vm0, %v8817_v0  ;;  %14807 = vmatpush3.bf16.msra.mxu0 %v16074_v58  ;;  %v9253_v58 = vshrl.u32 %v16109_v56, 16  ;;  %v16113_v0 = vld [vmem:[%s16299_s13 + $0x70] sm:$0xff]  }
 0x1c4   : > { %14949 = vmatpush3.bf16.msra.mxu1 %v16073_v52  ;;  %14816 = vmatprep.subr.bf16.mxu0 %v16080_v7  ;;  %v16105_v52 = vld [vmem:[%s16291_s8 + $0x78] sm:$0xff]  }
 0x1c5   : > { %14950 = vmatprep.subr.bf16.mxu1 %v16075_v62  ;;  %14952 = vmatprep.mubr.msk.bf16.mxu1 %vm297_vm0, %v10422_v20  ;;  %v9258_v9 = vor.u32 %v9257_v1, %v9253_v58  ;;  %v16130_v58 = vld [vmem:[%s17921_s2 + $0x80] sm:$0xff]  }
 0x1c6   : > { %14809 = vmatmul.mubr.msk.bf16.vlgmr.msra.gmra.mrb[24].mxu0 %vm297_vm0, %v16079_v6  ;;  %v10713_v6 = vshrl.u32 %v16112_v63, 16  ;;  %v16131_v63 = vld [vmem:[%s16291_s8 + $0x70] sm:$0xff]  }
 0x1c7   : > { %14817 = vmatpush3.bf16.msra.mxu0 %v16080_v7  ;;  %14812 = vmatprep.mubr.msk.bf16.mxu0 %vm297_vm0, %v16085_v22  ;;  %v9268_v7 = vshll.u32 %v16113_v0, 16  ;;  %v9263_v15 = vsel %vm537_vm1, %v9258_v9, %v9262_v2  ;;  %v9272_v22 = vshrl.u32 %v16113_v0, 16  ;;  %v16132_v0 = vld [vmem:[%s17921_s2 + $0x80] sm:$0xff]   ;;  %v16135_v9 = vld [vmem:[%s16299_s13 + $0x78] sm:$0xff]  }
 0x1c8   : > { %14951 = vmatpush3.bf16.msra.mxu1 %v16075_v62  ;;  %14818 = vmatprep.subr.bf16.mxu0 %v16083_v16  ;;  %v16111_v62 = vld [vmem:[%s16291_s8 + $0x60] sm:$0xff]  }
 0x1c9   : > { %14960 = vmatprep.subr.bf16.mxu1 %v16082_v13  ;;  %v10702_v3 = vshrl.u32 %v16111_v62, 16  ;;  %v10704_v4 = vshll.u32 %v16111_v62, 16  ;;  %v9270_v14 = vrot.slane %v9268_v7, 1 }
 0x1cb   : > { %14953 = vmatmul.mubr.msk.bf16.vlgmr.msra.gmra.mrb[24].mxu1 %vm297_vm0, %v10430_v24  ;;  %14819 = vmatpush3.bf16.msra.mxu0 %v16083_v16  ;;  %v10706_v11 = vrot.slane %v10704_v4, 1  ;;  %v9271_v20 = vsel %vm537_vm1, %v9266_v10, %v9270_v14  ;;  %v10719_v24 = vrot.slane %v10717_v17, 1  ;;  %v9274_v31 = vor.u32 %v9272_v22, %v9270_v14  ;;  %v16136_v10 = vld [vmem:[%s16291_s8 + $0x78] sm:$0xff]   ;;  %v16139_v17 = vld [vmem:[%s16291_s8 + $0x80] sm:$0xff]  }
 0x1cc   : > { %14961 = vmatpush3.bf16.msra.mxu1 %v16082_v13  ;;  %14820 = vmatprep.subr.bf16.mxu0 %v16088_v28  ;;  %v10711_v13 = vrot.slane %v10709_v5, 1 }
 0x1cd   : > { %14962 = vmatprep.subr.bf16.mxu1 %v16084_v18  ;;  %14956 = vmatprep.mubr.msk.bf16.mxu1 %vm297_vm0, %v10438_v35  ;;  %v10707_v16 = vor.u32 %v10706_v11, %v10702_v3  ;;  %v10725_v35 = vshll.u32 %v16120_v29, 16  ;;  %v16133_v3 = vld [vmem:[%s17921_s2 + $0x88] sm:$0xff]  }
 0x1ce   : > { %14813 = vmatmul.mubr.msk.bf16.gmra.mrb[28].mxu0 %vm297_vm0, %v16087_v25  ;;  %v10715_v19 = vor.u32 %v10713_v6, %v10711_v13  ;;  %v16118_v25 = vld [vmem:[%s17921_s2 + $0x68] sm:$0xff]  }
 0x1cf   : > { %14821 = vmatpush3.bf16.msra.mxu0 %v16088_v28  ;;  %14824 = vmatprep.mubr.msk.bf16.mxu0 %vm297_vm0, %v16093_v39  ;;  %v10712_v23 = vsel %vm537_vm1, %v10707_v16, %v10711_v13  ;;  %v16134_v6 = vld [vmem:[%s17921_s2 + $0x88] sm:$0xff]   ;;  %v16138_v13 = vld [vmem:[%s17921_s2 + $0x90] sm:$0xff]  }
 0x1d0   : > { %14963 = vmatpush3.bf16.msra.mxu1 %v16084_v18  ;;  %14822 = vmatprep.subr.bf16.mxu0 %v16091_v34  ;;  %v16116_v18 = vld [vmem:[%s17921_s2 + $0x60] sm:$0xff]   ;;  %v10720_v28 = vsel %vm537_vm1, %v10715_v19, %v10719_v24 }
 0x1d1   : > { %14964 = vmatprep.subr.bf16.mxu1 %v16090_v32 }
 0x1d3   : > { %14957 = vmatmul.mubr.msk.bf16.gmra.mrb[28].mxu1 %vm297_vm0, %v10446_v41  ;;  %14823 = vmatpush3.bf16.msra.mxu0 %v16091_v34  ;;  %v10723_v34 = vor.u32 %v10721_v27, %v10719_v24  ;;  %v10727_v41 = vrot.slane %v10725_v35, 1 }
 0x1d4   : > { %14965 = vmatpush3.bf16.msra.mxu1 %v16090_v32  ;;  %14968 = vmatprep.mubr.msk.bf16.mxu1 %vm297_vm0, %v16094_v40  ;;  %v9276_v32 = vshll.u32 %v16119_v26, 16  ;;  %v16123_v40 = vld [vmem:[%s16291_s8 + $0x80] ss:$0 sps:$4 sm:$0x11]  }
 0x1d5   : > { %14966 = vmatprep.subr.bf16.mxu1 %v16092_v37  ;;  %14832 = vmatprep.subr.bf16.mxu0 %v16096_v42 }
 0x1d6   : > { %14825 = vmatmul.mubr.msk.bf16.vlgmr.msra.gmra.mrb[24].mxu0 %vm297_vm0, %v16095_v43  ;;  %v9278_v39 = vrot.slane %v9276_v32, 1  ;;  %v16124_v43 = vld [vmem:[%s17921_s2 + $0x70] sm:$0xff]  }
 0x1d7   : > { %14833 = vmatpush3.bf16.msra.mxu0 %v16096_v42  ;;  %14828 = vmatprep.mubr.msk.bf16.mxu0 %vm297_vm0, %v16101_v48  ;;  %v9286_v42 = vrot.slane %v9284_v36, 1  ;;  %v10728_v48 = vsel %vm537_vm1, %v10723_v34, %v10727_v41  ;;  %v16145_v34 = vld [vmem:[%s16299_s13 + $0x70] sm:$0xff]  }
 0x1d8   : > { %14967 = vmatpush3.bf16.msra.mxu1 %v16092_v37  ;;  %14834 = vmatprep.subr.bf16.mxu0 %v16099_v46  ;;  %v16122_v37 = vld [vmem:[%s17921_s2 + $0x70] sm:$0xff]  }
 0x1d9   : > { %14976 = vmatprep.subr.bf16.mxu1 %v16098_v45 }
 0x1db   : > { %14969 = vmatmul.mubr.msk.bf16.vlgmr.msra.gmra.mrb[24].mxu1 %vm297_vm0, %v16097_v44  ;;  %14835 = vmatpush3.bf16.msra.mxu0 %v16099_v46  ;;  %v9279_v44 = vsel %vm537_vm1, %v9274_v31, %v9278_v39  ;;  %v10733_v46 = vshll.u32 %v16123_v40, 16  ;;  %v16144_v31 = vld [vmem:[%s16299_s13 + $0x68] sm:$0xff]   ;;  %v11023_v40 = vshll.u32 %v16145_v34, 16 }
 0x1dc   : > { %14977 = vmatpush3.bf16.msra.mxu1 %v16098_v45  ;;  %14972 = vmatprep.mubr.msk.bf16.mxu1 %vm297_vm0, %v16102_v49  ;;  %v9282_v45 = vor.u32 %v9280_v33, %v9278_v39  ;;  %v10731_v49 = vor.u32 %v10729_v38, %v10727_v41  ;;  %v11016_v35 = vshrl.u32 %v16144_v31, 16  ;;  %v11018_v36 = vshll.u32 %v16144_v31, 16  ;;  %v16166_v31 = vld [vmem:[%s16291_s8 + $0x78] sm:$0xff]  }
 0x1dd   : > { %14978 = vmatprep.subr.bf16.mxu1 %v16100_v47  ;;  %14836 = vmatprep.subr.bf16.mxu0 %v16104_v50  ;;  %v11027_v41 = vshrl.u32 %v16145_v34, 16 }
 0x1de   : > { %14829 = vmatmul.mubr.msk.bf16.gmra.mrb[28].mxu0 %vm297_vm0, %v16103_v51  ;;  %v9287_v51 = vsel %vm537_vm1, %v9282_v45, %v9286_v42  ;;  %v11020_v39 = vrot.slane %v11018_v36, 1  ;;  %v16147_v42 = vld [vmem:[%s17921_s2 + $0xa0] sm:$0xff]   ;;  %v11025_v45 = vrot.slane %v11023_v40, 1  ;;  %v11208_v36 = vshll.u32 %v16166_v31, 16 }
 0x1df   : > { %14837 = vmatpush3.bf16.msra.mxu0 %v16104_v50  ;;  %14840 = vmatprep.mubr.msk.bf16.mxu0 %vm297_vm0, %v9263_v15  ;;  %v16126_v50 = vld [vmem:[%s17921_s2 + $0x78] sm:$0xff]   ;;  %v16137_v15 = vld [vmem:[%s16299_s13 + $0x80] sm:$0xff]  }
 0x1e0   : > { %14979 = vmatpush3.bf16.msra.mxu1 %v16100_v47  ;;  %14838 = vmatprep.subr.bf16.mxu0 %v16107_v54  ;;  %v16125_v47 = vld [vmem:[%s17921_s2 + $0x78] sm:$0xff]   ;;  %v11210_v40 = vrot.slane %v11208_v36, 1 }
 0x1e1   : > { %14980 = vmatprep.subr.bf16.mxu1 %v16106_v53 }
 0x1e3   : > { %14973 = vmatmul.mubr.msk.bf16.gmra.mrb[28].mxu1 %vm297_vm0, %v16105_v52  ;;  %14839 = vmatpush3.bf16.msra.mxu0 %v16107_v54  ;;  %v10735_v52 = vrot.slane %v10733_v46, 1  ;;  %v16128_v54 = vld [vmem:[%s16291_s8 + $0x68] sm:$0xff]   ;;  %v16148_v46 = vld [vmem:[%s16299_s13 + $0x78] sm:$0xff]  }
 0x1e4   : > { %14981 = vmatpush3.bf16.msra.mxu1 %v16106_v53  ;;  %14848 = vmatprep.subr.bf16.mxu0 %v16114_v8  ;;  %v16127_v53 = vld [vmem:[%s16299_s13 + $0x68] sm:$0xff]  }
 0x1e5   : > { %14982 = vmatprep.subr.bf16.mxu1 %v16108_v55  ;;  %14984 = vmatprep.mubr.msk.bf16.mxu1 %vm297_vm0, %v10712_v23  ;;  %v10736_v56 = vsel %vm537_vm1, %v10731_v49, %v10735_v52  ;;  %v16141_v23 = vld [vmem:[%s17921_s2 + $0x98] sm:$0xff]   ;;  %v11029_v49 = vor.u32 %v11027_v41, %v11025_v45  ;;  %v16151_v52 = vld [vmem:[%s17921_s2 + $0xa8] sm:$0xff]   ;;  %v16170_v41 = vld [vmem:[%s16299_s13 + $0x80] sm:$0xff]  }
 0x1e6   : > { %14841 = vmatmul.mubr.msk.bf16.vlgmr.msra.gmra.mrb[24].mxu0 %vm297_vm0, %v9271_v20  ;;  %v16221_v20 = vld [vmem:[%s17922_s3] ss:$0 sm:$0xff] }
 0x1e7   : > { %14849 = vmatpush3.bf16.msra.mxu0 %v16114_v8  ;;  %14844 = vmatprep.mubr.msk.bf16.mxu0 %vm297_vm0, %v9279_v44  ;;  %v11021_v44 = vor.u32 %v11020_v39, %v11016_v35 }
 0x1e8   : > { %14983 = vmatpush3.bf16.msra.mxu1 %v16108_v55  ;;  %14850 = vmatprep.subr.bf16.mxu0 %v16117_v21 }
 0x1e9   : > { %14992 = vmatprep.subr.bf16.mxu1 %v16116_v18 }
 0x1eb   : > { %14985 = vmatmul.mubr.msk.bf16.vlgmr.msra.gmra.mrb[24].mxu1 %vm297_vm0, %v10720_v28  ;;  %14851 = vmatpush3.bf16.msra.mxu0 %v16117_v21  ;;  %v16143_v28 = vld [vmem:[%s16291_s8 + $0x68] sm:$0xff]  }
 0x1ec   : > { %14993 = vmatpush3.bf16.msra.mxu1 %v16116_v18  ;;  %14852 = vmatprep.subr.bf16.mxu0 %v16122_v37  ;;  %v16140_v18 = vld [vmem:[%s17921_s2 + $0x90] sm:$0xff]  }
 0x1ed   : > { %14994 = vmatprep.subr.bf16.mxu1 %v16118_v25  ;;  %14988 = vmatprep.mubr.msk.bf16.mxu1 %vm297_vm0, %v10728_v48  ;;  %v11026_v48 = vsel %vm537_vm1, %v11021_v44, %v11025_v45  ;;  %v16169_v44 = vld [vmem:[%s17921_s2 + $0xc8] sm:$0xff]   ;;  %v11212_v45 = vshrl.u32 %v16166_v31, 16  ;;  %v16198_v31 = vld [vmem:[%s17921_s2 + $0x100] sm:$0xff]  }
 0x1ee   : > { %14845 = vmatmul.mubr.msk.bf16.gmra.mrb[28].mxu0 %vm297_vm0, %v9287_v51  ;;  %v16150_v51 = vld [vmem:[%s17921_s2 + $0xa8] sm:$0xff]  }
 0x1ef   : > { %14853 = vmatpush3.bf16.msra.mxu0 %v16122_v37  ;;  %14856 = vmatprep.mubr.msk.bf16.mxu0 %vm297_vm0, %v16127_v53  ;;  %v16146_v37 = vld [vmem:[%s16291_s8 + $0x70] sm:$0xff]   ;;  %v11035_v53 = vshrl.u32 %v16148_v46, 16 }
 0x1f0   : > { %14995 = vmatpush3.bf16.msra.mxu1 %v16118_v25  ;;  %14854 = vmatprep.subr.bf16.mxu0 %v16125_v47  ;;  %v16142_v25 = vld [vmem:[%s17921_s2 + $0x98] sm:$0xff]  }
 0x1f1   : > { %14996 = vmatprep.subr.bf16.mxu1 %v16124_v43 }
 0x1f3   : > { %14989 = vmatmul.mubr.msk.bf16.gmra.mrb[28].mxu1 %vm297_vm0, %v10736_v56  ;;  %14855 = vmatpush3.bf16.msra.mxu0 %v16125_v47  ;;  %v16149_v47 = vld [vmem:[%s17921_s2 + $0xa0] sm:$0xff]  }
 0x1f4   : > { %14997 = vmatpush3.bf16.msra.mxu1 %v16124_v43  ;;  %15000 = vmatprep.mubr.msk.bf16.mxu1 %vm297_vm0, %v16128_v54  ;;  %v16153_v56 = vld [vmem:[%s16299_s13 + $0x80] sm:$0xff]  }
 0x1f5   : > { %14998 = vmatprep.subr.bf16.mxu1 %v16126_v50  ;;  %14864 = vmatprep.subr.bf16.mxu0 %v16130_v58 }
 0x1f6   : > { %14857 = vmatmul.mubr.msk.bf16.vlgmr.msra.gmra.mrb[24].mxu0 %vm297_vm0, %v16129_v61  ;;  %v16155_v61 = vld [vmem:[%s17921_s2 + $0xb0] sm:$0xff]  }
 0x1f7   : > { %14865 = vmatpush3.bf16.msra.mxu0 %v16130_v58  ;;  %14860 = vmatprep.mubr.msk.bf16.mxu0 %vm297_vm0, %v16135_v9  ;;  %v16161_v9 = vld [vmem:[%s16299_s13 + $0x70] sm:$0xff]  }
 0x1f8   : > { %14999 = vmatpush3.bf16.msra.mxu1 %v16126_v50  ;;  %14866 = vmatprep.subr.bf16.mxu0 %v16133_v3  ;;  %v11031_v50 = vshll.u32 %v16148_v46, 16 }
 0x1f9   : > { %v14362_v55 = vpop.f32.mrb[8].mxu0  ;;  %15008 = vmatprep.subr.bf16.mxu1 %v16132_v0 }
 0x1fa   : > { %v4506_v60 = vpop.f32.mrb[9].mxu0  ;;  %v11033_v54 = vrot.slane %v11031_v50, 1  ;;  %v16172_v50 = vld [vmem:[%s16299_s13 + $0x88] ss:$0 sps:$4 sm:$0x11]  }
 0x1fb   : > { %v14363_v2 = vpop.f32.mrb[10].mxu0  ;;  %15001 = vmatmul.mubr.msk.bf16.vlgmr.msra.gmra.mrb[24].mxu1 %vm297_vm0, %v16131_v63  ;;  %14867 = vmatpush3.bf16.msra.mxu0 %v16133_v3  ;;  %v16156_v63 = vld [vmem:[%s16299_s13 + $0x88] ss:$0 sps:$4 sm:$0x11]  }
 0x1fc   : > { %v4509_v7 = vpop.f32.mrb[11].mxu0  ;;  %15009 = vmatpush3.bf16.msra.mxu1 %v16132_v0  ;;  %15004 = vmatprep.mubr.msk.bf16.mxu1 %vm297_vm0, %v16136_v10  ;;  %v11037_v58 = vor.u32 %v11035_v53, %v11033_v54  ;;  %v16157_v0 = vld [vmem:[%s17921_s2 + $0xb0] sm:$0xff]   ;;  %v16158_v2 = vld [vmem:[%s17921_s2 + $0xb8] sm:$0xff]   ;;  %v11047_v3 = vshll.u32 %v16156_v63, 16  ;;  %v9755_v53 = vshrl.u32 %v16170_v41, 16 }
 0x1fd   : > { %15010 = vmatprep.subr.bf16.mxu1 %v16134_v6  ;;  %14868 = vmatprep.subr.bf16.mxu0 %v16138_v13  ;;  %v16159_v7 = vld [vmem:[%s17921_s2 + $0xb8] sm:$0xff]  }
 0x1fe   : > { %v14506_v57 = vpop.f32.mrb[8].mxu1  ;;  %14861 = vmatmul.mubr.msk.bf16.gmra.mrb[28].mxu0 %vm297_vm0, %v16137_v15 }
 0x1ff   : > { %v6023_v59 = vmax.f32 %v14362_v55, %v14506_v57  ;;  %v5987_v62 = vpop.f32.mrb[9].mxu1  ;;  %14869 = vmatpush3.bf16.msra.mxu0 %v16138_v13  ;;  %14872 = vmatprep.mubr.msk.bf16.mxu0 %vm297_vm0, %v16143_v28  ;;  %v16152_v55 = vld [vmem:[%s16291_s8 + $0x78] sm:$0xff]   ;;  %v11034_v57 = vsel %vm537_vm1, %v11029_v49, %v11033_v54  ;;  %v9735_v13 = vshll.u32 %v16161_v9, 16 }
 0x200   : > { %v6022_v1 = vmax.f32 %v4506_v60, %v5987_v62  ;;  %v14507_v4 = vpop.f32.mrb[10].mxu1  ;;  %15011 = vmatpush3.bf16.msra.mxu1 %v16134_v6  ;;  %14870 = vmatprep.subr.bf16.mxu0 %v16141_v23  ;;  %v16154_v60 = vld [vmem:[%s16291_s8 + $0x80] sm:$0xff]   ;;  %v11043_v62 = vshrl.u32 %v16153_v56, 16 }
 0x201   : > { %v5990_v8 = vpop.f32.mrb[11].mxu1  ;;  %v14366_v11 = vpop.f32.mrb[12].mxu0  ;;  %15012 = vmatprep.subr.bf16.mxu1 %v16140_v18  ;;  %v16160_v4 = vld [vmem:[%s16299_s13 + $0x68] sm:$0xff]  }
 0x202   : > { %v6026_v5 = vmax.f32 %v6022_v1, %v6023_v59  ;;  %v4522_v16 = vpop.f32.mrb[13].mxu0  ;;  %v11039_v59 = vshll.u32 %v16153_v56, 16  ;;  %v11049_v8 = vrot.slane %v11047_v3, 1  ;;  %v9728_v10 = vshrl.u32 %v16160_v4, 16  ;;  %v16176_v3 = vld [vmem:[%s17921_s2 + $0xd8] sm:$0xff]  }
 0x203   : > { %v14367_v24 = vpop.f32.mrb[14].mxu0  ;;  %15005 = vmatmul.mubr.msk.bf16.gmra.mrb[28].mxu1 %vm297_vm0, %v16139_v17  ;;  %14871 = vmatpush3.bf16.msra.mxu0 %v16141_v23  ;;  %v16163_v17 = vld [vmem:[%s16291_s8 + $0x70] sm:$0xff]  }
 0x204   : > { %v6028_v21 = vadd.f32 %v16221_v20, %v6026_v5  ;;  %v4525_v27 = vpop.f32.mrb[15].mxu0  ;;  %15013 = vmatpush3.bf16.msra.mxu1 %v16140_v18  ;;  %14880 = vmatprep.subr.bf16.mxu0 %v16147_v42  ;;  %v11041_v1 = vrot.slane %v11039_v59, 1  ;;  %v9737_v18 = vrot.slane %v9735_v13, 1  ;;  %v11200_v23 = vshll.u32 %v16163_v17, 16  ;;  %v16165_v24 = vld [vmem:[%s17921_s2 + $0xc0] sm:$0xff]   ;;  %v16175_v59 = vld [vmem:[%s17921_s2 + $0xd0] sm:$0xff]  }
 0x205   : > { %15014 = vmatprep.subr.bf16.mxu1 %v16142_v25  ;;  %15016 = vmatprep.mubr.msk.bf16.mxu1 %vm297_vm0, %v11026_v48  ;;  %v9751_v48 = vshll.u32 %v16170_v41, 16  ;;  %v16184_v13 = vld [vmem:[%s17921_s2 + $0xe8] sm:$0xff]  }
 0x206   : > { %v14510_v12 = vpop.f32.mrb[12].mxu1  ;;  %v6030_v32 = vmax.f32 %v6028_v21, 0.0  ;;  %14873 = vmatmul.mubr.msk.bf16.vlgmr.msra.gmra.mrb[24].mxu0 %vm297_vm0, %v16146_v37  ;;  %v11042_v5 = vsel %vm537_vm1, %v11037_v58, %v11041_v1  ;;  %v11045_v6 = vor.u32 %v11043_v62, %v11041_v1  ;;  %v16168_v37 = vld [vmem:[%s17921_s2 + $0xc8] sm:$0xff]  }
 0x207   : > { %v6025_v14 = vmax.f32 %v14366_v11, %v14510_v12  ;;  %v6001_v19 = vpop.f32.mrb[13].mxu1  ;;  %14881 = vmatpush3.bf16.msra.mxu0 %v16147_v42  ;;  %14876 = vmatprep.mubr.msk.bf16.mxu0 %vm297_vm0, %v16152_v55  ;;  %v9730_v11 = vshll.u32 %v16160_v4, 16  ;;  %v9753_v55 = vrot.slane %v9751_v48, 1  ;;  %v16174_v58 = vld [vmem:[%s16291_s8 + $0x88] ss:$0 sps:$4 sm:$0x11]  }
 0x208   : > { %v6024_v22 = vmax.f32 %v4522_v16, %v6001_v19  ;;  %v14511_v26 = vpop.f32.mrb[14].mxu1  ;;  %15015 = vmatpush3.bf16.msra.mxu1 %v16142_v25  ;;  %14882 = vmatprep.subr.bf16.mxu0 %v16150_v51  ;;  %v11050_v12 = vsel %vm537_vm1, %v11045_v6, %v11049_v8  ;;  %v16162_v16 = vld [vmem:[%s16291_s8 + $0x68] sm:$0xff]   ;;  %v16164_v19 = vld [vmem:[%s16299_s13 + $0x78] sm:$0xff]  }
 0x209   : > { %v6004_v30 = vpop.f32.mrb[15].mxu1  ;;  %15024 = vmatprep.subr.bf16.mxu1 %v16149_v47  ;;  %v9732_v15 = vrot.slane %v9730_v11, 1  ;;  %v11193_v21 = vshrl.u32 %v16162_v16, 16  ;;  %v11204_v26 = vshrl.u32 %v16163_v17, 16  ;;  %v9743_v27 = vshll.u32 %v16164_v19, 16  ;;  %v16182_v11 = vld [vmem:[%s16291_s8 + $0x78] sm:$0xff]  }
 0x20a   : > { %v6027_v29 = vmax.f32 %v6024_v22, %v6025_v14  ;;  %v9739_v14 = vshrl.u32 %v16161_v9, 16  ;;  %v11195_v22 = vshll.u32 %v16162_v16, 16  ;;  %v11202_v30 = vrot.slane %v11200_v23, 1  ;;  %v16181_v9 = vld [vmem:[%s17921_s2 + $0xe0] sm:$0xff]   ;;  %v16185_v16 = vld [vmem:[%s17921_s2 + $0xe8] sm:$0xff]   ;;  %v16189_v17 = vld [vmem:[%s17921_s2 + $0xf0] sm:$0xff]  }
 0x20b   : > { %15017 = vmatmul.mubr.msk.bf16.vlgmr.msra.gmra.mrb[24].mxu1 %vm297_vm0, %v11034_v57  ;;  %14883 = vmatpush3.bf16.msra.mxu0 %v16150_v51  ;;  %v9747_v42 = vshrl.u32 %v16164_v19, 16  ;;  %v16173_v51 = vld [vmem:[%s17921_s2 + $0xd0] sm:$0xff]   ;;  %v9759_v57 = vshll.u32 %v16172_v50, 16  ;;  %v9757_v62 = vor.u32 %v9755_v53, %v9753_v55  ;;  %v16190_v19 = vld [vmem:[%s16291_s8 + $0x88] sm:$0xff]  }
 0x20c   : > { %v6029_v33 = vadd.f32 %v16221_v20, %v6027_v29  ;;  %15025 = vmatpush3.bf16.msra.mxu1 %v16149_v47  ;;  %14884 = vmatprep.subr.bf16.mxu0 %v16155_v61  ;;  %v9733_v20 = vor.u32 %v9732_v15, %v9728_v10  ;;  %v9741_v25 = vor.u32 %v9739_v14, %v9737_v18  ;;  %v11197_v29 = vrot.slane %v11195_v22, 1  ;;  %v16180_v10 = vld [vmem:[%s16299_s13 + $0x78] sm:$0xff]   ;;  %v16186_v14 = vld [vmem:[%s16299_s13 + $0x80] sm:$0xff]   ;;  %v16194_v23 = vld [vmem:[%s16291_s8 + $0x70] sm:$0xff]  }
 0x20d   : > { %15026 = vmatprep.subr.bf16.mxu1 %v16151_v52  ;;  %15020 = vmatprep.mubr.msk.bf16.mxu1 %vm297_vm0, %v11042_v5  ;;  %v11206_v35 = vor.u32 %v11204_v26, %v11202_v30  ;;  %v9761_v63 = vrot.slane %v9759_v57, 1  ;;  %v16177_v5 = vld [vmem:[%s17921_s2 + $0xd8] sm:$0xff]   ;;  %v16187_v15 = vld [vmem:[%s16291_s8 + $0x80] sm:$0xff]   ;;  %v16206_v50 = vld [vmem:[%s17921_s2 + $0x110] sm:$0xff]  }
 0x20e   : > { %v6031_v38 = vmax.f32 %v6029_v33, 0.0  ;;  %14877 = vmatmul.mubr.msk.bf16.gmra.mrb[28].mxu0 %vm297_vm0, %v16154_v60  ;;  %v9738_v28 = vsel %vm537_vm1, %v9733_v20, %v9737_v18  ;;  %v9745_v33 = vrot.slane %v9743_v27, 1  ;;  %v11198_v34 = vor.u32 %v11197_v29, %v11193_v21  ;;  %v16188_v18 = vld [vmem:[%s16299_s13 + $0x88] sm:$0xff]   ;;  %v16191_v20 = vld [vmem:[%s17921_s2 + $0xf0] sm:$0xff]   ;;  %v16192_v21 = vld [vmem:[%s17921_s2 + $0xf8] sm:$0xff]  }
 0x20f   : > { %14885 = vmatpush3.bf16.msra.mxu0 %v16155_v61  ;;  %14888 = vmatprep.mubr.msk.bf16.mxu0 %vm297_vm0, %v9738_v28  ;;  %v11211_v46 = vsel %vm537_vm1, %v11206_v35, %v11210_v40  ;;  %v9762_v4 = vsel %vm537_vm1, %v9757_v62, %v9761_v63  ;;  %v16193_v22 = vld [vmem:[%s17921_s2 + $0xf8] sm:$0xff]   ;;  %v16200_v35 = vld [vmem:[%s17921_s2 + $0x100] sm:$0xff]   ;;  %v16208_v53 = vld [vmem:[%s17921_s2 + $0x110] sm:$0xff]  }
 0x210   : > { %v13345_v43 = vpack.c.bf16 %v6031_v38, %v6030_v32  ;;  %15027 = vmatpush3.bf16.msra.mxu1 %v16151_v52  ;;  %14886 = vmatprep.subr.bf16.mxu0 %v16158_v2  ;;  %v16167_v32 = vld [vmem:[%s17921_s2 + $0xc0] sm:$0xff]   ;;  %v9746_v38 = vsel %vm537_vm1, %v9741_v25, %v9745_v33  ;;  %v11203_v39 = vsel %vm537_vm1, %v11198_v34, %v11202_v30  ;;  %v16196_v25 = vld [vmem:[%s16299_s13 + $0x78] sm:$0xff]   ;;  %v16211_v57 = vld [vmem:[%s16299_s13 + $0x70] sm:$0xff]  }
 0x211   : > { %15028 = vmatprep.subr.bf16.mxu1 %v16157_v0  ;;  %v9749_v47 = vor.u32 %v9747_v42, %v9745_v33  ;;  %v11214_v52 = vor.u32 %v11212_v45, %v11210_v40  ;;  %v16197_v26 = vld [vmem:[%s16291_s8 + $0x78] sm:$0xff]   ;;  %v11514_v29 = vshll.u32 %v16196_v25, 16  ;;  %v11518_v30 = vshrl.u32 %v16196_v25, 16  ;;  %v16199_v34 = vld [vmem:[%s16299_s13 + $0x80] sm:$0xff]   ;;  %v16202_v40 = vld [vmem:[%s17921_s2 + $0x108] sm:$0xff]  }
 0x212   : > { %13357 = vst [vmem:[%s17298_s21 + $0x8] sm:$0xff] %v13345_v43   ;;  %v16171_v43 = vld [vmem:[%s16291_s8 + $0x80] sm:$0xff]   ;;  %v11526_v41 = vshrl.u32 %v16199_v34, 16  ;;  %v16204_v45 = vld [vmem:[%s16299_s13 + $0x88] sm:$0xff]   ;;  %v16212_v62 = vld [vmem:[%s16299_s13 + $0x78] sm:$0xff]   ;;  %v10203_v63 = vshrl.u32 %v16211_v57, 16 }
 0x213   : > { %15021 = vmatmul.mubr.msk.bf16.gmra.mrb[28].mxu1 %vm297_vm0, %v11050_v12  ;;  %14887 = vmatpush3.bf16.msra.mxu0 %v16158_v2  ;;  %v11216_v49 = vshll.u32 %v16171_v43, 16  ;;  %v11220_v54 = vshrl.u32 %v16171_v43, 16  ;;  %v9754_v60 = vsel %vm537_vm1, %v9749_v47, %v9753_v55  ;;  %v11224_v2 = vshll.u32 %v16174_v58, 16  ;;  %v16183_v12 = vld [vmem:[%s17921_s2 + $0xe0] sm:$0xff]   ;;  %v16209_v55 = vld [vmem:[%s17921_s2 + $0x118] sm:$0xff]  }
 0x214   : > { %15029 = vmatpush3.bf16.msra.mxu1 %v16157_v0  ;;  %14896 = vmatprep.subr.bf16.mxu0 %v16165_v24  ;;  %v16178_v0 = vld [vmem:[%s16299_s13 + $0x70] sm:$0xff]   ;;  %v11516_v33 = vrot.slane %v11514_v29, 1  ;;  %v11530_v48 = vshll.u32 %v16204_v45, 16 }
 0x215   : > { %15030 = vmatprep.subr.bf16.mxu1 %v16159_v7  ;;  %15032 = vmatprep.mubr.msk.bf16.mxu1 %vm297_vm0, %v11203_v39  ;;  %v11218_v56 = vrot.slane %v11216_v49, 1  ;;  %v11226_v6 = vrot.slane %v11224_v2, 1  ;;  %v16201_v39 = vld [vmem:[%s17921_s2 + $0x108] sm:$0xff]   ;;  %v10210_v2 = vshll.u32 %v16212_v62, 16 }
 0x216   : > { %14889 = vmatmul.mubr.msk.bf16.vlgmr.msra.gmra.mrb[24].mxu0 %vm297_vm0, %v9746_v38  ;;  %v11522_v38 = vshll.u32 %v16199_v34, 16  ;;  %v16205_v49 = vld [vmem:[%s16291_s8 + $0x88] sm:$0xff]  }
 0x217   : > { %14897 = vmatpush3.bf16.msra.mxu0 %v16165_v24  ;;  %v11219_v61 = vsel %vm537_vm1, %v11214_v52, %v11218_v56  ;;  %14892 = vmatprep.mubr.msk.bf16.mxu0 %vm297_vm0, %v9754_v60  ;;  %v11222_v1 = vor.u32 %v11220_v54, %v11218_v56  ;;  %v16195_v24 = vld [vmem:[%s16299_s13 + $0x70] sm:$0xff]   ;;  %v11532_v54 = vrot.slane %v11530_v48, 1  ;;  %v16210_v60 = vld [vmem:[%s17921_s2 + $0x118] sm:$0xff]  }
 0x218   : > { %15031 = vmatpush3.bf16.msra.mxu1 %v16159_v7  ;;  %14898 = vmatprep.subr.bf16.mxu0 %v16168_v37  ;;  %v16179_v7 = vld [vmem:[%s16291_s8 + $0x70] sm:$0xff]   ;;  %v11507_v27 = vshrl.u32 %v16195_v24, 16  ;;  %v11509_v28 = vshll.u32 %v16195_v24, 16  ;;  %v11524_v43 = vrot.slane %v11522_v38, 1  ;;  %v16218_v24 = vld [vmem:[%s16291_s8 + $0x88] sm:$0xff]  }
 0x219   : > { %15040 = vmatprep.subr.bf16.mxu1 %v16167_v32  ;;  %v11227_v8 = vsel %vm537_vm1, %v11222_v1, %v11226_v6  ;;  %v16207_v52 = vld [vmem:[%s16299_s13 + $0x90] ss:$0 sps:$4 sm:$0x11]   ;;  %v16214_v6 = vld [vmem:[%s16291_s8 + $0x78] sm:$0xff]  }
 0x21a   : > { %v11528_v47 = vor.u32 %v11526_v41, %v11524_v43  ;;  %v11538_v56 = vshll.u32 %v16207_v52, 16 }
 0x21b   : > { %15033 = vmatmul.mubr.msk.bf16.vlgmr.msra.gmra.mrb[24].mxu1 %vm297_vm0, %v11211_v46  ;;  %14899 = vmatpush3.bf16.msra.mxu0 %v16168_v37  ;;  %v11520_v37 = vor.u32 %v11518_v30, %v11516_v33 }
 0x21c   : > { %15041 = vmatpush3.bf16.msra.mxu1 %v16167_v32  ;;  %14900 = vmatprep.subr.bf16.mxu0 %v16173_v51  ;;  %v11511_v32 = vrot.slane %v11509_v28, 1  ;;  %v11533_v58 = vsel %vm537_vm1, %v11528_v47, %v11532_v54 }
 0x21d   : > { %15042 = vmatprep.subr.bf16.mxu1 %v16169_v44  ;;  %15036 = vmatprep.mubr.msk.bf16.mxu1 %vm297_vm0, %v11219_v61  ;;  %v11525_v46 = vsel %vm537_vm1, %v11520_v37, %v11524_v43  ;;  %v11540_v61 = vrot.slane %v11538_v56, 1 }
 0x21e   : > { %14893 = vmatmul.mubr.msk.bf16.gmra.mrb[28].mxu0 %vm297_vm0, %v9762_v4  ;;  %v11512_v36 = vor.u32 %v11511_v32, %v11507_v27  ;;  %v11707_v32 = vshll.u32 %v16218_v24, 16 }
 0x21f   : > { %14901 = vmatpush3.bf16.msra.mxu0 %v16173_v51  ;;  %14904 = vmatprep.mubr.msk.bf16.mxu0 %vm297_vm0, %v16178_v0  ;;  %v11534_v51 = vshrl.u32 %v16204_v45, 16  ;;  %v10205_v0 = vshll.u32 %v16211_v57, 16 }
 0x220   : > { %15043 = vmatpush3.bf16.msra.mxu1 %v16169_v44  ;;  %14902 = vmatprep.subr.bf16.mxu0 %v16176_v3  ;;  %v11517_v42 = vsel %vm537_vm1, %v11512_v36, %v11516_v33  ;;  %v16203_v44 = vld [vmem:[%s16291_s8 + $0x80] sm:$0xff]   ;;  %v16219_v33 = vld [vmem:[%s16299_s13 + $0x90] ss:$0 sps:$4 sm:$0x11]  }
 0x221   : > { %15044 = vmatprep.subr.bf16.mxu1 %v16175_v59  ;;  %v10207_v4 = vrot.slane %v10205_v0, 1  ;;  %v10234_v41 = vshll.u32 %v16219_v33, 16 }
 0x223   : > { %15037 = vmatmul.mubr.msk.bf16.gmra.mrb[28].mxu1 %vm297_vm0, %v11227_v8  ;;  %14903 = vmatpush3.bf16.msra.mxu0 %v16176_v3  ;;  %v10214_v3 = vshrl.u32 %v16212_v62, 16  ;;  %v16215_v8 = vld [vmem:[%s16299_s13 + $0x80] sm:$0xff]   ;;  %v10236_v47 = vrot.slane %v10234_v41, 1 }
 0x224   : > { %15045 = vmatpush3.bf16.msra.mxu1 %v16175_v59  ;;  %15048 = vmatprep.mubr.msk.bf16.mxu1 %vm297_vm0, %v16179_v7  ;;  %v11536_v59 = vor.u32 %v11534_v51, %v11532_v54  ;;  %v10212_v7 = vrot.slane %v10210_v2, 1 }
 0x225   : > { %15046 = vmatprep.subr.bf16.mxu1 %v16177_v5  ;;  %14912 = vmatprep.subr.bf16.mxu0 %v16181_v9 }
 0x226   : > { %14905 = vmatmul.mubr.msk.bf16.vlgmr.msra.gmra.mrb[24].mxu0 %vm297_vm0, %v16180_v10  ;;  %v11541_v1 = vsel %vm537_vm1, %v11536_v59, %v11540_v61 }
 0x227   : > { %14913 = vmatpush3.bf16.msra.mxu0 %v16181_v9  ;;  %14908 = vmatprep.mubr.msk.bf16.mxu0 %vm297_vm0, %v16186_v14  ;;  %v10208_v9 = vor.u32 %v10207_v4, %v10203_v63  ;;  %v10216_v14 = vor.u32 %v10214_v3, %v10212_v7 }
 0x228   : > { %15047 = vmatpush3.bf16.msra.mxu1 %v16177_v5  ;;  %14914 = vmatprep.subr.bf16.mxu0 %v16184_v13  ;;  %v16213_v5 = vld [vmem:[%s16291_s8 + $0x70] sm:$0xff]  }
 0x229   : > { %15056 = vmatprep.subr.bf16.mxu1 %v16183_v12  ;;  %v11684_v10 = vshrl.u32 %v16213_v5, 16 }
 0x22b   : > { %15049 = vmatmul.mubr.msk.bf16.vlgmr.msra.gmra.mrb[24].mxu1 %vm297_vm0, %v16182_v11  ;;  %14915 = vmatpush3.bf16.msra.mxu0 %v16184_v13  ;;  %v11686_v11 = vshll.u32 %v16213_v5, 16  ;;  %v16216_v13 = vld [vmem:[%s16291_s8 + $0x80] sm:$0xff]  }
 0x22c   : > { %15057 = vmatpush3.bf16.msra.mxu1 %v16183_v12  ;;  %15052 = vmatprep.mubr.msk.bf16.mxu1 %vm297_vm0, %v16187_v15  ;;  %v11691_v12 = vshll.u32 %v16214_v6, 16  ;;  %v11695_v15 = vshrl.u32 %v16214_v6, 16  ;;  %v11703_v25 = vshrl.u32 %v16216_v13, 16 }
 0x22d   : > { %15058 = vmatprep.subr.bf16.mxu1 %v16185_v16  ;;  %14916 = vmatprep.subr.bf16.mxu0 %v16189_v17 }
 0x22e   : > { %14909 = vmatmul.mubr.msk.bf16.gmra.mrb[28].mxu0 %vm297_vm0, %v16188_v18  ;;  %v11688_v18 = vrot.slane %v11686_v11, 1 }
 0x22f   : > { %14917 = vmatpush3.bf16.msra.mxu0 %v16189_v17  ;;  %14920 = vmatprep.mubr.msk.bf16.mxu0 %vm297_vm0, %v16194_v23  ;;  %v10213_v17 = vsel %vm537_vm1, %v10208_v9, %v10212_v7  ;;  %v10222_v23 = vshrl.u32 %v16215_v8, 16  ;;  %v16222_v9 = vld [vmem:[%s17922_s3] ss:$0 sm:$0xff] }
 0x230   : > { %15059 = vmatpush3.bf16.msra.mxu1 %v16185_v16  ;;  %14918 = vmatprep.subr.bf16.mxu0 %v16192_v21  ;;  %v10218_v16 = vshll.u32 %v16215_v8, 16 }
 0x231   : > { %15060 = vmatprep.subr.bf16.mxu1 %v16191_v20 }
 0x233   : > { %15053 = vmatmul.mubr.msk.bf16.gmra.mrb[28].mxu1 %vm297_vm0, %v16190_v19  ;;  %14919 = vmatpush3.bf16.msra.mxu0 %v16192_v21  ;;  %v11693_v19 = vrot.slane %v11691_v12, 1  ;;  %v16217_v21 = vld [vmem:[%s16299_s13 + $0x88] sm:$0xff]  }
 0x234   : > { %15061 = vmatpush3.bf16.msra.mxu1 %v16191_v20  ;;  %14928 = vmatprep.subr.bf16.mxu0 %v16198_v31  ;;  %v11699_v20 = vshll.u32 %v16216_v13, 16  ;;  %v10226_v29 = vshll.u32 %v16217_v21, 16  ;;  %v10230_v34 = vshrl.u32 %v16217_v21, 16 }
 0x235   : > { %15062 = vmatprep.subr.bf16.mxu1 %v16193_v22  ;;  %15064 = vmatprep.mubr.msk.bf16.mxu1 %vm297_vm0, %v11517_v42  ;;  %v11697_v27 = vor.u32 %v11695_v15, %v11693_v19  ;;  %v11711_v42 = vshrl.u32 %v16218_v24, 16 }
 0x236   : > { %14921 = vmatmul.mubr.msk.bf16.vlgmr.msra.gmra.mrb[24].mxu0 %vm297_vm0, %v16197_v26  ;;  %v11689_v26 = vor.u32 %v11688_v18, %v11684_v10  ;;  %v11701_v28 = vrot.slane %v11699_v20, 1  ;;  %v10228_v37 = vrot.slane %v10226_v29, 1 }
 0x237   : > { %14929 = vmatpush3.bf16.msra.mxu0 %v16198_v31  ;;  %14924 = vmatprep.mubr.msk.bf16.mxu0 %vm297_vm0, %v16203_v44 }
 0x238   : > { %15063 = vmatpush3.bf16.msra.mxu1 %v16193_v22  ;;  %14930 = vmatprep.subr.bf16.mxu0 %v16201_v39  ;;  %v10220_v22 = vrot.slane %v10218_v16, 1  ;;  %v11702_v36 = vsel %vm537_vm1, %v11697_v27, %v11701_v28  ;;  %v11705_v38 = vor.u32 %v11703_v25, %v11701_v28  ;;  %v10232_v44 = vor.u32 %v10230_v34, %v10228_v37 }
 0x239   : > { %15072 = vmatprep.subr.bf16.mxu1 %v16200_v35 }
 0x23a   : > { %v10221_v30 = vsel %vm537_vm1, %v10216_v14, %v10220_v22  ;;  %v10224_v31 = vor.u32 %v10222_v23, %v10220_v22 }
 0x23b   : > { %15065 = vmatmul.mubr.msk.bf16.vlgmr.msra.gmra.mrb[24].mxu1 %vm297_vm0, %v11525_v46  ;;  %14931 = vmatpush3.bf16.msra.mxu0 %v16201_v39  ;;  %v16220_v39 = vld [vmem:[%s16291_s8 + $0x90] ss:$0 sps:$4 sm:$0x11]  }
 0x23c   : > { %15073 = vmatpush3.bf16.msra.mxu1 %v16200_v35  ;;  %14932 = vmatprep.subr.bf16.mxu0 %v16206_v50  ;;  %v11694_v35 = vsel %vm537_vm1, %v11689_v26, %v11693_v19  ;;  %v10229_v43 = vsel %vm537_vm1, %v10224_v31, %v10228_v37  ;;  %v11715_v45 = vshll.u32 %v16220_v39, 16 }
 0x23d   : > { %15074 = vmatprep.subr.bf16.mxu1 %v16202_v40  ;;  %15068 = vmatprep.mubr.msk.bf16.mxu1 %vm297_vm0, %v11533_v58 }
 0x23e   : > { %14925 = vmatmul.mubr.msk.bf16.gmra.mrb[28].mxu0 %vm297_vm0, %v16205_v49  ;;  %v11717_v49 = vrot.slane %v11715_v45, 1 }
 0x23f   : > { %14933 = vmatpush3.bf16.msra.mxu0 %v16206_v50  ;;  %14936 = vmatprep.mubr.msk.bf16.mxu0 %vm297_vm0, %v10213_v17  ;;  %v10237_v50 = vsel %vm537_vm1, %v10232_v44, %v10236_v47 }
 0x240   : > { %15075 = vmatpush3.bf16.msra.mxu1 %v16202_v40  ;;  %14934 = vmatprep.subr.bf16.mxu0 %v16209_v55  ;;  %v11709_v40 = vrot.slane %v11707_v32, 1 }
 0x241   : > { %15076 = vmatprep.subr.bf16.mxu1 %v16208_v53 }
 0x242   : > { %v11710_v46 = vsel %vm537_vm1, %v11705_v38, %v11709_v40  ;;  %v11713_v48 = vor.u32 %v11711_v42, %v11709_v40 }
 0x243   : > { %15069 = vmatmul.mubr.msk.bf16.gmra.mrb[28].mxu1 %vm297_vm0, %v11541_v1  ;;  %14935 = vmatpush3.bf16.msra.mxu0 %v16209_v55 }
 0x244   : > { %15077 = vmatpush3.bf16.msra.mxu1 %v16208_v53  ;;  %15080 = vmatprep.mubr.msk.bf16.mxu1 %vm297_vm0, %v11694_v35  ;;  %v11718_v51 = vsel %vm537_vm1, %v11713_v48, %v11717_v49 }
 0x245   : > { %15078 = vmatprep.subr.bf16.mxu1 %v16210_v60 }
 0x246   : > { %14937 = vmatmul.mubr.msk.bf16.vlgmr.msra.gmra.mrb[24].mxu0 %vm297_vm0, %v10221_v30 }
 0x247   : > { %14940 = vmatprep.mubr.msk.bf16.mxu0 %vm297_vm0, %v10229_v43 }
 0x248   : > { %15079 = vmatpush3.bf16.msra.mxu1 %v16210_v60 }
 0x24b   : > { %15081 = vmatmul.mubr.msk.bf16.vlgmr.msra.gmra.mrb[24].mxu1 %vm297_vm0, %v11702_v36 }
 0x24c   : > { %15084 = vmatprep.mubr.msk.bf16.mxu1 %vm297_vm0, %v11710_v46 }
 0x24e   : > { %14941 = vmatmul.mubr.msk.bf16.gmra.mrb[28].mxu0 %vm297_vm0, %v10237_v50 }
 0x253   : > { %15085 = vmatmul.mubr.msk.bf16.gmra.mrb[28].mxu1 %vm297_vm0, %v11718_v51 }
 0x289   : > { %v14650_v52 = vpop.f32.mrb[16].mxu0 }
 0x28a   : > { %v7407_v53 = vpop.f32.mrb[17].mxu0 }
 0x28b   : > { %v14651_v55 = vpop.f32.mrb[18].mxu0 }
 0x28c   : > { %v7410_v58 = vpop.f32.mrb[19].mxu0 }
 0x28e   : > { %v14794_v54 = vpop.f32.mrb[16].mxu1 }
 0x28f   : > { %v8924_v56 = vmax.f32 %v14650_v52, %v14794_v54  ;;  %v8888_v57 = vpop.f32.mrb[17].mxu1 }
 0x290   : > { %v8923_v59 = vmax.f32 %v7407_v53, %v8888_v57  ;;  %v14795_v60 = vpop.f32.mrb[18].mxu1 }
 0x291   : > { %v8891_v61 = vpop.f32.mrb[19].mxu1  ;;  %v14654_v63 = vpop.f32.mrb[20].mxu0 }
 0x292   : > { %v8927_v62 = vmax.f32 %v8923_v59, %v8924_v56  ;;  %v7423_v1 = vpop.f32.mrb[21].mxu0 }
 0x293   : > { %v14655_v4 = vpop.f32.mrb[22].mxu0 }
 0x294   : > { %v7426_v7 = vpop.f32.mrb[23].mxu0  ;;  %v8929_v10 = vadd.f32 %v16222_v9, %v8927_v62 }
 0x296   : > { %v14798_v0 = vpop.f32.mrb[20].mxu1  ;;  %v8931_v13 = vmax.f32 %v8929_v10, 0.0 }
 0x297   : > { %v8926_v2 = vmax.f32 %v14654_v63, %v14798_v0  ;;  %v8902_v3 = vpop.f32.mrb[21].mxu1 }
 0x298   : > { %v8925_v5 = vmax.f32 %v7423_v1, %v8902_v3  ;;  %v14799_v6 = vpop.f32.mrb[22].mxu1 }
 0x299   : > { %v8905_v8 = vpop.f32.mrb[23].mxu1 }
 0x29a   : > { %v8928_v11 = vmax.f32 %v8925_v5, %v8926_v2 }
 0x29c   : > { %v8930_v12 = vadd.f32 %v16222_v9, %v8928_v11 }
 0x29e   : > { %v8932_v14 = vmax.f32 %v8930_v12, 0.0 }
 0x2a0   : > { %v13350_v15 = vpack.c.bf16 %v8932_v14, %v8931_v13 }
 0x2a2   : > { %13358 = vst [vmem:[%s17298_s21 + $0x10] sm:$0xff] %v13350_v15  }
 0x319   : > { %v14938_v16 = vpop.f32.mrb[24].mxu0 }
 0x31a   : > { %v10308_v17 = vpop.f32.mrb[25].mxu0 }
 0x31b   : > { %v14939_v19 = vpop.f32.mrb[26].mxu0 }
 0x31c   : > { %v10311_v22 = vpop.f32.mrb[27].mxu0 }
 0x31e   : > { %v15082_v18 = vpop.f32.mrb[24].mxu1 }
 0x31f   : > { %v11825_v20 = vmax.f32 %v14938_v16, %v15082_v18  ;;  %v11789_v21 = vpop.f32.mrb[25].mxu1 }
 0x320   : > { %v11824_v23 = vmax.f32 %v10308_v17, %v11789_v21  ;;  %v15083_v24 = vpop.f32.mrb[26].mxu1 }
 0x321   : > { %v11792_v25 = vpop.f32.mrb[27].mxu1  ;;  %v14942_v27 = vpop.f32.mrb[28].mxu0 }
 0x322   : > { %v11828_v26 = vmax.f32 %v11824_v23, %v11825_v20  ;;  %v10324_v28 = vpop.f32.mrb[29].mxu0 }
 0x323   : > { %v14943_v30 = vpop.f32.mrb[30].mxu0 }
 0x324   : > { %v10327_v33 = vpop.f32.mrb[31].mxu0  ;;  %v11830_v37 = vadd.f32 %v16222_v9, %v11828_v26 }
 0x326   : > { %v15086_v29 = vpop.f32.mrb[28].mxu1  ;;  %v11832_v40 = vmax.f32 %v11830_v37, 0.0 }
 0x327   : > { %v11827_v31 = vmax.f32 %v14942_v27, %v15086_v29  ;;  %v11803_v32 = vpop.f32.mrb[29].mxu1 }
 0x328   : > { %v11826_v34 = vmax.f32 %v10324_v28, %v11803_v32  ;;  %v15087_v35 = vpop.f32.mrb[30].mxu1 }
 0x329   : > { %v11806_v36 = vpop.f32.mrb[31].mxu1 }
 0x32a   : > { %v11829_v38 = vmax.f32 %v11826_v34, %v11827_v31 }
 0x32c   : > { %v11831_v39 = vadd.f32 %v16222_v9, %v11829_v38 }
 0x32e   : > { %v11833_v41 = vmax.f32 %v11831_v39, 0.0 }
 0x330   : > { %v13355_v42 = vpack.c.bf16 %v11833_v41, %v11832_v40 }
 0x332   : > { %13359 = vst [vmem:[%s17298_s21 + $0x18] sm:$0xff] %v13355_v42  }
 0x333 PF: > { %s14_s15 = sadd.s32 1, %s16229_s15  }
 0x334   : > { %p11_p4 = scmp.ge.s32.totalorder %s14_s15, 4  }
 0x336   :  { %13 = sbr.rel (!%p11_p4) target bundleno = 1 (0x1), region = 80 }

</bundles_post_ra>
